<compile_context>
chip_gen: v7x
topology: tpu7x:2x2x1
jax: 0.10.0
libtpu: 0.0.40
codegen_flags: <defaults>
</compile_context>

<pallas_src>
import jax
import jax.numpy as jnp
from jax.experimental import pallas as pl
from jax.experimental.pallas import tpu as pltpu

LPAD = 8     # interior of padded activations starts at sublane offset 8 (tile aligned)
LANE = 128   # MXU K-tile / lane width


def _round_up(n, m):
    return ((n + m - 1) // m) * m


# ---------------------------------------------------------------------------
# One conv(3x3, pad=1) + bias + ReLU + maxpool(2,2) stage (per sample)
# ---------------------------------------------------------------------------
def _conv3x3_relu_pool(pad_ref, pat_ref, y_ref, w_ref, b_ref, write_out):
    """pad_ref : (H+2, W+LPAD+1, Cin) f32 VMEM. Interior [1:H+1, LPAD:LPAD+W] already
                 holds this layer's input; only the halo cells are zeroed here.
       pat_ref : (H*W, Kpad) VMEM im2col patches, Kpad = round_up(9*Cin, 128).
       y_ref   : (H*W, Cout) f32 VMEM raw conv output (bounds vreg live ranges).
       w_ref   : (Kpad, Cout); rows [t*Cin, (t+1)*Cin) hold tap t = 3*dy+dx, rest zero.
       b_ref   : (1, Cout) f32.
       write_out(ho, row): consume pooled+bias+ReLU row `ho`, shape (W//2, Cout), f32.
    """
    Hp, Wp, Cin = pad_ref.shape
    H, W = Hp - 2, Wp - (LPAD + 1)
    HW = H * W
    Kpad, Cout = w_ref.shape
    K = 9 * Cin

    # -- padding=1: zero only the halo cells the taps read (interior already written).
    zr = jnp.zeros((1, W + 2, Cin), jnp.float32)
    pad_ref[0:1, LPAD - 1:LPAD + W + 1, :] = zr
    pad_ref[H + 1:H + 2, LPAD - 1:LPAD + W + 1, :] = zr
    zc = jnp.zeros((H, 1, Cin), jnp.float32)
    pad_ref[1:H + 1, LPAD - 1:LPAD, :] = zc
    pad_ref[1:H + 1, LPAD + W:LPAD + W + 1, :] = zc

    # -- im2col, compact K: tap t at lane offset t*Cin.  The K round-up columns MUST be
    #    zeroed (uninitialized VMEM * zero weight can produce NaN); columns < 9*Cin are
    #    fully overwritten by the tap stores below.
    if Kpad > K:
        pat_ref[:, K:Kpad] = jnp.zeros((HW, Kpad - K), pat_ref.dtype)
    for dy in range(3):
        for dx in range(3):
            t = dy * 3 + dx
            sl = pad_ref[dy:dy + H, LPAD - 1 + dx:LPAD - 1 + dx + W, :]   # Ref slice
            pat_ref[:, t * Cin:(t + 1) * Cin] = (
                sl.reshape(HW, Cin).astype(pat_ref.dtype))

    # -- single MXU pass; park the raw result in VMEM so the epilogue reads small slabs
    #    instead of keeping the whole (HW, Cout) result live in vregs.
    y_ref[...] = jnp.dot(pat_ref[...], w_ref[...],
                         preferred_element_type=jnp.float32)

    # -- 2x2 max-pool per output row, then bias + ReLU on the pooled values
    #    (ReLU(max(x)+b) == max(ReLU(x+b)) since ReLU is monotone -> 4x fewer VPU ops).
    bias = b_ref[...]                                            # (1, Cout)
    for ho in range(H // 2):
        slab = y_ref[2 * ho * W:(2 * ho + 2) * W, :]             # (2W, Cout)
        pooled = jnp.max(slab.reshape(2, W // 2, 2, Cout), axis=(0, 2))
        write_out(ho, jnp.maximum(pooled + bias, 0.0))           # (W//2, Cout)


def _write_into(pad_next_ref):
    """Pooled output row `ho` -> interior row 1+ho of the next layer's padded scratch."""
    def write(ho, row):                                          # row: (Wo, Cout) f32
        wo = row.shape[0]
        pad_next_ref[1 + ho:2 + ho, LPAD:LPAD + wo, :] = row[None]
    return write


# ---------------------------------------------------------------------------
# Fused per-sample kernel: conv1/2/3 (+bias, ReLU, pool) + fc1 + ReLU + fc2
# ---------------------------------------------------------------------------
def _smallcnn_kernel(x_ref,
                     c1w, c1b, c2w, c2b, c3w, c3b, fc1w, fc1b, fc2w, fc2b,
                     o_ref,
                     pad1, pat1, y1, pad2, pat2, y2, pad3, pat3, y3):
    _, H, W, _ = x_ref.shape
    # Input -> interior of pad1 (tile-aligned store at sublane offset LPAD).
    pad1[1:H + 1, LPAD:LPAD + W, :] = x_ref[0]

    _conv3x3_relu_pool(pad1, pat1, y1, c1w, c1b, _write_into(pad2))   # (16,16,6)->(8,8,16)
    _conv3x3_relu_pool(pad2, pat2, y2, c2w, c2b, _write_into(pad3))   # ->(4,4,32)

    rows3 = []                                                    # 2 rows of (2, 64)
    _conv3x3_relu_pool(pad3, pat3, y3, c3w, c3b,
                       lambda ho, row: rows3.append(row))         # ->(2,2,64)

    # fc1 -> ReLU -> fc2.  fc1 weight was pre-split (once, at param-prep time) into one
    # (64-in, 64-out) block per spatial position p = h*2 + w, so the PyTorch NCHW
    # flatten order is consumed with no in-kernel transpose / sublane->lane reshape.
    acc = fc1b[...]                                               # (1, 64) f32
    for ho in range(2):
        for wi in range(2):
            xp = rows3[ho][wi:wi + 1, :].astype(fc1w.dtype)       # (1, 64)
            acc = acc + jnp.dot(xp, fc1w[ho * 2 + wi],
                                preferred_element_type=jnp.float32)
    h1 = jnp.maximum(acc, 0.0)                                    # (1, 64)
    out = jnp.sum(h1 * fc2w[...], axis=1, keepdims=True) + fc2b[...]   # fc2 on VPU/XLU
    o_ref[...] = out.reshape(1, 1, 1)


# ---------------------------------------------------------------------------
# Parameters (PyTorch-style shapes: OIHW conv, (out,in) linear) + one-time repack
# ---------------------------------------------------------------------------
def init_params(key):
    ks = jax.random.split(key, 10)

    def u(k, shape, fan_in):
        bound = 1.0 / jnp.sqrt(jnp.float32(fan_in))
        return jax.random.uniform(k, shape, jnp.float32, -bound, bound)

    return {
        "conv1_w": u(ks[0], (16, 6, 3, 3), 6 * 9),
        "conv1_b": u(ks[1], (16,), 6 * 9),
        "conv2_w": u(ks[2], (32, 16, 3, 3), 16 * 9),
        "conv2_b": u(ks[3], (32,), 16 * 9),
        "conv3_w": u(ks[4], (64, 32, 3, 3), 32 * 9),
        "conv3_b": u(ks[5], (64,), 32 * 9),
        "fc1_w": u(ks[6], (64, 256), 256),   # Linear(32*2*4 = 256, 64)
        "fc1_b": u(ks[7], (64,), 256),
        "fc2_w": u(ks[8], (1, 64), 64),      # Linear(64, 1)
        "fc2_b": u(ks[9], (1,), 64),
    }


def prepare_params(params, matmul_dtype=jnp.float32):
    """One-time repack of PyTorch-layout params into the kernel's layouts.

    matmul_dtype=jnp.bfloat16 halves weight DMA/VMEM and feeds the v6e/v7x MXU natively
    (accumulation stays f32 inside the kernel); biases and fc2 stay f32.
    """
    def conv_w(w_oihw):                               # (Cout, Cin, 3, 3)
        cout, cin = int(w_oihw.shape[0]), int(w_oihw.shape[1])
        k = 9 * cin
        kpad = _round_up(k, LANE)
        taps = jnp.transpose(w_oihw, (2, 3, 1, 0)).reshape(k, cout)   # row t*Cin + ci
        w = jnp.zeros((kpad, cout), jnp.float32).at[:k, :].set(taps)
        return w.astype(matmul_dtype)

    # PyTorch flattens the (64, 2, 2) conv3 output as j = c*4 + (h*2 + w); split fc1
    # into one (64-in, 64-out) block per spatial position p = h*2 + w.
    fc1 = params["fc1_w"]                                               # (64, 256)
    fc1_blocks = jnp.stack([fc1[:, p::4].T for p in range(4)], axis=0)  # (4, 64, 64)

    return {
        "c1w": conv_w(params["conv1_w"]), "c1b": params["conv1_b"].reshape(1, -1),
        "c2w": conv_w(params["conv2_w"]), "c2b": params["conv2_b"].reshape(1, -1),
        "c3w": conv_w(params["conv3_w"]), "c3b": params["conv3_b"].reshape(1, -1),
        "fc1w": fc1_blocks.astype(matmul_dtype),
        "fc1b": params["fc1_b"].reshape(1, -1),
        "fc2w": params["fc2_w"].reshape(1, -1),       # (1, 64), used on VPU -> stays f32
        "fc2b": params["fc2_b"].reshape(1, -1),
    }


# ---------------------------------------------------------------------------
# Forward pass: single fused pallas_call, one sample per grid step
# ---------------------------------------------------------------------------
def small_cnn_forward(prepped, x_nchw):
    x = jnp.transpose(x_nchw, (0, 2, 3, 1)).astype(jnp.float32)   # NCHW -> NHWC (tiny)
    B, H, W, Cin = x.shape
    h2, w2 = H // 2, W // 2
    h4, w4 = H // 4, W // 4
    mdt = prepped["c1w"].dtype
    k1, k2, k3 = (prepped["c1w"].shape[0], prepped["c2w"].shape[0],
                  prepped["c3w"].shape[0])

    weights = (prepped["c1w"], prepped["c1b"], prepped["c2w"], prepped["c2b"],
               prepped["c3w"], prepped["c3b"], prepped["fc1w"], prepped["fc1b"],
               prepped["fc2w"], prepped["fc2b"])

    out = pl.pallas_call(
        _smallcnn_kernel,
        out_shape=jax.ShapeDtypeStruct((B, 1, 1), jnp.float32),
        grid_spec=pltpu.PrefetchScalarGridSpec(
            num_scalar_prefetch=0,
            grid=(B,),                              # per-sample; parallel across v7x TCs
            in_specs=[pl.BlockSpec((1, H, W, Cin), lambda b: (b, 0, 0, 0))]
                     + [pl.BlockSpec(w.shape, lambda b, n=w.ndim: (0,) * n)
                        for w in weights],          # weights resident across the grid
            out_specs=pl.BlockSpec((1, 1, 1), lambda b: (b, 0, 0)),
            scratch_shapes=[
                pltpu.VMEM((H + 2, W + LPAD + 1, Cin), jnp.float32),     # pad1
                pltpu.VMEM((H * W, k1), mdt),                            # pat1
                pltpu.VMEM((H * W, 16), jnp.float32),                    # y1
                pltpu.VMEM((h2 + 2, w2 + LPAD + 1, 16), jnp.float32),    # pad2
                pltpu.VMEM((h2 * w2, k2), mdt),                          # pat2
                pltpu.VMEM((h2 * w2, 32), jnp.float32),                  # y2
                pltpu.VMEM((h4 + 2, w4 + LPAD + 1, 32), jnp.float32),    # pad3
                pltpu.VMEM((h4 * w4, k3), mdt),                          # pat3
                pltpu.VMEM((h4 * w4, 64), jnp.float32),                  # y3
            ]),
        compiler_params=pltpu.CompilerParams(
            dimension_semantics=("parallel",)),     # batch axis -> both v7x TensorCores
    )(x, *weights)
    return jnp.squeeze(out)                         # matches PyTorch x.squeeze()


# ---------------------------------------------------------------------------
# Pure-JAX reference (PyTorch semantics) for the numerical check
# ---------------------------------------------------------------------------
def reference_forward(params, x_nchw):
    x = x_nchw.astype(jnp.float32)
    for i in (1, 2, 3):
        w, b = params[f"conv{i}_w"], params[f"conv{i}_b"]
        x = jax.lax.conv_general_dilated(
            x, w, window_strides=(1, 1), padding=((1, 1), (1, 1)),
            dimension_numbers=("NCHW", "OIHW", "NCHW"))
        x = jnp.maximum(x + b[None, :, None, None], 0.0)
        x = jax.lax.reduce_window(x, -jnp.inf, jax.lax.max,
                                  (1, 1, 2, 2), (1, 1, 2, 2), "VALID")
    flat = x.reshape(x.shape[0], -1)                             # NCHW flatten
    h = jnp.maximum(flat @ params["fc1_w"].T + params["fc1_b"], 0.0)
    out = h @ params["fc2_w"].T + params["fc2_b"]
    return jnp.squeeze(out)


# ---------------------------------------------------------------------------
if __name__ == "__main__":
    key = jax.random.PRNGKey(0)
    pkey, xkey = jax.random.split(key)
    params = init_params(pkey)

    # Input: batch=2, channels=6, 16x16 spatial -> conv3 output 64*2*2 = 256 = fc1 in.
    x = jax.random.normal(xkey, (2, 6, 16, 16), jnp.float32)
    ref = reference_forward(params, x)

    # f32 MXU operands (exact path, all generations).
    out = jax.block_until_ready(jax.jit(small_cnn_forward)(prepare_params(params), x))
    assert out.shape == (2,) and out.dtype == jnp.float32, (out.shape, out.dtype)
    assert jnp.allclose(out, ref, atol=1e-3, rtol=1e-3), (out, ref)

    # bf16 MXU operands (v6e/v7x perf path), f32 accumulation in-kernel.
    out_bf16 = jax.block_until_ready(
        jax.jit(small_cnn_forward)(prepare_params(params, jnp.bfloat16), x))
    assert jnp.allclose(out_bf16, ref, atol=5e-2, rtol=5e-2), (out_bf16, ref)

    print("KERNEL_OK")
</pallas_src>

<mosaic_0001>
module attributes {stable_mosaic.version = 11 : i64} {
  func.func @_smallcnn_kernel(%arg0: i32, %arg1: memref<1x16x16x6xf32, #tpu.memory_space<vmem>>, %arg2: memref<128x16xf32, #tpu.memory_space<vmem>>, %arg3: memref<1x16xf32, #tpu.memory_space<vmem>>, %arg4: memref<256x32xf32, #tpu.memory_space<vmem>>, %arg5: memref<1x32xf32, #tpu.memory_space<vmem>>, %arg6: memref<384x64xf32, #tpu.memory_space<vmem>>, %arg7: memref<1x64xf32, #tpu.memory_space<vmem>>, %arg8: memref<4x64x64xf32, #tpu.memory_space<vmem>>, %arg9: memref<1x64xf32, #tpu.memory_space<vmem>>, %arg10: memref<1x64xf32, #tpu.memory_space<vmem>>, %arg11: memref<1x1xf32, #tpu.memory_space<vmem>>, %arg12: memref<1x1x1xf32, #tpu.memory_space<vmem>>, %arg13: memref<18x25x6xf32, #tpu.memory_space<vmem>>, %arg14: memref<256x128xf32, #tpu.memory_space<vmem>>, %arg15: memref<256x16xf32, #tpu.memory_space<vmem>>, %arg16: memref<10x17x16xf32, #tpu.memory_space<vmem>>, %arg17: memref<64x256xf32, #tpu.memory_space<vmem>>, %arg18: memref<64x32xf32, #tpu.memory_space<vmem>>, %arg19: memref<6x13x32xf32, #tpu.memory_space<vmem>>, %arg20: memref<16x384xf32, #tpu.memory_space<vmem>>, %arg21: memref<16x64xf32, #tpu.memory_space<vmem>>) attributes {dimension_semantics = [#tpu.dimension_semantics<parallel>], iteration_bounds = array<i64: 2>, scalar_prefetch = 0 : i64, scratch_operands = 9 : i64, tpu.core_type = #tpu.core_type<tc>, window_params = [{transform_indices = @transform_0, window_bounds = array<i64: 1, 16, 16, 6>}, {pipeline_mode = #tpu.pipeline_mode<synchronous>, transform_indices = @transform_1, window_bounds = array<i64: 128, 16>}, {pipeline_mode = #tpu.pipeline_mode<synchronous>, transform_indices = @transform_2, window_bounds = array<i64: 1, 16>}, {pipeline_mode = #tpu.pipeline_mode<synchronous>, transform_indices = @transform_3, window_bounds = array<i64: 256, 32>}, {pipeline_mode = #tpu.pipeline_mode<synchronous>, transform_indices = @transform_4, window_bounds = array<i64: 1, 32>}, {pipeline_mode = #tpu.pipeline_mode<synchronous>, transform_indices = @transform_5, window_bounds = array<i64: 384, 64>}, {pipeline_mode = #tpu.pipeline_mode<synchronous>, transform_indices = @transform_6, window_bounds = array<i64: 1, 64>}, {pipeline_mode = #tpu.pipeline_mode<synchronous>, transform_indices = @transform_7, window_bounds = array<i64: 4, 64, 64>}, {pipeline_mode = #tpu.pipeline_mode<synchronous>, transform_indices = @transform_8, window_bounds = array<i64: 1, 64>}, {pipeline_mode = #tpu.pipeline_mode<synchronous>, transform_indices = @transform_9, window_bounds = array<i64: 1, 64>}, {pipeline_mode = #tpu.pipeline_mode<synchronous>, transform_indices = @transform_10, window_bounds = array<i64: 1, 1>}, {transform_indices = @transform_11, window_bounds = array<i64: 1, 1, 1>}]} {
    %c0 = arith.constant 0 : index
    %c0_0 = arith.constant 0 : index
    %c0_1 = arith.constant 0 : index
    %c0_2 = arith.constant 0 : index
    %0 = vector.load %arg1[%c0, %c0_0, %c0_1, %c0_2] : memref<1x16x16x6xf32, #tpu.memory_space<vmem>>, vector<1x16x16x6xf32>
    %1 = vector.shape_cast %0 : vector<1x16x16x6xf32> to vector<16x16x6xf32>
    %c1 = arith.constant 1 : index
    %c8 = arith.constant 8 : index
    %c0_3 = arith.constant 0 : index
    %2 = vector.load %arg13[%c1, %c8, %c0_3] : memref<18x25x6xf32, #tpu.memory_space<vmem>>, vector<16x16x6xf32>
    tpu.vector_store %arg13[%c1, %c8, %c0_3], %1 {strides = array<i32>} : memref<18x25x6xf32, #tpu.memory_space<vmem>>, vector<16x16x6xf32>,
    %cst = arith.constant 0.000000e+00 : f32
    %3 = vector.broadcast %cst : f32 to vector<1x18x6xf32>
    %c0_4 = arith.constant 0 : index
    %c7 = arith.constant 7 : index
    %c0_5 = arith.constant 0 : index
    %4 = vector.load %arg13[%c0_4, %c7, %c0_5] : memref<18x25x6xf32, #tpu.memory_space<vmem>>, vector<1x18x6xf32>
    tpu.vector_store %arg13[%c0_4, %c7, %c0_5], %3 {strides = array<i32>} : memref<18x25x6xf32, #tpu.memory_space<vmem>>, vector<1x18x6xf32>,
    %c17 = arith.constant 17 : index
    %c7_6 = arith.constant 7 : index
    %c0_7 = arith.constant 0 : index
    %5 = vector.load %arg13[%c17, %c7_6, %c0_7] : memref<18x25x6xf32, #tpu.memory_space<vmem>>, vector<1x18x6xf32>
    tpu.vector_store %arg13[%c17, %c7_6, %c0_7], %3 {strides = array<i32>} : memref<18x25x6xf32, #tpu.memory_space<vmem>>, vector<1x18x6xf32>,
    %cst_8 = arith.constant 0.000000e+00 : f32
    %6 = vector.broadcast %cst_8 : f32 to vector<16x1x6xf32>
    %c1_9 = arith.constant 1 : index
    %c7_10 = arith.constant 7 : index
    %c0_11 = arith.constant 0 : index
    %7 = vector.load %arg13[%c1_9, %c7_10, %c0_11] : memref<18x25x6xf32, #tpu.memory_space<vmem>>, vector<16x1x6xf32>
    tpu.vector_store %arg13[%c1_9, %c7_10, %c0_11], %6 {strides = array<i32>} : memref<18x25x6xf32, #tpu.memory_space<vmem>>, vector<16x1x6xf32>,
    %c1_12 = arith.constant 1 : index
    %c24 = arith.constant 24 : index
    %c0_13 = arith.constant 0 : index
    %8 = vector.load %arg13[%c1_12, %c24, %c0_13] : memref<18x25x6xf32, #tpu.memory_space<vmem>>, vector<16x1x6xf32>
    tpu.vector_store %arg13[%c1_12, %c24, %c0_13], %6 {strides = array<i32>} : memref<18x25x6xf32, #tpu.memory_space<vmem>>, vector<16x1x6xf32>,
    %cst_14 = arith.constant 0.000000e+00 : f32
    %9 = vector.broadcast %cst_14 : f32 to vector<256x74xf32>
    %c0_15 = arith.constant 0 : index
    %c54 = arith.constant 54 : index
    %10 = vector.load %arg14[%c0_15, %c54] : memref<256x128xf32, #tpu.memory_space<vmem>>, vector<256x74xf32>
    tpu.vector_store %arg14[%c0_15, %c54], %9 {strides = array<i32>} : memref<256x128xf32, #tpu.memory_space<vmem>>, vector<256x74xf32>,
    %c0_16 = arith.constant 0 : index
    %c7_17 = arith.constant 7 : index
    %c0_18 = arith.constant 0 : index
    %11 = vector.load %arg13[%c0_16, %c7_17, %c0_18] : memref<18x25x6xf32, #tpu.memory_space<vmem>>, vector<16x16x6xf32>
    %12 = vector.shape_cast %11 : vector<16x16x6xf32> to vector<256x6xf32>
    %c0_19 = arith.constant 0 : index
    %c0_20 = arith.constant 0 : index
    %13 = vector.load %arg14[%c0_19, %c0_20] : memref<256x128xf32, #tpu.memory_space<vmem>>, vector<256x6xf32>
    tpu.vector_store %arg14[%c0_19, %c0_20], %12 {strides = array<i32>} : memref<256x128xf32, #tpu.memory_space<vmem>>, vector<256x6xf32>,
    %c0_21 = arith.constant 0 : index
    %c8_22 = arith.constant 8 : index
    %c0_23 = arith.constant 0 : index
    %14 = vector.load %arg13[%c0_21, %c8_22, %c0_23] : memref<18x25x6xf32, #tpu.memory_space<vmem>>, vector<16x16x6xf32>
    %15 = vector.shape_cast %14 : vector<16x16x6xf32> to vector<256x6xf32>
    %c0_24 = arith.constant 0 : index
    %c6 = arith.constant 6 : index
    %16 = vector.load %arg14[%c0_24, %c6] : memref<256x128xf32, #tpu.memory_space<vmem>>, vector<256x6xf32>
    tpu.vector_store %arg14[%c0_24, %c6], %15 {strides = array<i32>} : memref<256x128xf32, #tpu.memory_space<vmem>>, vector<256x6xf32>,
    %c0_25 = arith.constant 0 : index
    %c9 = arith.constant 9 : index
    %c0_26 = arith.constant 0 : index
    %17 = vector.load %arg13[%c0_25, %c9, %c0_26] : memref<18x25x6xf32, #tpu.memory_space<vmem>>, vector<16x16x6xf32>
    %18 = vector.shape_cast %17 : vector<16x16x6xf32> to vector<256x6xf32>
    %c0_27 = arith.constant 0 : index
    %c12 = arith.constant 12 : index
    %19 = vector.load %arg14[%c0_27, %c12] : memref<256x128xf32, #tpu.memory_space<vmem>>, vector<256x6xf32>
    tpu.vector_store %arg14[%c0_27, %c12], %18 {strides = array<i32>} : memref<256x128xf32, #tpu.memory_space<vmem>>, vector<256x6xf32>,
    %c1_28 = arith.constant 1 : index
    %c7_29 = arith.constant 7 : index
    %c0_30 = arith.constant 0 : index
    %20 = vector.load %arg13[%c1_28, %c7_29, %c0_30] : memref<18x25x6xf32, #tpu.memory_space<vmem>>, vector<16x16x6xf32>
    %21 = vector.shape_cast %20 : vector<16x16x6xf32> to vector<256x6xf32>
    %c0_31 = arith.constant 0 : index
    %c18 = arith.constant 18 : index
    %22 = vector.load %arg14[%c0_31, %c18] : memref<256x128xf32, #tpu.memory_space<vmem>>, vector<256x6xf32>
    tpu.vector_store %arg14[%c0_31, %c18], %21 {strides = array<i32>} : memref<256x128xf32, #tpu.memory_space<vmem>>, vector<256x6xf32>,
    %c1_32 = arith.constant 1 : index
    %c8_33 = arith.constant 8 : index
    %c0_34 = arith.constant 0 : index
    %23 = vector.load %arg13[%c1_32, %c8_33, %c0_34] : memref<18x25x6xf32, #tpu.memory_space<vmem>>, vector<16x16x6xf32>
    %24 = vector.shape_cast %23 : vector<16x16x6xf32> to vector<256x6xf32>
    %c0_35 = arith.constant 0 : index
    %c24_36 = arith.constant 24 : index
    %25 = vector.load %arg14[%c0_35, %c24_36] : memref<256x128xf32, #tpu.memory_space<vmem>>, vector<256x6xf32>
    tpu.vector_store %arg14[%c0_35, %c24_36], %24 {strides = array<i32>} : memref<256x128xf32, #tpu.memory_space<vmem>>, vector<256x6xf32>,
    %c1_37 = arith.constant 1 : index
    %c9_38 = arith.constant 9 : index
    %c0_39 = arith.constant 0 : index
    %26 = vector.load %arg13[%c1_37, %c9_38, %c0_39] : memref<18x25x6xf32, #tpu.memory_space<vmem>>, vector<16x16x6xf32>
    %27 = vector.shape_cast %26 : vector<16x16x6xf32> to vector<256x6xf32>
    %c0_40 = arith.constant 0 : index
    %c30 = arith.constant 30 : index
    %28 = vector.load %arg14[%c0_40, %c30] : memref<256x128xf32, #tpu.memory_space<vmem>>, vector<256x6xf32>
    tpu.vector_store %arg14[%c0_40, %c30], %27 {strides = array<i32>} : memref<256x128xf32, #tpu.memory_space<vmem>>, vector<256x6xf32>,
    %c2 = arith.constant 2 : index
    %c7_41 = arith.constant 7 : index
    %c0_42 = arith.constant 0 : index
    %29 = vector.load %arg13[%c2, %c7_41, %c0_42] : memref<18x25x6xf32, #tpu.memory_space<vmem>>, vector<16x16x6xf32>
    %30 = vector.shape_cast %29 : vector<16x16x6xf32> to vector<256x6xf32>
    %c0_43 = arith.constant 0 : index
    %c36 = arith.constant 36 : index
    %31 = vector.load %arg14[%c0_43, %c36] : memref<256x128xf32, #tpu.memory_space<vmem>>, vector<256x6xf32>
    tpu.vector_store %arg14[%c0_43, %c36], %30 {strides = array<i32>} : memref<256x128xf32, #tpu.memory_space<vmem>>, vector<256x6xf32>,
    %c2_44 = arith.constant 2 : index
    %c8_45 = arith.constant 8 : index
    %c0_46 = arith.constant 0 : index
    %32 = vector.load %arg13[%c2_44, %c8_45, %c0_46] : memref<18x25x6xf32, #tpu.memory_space<vmem>>, vector<16x16x6xf32>
    %33 = vector.shape_cast %32 : vector<16x16x6xf32> to vector<256x6xf32>
    %c0_47 = arith.constant 0 : index
    %c42 = arith.constant 42 : index
    %34 = vector.load %arg14[%c0_47, %c42] : memref<256x128xf32, #tpu.memory_space<vmem>>, vector<256x6xf32>
    tpu.vector_store %arg14[%c0_47, %c42], %33 {strides = array<i32>} : memref<256x128xf32, #tpu.memory_space<vmem>>, vector<256x6xf32>,
    %c2_48 = arith.constant 2 : index
    %c9_49 = arith.constant 9 : index
    %c0_50 = arith.constant 0 : index
    %35 = vector.load %arg13[%c2_48, %c9_49, %c0_50] : memref<18x25x6xf32, #tpu.memory_space<vmem>>, vector<16x16x6xf32>
    %36 = vector.shape_cast %35 : vector<16x16x6xf32> to vector<256x6xf32>
    %c0_51 = arith.constant 0 : index
    %c48 = arith.constant 48 : index
    %37 = vector.load %arg14[%c0_51, %c48] : memref<256x128xf32, #tpu.memory_space<vmem>>, vector<256x6xf32>
    tpu.vector_store %arg14[%c0_51, %c48], %36 {strides = array<i32>} : memref<256x128xf32, #tpu.memory_space<vmem>>, vector<256x6xf32>,
    %c0_52 = arith.constant 0 : index
    %c0_53 = arith.constant 0 : index
    %38 = vector.load %arg14[%c0_52, %c0_53] : memref<256x128xf32, #tpu.memory_space<vmem>>, vector<256x128xf32>
    %c0_54 = arith.constant 0 : index
    %c0_55 = arith.constant 0 : index
    %39 = vector.load %arg2[%c0_54, %c0_55] : memref<128x16xf32, #tpu.memory_space<vmem>>, vector<128x16xf32>
    %cst_56 = arith.constant dense<0.000000e+00> : vector<256x16xf32>
    %40 = tpu.matmul %38, %39, %cst_56 {dimension_numbers = #tpu.dot_dimension_numbers<[1], [0], [0], [1], [0, 0, 1, 1], [], []>} : vector<256x128xf32>, vector<128x16xf32>, vector<256x16xf32> -> vector<256x16xf32>
    %c0_57 = arith.constant 0 : index
    %c0_58 = arith.constant 0 : index
    %41 = vector.load %arg15[%c0_57, %c0_58] : memref<256x16xf32, #tpu.memory_space<vmem>>, vector<256x16xf32>
    tpu.vector_store %arg15[%c0_57, %c0_58], %40 {strides = array<i32>} : memref<256x16xf32, #tpu.memory_space<vmem>>, vector<256x16xf32>,
    %c0_59 = arith.constant 0 : index
    %c0_60 = arith.constant 0 : index
    %42 = vector.load %arg3[%c0_59, %c0_60] : memref<1x16xf32, #tpu.memory_space<vmem>>, vector<1x16xf32>
    %c0_61 = arith.constant 0 : index
    %c0_62 = arith.constant 0 : index
    %43 = vector.load %arg15[%c0_61, %c0_62] : memref<256x16xf32, #tpu.memory_space<vmem>>, vector<32x16xf32>
    %44 = vector.shape_cast %43 : vector<32x16xf32> to vector<2x8x2x16xf32>
    %cst_63 = arith.constant dense<0xFF800000> : vector<8x16xf32>
    %45 = vector.multi_reduction <maximumf>, %44, %cst_63 [0, 2] : vector<2x8x2x16xf32> to vector<8x16xf32>
    %46 = vector.broadcast %42 : vector<1x16xf32> to vector<8x16xf32>
    %47 = arith.addf %45, %46 : vector<8x16xf32>
    %cst_64 = arith.constant 0.000000e+00 : f32
    %48 = vector.broadcast %cst_64 : f32 to vector<8x16xf32>
    %49 = arith.maximumf %47, %48 : vector<8x16xf32>
    %50 = vector.shape_cast %49 : vector<8x16xf32> to vector<1x8x16xf32>
    %c1_65 = arith.constant 1 : index
    %c8_66 = arith.constant 8 : index
    %c0_67 = arith.constant 0 : index
    %51 = vector.load %arg16[%c1_65, %c8_66, %c0_67] : memref<10x17x16xf32, #tpu.memory_space<vmem>>, vector<1x8x16xf32>
    tpu.vector_store %arg16[%c1_65, %c8_66, %c0_67], %50 {strides = array<i32>} : memref<10x17x16xf32, #tpu.memory_space<vmem>>, vector<1x8x16xf32>,
    %c32 = arith.constant 32 : index
    %c0_68 = arith.constant 0 : index
    %52 = vector.load %arg15[%c32, %c0_68] : memref<256x16xf32, #tpu.memory_space<vmem>>, vector<32x16xf32>
    %53 = vector.shape_cast %52 : vector<32x16xf32> to vector<2x8x2x16xf32>
    %cst_69 = arith.constant dense<0xFF800000> : vector<8x16xf32>
    %54 = vector.multi_reduction <maximumf>, %53, %cst_69 [0, 2] : vector<2x8x2x16xf32> to vector<8x16xf32>
    %55 = vector.broadcast %42 : vector<1x16xf32> to vector<8x16xf32>
    %56 = arith.addf %54, %55 : vector<8x16xf32>
    %cst_70 = arith.constant 0.000000e+00 : f32
    %57 = vector.broadcast %cst_70 : f32 to vector<8x16xf32>
    %58 = arith.maximumf %56, %57 : vector<8x16xf32>
    %59 = vector.shape_cast %58 : vector<8x16xf32> to vector<1x8x16xf32>
    %c2_71 = arith.constant 2 : index
    %c8_72 = arith.constant 8 : index
    %c0_73 = arith.constant 0 : index
    %60 = vector.load %arg16[%c2_71, %c8_72, %c0_73] : memref<10x17x16xf32, #tpu.memory_space<vmem>>, vector<1x8x16xf32>
    tpu.vector_store %arg16[%c2_71, %c8_72, %c0_73], %59 {strides = array<i32>} : memref<10x17x16xf32, #tpu.memory_space<vmem>>, vector<1x8x16xf32>,
    %c64 = arith.constant 64 : index
    %c0_74 = arith.constant 0 : index
    %61 = vector.load %arg15[%c64, %c0_74] : memref<256x16xf32, #tpu.memory_space<vmem>>, vector<32x16xf32>
    %62 = vector.shape_cast %61 : vector<32x16xf32> to vector<2x8x2x16xf32>
    %cst_75 = arith.constant dense<0xFF800000> : vector<8x16xf32>
    %63 = vector.multi_reduction <maximumf>, %62, %cst_75 [0, 2] : vector<2x8x2x16xf32> to vector<8x16xf32>
    %64 = vector.broadcast %42 : vector<1x16xf32> to vector<8x16xf32>
    %65 = arith.addf %63, %64 : vector<8x16xf32>
    %cst_76 = arith.constant 0.000000e+00 : f32
    %66 = vector.broadcast %cst_76 : f32 to vector<8x16xf32>
    %67 = arith.maximumf %65, %66 : vector<8x16xf32>
    %68 = vector.shape_cast %67 : vector<8x16xf32> to vector<1x8x16xf32>
    %c3 = arith.constant 3 : index
    %c8_77 = arith.constant 8 : index
    %c0_78 = arith.constant 0 : index
    %69 = vector.load %arg16[%c3, %c8_77, %c0_78] : memref<10x17x16xf32, #tpu.memory_space<vmem>>, vector<1x8x16xf32>
    tpu.vector_store %arg16[%c3, %c8_77, %c0_78], %68 {strides = array<i32>} : memref<10x17x16xf32, #tpu.memory_space<vmem>>, vector<1x8x16xf32>,
    %c96 = arith.constant 96 : index
    %c0_79 = arith.constant 0 : index
    %70 = vector.load %arg15[%c96, %c0_79] : memref<256x16xf32, #tpu.memory_space<vmem>>, vector<32x16xf32>
    %71 = vector.shape_cast %70 : vector<32x16xf32> to vector<2x8x2x16xf32>
    %cst_80 = arith.constant dense<0xFF800000> : vector<8x16xf32>
    %72 = vector.multi_reduction <maximumf>, %71, %cst_80 [0, 2] : vector<2x8x2x16xf32> to vector<8x16xf32>
    %73 = vector.broadcast %42 : vector<1x16xf32> to vector<8x16xf32>
    %74 = arith.addf %72, %73 : vector<8x16xf32>
    %cst_81 = arith.constant 0.000000e+00 : f32
    %75 = vector.broadcast %cst_81 : f32 to vector<8x16xf32>
    %76 = arith.maximumf %74, %75 : vector<8x16xf32>
    %77 = vector.shape_cast %76 : vector<8x16xf32> to vector<1x8x16xf32>
    %c4 = arith.constant 4 : index
    %c8_82 = arith.constant 8 : index
    %c0_83 = arith.constant 0 : index
    %78 = vector.load %arg16[%c4, %c8_82, %c0_83] : memref<10x17x16xf32, #tpu.memory_space<vmem>>, vector<1x8x16xf32>
    tpu.vector_store %arg16[%c4, %c8_82, %c0_83], %77 {strides = array<i32>} : memref<10x17x16xf32, #tpu.memory_space<vmem>>, vector<1x8x16xf32>,
    %c128 = arith.constant 128 : index
    %c0_84 = arith.constant 0 : index
    %79 = vector.load %arg15[%c128, %c0_84] : memref<256x16xf32, #tpu.memory_space<vmem>>, vector<32x16xf32>
    %80 = vector.shape_cast %79 : vector<32x16xf32> to vector<2x8x2x16xf32>
    %cst_85 = arith.constant dense<0xFF800000> : vector<8x16xf32>
    %81 = vector.multi_reduction <maximumf>, %80, %cst_85 [0, 2] : vector<2x8x2x16xf32> to vector<8x16xf32>
    %82 = vector.broadcast %42 : vector<1x16xf32> to vector<8x16xf32>
    %83 = arith.addf %81, %82 : vector<8x16xf32>
    %cst_86 = arith.constant 0.000000e+00 : f32
    %84 = vector.broadcast %cst_86 : f32 to vector<8x16xf32>
    %85 = arith.maximumf %83, %84 : vector<8x16xf32>
    %86 = vector.shape_cast %85 : vector<8x16xf32> to vector<1x8x16xf32>
    %c5 = arith.constant 5 : index
    %c8_87 = arith.constant 8 : index
    %c0_88 = arith.constant 0 : index
    %87 = vector.load %arg16[%c5, %c8_87, %c0_88] : memref<10x17x16xf32, #tpu.memory_space<vmem>>, vector<1x8x16xf32>
    tpu.vector_store %arg16[%c5, %c8_87, %c0_88], %86 {strides = array<i32>} : memref<10x17x16xf32, #tpu.memory_space<vmem>>, vector<1x8x16xf32>,
    %c160 = arith.constant 160 : index
    %c0_89 = arith.constant 0 : index
    %88 = vector.load %arg15[%c160, %c0_89] : memref<256x16xf32, #tpu.memory_space<vmem>>, vector<32x16xf32>
    %89 = vector.shape_cast %88 : vector<32x16xf32> to vector<2x8x2x16xf32>
    %cst_90 = arith.constant dense<0xFF800000> : vector<8x16xf32>
    %90 = vector.multi_reduction <maximumf>, %89, %cst_90 [0, 2] : vector<2x8x2x16xf32> to vector<8x16xf32>
    %91 = vector.broadcast %42 : vector<1x16xf32> to vector<8x16xf32>
    %92 = arith.addf %90, %91 : vector<8x16xf32>
    %cst_91 = arith.constant 0.000000e+00 : f32
    %93 = vector.broadcast %cst_91 : f32 to vector<8x16xf32>
    %94 = arith.maximumf %92, %93 : vector<8x16xf32>
    %95 = vector.shape_cast %94 : vector<8x16xf32> to vector<1x8x16xf32>
    %c6_92 = arith.constant 6 : index
    %c8_93 = arith.constant 8 : index
    %c0_94 = arith.constant 0 : index
    %96 = vector.load %arg16[%c6_92, %c8_93, %c0_94] : memref<10x17x16xf32, #tpu.memory_space<vmem>>, vector<1x8x16xf32>
    tpu.vector_store %arg16[%c6_92, %c8_93, %c0_94], %95 {strides = array<i32>} : memref<10x17x16xf32, #tpu.memory_space<vmem>>, vector<1x8x16xf32>,
    %c192 = arith.constant 192 : index
    %c0_95 = arith.constant 0 : index
    %97 = vector.load %arg15[%c192, %c0_95] : memref<256x16xf32, #tpu.memory_space<vmem>>, vector<32x16xf32>
    %98 = vector.shape_cast %97 : vector<32x16xf32> to vector<2x8x2x16xf32>
    %cst_96 = arith.constant dense<0xFF800000> : vector<8x16xf32>
    %99 = vector.multi_reduction <maximumf>, %98, %cst_96 [0, 2] : vector<2x8x2x16xf32> to vector<8x16xf32>
    %100 = vector.broadcast %42 : vector<1x16xf32> to vector<8x16xf32>
    %101 = arith.addf %99, %100 : vector<8x16xf32>
    %cst_97 = arith.constant 0.000000e+00 : f32
    %102 = vector.broadcast %cst_97 : f32 to vector<8x16xf32>
    %103 = arith.maximumf %101, %102 : vector<8x16xf32>
    %104 = vector.shape_cast %103 : vector<8x16xf32> to vector<1x8x16xf32>
    %c7_98 = arith.constant 7 : index
    %c8_99 = arith.constant 8 : index
    %c0_100 = arith.constant 0 : index
    %105 = vector.load %arg16[%c7_98, %c8_99, %c0_100] : memref<10x17x16xf32, #tpu.memory_space<vmem>>, vector<1x8x16xf32>
    tpu.vector_store %arg16[%c7_98, %c8_99, %c0_100], %104 {strides = array<i32>} : memref<10x17x16xf32, #tpu.memory_space<vmem>>, vector<1x8x16xf32>,
    %c224 = arith.constant 224 : index
    %c0_101 = arith.constant 0 : index
    %106 = vector.load %arg15[%c224, %c0_101] : memref<256x16xf32, #tpu.memory_space<vmem>>, vector<32x16xf32>
    %107 = vector.shape_cast %106 : vector<32x16xf32> to vector<2x8x2x16xf32>
    %cst_102 = arith.constant dense<0xFF800000> : vector<8x16xf32>
    %108 = vector.multi_reduction <maximumf>, %107, %cst_102 [0, 2] : vector<2x8x2x16xf32> to vector<8x16xf32>
    %109 = vector.broadcast %42 : vector<1x16xf32> to vector<8x16xf32>
    %110 = arith.addf %108, %109 : vector<8x16xf32>
    %cst_103 = arith.constant 0.000000e+00 : f32
    %111 = vector.broadcast %cst_103 : f32 to vector<8x16xf32>
    %112 = arith.maximumf %110, %111 : vector<8x16xf32>
    %113 = vector.shape_cast %112 : vector<8x16xf32> to vector<1x8x16xf32>
    %c8_104 = arith.constant 8 : index
    %c8_105 = arith.constant 8 : index
    %c0_106 = arith.constant 0 : index
    %114 = vector.load %arg16[%c8_104, %c8_105, %c0_106] : memref<10x17x16xf32, #tpu.memory_space<vmem>>, vector<1x8x16xf32>
    tpu.vector_store %arg16[%c8_104, %c8_105, %c0_106], %113 {strides = array<i32>} : memref<10x17x16xf32, #tpu.memory_space<vmem>>, vector<1x8x16xf32>,
    %cst_107 = arith.constant 0.000000e+00 : f32
    %115 = vector.broadcast %cst_107 : f32 to vector<1x10x16xf32>
    %c0_108 = arith.constant 0 : index
    %c7_109 = arith.constant 7 : index
    %c0_110 = arith.constant 0 : index
    %116 = vector.load %arg16[%c0_108, %c7_109, %c0_110] : memref<10x17x16xf32, #tpu.memory_space<vmem>>, vector<1x10x16xf32>
    tpu.vector_store %arg16[%c0_108, %c7_109, %c0_110], %115 {strides = array<i32>} : memref<10x17x16xf32, #tpu.memory_space<vmem>>, vector<1x10x16xf32>,
    %c9_111 = arith.constant 9 : index
    %c7_112 = arith.constant 7 : index
    %c0_113 = arith.constant 0 : index
    %117 = vector.load %arg16[%c9_111, %c7_112, %c0_113] : memref<10x17x16xf32, #tpu.memory_space<vmem>>, vector<1x10x16xf32>
    tpu.vector_store %arg16[%c9_111, %c7_112, %c0_113], %115 {strides = array<i32>} : memref<10x17x16xf32, #tpu.memory_space<vmem>>, vector<1x10x16xf32>,
    %cst_114 = arith.constant 0.000000e+00 : f32
    %118 = vector.broadcast %cst_114 : f32 to vector<8x1x16xf32>
    %c1_115 = arith.constant 1 : index
    %c7_116 = arith.constant 7 : index
    %c0_117 = arith.constant 0 : index
    %119 = vector.load %arg16[%c1_115, %c7_116, %c0_117] : memref<10x17x16xf32, #tpu.memory_space<vmem>>, vector<8x1x16xf32>
    tpu.vector_store %arg16[%c1_115, %c7_116, %c0_117], %118 {strides = array<i32>} : memref<10x17x16xf32, #tpu.memory_space<vmem>>, vector<8x1x16xf32>,
    %c1_118 = arith.constant 1 : index
    %c16 = arith.constant 16 : index
    %c0_119 = arith.constant 0 : index
    %120 = vector.load %arg16[%c1_118, %c16, %c0_119] : memref<10x17x16xf32, #tpu.memory_space<vmem>>, vector<8x1x16xf32>
    tpu.vector_store %arg16[%c1_118, %c16, %c0_119], %118 {strides = array<i32>} : memref<10x17x16xf32, #tpu.memory_space<vmem>>, vector<8x1x16xf32>,
    %cst_120 = arith.constant 0.000000e+00 : f32
    %121 = vector.broadcast %cst_120 : f32 to vector<64x112xf32>
    %c0_121 = arith.constant 0 : index
    %c144 = arith.constant 144 : index
    %122 = vector.load %arg17[%c0_121, %c144] : memref<64x256xf32, #tpu.memory_space<vmem>>, vector<64x112xf32>
    tpu.vector_store %arg17[%c0_121, %c144], %121 {strides = array<i32>} : memref<64x256xf32, #tpu.memory_space<vmem>>, vector<64x112xf32>,
    %c0_122 = arith.constant 0 : index
    %c7_123 = arith.constant 7 : index
    %c0_124 = arith.constant 0 : index
    %123 = vector.load %arg16[%c0_122, %c7_123, %c0_124] : memref<10x17x16xf32, #tpu.memory_space<vmem>>, vector<8x8x16xf32>
    %124 = vector.shape_cast %123 : vector<8x8x16xf32> to vector<64x16xf32>
    %c0_125 = arith.constant 0 : index
    %c0_126 = arith.constant 0 : index
    %125 = vector.load %arg17[%c0_125, %c0_126] : memref<64x256xf32, #tpu.memory_space<vmem>>, vector<64x16xf32>
    tpu.vector_store %arg17[%c0_125, %c0_126], %124 {strides = array<i32>} : memref<64x256xf32, #tpu.memory_space<vmem>>, vector<64x16xf32>,
    %c0_127 = arith.constant 0 : index
    %c8_128 = arith.constant 8 : index
    %c0_129 = arith.constant 0 : index
    %126 = vector.load %arg16[%c0_127, %c8_128, %c0_129] : memref<10x17x16xf32, #tpu.memory_space<vmem>>, vector<8x8x16xf32>
    %127 = vector.shape_cast %126 : vector<8x8x16xf32> to vector<64x16xf32>
    %c0_130 = arith.constant 0 : index
    %c16_131 = arith.constant 16 : index
    %128 = vector.load %arg17[%c0_130, %c16_131] : memref<64x256xf32, #tpu.memory_space<vmem>>, vector<64x16xf32>
    tpu.vector_store %arg17[%c0_130, %c16_131], %127 {strides = array<i32>} : memref<64x256xf32, #tpu.memory_space<vmem>>, vector<64x16xf32>,
    %c0_132 = arith.constant 0 : index
    %c9_133 = arith.constant 9 : index
    %c0_134 = arith.constant 0 : index
    %129 = vector.load %arg16[%c0_132, %c9_133, %c0_134] : memref<10x17x16xf32, #tpu.memory_space<vmem>>, vector<8x8x16xf32>
    %130 = vector.shape_cast %129 : vector<8x8x16xf32> to vector<64x16xf32>
    %c0_135 = arith.constant 0 : index
    %c32_136 = arith.constant 32 : index
    %131 = vector.load %arg17[%c0_135, %c32_136] : memref<64x256xf32, #tpu.memory_space<vmem>>, vector<64x16xf32>
    tpu.vector_store %arg17[%c0_135, %c32_136], %130 {strides = array<i32>} : memref<64x256xf32, #tpu.memory_space<vmem>>, vector<64x16xf32>,
    %c1_137 = arith.constant 1 : index
    %c7_138 = arith.constant 7 : index
    %c0_139 = arith.constant 0 : index
    %132 = vector.load %arg16[%c1_137, %c7_138, %c0_139] : memref<10x17x16xf32, #tpu.memory_space<vmem>>, vector<8x8x16xf32>
    %133 = vector.shape_cast %132 : vector<8x8x16xf32> to vector<64x16xf32>
    %c0_140 = arith.constant 0 : index
    %c48_141 = arith.constant 48 : index
    %134 = vector.load %arg17[%c0_140, %c48_141] : memref<64x256xf32, #tpu.memory_space<vmem>>, vector<64x16xf32>
    tpu.vector_store %arg17[%c0_140, %c48_141], %133 {strides = array<i32>} : memref<64x256xf32, #tpu.memory_space<vmem>>, vector<64x16xf32>,
    %c1_142 = arith.constant 1 : index
    %c8_143 = arith.constant 8 : index
    %c0_144 = arith.constant 0 : index
    %135 = vector.load %arg16[%c1_142, %c8_143, %c0_144] : memref<10x17x16xf32, #tpu.memory_space<vmem>>, vector<8x8x16xf32>
    %136 = vector.shape_cast %135 : vector<8x8x16xf32> to vector<64x16xf32>
    %c0_145 = arith.constant 0 : index
    %c64_146 = arith.constant 64 : index
    %137 = vector.load %arg17[%c0_145, %c64_146] : memref<64x256xf32, #tpu.memory_space<vmem>>, vector<64x16xf32>
    tpu.vector_store %arg17[%c0_145, %c64_146], %136 {strides = array<i32>} : memref<64x256xf32, #tpu.memory_space<vmem>>, vector<64x16xf32>,
    %c1_147 = arith.constant 1 : index
    %c9_148 = arith.constant 9 : index
    %c0_149 = arith.constant 0 : index
    %138 = vector.load %arg16[%c1_147, %c9_148, %c0_149] : memref<10x17x16xf32, #tpu.memory_space<vmem>>, vector<8x8x16xf32>
    %139 = vector.shape_cast %138 : vector<8x8x16xf32> to vector<64x16xf32>
    %c0_150 = arith.constant 0 : index
    %c80 = arith.constant 80 : index
    %140 = vector.load %arg17[%c0_150, %c80] : memref<64x256xf32, #tpu.memory_space<vmem>>, vector<64x16xf32>
    tpu.vector_store %arg17[%c0_150, %c80], %139 {strides = array<i32>} : memref<64x256xf32, #tpu.memory_space<vmem>>, vector<64x16xf32>,
    %c2_151 = arith.constant 2 : index
    %c7_152 = arith.constant 7 : index
    %c0_153 = arith.constant 0 : index
    %141 = vector.load %arg16[%c2_151, %c7_152, %c0_153] : memref<10x17x16xf32, #tpu.memory_space<vmem>>, vector<8x8x16xf32>
    %142 = vector.shape_cast %141 : vector<8x8x16xf32> to vector<64x16xf32>
    %c0_154 = arith.constant 0 : index
    %c96_155 = arith.constant 96 : index
    %143 = vector.load %arg17[%c0_154, %c96_155] : memref<64x256xf32, #tpu.memory_space<vmem>>, vector<64x16xf32>
    tpu.vector_store %arg17[%c0_154, %c96_155], %142 {strides = array<i32>} : memref<64x256xf32, #tpu.memory_space<vmem>>, vector<64x16xf32>,
    %c2_156 = arith.constant 2 : index
    %c8_157 = arith.constant 8 : index
    %c0_158 = arith.constant 0 : index
    %144 = vector.load %arg16[%c2_156, %c8_157, %c0_158] : memref<10x17x16xf32, #tpu.memory_space<vmem>>, vector<8x8x16xf32>
    %145 = vector.shape_cast %144 : vector<8x8x16xf32> to vector<64x16xf32>
    %c0_159 = arith.constant 0 : index
    %c112 = arith.constant 112 : index
    %146 = vector.load %arg17[%c0_159, %c112] : memref<64x256xf32, #tpu.memory_space<vmem>>, vector<64x16xf32>
    tpu.vector_store %arg17[%c0_159, %c112], %145 {strides = array<i32>} : memref<64x256xf32, #tpu.memory_space<vmem>>, vector<64x16xf32>,
    %c2_160 = arith.constant 2 : index
    %c9_161 = arith.constant 9 : index
    %c0_162 = arith.constant 0 : index
    %147 = vector.load %arg16[%c2_160, %c9_161, %c0_162] : memref<10x17x16xf32, #tpu.memory_space<vmem>>, vector<8x8x16xf32>
    %148 = vector.shape_cast %147 : vector<8x8x16xf32> to vector<64x16xf32>
    %c0_163 = arith.constant 0 : index
    %c128_164 = arith.constant 128 : index
    %149 = vector.load %arg17[%c0_163, %c128_164] : memref<64x256xf32, #tpu.memory_space<vmem>>, vector<64x16xf32>
    tpu.vector_store %arg17[%c0_163, %c128_164], %148 {strides = array<i32>} : memref<64x256xf32, #tpu.memory_space<vmem>>, vector<64x16xf32>,
    %c0_165 = arith.constant 0 : index
    %c0_166 = arith.constant 0 : index
    %150 = vector.load %arg17[%c0_165, %c0_166] : memref<64x256xf32, #tpu.memory_space<vmem>>, vector<64x256xf32>
    %c0_167 = arith.constant 0 : index
    %c0_168 = arith.constant 0 : index
    %151 = vector.load %arg4[%c0_167, %c0_168] : memref<256x32xf32, #tpu.memory_space<vmem>>, vector<256x32xf32>
    %cst_169 = arith.constant dense<0.000000e+00> : vector<64x32xf32>
    %152 = tpu.matmul %150, %151, %cst_169 {dimension_numbers = #tpu.dot_dimension_numbers<[1], [0], [0], [1], [0, 0, 1, 1], [], []>} : vector<64x256xf32>, vector<256x32xf32>, vector<64x32xf32> -> vector<64x32xf32>
    %c0_170 = arith.constant 0 : index
    %c0_171 = arith.constant 0 : index
    %153 = vector.load %arg18[%c0_170, %c0_171] : memref<64x32xf32, #tpu.memory_space<vmem>>, vector<64x32xf32>
    tpu.vector_store %arg18[%c0_170, %c0_171], %152 {strides = array<i32>} : memref<64x32xf32, #tpu.memory_space<vmem>>, vector<64x32xf32>,
    %c0_172 = arith.constant 0 : index
    %c0_173 = arith.constant 0 : index
    %154 = vector.load %arg5[%c0_172, %c0_173] : memref<1x32xf32, #tpu.memory_space<vmem>>, vector<1x32xf32>
    %c0_174 = arith.constant 0 : index
    %c0_175 = arith.constant 0 : index
    %155 = vector.load %arg18[%c0_174, %c0_175] : memref<64x32xf32, #tpu.memory_space<vmem>>, vector<16x32xf32>
    %156 = vector.shape_cast %155 : vector<16x32xf32> to vector<2x4x2x32xf32>
    %cst_176 = arith.constant dense<0xFF800000> : vector<4x32xf32>
    %157 = vector.multi_reduction <maximumf>, %156, %cst_176 [0, 2] : vector<2x4x2x32xf32> to vector<4x32xf32>
    %158 = vector.broadcast %154 : vector<1x32xf32> to vector<4x32xf32>
    %159 = arith.addf %157, %158 : vector<4x32xf32>
    %cst_177 = arith.constant 0.000000e+00 : f32
    %160 = vector.broadcast %cst_177 : f32 to vector<4x32xf32>
    %161 = arith.maximumf %159, %160 : vector<4x32xf32>
    %162 = vector.shape_cast %161 : vector<4x32xf32> to vector<1x4x32xf32>
    %c1_178 = arith.constant 1 : index
    %c8_179 = arith.constant 8 : index
    %c0_180 = arith.constant 0 : index
    %163 = vector.load %arg19[%c1_178, %c8_179, %c0_180] : memref<6x13x32xf32, #tpu.memory_space<vmem>>, vector<1x4x32xf32>
    tpu.vector_store %arg19[%c1_178, %c8_179, %c0_180], %162 {strides = array<i32>} : memref<6x13x32xf32, #tpu.memory_space<vmem>>, vector<1x4x32xf32>,
    %c16_181 = arith.constant 16 : index
    %c0_182 = arith.constant 0 : index
    %164 = vector.load %arg18[%c16_181, %c0_182] : memref<64x32xf32, #tpu.memory_space<vmem>>, vector<16x32xf32>
    %165 = vector.shape_cast %164 : vector<16x32xf32> to vector<2x4x2x32xf32>
    %cst_183 = arith.constant dense<0xFF800000> : vector<4x32xf32>
    %166 = vector.multi_reduction <maximumf>, %165, %cst_183 [0, 2] : vector<2x4x2x32xf32> to vector<4x32xf32>
    %167 = vector.broadcast %154 : vector<1x32xf32> to vector<4x32xf32>
    %168 = arith.addf %166, %167 : vector<4x32xf32>
    %cst_184 = arith.constant 0.000000e+00 : f32
    %169 = vector.broadcast %cst_184 : f32 to vector<4x32xf32>
    %170 = arith.maximumf %168, %169 : vector<4x32xf32>
    %171 = vector.shape_cast %170 : vector<4x32xf32> to vector<1x4x32xf32>
    %c2_185 = arith.constant 2 : index
    %c8_186 = arith.constant 8 : index
    %c0_187 = arith.constant 0 : index
    %172 = vector.load %arg19[%c2_185, %c8_186, %c0_187] : memref<6x13x32xf32, #tpu.memory_space<vmem>>, vector<1x4x32xf32>
    tpu.vector_store %arg19[%c2_185, %c8_186, %c0_187], %171 {strides = array<i32>} : memref<6x13x32xf32, #tpu.memory_space<vmem>>, vector<1x4x32xf32>,
    %c32_188 = arith.constant 32 : index
    %c0_189 = arith.constant 0 : index
    %173 = vector.load %arg18[%c32_188, %c0_189] : memref<64x32xf32, #tpu.memory_space<vmem>>, vector<16x32xf32>
    %174 = vector.shape_cast %173 : vector<16x32xf32> to vector<2x4x2x32xf32>
    %cst_190 = arith.constant dense<0xFF800000> : vector<4x32xf32>
    %175 = vector.multi_reduction <maximumf>, %174, %cst_190 [0, 2] : vector<2x4x2x32xf32> to vector<4x32xf32>
    %176 = vector.broadcast %154 : vector<1x32xf32> to vector<4x32xf32>
    %177 = arith.addf %175, %176 : vector<4x32xf32>
    %cst_191 = arith.constant 0.000000e+00 : f32
    %178 = vector.broadcast %cst_191 : f32 to vector<4x32xf32>
    %179 = arith.maximumf %177, %178 : vector<4x32xf32>
    %180 = vector.shape_cast %179 : vector<4x32xf32> to vector<1x4x32xf32>
    %c3_192 = arith.constant 3 : index
    %c8_193 = arith.constant 8 : index
    %c0_194 = arith.constant 0 : index
    %181 = vector.load %arg19[%c3_192, %c8_193, %c0_194] : memref<6x13x32xf32, #tpu.memory_space<vmem>>, vector<1x4x32xf32>
    tpu.vector_store %arg19[%c3_192, %c8_193, %c0_194], %180 {strides = array<i32>} : memref<6x13x32xf32, #tpu.memory_space<vmem>>, vector<1x4x32xf32>,
    %c48_195 = arith.constant 48 : index
    %c0_196 = arith.constant 0 : index
    %182 = vector.load %arg18[%c48_195, %c0_196] : memref<64x32xf32, #tpu.memory_space<vmem>>, vector<16x32xf32>
    %183 = vector.shape_cast %182 : vector<16x32xf32> to vector<2x4x2x32xf32>
    %cst_197 = arith.constant dense<0xFF800000> : vector<4x32xf32>
    %184 = vector.multi_reduction <maximumf>, %183, %cst_197 [0, 2] : vector<2x4x2x32xf32> to vector<4x32xf32>
    %185 = vector.broadcast %154 : vector<1x32xf32> to vector<4x32xf32>
    %186 = arith.addf %184, %185 : vector<4x32xf32>
    %cst_198 = arith.constant 0.000000e+00 : f32
    %187 = vector.broadcast %cst_198 : f32 to vector<4x32xf32>
    %188 = arith.maximumf %186, %187 : vector<4x32xf32>
    %189 = vector.shape_cast %188 : vector<4x32xf32> to vector<1x4x32xf32>
    %c4_199 = arith.constant 4 : index
    %c8_200 = arith.constant 8 : index
    %c0_201 = arith.constant 0 : index
    %190 = vector.load %arg19[%c4_199, %c8_200, %c0_201] : memref<6x13x32xf32, #tpu.memory_space<vmem>>, vector<1x4x32xf32>
    tpu.vector_store %arg19[%c4_199, %c8_200, %c0_201], %189 {strides = array<i32>} : memref<6x13x32xf32, #tpu.memory_space<vmem>>, vector<1x4x32xf32>,
    %cst_202 = arith.constant 0.000000e+00 : f32
    %191 = vector.broadcast %cst_202 : f32 to vector<1x6x32xf32>
    %c0_203 = arith.constant 0 : index
    %c7_204 = arith.constant 7 : index
    %c0_205 = arith.constant 0 : index
    %192 = vector.load %arg19[%c0_203, %c7_204, %c0_205] : memref<6x13x32xf32, #tpu.memory_space<vmem>>, vector<1x6x32xf32>
    tpu.vector_store %arg19[%c0_203, %c7_204, %c0_205], %191 {strides = array<i32>} : memref<6x13x32xf32, #tpu.memory_space<vmem>>, vector<1x6x32xf32>,
    %c5_206 = arith.constant 5 : index
    %c7_207 = arith.constant 7 : index
    %c0_208 = arith.constant 0 : index
    %193 = vector.load %arg19[%c5_206, %c7_207, %c0_208] : memref<6x13x32xf32, #tpu.memory_space<vmem>>, vector<1x6x32xf32>
    tpu.vector_store %arg19[%c5_206, %c7_207, %c0_208], %191 {strides = array<i32>} : memref<6x13x32xf32, #tpu.memory_space<vmem>>, vector<1x6x32xf32>,
    %cst_209 = arith.constant 0.000000e+00 : f32
    %194 = vector.broadcast %cst_209 : f32 to vector<4x1x32xf32>
    %c1_210 = arith.constant 1 : index
    %c7_211 = arith.constant 7 : index
    %c0_212 = arith.constant 0 : index
    %195 = vector.load %arg19[%c1_210, %c7_211, %c0_212] : memref<6x13x32xf32, #tpu.memory_space<vmem>>, vector<4x1x32xf32>
    tpu.vector_store %arg19[%c1_210, %c7_211, %c0_212], %194 {strides = array<i32>} : memref<6x13x32xf32, #tpu.memory_space<vmem>>, vector<4x1x32xf32>,
    %c1_213 = arith.constant 1 : index
    %c12_214 = arith.constant 12 : index
    %c0_215 = arith.constant 0 : index
    %196 = vector.load %arg19[%c1_213, %c12_214, %c0_215] : memref<6x13x32xf32, #tpu.memory_space<vmem>>, vector<4x1x32xf32>
    tpu.vector_store %arg19[%c1_213, %c12_214, %c0_215], %194 {strides = array<i32>} : memref<6x13x32xf32, #tpu.memory_space<vmem>>, vector<4x1x32xf32>,
    %cst_216 = arith.constant 0.000000e+00 : f32
    %197 = vector.broadcast %cst_216 : f32 to vector<16x96xf32>
    %c0_217 = arith.constant 0 : index
    %c288 = arith.constant 288 : index
    %198 = vector.load %arg20[%c0_217, %c288] : memref<16x384xf32, #tpu.memory_space<vmem>>, vector<16x96xf32>
    tpu.vector_store %arg20[%c0_217, %c288], %197 {strides = array<i32>} : memref<16x384xf32, #tpu.memory_space<vmem>>, vector<16x96xf32>,
    %c0_218 = arith.constant 0 : index
    %c7_219 = arith.constant 7 : index
    %c0_220 = arith.constant 0 : index
    %199 = vector.load %arg19[%c0_218, %c7_219, %c0_220] : memref<6x13x32xf32, #tpu.memory_space<vmem>>, vector<4x4x32xf32>
    %200 = vector.shape_cast %199 : vector<4x4x32xf32> to vector<16x32xf32>
    %c0_221 = arith.constant 0 : index
    %c0_222 = arith.constant 0 : index
    %201 = vector.load %arg20[%c0_221, %c0_222] : memref<16x384xf32, #tpu.memory_space<vmem>>, vector<16x32xf32>
    tpu.vector_store %arg20[%c0_221, %c0_222], %200 {strides = array<i32>} : memref<16x384xf32, #tpu.memory_space<vmem>>, vector<16x32xf32>,
    %c0_223 = arith.constant 0 : index
    %c8_224 = arith.constant 8 : index
    %c0_225 = arith.constant 0 : index
    %202 = vector.load %arg19[%c0_223, %c8_224, %c0_225] : memref<6x13x32xf32, #tpu.memory_space<vmem>>, vector<4x4x32xf32>
    %203 = vector.shape_cast %202 : vector<4x4x32xf32> to vector<16x32xf32>
    %c0_226 = arith.constant 0 : index
    %c32_227 = arith.constant 32 : index
    %204 = vector.load %arg20[%c0_226, %c32_227] : memref<16x384xf32, #tpu.memory_space<vmem>>, vector<16x32xf32>
    tpu.vector_store %arg20[%c0_226, %c32_227], %203 {strides = array<i32>} : memref<16x384xf32, #tpu.memory_space<vmem>>, vector<16x32xf32>,
    %c0_228 = arith.constant 0 : index
    %c9_229 = arith.constant 9 : index
    %c0_230 = arith.constant 0 : index
    %205 = vector.load %arg19[%c0_228, %c9_229, %c0_230] : memref<6x13x32xf32, #tpu.memory_space<vmem>>, vector<4x4x32xf32>
    %206 = vector.shape_cast %205 : vector<4x4x32xf32> to vector<16x32xf32>
    %c0_231 = arith.constant 0 : index
    %c64_232 = arith.constant 64 : index
    %207 = vector.load %arg20[%c0_231, %c64_232] : memref<16x384xf32, #tpu.memory_space<vmem>>, vector<16x32xf32>
    tpu.vector_store %arg20[%c0_231, %c64_232], %206 {strides = array<i32>} : memref<16x384xf32, #tpu.memory_space<vmem>>, vector<16x32xf32>,
    %c1_233 = arith.constant 1 : index
    %c7_234 = arith.constant 7 : index
    %c0_235 = arith.constant 0 : index
    %208 = vector.load %arg19[%c1_233, %c7_234, %c0_235] : memref<6x13x32xf32, #tpu.memory_space<vmem>>, vector<4x4x32xf32>
    %209 = vector.shape_cast %208 : vector<4x4x32xf32> to vector<16x32xf32>
    %c0_236 = arith.constant 0 : index
    %c96_237 = arith.constant 96 : index
    %210 = vector.load %arg20[%c0_236, %c96_237] : memref<16x384xf32, #tpu.memory_space<vmem>>, vector<16x32xf32>
    tpu.vector_store %arg20[%c0_236, %c96_237], %209 {strides = array<i32>} : memref<16x384xf32, #tpu.memory_space<vmem>>, vector<16x32xf32>,
    %c1_238 = arith.constant 1 : index
    %c8_239 = arith.constant 8 : index
    %c0_240 = arith.constant 0 : index
    %211 = vector.load %arg19[%c1_238, %c8_239, %c0_240] : memref<6x13x32xf32, #tpu.memory_space<vmem>>, vector<4x4x32xf32>
    %212 = vector.shape_cast %211 : vector<4x4x32xf32> to vector<16x32xf32>
    %c0_241 = arith.constant 0 : index
    %c128_242 = arith.constant 128 : index
    %213 = vector.load %arg20[%c0_241, %c128_242] : memref<16x384xf32, #tpu.memory_space<vmem>>, vector<16x32xf32>
    tpu.vector_store %arg20[%c0_241, %c128_242], %212 {strides = array<i32>} : memref<16x384xf32, #tpu.memory_space<vmem>>, vector<16x32xf32>,
    %c1_243 = arith.constant 1 : index
    %c9_244 = arith.constant 9 : index
    %c0_245 = arith.constant 0 : index
    %214 = vector.load %arg19[%c1_243, %c9_244, %c0_245] : memref<6x13x32xf32, #tpu.memory_space<vmem>>, vector<4x4x32xf32>
    %215 = vector.shape_cast %214 : vector<4x4x32xf32> to vector<16x32xf32>
    %c0_246 = arith.constant 0 : index
    %c160_247 = arith.constant 160 : index
    %216 = vector.load %arg20[%c0_246, %c160_247] : memref<16x384xf32, #tpu.memory_space<vmem>>, vector<16x32xf32>
    tpu.vector_store %arg20[%c0_246, %c160_247], %215 {strides = array<i32>} : memref<16x384xf32, #tpu.memory_space<vmem>>, vector<16x32xf32>,
    %c2_248 = arith.constant 2 : index
    %c7_249 = arith.constant 7 : index
    %c0_250 = arith.constant 0 : index
    %217 = vector.load %arg19[%c2_248, %c7_249, %c0_250] : memref<6x13x32xf32, #tpu.memory_space<vmem>>, vector<4x4x32xf32>
    %218 = vector.shape_cast %217 : vector<4x4x32xf32> to vector<16x32xf32>
    %c0_251 = arith.constant 0 : index
    %c192_252 = arith.constant 192 : index
    %219 = vector.load %arg20[%c0_251, %c192_252] : memref<16x384xf32, #tpu.memory_space<vmem>>, vector<16x32xf32>
    tpu.vector_store %arg20[%c0_251, %c192_252], %218 {strides = array<i32>} : memref<16x384xf32, #tpu.memory_space<vmem>>, vector<16x32xf32>,
    %c2_253 = arith.constant 2 : index
    %c8_254 = arith.constant 8 : index
    %c0_255 = arith.constant 0 : index
    %220 = vector.load %arg19[%c2_253, %c8_254, %c0_255] : memref<6x13x32xf32, #tpu.memory_space<vmem>>, vector<4x4x32xf32>
    %221 = vector.shape_cast %220 : vector<4x4x32xf32> to vector<16x32xf32>
    %c0_256 = arith.constant 0 : index
    %c224_257 = arith.constant 224 : index
    %222 = vector.load %arg20[%c0_256, %c224_257] : memref<16x384xf32, #tpu.memory_space<vmem>>, vector<16x32xf32>
    tpu.vector_store %arg20[%c0_256, %c224_257], %221 {strides = array<i32>} : memref<16x384xf32, #tpu.memory_space<vmem>>, vector<16x32xf32>,
    %c2_258 = arith.constant 2 : index
    %c9_259 = arith.constant 9 : index
    %c0_260 = arith.constant 0 : index
    %223 = vector.load %arg19[%c2_258, %c9_259, %c0_260] : memref<6x13x32xf32, #tpu.memory_space<vmem>>, vector<4x4x32xf32>
    %224 = vector.shape_cast %223 : vector<4x4x32xf32> to vector<16x32xf32>
    %c0_261 = arith.constant 0 : index
    %c256 = arith.constant 256 : index
    %225 = vector.load %arg20[%c0_261, %c256] : memref<16x384xf32, #tpu.memory_space<vmem>>, vector<16x32xf32>
    tpu.vector_store %arg20[%c0_261, %c256], %224 {strides = array<i32>} : memref<16x384xf32, #tpu.memory_space<vmem>>, vector<16x32xf32>,
    %c0_262 = arith.constant 0 : index
    %c0_263 = arith.constant 0 : index
    %226 = vector.load %arg20[%c0_262, %c0_263] : memref<16x384xf32, #tpu.memory_space<vmem>>, vector<16x384xf32>
    %c0_264 = arith.constant 0 : index
    %c0_265 = arith.constant 0 : index
    %227 = vector.load %arg6[%c0_264, %c0_265] : memref<384x64xf32, #tpu.memory_space<vmem>>, vector<384x64xf32>
    %cst_266 = arith.constant dense<0.000000e+00> : vector<16x64xf32>
    %228 = tpu.matmul %226, %227, %cst_266 {dimension_numbers = #tpu.dot_dimension_numbers<[1], [0], [0], [1], [0, 0, 1, 1], [], []>} : vector<16x384xf32>, vector<384x64xf32>, vector<16x64xf32> -> vector<16x64xf32>
    %c0_267 = arith.constant 0 : index
    %c0_268 = arith.constant 0 : index
    %229 = vector.load %arg21[%c0_267, %c0_268] : memref<16x64xf32, #tpu.memory_space<vmem>>, vector<16x64xf32>
    tpu.vector_store %arg21[%c0_267, %c0_268], %228 {strides = array<i32>} : memref<16x64xf32, #tpu.memory_space<vmem>>, vector<16x64xf32>,
    %c0_269 = arith.constant 0 : index
    %c0_270 = arith.constant 0 : index
    %230 = vector.load %arg7[%c0_269, %c0_270] : memref<1x64xf32, #tpu.memory_space<vmem>>, vector<1x64xf32>
    %c0_271 = arith.constant 0 : index
    %c0_272 = arith.constant 0 : index
    %231 = vector.load %arg21[%c0_271, %c0_272] : memref<16x64xf32, #tpu.memory_space<vmem>>, vector<8x64xf32>
    %232 = vector.shape_cast %231 : vector<8x64xf32> to vector<2x2x2x64xf32>
    %cst_273 = arith.constant dense<0xFF800000> : vector<2x64xf32>
    %233 = vector.multi_reduction <maximumf>, %232, %cst_273 [0, 2] : vector<2x2x2x64xf32> to vector<2x64xf32>
    %234 = vector.broadcast %230 : vector<1x64xf32> to vector<2x64xf32>
    %235 = arith.addf %233, %234 : vector<2x64xf32>
    %cst_274 = arith.constant 0.000000e+00 : f32
    %236 = vector.broadcast %cst_274 : f32 to vector<2x64xf32>
    %237 = arith.maximumf %235, %236 : vector<2x64xf32>
    %c8_275 = arith.constant 8 : index
    %c0_276 = arith.constant 0 : index
    %238 = vector.load %arg21[%c8_275, %c0_276] : memref<16x64xf32, #tpu.memory_space<vmem>>, vector<8x64xf32>
    %239 = vector.shape_cast %238 : vector<8x64xf32> to vector<2x2x2x64xf32>
    %cst_277 = arith.constant dense<0xFF800000> : vector<2x64xf32>
    %240 = vector.multi_reduction <maximumf>, %239, %cst_277 [0, 2] : vector<2x2x2x64xf32> to vector<2x64xf32>
    %241 = vector.broadcast %230 : vector<1x64xf32> to vector<2x64xf32>
    %242 = arith.addf %240, %241 : vector<2x64xf32>
    %cst_278 = arith.constant 0.000000e+00 : f32
    %243 = vector.broadcast %cst_278 : f32 to vector<2x64xf32>
    %244 = arith.maximumf %242, %243 : vector<2x64xf32>
    %c0_279 = arith.constant 0 : index
    %c0_280 = arith.constant 0 : index
    %245 = vector.load %arg9[%c0_279, %c0_280] : memref<1x64xf32, #tpu.memory_space<vmem>>, vector<1x64xf32>
    %246 = vector.extract_strided_slice %237 {offsets = [0, 0], sizes = [1, 64], strides = [1, 1]} : vector<2x64xf32> to vector<1x64xf32>
    %c0_281 = arith.constant 0 : index
    %c0_282 = arith.constant 0 : index
    %c0_283 = arith.constant 0 : index
    %247 = vector.load %arg8[%c0_281, %c0_282, %c0_283] : memref<4x64x64xf32, #tpu.memory_space<vmem>>, vector<1x64x64xf32>
    %248 = vector.shape_cast %247 : vector<1x64x64xf32> to vector<64x64xf32>
    %cst_284 = arith.constant dense<0.000000e+00> : vector<1x64xf32>
    %249 = tpu.matmul %246, %248, %cst_284 {dimension_numbers = #tpu.dot_dimension_numbers<[1], [0], [0], [1], [0, 0, 1, 1], [], []>} : vector<1x64xf32>, vector<64x64xf32>, vector<1x64xf32> -> vector<1x64xf32>
    %250 = arith.addf %245, %249 : vector<1x64xf32>
    %251 = vector.extract_strided_slice %237 {offsets = [1, 0], sizes = [1, 64], strides = [1, 1]} : vector<2x64xf32> to vector<1x64xf32>
    %c1_285 = arith.constant 1 : index
    %c0_286 = arith.constant 0 : index
    %c0_287 = arith.constant 0 : index
    %252 = vector.load %arg8[%c1_285, %c0_286, %c0_287] : memref<4x64x64xf32, #tpu.memory_space<vmem>>, vector<1x64x64xf32>
    %253 = vector.shape_cast %252 : vector<1x64x64xf32> to vector<64x64xf32>
    %cst_288 = arith.constant dense<0.000000e+00> : vector<1x64xf32>
    %254 = tpu.matmul %251, %253, %cst_288 {dimension_numbers = #tpu.dot_dimension_numbers<[1], [0], [0], [1], [0, 0, 1, 1], [], []>} : vector<1x64xf32>, vector<64x64xf32>, vector<1x64xf32> -> vector<1x64xf32>
    %255 = arith.addf %250, %254 : vector<1x64xf32>
    %256 = vector.extract_strided_slice %244 {offsets = [0, 0], sizes = [1, 64], strides = [1, 1]} : vector<2x64xf32> to vector<1x64xf32>
    %c2_289 = arith.constant 2 : index
    %c0_290 = arith.constant 0 : index
    %c0_291 = arith.constant 0 : index
    %257 = vector.load %arg8[%c2_289, %c0_290, %c0_291] : memref<4x64x64xf32, #tpu.memory_space<vmem>>, vector<1x64x64xf32>
    %258 = vector.shape_cast %257 : vector<1x64x64xf32> to vector<64x64xf32>
    %cst_292 = arith.constant dense<0.000000e+00> : vector<1x64xf32>
    %259 = tpu.matmul %256, %258, %cst_292 {dimension_numbers = #tpu.dot_dimension_numbers<[1], [0], [0], [1], [0, 0, 1, 1], [], []>} : vector<1x64xf32>, vector<64x64xf32>, vector<1x64xf32> -> vector<1x64xf32>
    %260 = arith.addf %255, %259 : vector<1x64xf32>
    %261 = vector.extract_strided_slice %244 {offsets = [1, 0], sizes = [1, 64], strides = [1, 1]} : vector<2x64xf32> to vector<1x64xf32>
    %c3_293 = arith.constant 3 : index
    %c0_294 = arith.constant 0 : index
    %c0_295 = arith.constant 0 : index
    %262 = vector.load %arg8[%c3_293, %c0_294, %c0_295] : memref<4x64x64xf32, #tpu.memory_space<vmem>>, vector<1x64x64xf32>
    %263 = vector.shape_cast %262 : vector<1x64x64xf32> to vector<64x64xf32>
    %cst_296 = arith.constant dense<0.000000e+00> : vector<1x64xf32>
    %264 = tpu.matmul %261, %263, %cst_296 {dimension_numbers = #tpu.dot_dimension_numbers<[1], [0], [0], [1], [0, 0, 1, 1], [], []>} : vector<1x64xf32>, vector<64x64xf32>, vector<1x64xf32> -> vector<1x64xf32>
    %265 = arith.addf %260, %264 : vector<1x64xf32>
    %cst_297 = arith.constant 0.000000e+00 : f32
    %266 = vector.broadcast %cst_297 : f32 to vector<1x64xf32>
    %267 = arith.maximumf %265, %266 : vector<1x64xf32>
    %c0_298 = arith.constant 0 : index
    %c0_299 = arith.constant 0 : index
    %268 = vector.load %arg10[%c0_298, %c0_299] : memref<1x64xf32, #tpu.memory_space<vmem>>, vector<1x64xf32>
    %269 = arith.mulf %267, %268 : vector<1x64xf32>
    %cst_300 = arith.constant dense<0.000000e+00> : vector<1xf32>
    %270 = vector.multi_reduction <add>, %269, %cst_300 [1] : vector<1x64xf32> to vector<1xf32>
    %271 = vector.shape_cast %270 : vector<1xf32> to vector<1x1xf32>
    %c0_301 = arith.constant 0 : index
    %c0_302 = arith.constant 0 : index
    %272 = vector.load %arg11[%c0_301, %c0_302] : memref<1x1xf32, #tpu.memory_space<vmem>>, vector<1x1xf32>
    %273 = arith.addf %271, %272 : vector<1x1xf32>
    %274 = vector.shape_cast %273 : vector<1x1xf32> to vector<1x1x1xf32>
    %c0_303 = arith.constant 0 : index
    %c0_304 = arith.constant 0 : index
    %c0_305 = arith.constant 0 : index
    %275 = vector.load %arg12[%c0_303, %c0_304, %c0_305] : memref<1x1x1xf32, #tpu.memory_space<vmem>>, vector<1x1x1xf32>
    tpu.vector_store %arg12[%c0_303, %c0_304, %c0_305], %274 {strides = array<i32>} : memref<1x1x1xf32, #tpu.memory_space<vmem>>, vector<1x1x1xf32>,
    return
  }
  func.func @transform_0(%arg0: i32) -> (i32, i32, i32, i32) {
    %c0_i32 = arith.constant 0 : i32
    %c0_i32_0 = arith.constant 0 : i32
    %c0_i32_1 = arith.constant 0 : i32
    %c0_i32_2 = arith.constant 0 : i32
    return %arg0, %c0_i32, %c0_i32_0, %c0_i32_1 : i32, i32, i32, i32
  }
  func.func @transform_1(%arg0: i32) -> (i32, i32) {
    %c0_i32 = arith.constant 0 : i32
    %c0_i32_0 = arith.constant 0 : i32
    %c0_i32_1 = arith.constant 0 : i32
    return %c0_i32, %c0_i32_0 : i32, i32
  }
  func.func @transform_2(%arg0: i32) -> (i32, i32) {
    %c0_i32 = arith.constant 0 : i32
    %c0_i32_0 = arith.constant 0 : i32
    %c0_i32_1 = arith.constant 0 : i32
    return %c0_i32, %c0_i32_0 : i32, i32
  }
  func.func @transform_3(%arg0: i32) -> (i32, i32) {
    %c0_i32 = arith.constant 0 : i32
    %c0_i32_0 = arith.constant 0 : i32
    %c0_i32_1 = arith.constant 0 : i32
    return %c0_i32, %c0_i32_0 : i32, i32
  }
  func.func @transform_4(%arg0: i32) -> (i32, i32) {
    %c0_i32 = arith.constant 0 : i32
    %c0_i32_0 = arith.constant 0 : i32
    %c0_i32_1 = arith.constant 0 : i32
    return %c0_i32, %c0_i32_0 : i32, i32
  }
  func.func @transform_5(%arg0: i32) -> (i32, i32) {
    %c0_i32 = arith.constant 0 : i32
    %c0_i32_0 = arith.constant 0 : i32
    %c0_i32_1 = arith.constant 0 : i32
    return %c0_i32, %c0_i32_0 : i32, i32
  }
  func.func @transform_6(%arg0: i32) -> (i32, i32) {
    %c0_i32 = arith.constant 0 : i32
    %c0_i32_0 = arith.constant 0 : i32
    %c0_i32_1 = arith.constant 0 : i32
    return %c0_i32, %c0_i32_0 : i32, i32
  }
  func.func @transform_7(%arg0: i32) -> (i32, i32, i32) {
    %c0_i32 = arith.constant 0 : i32
    %c0_i32_0 = arith.constant 0 : i32
    %c0_i32_1 = arith.constant 0 : i32
    %c0_i32_2 = arith.constant 0 : i32
    return %c0_i32, %c0_i32_0, %c0_i32_1 : i32, i32, i32
  }
  func.func @transform_8(%arg0: i32) -> (i32, i32) {
    %c0_i32 = arith.constant 0 : i32
    %c0_i32_0 = arith.constant 0 : i32
    %c0_i32_1 = arith.constant 0 : i32
    return %c0_i32, %c0_i32_0 : i32, i32
  }
  func.func @transform_9(%arg0: i32) -> (i32, i32) {
    %c0_i32 = arith.constant 0 : i32
    %c0_i32_0 = arith.constant 0 : i32
    %c0_i32_1 = arith.constant 0 : i32
    return %c0_i32, %c0_i32_0 : i32, i32
  }
  func.func @transform_10(%arg0: i32) -> (i32, i32) {
    %c0_i32 = arith.constant 0 : i32
    %c0_i32_0 = arith.constant 0 : i32
    %c0_i32_1 = arith.constant 0 : i32
    return %c0_i32, %c0_i32_0 : i32, i32
  }
  func.func @transform_11(%arg0: i32) -> (i32, i32, i32) {
    %c0_i32 = arith.constant 0 : i32
    %c0_i32_0 = arith.constant 0 : i32
    %c0_i32_1 = arith.constant 0 : i32
    return %arg0, %c0_i32, %c0_i32_0 : i32, i32, i32
  }
}

</mosaic_0001>

<bundles_post_ra>
// kernel: small_cnn_forward.1
= control target key start
LH: loop header
LB: loop body
LE: loop exit
PB: predicated region body
PF: predicated region fallthrough
CT: control target
= control target key end

     0   :  { %s6735_s19 = smov 0   ;;  %s8803_s0 = inlined_call_operand.vmem [shape: f32[2,16,16,6], index: 0, kind: input, shape index: {}]   ;;  %s8804_s1 = inlined_call_operand.vmem [shape: f32[128,16], index: 1, kind: input, shape index: {}]   ;;  %s8805_s2 = inlined_call_operand.vmem [shape: f32[1,16], index: 2, kind: input, shape index: {}]   ;;  %s8806_s3 = inlined_call_operand.vmem [shape: f32[256,32], index: 3, kind: input, shape index: {}]   ;;  %s8807_s4 = inlined_call_operand.vmem [shape: f32[1,32], index: 4, kind: input, shape index: {}]   ;;  %s8808_s5 = inlined_call_operand.vmem [shape: f32[384,64], index: 5, kind: input, shape index: {}]   ;;  %s8809_s6 = inlined_call_operand.vmem [shape: f32[1,64], index: 6, kind: input, shape index: {}]   ;;  %s8810_s7 = inlined_call_operand.vmem [shape: f32[4,64,64], index: 7, kind: input, shape index: {}]   ;;  %s8811_s8 = inlined_call_operand.vmem [shape: f32[1,64], index: 8, kind: input, shape index: {}]   ;;  %s8812_s9 = inlined_call_operand.vmem [shape: f32[1,64], index: 9, kind: input, shape index: {}]   ;;  %s8813_s10 = inlined_call_operand.<no memory space> [shape: f32[1,1], index: 10, kind: input, shape index: {}]   ;;  %s8814_s11 = inlined_call_operand.vmem [shape: f32[2,1,1], index: 11, kind: output, shape index: {}]  }
   0x1   :  { %v16_v0 = vstv %s8813_s10 }
   0x2   :  { %17 = vst [vmem:[#allocation11] sm:$0x1] %v16_v0 }
   0x3 LB: > { %s5948_s20 = sadd.s32 4294967295, %s6652_s19   ;;  %p5952_p0 = scmp.ge.s32.totalorder %s6652_s19, 1  ;;  %s6652_s19 = sphi %s6735_s19, %s23_s19  }
   0x4   : > { %p339_p1 = scmp.lt.s32.totalorder %s6652_s19, 3 }
   0x6   : > { %p340_p2 = pnand %p5952_p0, %p339_p1 }
   0x7   : > { %vm418_vm0 = vcmask (!%p340_p2), 48128   ;;  %vm453_vm1 = vcmask (!%p340_p2), 41984   ;;  %vm459_vm2 = vcmask (!%p340_p2), 40960   ;;  %v6654_v1 = vmov (!%p340_p2), 0.0   ;;  %p6755_p3 = scmp.lt.s32.totalorder (!%p340_p2), %s5948_s20, 1  ;;  %s6655_s25 = smov (!%p340_p2), 12  }
   0x8   : > { %343 = sbr.rel (%p340_p2) target bundleno = 2094 (0x82e), region = 64  ;;  %451 = vst.msk [vmem:[#allocation2 + $0x7] sm:$0xff] (!%p340_p2), %vm418_vm0, %v6654_v1  ;;  %452 = vst.msk [vmem:[#allocation2 + $0xf] sm:$0xff] (!%p340_p2), %vm418_vm0, %v6654_v1  ;;  %vm492_vm3 = vcmask (!%p340_p2), 1047984   ;;  %s6656_s26 = smov (!%p340_p2), 6   ;;  %v2166_v31 = vld [vmem:[%s8804_s1] sm:$0xff] (!%p340_p2) }
   0x9   : > { %456 = vst.msk [vmem:[#allocation2 + $0x227] sm:$0xff] (!%p340_p2), %vm418_vm0, %v6654_v1  ;;  %457 = vst.msk [vmem:[#allocation2 + $0x22f] sm:$0xff] (!%p340_p2), %vm418_vm0, %v6654_v1  ;;  %s6657_s27 = smov (!%p340_p2), 18   ;;  %s6658_s28 = smov (!%p340_p2), 24   ;;  %v2167_v32 = vld [vmem:[%s8804_s1 + $0x8] sm:$0xff] (!%p340_p2)  ;;  %v2168_v33 = vld [vmem:[%s8804_s1 + $0x10] sm:$0xff] (!%p340_p2) }
   0xa   : > { %454 = vst.msk [vmem:[#allocation2 + $0x17] sm:$0x3] (!%p340_p2), %vm453_vm1, %v6654_v1  ;;  %458 = vst.msk [vmem:[#allocation2 + $0x237] sm:$0x3] (!%p340_p2), %vm453_vm1, %v6654_v1  ;;  %s6659_s12 = smov (!%p340_p2), 30   ;;  %v6376_v34 = vpack.c.bf16 (!%p340_p2), %v2167_v32, %v2166_v31  ;;  %v2169_v35 = vld [vmem:[%s8804_s1 + $0x18] sm:$0xff] (!%p340_p2) }
   0xb   : > { %460 = vst.msk [vmem:[#allocation2 + $0x27] sm:$0x1] (!%p340_p2), %vm459_vm2, %v6654_v1  ;;  %461 = vst.msk [vmem:[#allocation2 + $0x47] sm:$0x1] (!%p340_p2), %vm459_vm2, %v6654_v1  ;;  %v6380_v36 = vpack.c.bf16 (!%p340_p2), %v2169_v35, %v2168_v33  ;;  %v2170_v38 = vld [vmem:[%s8804_s1 + $0x20] sm:$0xff] (!%p340_p2)  ;;  %v2171_v39 = vld [vmem:[%s8804_s1 + $0x28] sm:$0xff] (!%p340_p2) }
   0xc   : > { %462 = vst.msk [vmem:[#allocation2 + $0x67] sm:$0x1] (!%p340_p2), %vm459_vm2, %v6654_v1  ;;  %463 = vst.msk [vmem:[#allocation2 + $0x87] sm:$0x1] (!%p340_p2), %vm459_vm2, %v6654_v1  ;;  %6377 = vmatprep.subr.bf16.mxu0 (!%p340_p2), %v6376_v34  ;;  %v6384_v41 = vpack.c.bf16 (!%p340_p2), %v2171_v39, %v2170_v38  ;;  %v2172_v42 = vld [vmem:[%s8804_s1 + $0x30] sm:$0xff] (!%p340_p2)  ;;  %v2173_v43 = vld [vmem:[%s8804_s1 + $0x38] sm:$0xff] (!%p340_p2) }
   0xd   : > { %464 = vst.msk [vmem:[#allocation2 + $0xa7] sm:$0x1] (!%p340_p2), %vm459_vm2, %v6654_v1  ;;  %465 = vst.msk [vmem:[#allocation2 + $0xc7] sm:$0x1] (!%p340_p2), %vm459_vm2, %v6654_v1  ;;  %6379 = vmatpush3.bf16.msra.mxu0 (!%p340_p2), %v6376_v34  ;;  %s6660_s15 = smov (!%p340_p2), 36   ;;  %v6388_v45 = vpack.c.bf16 (!%p340_p2), %v2173_v43, %v2172_v42  ;;  %v2174_v47 = vld [vmem:[%s8804_s1 + $0x40] sm:$0xff] (!%p340_p2) }
   0xe   : > { %466 = vst.msk [vmem:[#allocation2 + $0xe7] sm:$0x1] (!%p340_p2), %vm459_vm2, %v6654_v1  ;;  %467 = vst.msk [vmem:[#allocation2 + $0x107] sm:$0x1] (!%p340_p2), %vm459_vm2, %v6654_v1  ;;  %6381 = vmatprep.subr.bf16.mxu0 (!%p340_p2), %v6380_v36  ;;  %v2175_v48 = vld [vmem:[%s8804_s1 + $0x48] sm:$0xff] (!%p340_p2)  ;;  %v2176_v51 = vld [vmem:[%s8804_s1 + $0x50] sm:$0xff] (!%p340_p2) }
   0xf   : > { %468 = vst.msk [vmem:[#allocation2 + $0x127] sm:$0x1] %vm459_vm2, %v6654_v1  ;;  %469 = vst.msk [vmem:[#allocation2 + $0x147] sm:$0x1] %vm459_vm2, %v6654_v1  ;;  %s8975_s20 = smov (!%p6755_p3, %s5948_s20), 1  ;;  %v782_v5 = vld [vmem:[#allocation2 + $0x9] sm:$0xff]  ;;  %v6392_v50 = vpack.c.bf16 %v2175_v48, %v2174_v47 }
  0x10   : > { %470 = vst.msk [vmem:[#allocation2 + $0x167] sm:$0x1] %vm459_vm2, %v6654_v1  ;;  %471 = vst.msk [vmem:[#allocation2 + $0x187] sm:$0x1] %vm459_vm2, %v6654_v1  ;;  %s5988_s21 = sshll.u32 %s8975_s20, 8  ;;  %v589_v6 = vld [vmem:[#allocation2 + $0x8] sm:$0xff]  ;;  %846 = vrot.lane.b32.xlu1 %v782_v5, %s6655_s25 }
  0x11   : > { %472 = vst.msk [vmem:[#allocation2 + $0x1a7] sm:$0x1] %vm459_vm2, %v6654_v1  ;;  %473 = vst.msk [vmem:[#allocation2 + $0x1c7] sm:$0x1] %vm459_vm2, %v6654_v1  ;;  %s6897_s24 = scalar_lea.vmem %s8803_s0, %s5988_s21  ;;  %v783_v7 = vld [vmem:[#allocation2 + $0x11] sm:$0xff]  ;;  %653 = vrot.lane.b32.xlu0 %v589_v6, %s6656_s26  ;;  %v525_v14 = vld [vmem:[#allocation2 + $0x7] sm:$0xff]  ;;  %6383 = vmatpush3.bf16.msra.mxu0 %v6380_v36 }
  0x12   : > { %474 = vst.msk [vmem:[#allocation2 + $0x1e7] sm:$0x1] %vm459_vm2, %v6654_v1  ;;  %475 = vst.msk [vmem:[#allocation2 + $0x207] sm:$0x1] %vm459_vm2, %v6654_v1  ;;  %v385_v2 = vld [vmem:[%s6897_s24] sm:$0xff]  ;;  %v386_v3 = vld [vmem:[%s6897_s24 + $0x8] sm:$0xff]  ;;  %6385 = vmatprep.subr.bf16.mxu0 %v6384_v41 }
  0x13   : > { %476 = vst.msk [vmem:[#allocation2 + $0x38] sm:$0x1] %vm459_vm2, %v6654_v1  ;;  %477 = vst.msk [vmem:[#allocation2 + $0x58] sm:$0x1] %vm459_vm2, %v6654_v1  ;;  %v387_v4 = vld [vmem:[%s6897_s24 + $0x10] sm:$0xff]  ;;  %v388_v9 = vld [vmem:[%s6897_s24 + $0x18] sm:$0xff] }
  0x14   : > { %478 = vst.msk [vmem:[#allocation2 + $0x78] sm:$0x1] %vm459_vm2, %v6654_v1  ;;  %479 = vst.msk [vmem:[#allocation2 + $0x98] sm:$0x1] %vm459_vm2, %v6654_v1  ;;  %v590_v8 = vld [vmem:[#allocation2 + $0x10] sm:$0xff]  ;;  %v389_v10 = vld [vmem:[%s6897_s24 + $0x20] sm:$0xff]  ;;  %848 = vrot.lane.b32.xlu1 %v783_v7, %s6655_s25 }
  0x15   : > { %480 = vst.msk [vmem:[#allocation2 + $0xb8] sm:$0x1] %vm459_vm2, %v6654_v1  ;;  %481 = vst.msk [vmem:[#allocation2 + $0xd8] sm:$0x1] %vm459_vm2, %v6654_v1  ;;  %v390_v11 = vld [vmem:[%s6897_s24 + $0x28] sm:$0xff]  ;;  %v391_v12 = vld [vmem:[%s6897_s24 + $0x30] sm:$0xff]  ;;  %655 = vrot.lane.b32.xlu0 %v590_v8, %s6656_s26  ;;  %6387 = vmatpush3.bf16.msra.mxu0 %v6384_v41 }
  0x16   : > { %482 = vst.msk [vmem:[#allocation2 + $0xf8] sm:$0x1] %vm459_vm2, %v6654_v1  ;;  %483 = vst.msk [vmem:[#allocation2 + $0x118] sm:$0x1] %vm459_vm2, %v6654_v1  ;;  %v392_v13 = vld [vmem:[%s6897_s24 + $0x38] sm:$0xff]  ;;  %v526_v15 = vld [vmem:[#allocation2 + $0xf] sm:$0xff]  ;;  %6389 = vmatprep.subr.bf16.mxu0 %v6388_v45 }
  0x17   : > { %484 = vst.msk [vmem:[#allocation2 + $0x138] sm:$0x1] %vm459_vm2, %v6654_v1  ;;  %485 = vst.msk [vmem:[#allocation2 + $0x158] sm:$0x1] %vm459_vm2, %v6654_v1  ;;  %v393_v16 = vld [vmem:[%s6897_s24 + $0x40] sm:$0xff]  ;;  %v394_v17 = vld [vmem:[%s6897_s24 + $0x48] sm:$0xff] }
  0x18   : > { %486 = vst.msk [vmem:[#allocation2 + $0x178] sm:$0x1] %vm459_vm2, %v6654_v1  ;;  %487 = vst.msk [vmem:[#allocation2 + $0x198] sm:$0x1] %vm459_vm2, %v6654_v1  ;;  %v395_v37 = vld [vmem:[%s6897_s24 + $0x50] sm:$0xff]  ;;  %v396_v44 = vld [vmem:[%s6897_s24 + $0x58] sm:$0xff] }
  0x19   : > { %488 = vst.msk [vmem:[#allocation2 + $0x1b8] sm:$0x1] %vm459_vm2, %v6654_v1  ;;  %489 = vst.msk [vmem:[#allocation2 + $0x1d8] sm:$0x1] %vm459_vm2, %v6654_v1  ;;  %v2177_v52 = vld [vmem:[%s8804_s1 + $0x58] sm:$0xff]  ;;  %s6661_s30 = smov 42   ;;  %6391 = vmatpush3.bf16.msra.mxu0 %v6388_v45 }
  0x1a   : > { %490 = vst.msk [vmem:[#allocation2 + $0x1f8] sm:$0x1] %vm459_vm2, %v6654_v1  ;;  %491 = vst.msk [vmem:[#allocation2 + $0x218] sm:$0x1] %vm459_vm2, %v6654_v1  ;;  %6393 = vmatprep.subr.bf16.mxu0 %v6392_v50  ;;  %v6396_v54 = vpack.c.bf16 %v2177_v52, %v2176_v51  ;;  %v2178_v55 = vld [vmem:[%s8804_s1 + $0x60] sm:$0xff]  ;;  %v2179_v56 = vld [vmem:[%s8804_s1 + $0x68] sm:$0xff] }
  0x1b   : > { %493 = vst.msk [vmem:[#allocation3] sm:$0xff] %vm492_vm3, %v6654_v1  ;;  %494 = vst.msk [vmem:[#allocation3 + $0x8] sm:$0xff] %vm492_vm3, %v6654_v1  ;;  %v6400_v59 = vpack.c.bf16 %v2179_v56, %v2178_v55  ;;  %v2180_v60 = vld [vmem:[%s8804_s1 + $0x70] sm:$0xff]  ;;  %v2181_v61 = vld [vmem:[%s8804_s1 + $0x78] sm:$0xff]  ;;  %s6662_s23 = smov 48   ;;  %vm749_vm4 = vcmask 97328  }
  0x1c   : > { %495 = vst.msk [vmem:[#allocation3 + $0x10] sm:$0xff] %vm492_vm3, %v6654_v1  ;;  %496 = vst.msk [vmem:[#allocation3 + $0x18] sm:$0xff] %vm492_vm3, %v6654_v1  ;;  %v6404_v62 = vpack.c.bf16 %v2181_v61, %v2180_v60  ;;  %v397_v0 = vld [vmem:[%s6897_s24 + $0x60] sm:$0xff]  ;;  %vm942_vm5 = vcmask 146528   ;;  %vm1135_vm6 = vcmask 195728   ;;  %vm1328_vm7 = vcmask 244928  }
  0x1d   : > { %497 = vst.msk [vmem:[#allocation3 + $0x20] sm:$0xff] %vm492_vm3, %v6654_v1  ;;  %498 = vst.msk [vmem:[#allocation3 + $0x28] sm:$0xff] %vm492_vm3, %v6654_v1  ;;  %6395 = vmatpush3.bf16.msra.mxu0 %v6392_v50  ;;  %vm1521_vm8 = vcmask 294128   ;;  %vm1715_vm9 = vcmask 343328   ;;  %v403_v41 = vld [vmem:[%s6897_s24 + $0x90] sm:$0xff]  ;;  %vm1908_vm10 = vcmask 392528  }
  0x1e   : > { %499 = vst.msk [vmem:[#allocation3 + $0x30] sm:$0xff] %vm492_vm3, %v6654_v1  ;;  %500 = vst.msk [vmem:[#allocation3 + $0x38] sm:$0xff] %vm492_vm3, %v6654_v1  ;;  %6397 = vmatprep.subr.bf16.mxu0 %v6396_v54  ;;  %v404_v48 = vld [vmem:[%s6897_s24 + $0x98] sm:$0xff]  ;;  %vm2101_vm11 = vcmask 441728   ;;  %vm2407_vm12 = vcmask 130048   ;;  %vm8816_vm13 = vcmask 123904  }
  0x1f   : > { %501 = vst.msk [vmem:[#allocation3 + $0x40] sm:$0xff] %vm492_vm3, %v6654_v1  ;;  %502 = vst.msk [vmem:[#allocation3 + $0x48] sm:$0xff] %vm492_vm3, %v6654_v1  ;;  %vm4100_vm14 = vcmask 122880   ;;  %vm4117_vm15 = vcmask 1047680   ;;  %vm8815_vm1 = vcmask 1041409   ;;  %vm2640_vm2 = vcmask 1042434  }
  0x20   : > { %503 = vst.msk [vmem:[#allocation3 + $0x50] sm:$0xff] %vm492_vm3, %v6654_v1  ;;  %504 = vst.msk [vmem:[#allocation3 + $0x58] sm:$0xff] %vm492_vm3, %v6654_v1  ;;  %s6666_s21 = smov 64   ;;  %s6667_s13 = smov 80  }
  0x21   : > { %505 = vst.msk [vmem:[#allocation3 + $0x60] sm:$0xff] %vm492_vm3, %v6654_v1  ;;  %506 = vst.msk [vmem:[#allocation3 + $0x68] sm:$0xff] %vm492_vm3, %v6654_v1  ;;  %6399 = vmatpush3.bf16.msra.mxu0 %v6396_v54  ;;  %s6668_s18 = smov 96  }
  0x22   : > { %507 = vst.msk [vmem:[#allocation3 + $0x70] sm:$0xff] %vm492_vm3, %v6654_v1  ;;  %508 = vst.msk [vmem:[#allocation3 + $0x78] sm:$0xff] %vm492_vm3, %v6654_v1  ;;  %6401 = vmatprep.subr.bf16.mxu0 %v6400_v59 }
  0x23   : > { %509 = vst.msk [vmem:[#allocation3 + $0x80] sm:$0xff] %vm492_vm3, %v6654_v1  ;;  %510 = vst.msk [vmem:[#allocation3 + $0x88] sm:$0xff] %vm492_vm3, %v6654_v1 }
  0x24   : > { %511 = vst.msk [vmem:[#allocation3 + $0x90] sm:$0xff] %vm492_vm3, %v6654_v1  ;;  %512 = vst.msk [vmem:[#allocation3 + $0x98] sm:$0xff] %vm492_vm3, %v6654_v1 }
  0x25   : > { %513 = vst.msk [vmem:[#allocation3 + $0xa0] sm:$0xff] %vm492_vm3, %v6654_v1  ;;  %514 = vst.msk [vmem:[#allocation3 + $0xa8] sm:$0xff] %vm492_vm3, %v6654_v1  ;;  %6403 = vmatpush3.bf16.msra.mxu0 %v6400_v59 }
  0x26   : > { %515 = vst.msk [vmem:[#allocation3 + $0xb0] sm:$0xff] %vm492_vm3, %v6654_v1  ;;  %516 = vst.msk [vmem:[#allocation3 + $0xb8] sm:$0xff] %vm492_vm3, %v6654_v1  ;;  %6405 = vmatprep.subr.bf16.mxu0 %v6404_v62 }
  0x27   : > { %517 = vst.msk [vmem:[#allocation3 + $0xc0] sm:$0xff] %vm492_vm3, %v6654_v1  ;;  %518 = vst.msk [vmem:[#allocation3 + $0xc8] sm:$0xff] %vm492_vm3, %v6654_v1 }
  0x28   : > { %519 = vst.msk [vmem:[#allocation3 + $0xd0] sm:$0xff] %vm492_vm3, %v6654_v1  ;;  %520 = vst.msk [vmem:[#allocation3 + $0xd8] sm:$0xff] %vm492_vm3, %v6654_v1 }
  0x29   : > { %521 = vst.msk [vmem:[#allocation3 + $0xe0] sm:$0xff] %vm492_vm3, %v6654_v1  ;;  %522 = vst.msk [vmem:[#allocation3 + $0xe8] sm:$0xff] %vm492_vm3, %v6654_v1  ;;  %6407 = vmatpush3.bf16.msra.mxu0 %v6404_v62 }
  0x2a   : > { %523 = vst.msk [vmem:[#allocation3 + $0xf0] sm:$0xff] %vm492_vm3, %v6654_v1  ;;  %524 = vst.msk [vmem:[#allocation3 + $0xf8] sm:$0xff] %vm492_vm3, %v6654_v1  ;;  %vm8821_vm3 = vcmask 1043459  }
  0x2b   : > { %419 = vst.msk [vmem:[#allocation2 + $0x28] sm:$0xff] %vm418_vm0, %v385_v2  ;;  %420 = vst.msk [vmem:[#allocation2 + $0x30] sm:$0xff] %vm418_vm0, %v386_v3  ;;  %v398_v3 = vld [vmem:[%s6897_s24 + $0x68] sm:$0xff] }
  0x2c   : > { %421 = vst.msk [vmem:[#allocation2 + $0x48] sm:$0xff] %vm418_vm0, %v387_v4  ;;  %422 = vst.msk [vmem:[#allocation2 + $0x50] sm:$0xff] %vm418_vm0, %v388_v9  ;;  %v399_v9 = vld [vmem:[%s6897_s24 + $0x70] sm:$0xff] }
  0x2d   : > { %423 = vst.msk [vmem:[#allocation2 + $0x68] sm:$0xff] %vm418_vm0, %v389_v10  ;;  %424 = vst.msk [vmem:[#allocation2 + $0x70] sm:$0xff] %vm418_vm0, %v390_v11  ;;  %v400_v11 = vld [vmem:[%s6897_s24 + $0x78] sm:$0xff] }
  0x2e   : > { %425 = vst.msk [vmem:[#allocation2 + $0x88] sm:$0xff] %vm418_vm0, %v391_v12  ;;  %426 = vst.msk [vmem:[#allocation2 + $0x90] sm:$0xff] %vm418_vm0, %v392_v13 }
  0x2f   : > { %557 = vst.msk [vmem:[#allocation3] sm:$0xff] %vm418_vm0, %v525_v14  ;;  %558 = vst.msk [vmem:[#allocation3 + $0x8] sm:$0xff] %vm418_vm0, %v526_v15 }
  0x30   : > { %427 = vst.msk [vmem:[#allocation2 + $0xa8] sm:$0xff] %vm418_vm0, %v393_v16  ;;  %428 = vst.msk [vmem:[#allocation2 + $0xb0] sm:$0xff] %vm418_vm0, %v394_v17  ;;  %v401_v17 = vld [vmem:[%s6897_s24 + $0x80] sm:$0xff] }
  0x31   : > { %429 = vst.msk [vmem:[#allocation2 + $0xc8] sm:$0xff] %vm418_vm0, %v395_v37  ;;  %430 = vst.msk [vmem:[#allocation2 + $0xd0] sm:$0xff] %vm418_vm0, %v396_v44 }
  0x32   : > { %v976_v18 = vld [vmem:[#allocation2 + $0x2f] sm:$0xff]  ;;  %v975_v19 = vld [vmem:[#allocation2 + $0x27] sm:$0xff]  ;;  %431 = vst.msk [vmem:[#allocation2 + $0xe8] sm:$0xff] %vm418_vm0, %v397_v0  ;;  %432 = vst.msk [vmem:[#allocation2 + $0xf0] sm:$0xff] %vm418_vm0, %v398_v3 }
  0x33   : > { %559 = vst.msk [vmem:[#allocation3 + $0x10] sm:$0xff] %vm418_vm0, %v975_v19  ;;  %560 = vst.msk [vmem:[#allocation3 + $0x18] sm:$0xff] %vm418_vm0, %v976_v18  ;;  %1041 = vrot.lane.b32.xlu1 %v976_v18, %s6657_s27  ;;  %1039 = vrot.lane.b32.xlu0 %v975_v19, %s6657_s27  ;;  %v1555_v20 = vld [vmem:[#allocation2 + $0x47] sm:$0xff]  ;;  %v6929_v21 = vld [vmem:[#allocation2 + $0x4f] sm:$0xff] }
  0x34   : > { %v1168_v22 = vld [vmem:[#allocation2 + $0x28] sm:$0xff]  ;;  %561 = vst.msk [vmem:[#allocation3 + $0x20] sm:$0xff] %vm418_vm0, %v1555_v20  ;;  %562 = vst.msk [vmem:[#allocation3 + $0x28] sm:$0xff] %vm418_vm0, %v6929_v21  ;;  %v1169_v27 = vld [vmem:[#allocation2 + $0x30] sm:$0xff] }
  0x35   : > { %v6934_v23 = vld [vmem:[#allocation2 + $0x67] sm:$0xff]  ;;  %v6936_v24 = vld [vmem:[#allocation2 + $0x6f] sm:$0xff]  ;;  %433 = vst.msk [vmem:[#allocation2 + $0x108] sm:$0xff] %vm418_vm0, %v399_v9  ;;  %434 = vst.msk [vmem:[#allocation2 + $0x110] sm:$0xff] %vm418_vm0, %v400_v11 }
  0x36   : > { %563 = vst.msk [vmem:[#allocation3 + $0x30] sm:$0xff] %vm418_vm0, %v6934_v23  ;;  %564 = vst.msk [vmem:[#allocation3 + $0x38] sm:$0xff] %vm418_vm0, %v6936_v24  ;;  %v6944_v25 = vld [vmem:[#allocation2 + $0x87] sm:$0xff]  ;;  %v6946_v26 = vld [vmem:[#allocation2 + $0x8f] sm:$0xff] }
  0x37   : > { %1232 = vrot.lane.b32.xlu0 %v1168_v22, %s6658_s28  ;;  %657 = vrot.lane.b32.xlu1 %v1168_v22, %s6656_s26  ;;  %v1361_v28 = vld [vmem:[#allocation2 + $0x29] sm:$0xff]  ;;  %565 = vst.msk [vmem:[#allocation3 + $0x40] sm:$0xff] %vm418_vm0, %v6944_v25  ;;  %566 = vst.msk [vmem:[#allocation3 + $0x48] sm:$0xff] %vm418_vm0, %v6946_v26  ;;  %v1362_v40 = vld [vmem:[#allocation2 + $0x31] sm:$0xff] }
  0x38   : > { %v6952_v29 = vld [vmem:[#allocation2 + $0xa7] sm:$0xff]  ;;  %v6954_v30 = vld [vmem:[#allocation2 + $0xaf] sm:$0xff]  ;;  %435 = vst.msk [vmem:[#allocation2 + $0x128] sm:$0xff] %vm418_vm0, %v401_v17  ;;  %437 = vst.msk [vmem:[#allocation2 + $0x148] sm:$0xff] %vm418_vm0, %v403_v41 }
  0x39   : > { %567 = vst.msk [vmem:[#allocation3 + $0x50] sm:$0xff] %vm418_vm0, %v6952_v29  ;;  %568 = vst.msk [vmem:[#allocation3 + $0x58] sm:$0xff] %vm418_vm0, %v6954_v30  ;;  %v6994_v46 = vld [vmem:[#allocation2 + $0xc7] sm:$0xff]  ;;  %v7012_v53 = vld [vmem:[#allocation2 + $0xcf] sm:$0xff] }
  0x3a   : > { %569 = vst.msk [vmem:[#allocation3 + $0x60] sm:$0xff] %vm418_vm0, %v6994_v46  ;;  %v1748_v49 = vld [vmem:[#allocation2 + $0x48] sm:$0xff]  ;;  %570 = vst.msk [vmem:[#allocation3 + $0x68] sm:$0xff] %vm418_vm0, %v7012_v53  ;;  %v1749_v57 = vld [vmem:[#allocation2 + $0x50] sm:$0xff] }
  0x3b   : > { %1234 = vrot.lane.b32.xlu0 %v1169_v27, %s6658_s28  ;;  %1425 = vrot.lane.b32.xlu1 %v1361_v28, %s6659_s12  ;;  %v1941_v58 = vld [vmem:[#allocation2 + $0x49] sm:$0xff]  ;;  %v1942_v63 = vld [vmem:[#allocation2 + $0x51] sm:$0xff]  ;;  %438 = vst.msk [vmem:[#allocation2 + $0x150] sm:$0xff] %vm418_vm0, %v404_v48 }
  0x3c   : > { %v7044_v2 = vld [vmem:[#allocation2 + $0xe7] sm:$0xff]  ;;  %v7056_v5 = vld [vmem:[#allocation2 + $0xef] sm:$0xff]  ;;  %4095 = vst.msk [vmem:[#allocation5 + $0x7] sm:$0xff] %vm2407_vm12, %v6654_v1  ;;  %4098 = vst.msk [vmem:[#allocation5 + $0xdf] sm:$0xff] %vm2407_vm12, %v6654_v1 }
  0x3d   : > { %571 = vst.msk [vmem:[#allocation3 + $0x70] sm:$0xff] %vm418_vm0, %v7044_v2  ;;  %v1750_v4 = vld [vmem:[#allocation2 + $0x68] sm:$0xff]  ;;  %572 = vst.msk [vmem:[#allocation3 + $0x78] sm:$0xff] %vm418_vm0, %v7056_v5  ;;  %v1751_v6 = vld [vmem:[#allocation2 + $0x70] sm:$0xff] }
  0x3e   : > { %v1943_v7 = vld [vmem:[#allocation2 + $0x69] sm:$0xff]  ;;  %v1944_v8 = vld [vmem:[#allocation2 + $0x71] sm:$0xff]  ;;  %4096 = vst.msk [vmem:[#allocation5 + $0xf] sm:$0x3] %vm8816_vm13, %v6654_v1  ;;  %4099 = vst.msk [vmem:[#allocation5 + $0xe7] sm:$0x3] %vm8816_vm13, %v6654_v1 }
  0x3f   : > { %659 = vrot.lane.b32.xlu0 %v1169_v27, %s6656_s26  ;;  %850 = vrot.lane.b32.xlu1 %v1361_v28, %s6655_s25  ;;  %v7076_v10 = vld [vmem:[#allocation2 + $0x107] sm:$0xff]  ;;  %v7088_v13 = vld [vmem:[#allocation2 + $0x10f] sm:$0xff]  ;;  %4101 = vst.msk [vmem:[#allocation5 + $0x1f] sm:$0x1] %vm4100_vm14, %v6654_v1  ;;  %4102 = vst.msk [vmem:[#allocation5 + $0x37] sm:$0x1] %vm4100_vm14, %v6654_v1 }
  0x40   : > { %573 = vst.msk [vmem:[#allocation3 + $0x80] sm:$0xff] %vm418_vm0, %v7076_v10  ;;  %v1752_v12 = vld [vmem:[#allocation2 + $0x88] sm:$0xff]  ;;  %574 = vst.msk [vmem:[#allocation3 + $0x88] sm:$0xff] %vm418_vm0, %v7088_v13  ;;  %v1753_v14 = vld [vmem:[#allocation2 + $0x90] sm:$0xff] }
  0x41   : > { %v1945_v15 = vld [vmem:[#allocation2 + $0x89] sm:$0xff]  ;;  %v1946_v16 = vld [vmem:[#allocation2 + $0x91] sm:$0xff]  ;;  %4103 = vst.msk [vmem:[#allocation5 + $0x4f] sm:$0x1] %vm4100_vm14, %v6654_v1  ;;  %4104 = vst.msk [vmem:[#allocation5 + $0x67] sm:$0x1] %vm4100_vm14, %v6654_v1 }
  0x42   : > { %v7111_v22 = vld [vmem:[#allocation2 + $0x127] sm:$0xff]  ;;  %v1755_v33 = vld [vmem:[#allocation2 + $0xb0] sm:$0xff]  ;;  %4105 = vst.msk [vmem:[#allocation5 + $0x7f] sm:$0x1] %vm4100_vm14, %v6654_v1  ;;  %4106 = vst.msk [vmem:[#allocation5 + $0x97] sm:$0x1] %vm4100_vm14, %v6654_v1 }
  0x43   : > { %1427 = vrot.lane.b32.xlu0 %v1362_v40, %s6659_s12  ;;  %1619 = vrot.lane.b32.xlu1 %v1555_v20, %s6660_s15  ;;  %575 = vst.msk [vmem:[#allocation3 + $0x90] sm:$0xff] %vm418_vm0, %v7111_v22  ;;  %v1947_v34 = vld [vmem:[#allocation2 + $0xa9] sm:$0xff] }
  0x44   : > { %v7160_v47 = vld [vmem:[#allocation2 + $0x147] sm:$0xff]  ;;  %v7176_v55 = vld [vmem:[#allocation2 + $0x14f] sm:$0xff]  ;;  %4107 = vst.msk [vmem:[#allocation5 + $0xaf] sm:$0x1] %vm4100_vm14, %v6654_v1  ;;  %4108 = vst.msk [vmem:[#allocation5 + $0xc7] sm:$0x1] %vm4100_vm14, %v6654_v1 }
  0x45   : > { %577 = vst.msk [vmem:[#allocation3 + $0xa0] sm:$0xff] %vm418_vm0, %v7160_v47  ;;  %v1756_v51 = vld [vmem:[#allocation2 + $0xc8] sm:$0xff]  ;;  %578 = vst.msk [vmem:[#allocation3 + $0xa8] sm:$0xff] %vm418_vm0, %v7176_v55 }
  0x46   : > { %v1949_v59 = vld [vmem:[#allocation2 + $0xc9] sm:$0xff]  ;;  %4109 = vst.msk [vmem:[#allocation5 + $0x28] sm:$0x1] %vm4100_vm14, %v6654_v1  ;;  %4110 = vst.msk [vmem:[#allocation5 + $0x40] sm:$0x1] %vm4100_vm14, %v6654_v1 }
  0x47   : > { %852 = vrot.lane.b32.xlu0 %v1362_v40, %s6655_s25  ;;  %1043 = vrot.lane.b32.xlu1 %v1555_v20, %s6657_s27  ;;  %v1758_v17 = vld [vmem:[#allocation2 + $0xe8] sm:$0xff]  ;;  %4111 = vst.msk [vmem:[#allocation5 + $0x58] sm:$0x1] %vm4100_vm14, %v6654_v1  ;;  %4112 = vst.msk [vmem:[#allocation5 + $0x70] sm:$0x1] %vm4100_vm14, %v6654_v1 }
  0x48   : > { %4113 = vst.msk [vmem:[#allocation5 + $0x88] sm:$0x1] %vm4100_vm14, %v6654_v1  ;;  %4114 = vst.msk [vmem:[#allocation5 + $0xa0] sm:$0x1] %vm4100_vm14, %v6654_v1 }
  0x49   : > { %4115 = vst.msk [vmem:[#allocation5 + $0xb8] sm:$0x1] %vm4100_vm14, %v6654_v1  ;;  %4116 = vst.msk [vmem:[#allocation5 + $0xd0] sm:$0x1] %vm4100_vm14, %v6654_v1  ;;  %vm8820_vm14 = vcmask 1044484  }
  0x4a   : > { %4118 = vst.msk [vmem:[#allocation6 + $0x8] sm:$0xff] %vm4117_vm15, %v6654_v1  ;;  %4119 = vst.msk [vmem:[#allocation6 + $0x18] sm:$0xff] %vm4117_vm15, %v6654_v1 }
  0x4b   : > { %1621 = vrot.lane.b32.xlu0 %v6929_v21, %s6660_s15  ;;  %1812 = vrot.lane.b32.xlu1 %v1748_v49, %s6661_s30  ;;  %4120 = vst.msk [vmem:[#allocation6 + $0x28] sm:$0xff] %vm4117_vm15, %v6654_v1  ;;  %4121 = vst.msk [vmem:[#allocation6 + $0x38] sm:$0xff] %vm4117_vm15, %v6654_v1 }
  0x4c   : > { %4122 = vst.msk [vmem:[#allocation6 + $0x48] sm:$0xff] %vm4117_vm15, %v6654_v1  ;;  %4123 = vst.msk [vmem:[#allocation6 + $0x58] sm:$0xff] %vm4117_vm15, %v6654_v1 }
  0x4d   : > { %4124 = vst.msk [vmem:[#allocation6 + $0x68] sm:$0xff] %vm4117_vm15, %v6654_v1  ;;  %4125 = vst.msk [vmem:[#allocation6 + $0x78] sm:$0xff] %vm4117_vm15, %v6654_v1  ;;  %vm8819_vm15 = vcmask 1045509  }
  0x4f   : > { %1045 = vrot.lane.b32.xlu0 %v6929_v21, %s6657_s27  ;;  %1236 = vrot.lane.b32.xlu1 %v1748_v49, %s6658_s28 }
  0x53   : > { %1814 = vrot.lane.b32.xlu0 %v1749_v57, %s6661_s30  ;;  %2005 = vrot.lane.b32.xlu1 %v1941_v58, %s6662_s23 }
  0x57   : > { %661 = vrot.lane.b32.xlu0 %v1748_v49, %s6656_s26  ;;  %1238 = vrot.lane.b32.xlu1 %v1749_v57, %s6658_s28 }
  0x5b   : > { %1429 = vrot.lane.b32.xlu0 %v1941_v58, %s6659_s12  ;;  %2007 = vrot.lane.b32.xlu1 %v1942_v63, %s6662_s23 }
  0x5f   : > { %663 = vrot.lane.b32.xlu0 %v1749_v57, %s6656_s26  ;;  %854 = vrot.lane.b32.xlu1 %v1941_v58, %s6655_s25  ;;  %v1757_v58 = vld [vmem:[#allocation2 + $0xd0] sm:$0xff] }
  0x63   : > { %1431 = vrot.lane.b32.xlu0 %v1942_v63, %s6659_s12  ;;  %1623 = vrot.lane.b32.xlu1 %v6934_v23, %s6660_s15 }
  0x67   : > { %856 = vrot.lane.b32.xlu0 %v1942_v63, %s6655_s25  ;;  %1047 = vrot.lane.b32.xlu1 %v6934_v23, %s6657_s27  ;;  %v402_v23 = vld [vmem:[%s6897_s24 + $0x88] sm:$0xff] }
  0x68   : > { %436 = vst.msk [vmem:[#allocation2 + $0x130] sm:$0xff] %vm418_vm0, %v402_v23 }
  0x6b   : > { %1625 = vrot.lane.b32.xlu0 %v6936_v24, %s6660_s15  ;;  %1816 = vrot.lane.b32.xlu1 %v1750_v4, %s6661_s30 }
  0x6f   : > { %1049 = vrot.lane.b32.xlu0 %v6936_v24, %s6657_s27  ;;  %1240 = vrot.lane.b32.xlu1 %v1750_v4, %s6658_s28  ;;  %v7128_v31 = vld [vmem:[#allocation2 + $0x12f] sm:$0xff] }
  0x70   : > { %576 = vst.msk [vmem:[#allocation3 + $0x98] sm:$0xff] %vm418_vm0, %v7128_v31 }
  0x73   : > { %1818 = vrot.lane.b32.xlu0 %v1751_v6, %s6661_s30  ;;  %2009 = vrot.lane.b32.xlu1 %v1943_v7, %s6662_s23 }
  0x77   : > { %665 = vrot.lane.b32.xlu0 %v1750_v4, %s6656_s26  ;;  %1242 = vrot.lane.b32.xlu1 %v1751_v6, %s6658_s28 }
  0x7b   : > { %1433 = vrot.lane.b32.xlu0 %v1943_v7, %s6659_s12  ;;  %2011 = vrot.lane.b32.xlu1 %v1944_v8, %s6662_s23 }
  0x7f   : > { %667 = vrot.lane.b32.xlu0 %v1751_v6, %s6656_s26  ;;  %858 = vrot.lane.b32.xlu1 %v1943_v7, %s6655_s25  ;;  %v405_v6 = vld [vmem:[%s6897_s24 + $0xa0] sm:$0xff] }
  0x80   : > { %439 = vst.msk [vmem:[#allocation2 + $0x168] sm:$0xff] %vm418_vm0, %v405_v6  ;;  %v1762_v6 = vld [vmem:[#allocation2 + $0x128] sm:$0xff] }
  0x82   : > { %v847_v18 = vpop.permute.xlu1 %846 }
  0x83   : > { %1435 = vrot.lane.b32.xlu0 %v1944_v8, %s6659_s12  ;;  %1627 = vrot.lane.b32.xlu1 %v6944_v25, %s6660_s15  ;;  %v654_v19 = vpop.permute.xlu0 %653 }
  0x84   : > { %750 = vst.msk [vmem:[#allocation3] sm:$0xff] %vm749_vm4, %v654_v19 }
  0x85   : > { %943 = vst.msk [vmem:[#allocation3] sm:$0xff] %vm942_vm5, %v847_v18 }
  0x86   : > { %v849_v20 = vpop.permute.xlu1 %848 }
  0x87   : > { %860 = vrot.lane.b32.xlu0 %v1944_v8, %s6655_s25  ;;  %1051 = vrot.lane.b32.xlu1 %v6944_v25, %s6657_s27  ;;  %v656_v21 = vpop.permute.xlu0 %655 }
  0x88   : > { %751 = vst.msk [vmem:[#allocation3 + $0x8] sm:$0xff] %vm749_vm4, %v656_v21 }
  0x89   : > { %944 = vst.msk [vmem:[#allocation3 + $0x8] sm:$0xff] %vm942_vm5, %v849_v20 }
  0x8b   : > { %1629 = vrot.lane.b32.xlu0 %v6946_v26, %s6660_s15  ;;  %1820 = vrot.lane.b32.xlu1 %v1752_v12, %s6661_s30 }
  0x8f   : > { %1053 = vrot.lane.b32.xlu0 %v6946_v26, %s6657_s27  ;;  %1244 = vrot.lane.b32.xlu1 %v1752_v12, %s6658_s28  ;;  %v1754_v26 = vld [vmem:[#allocation2 + $0xa8] sm:$0xff] }
  0x93   : > { %1822 = vrot.lane.b32.xlu0 %v1753_v14, %s6661_s30  ;;  %2013 = vrot.lane.b32.xlu1 %v1945_v15, %s6662_s23 }
  0x97   : > { %669 = vrot.lane.b32.xlu0 %v1752_v12, %s6656_s26  ;;  %1246 = vrot.lane.b32.xlu1 %v1753_v14, %s6658_s28  ;;  %v7208_v12 = vld [vmem:[#allocation2 + $0x167] sm:$0xff] }
  0x98   : > { %579 = vst.msk [vmem:[#allocation3 + $0xb0] sm:$0xff] %vm418_vm0, %v7208_v12 }
  0x9b   : > { %1437 = vrot.lane.b32.xlu0 %v1945_v15, %s6659_s12  ;;  %2015 = vrot.lane.b32.xlu1 %v1946_v16, %s6662_s23 }
  0x9f   : > { %671 = vrot.lane.b32.xlu0 %v1753_v14, %s6656_s26  ;;  %862 = vrot.lane.b32.xlu1 %v1945_v15, %s6655_s25  ;;  %v406_v14 = vld [vmem:[%s6897_s24 + $0xa8] sm:$0xff] }
  0xa0   : > { %440 = vst.msk [vmem:[#allocation2 + $0x170] sm:$0xff] %vm418_vm0, %v406_v14  ;;  %v1763_v14 = vld [vmem:[#allocation2 + $0x130] sm:$0xff] }
  0xa3   : > { %1439 = vrot.lane.b32.xlu0 %v1946_v16, %s6659_s12  ;;  %1631 = vrot.lane.b32.xlu1 %v6952_v29, %s6660_s15 }
  0xa5   : > { %v1042_v24 = vpop.permute.xlu1 %1041  ;;  %v1040_v25 = vpop.permute.xlu0 %1039 }
  0xa6   : > { %1137 = vst.msk [vmem:[#allocation3 + $0x8] sm:$0xff] %vm1135_vm6, %v1042_v24  ;;  %1136 = vst.msk [vmem:[#allocation3] sm:$0xff] %vm1135_vm6, %v1040_v25  ;;  %v1759_v24 = vld [vmem:[#allocation2 + $0xf0] sm:$0xff] }
  0xa7   : > { %864 = vrot.lane.b32.xlu0 %v1946_v16, %s6655_s25  ;;  %1055 = vrot.lane.b32.xlu1 %v6952_v29, %s6657_s27  ;;  %v7224_v20 = vld [vmem:[#allocation2 + $0x16f] sm:$0xff] }
  0xa8   : > { %580 = vst.msk [vmem:[#allocation3 + $0xb8] sm:$0xff] %vm418_vm0, %v7224_v20  ;;  %v1951_v25 = vld [vmem:[#allocation2 + $0xe9] sm:$0xff] }
  0xa9   : > { %v1233_v27 = vpop.permute.xlu0 %1232  ;;  %v658_v28 = vpop.permute.xlu1 %657 }
  0xaa   : > { %1329 = vst.msk [vmem:[#allocation3] sm:$0xff] %vm1328_vm7, %v1233_v27 }
  0xab   : > { %752 = vst.msk [vmem:[#allocation3 + $0x10] sm:$0xff] %vm749_vm4, %v658_v28  ;;  %1633 = vrot.lane.b32.xlu0 %v6954_v30, %s6660_s15  ;;  %1824 = vrot.lane.b32.xlu1 %v1754_v26, %s6661_s30 }
  0xad   : > { %v1235_v29 = vpop.permute.xlu0 %1234  ;;  %v1426_v32 = vpop.permute.xlu1 %1425 }
  0xae   : > { %1330 = vst.msk [vmem:[#allocation3 + $0x8] sm:$0xff] %vm1328_vm7, %v1235_v29 }
  0xaf   : > { %1522 = vst.msk [vmem:[#allocation3] sm:$0xff] %vm1521_vm8, %v1426_v32  ;;  %1057 = vrot.lane.b32.xlu0 %v6954_v30, %s6657_s27  ;;  %1248 = vrot.lane.b32.xlu1 %v1754_v26, %s6658_s28  ;;  %v1948_v30 = vld [vmem:[#allocation2 + $0xb1] sm:$0xff] }
  0xb1   : > { %v660_v35 = vpop.permute.xlu0 %659  ;;  %v851_v36 = vpop.permute.xlu1 %850 }
  0xb2   : > { %753 = vst.msk [vmem:[#allocation3 + $0x18] sm:$0xff] %vm749_vm4, %v660_v35  ;;  %v407_v35 = vld [vmem:[%s6897_s24 + $0xb0] sm:$0xff] }
  0xb3   : > { %945 = vst.msk [vmem:[#allocation3 + $0x10] sm:$0xff] %vm942_vm5, %v851_v36  ;;  %1826 = vrot.lane.b32.xlu0 %v1755_v33, %s6661_s30  ;;  %2017 = vrot.lane.b32.xlu1 %v1947_v34, %s6662_s23 }
  0xb4   : > { %441 = vst.msk [vmem:[#allocation2 + $0x188] sm:$0xff] %vm418_vm0, %v407_v35 }
  0xb5   : > { %v1428_v37 = vpop.permute.xlu0 %1427  ;;  %v1620_v38 = vpop.permute.xlu1 %1619 }
  0xb6   : > { %1523 = vst.msk [vmem:[#allocation3 + $0x8] sm:$0xff] %vm1521_vm8, %v1428_v37 }
  0xb7   : > { %1716 = vst.msk [vmem:[#allocation3] sm:$0xff] %vm1715_vm9, %v1620_v38  ;;  %673 = vrot.lane.b32.xlu0 %v1754_v26, %s6656_s26  ;;  %1250 = vrot.lane.b32.xlu1 %v1755_v33, %s6658_s28 }
  0xb9   : > { %v853_v39 = vpop.permute.xlu0 %852  ;;  %v1044_v40 = vpop.permute.xlu1 %1043 }
  0xba   : > { %946 = vst.msk [vmem:[#allocation3 + $0x18] sm:$0xff] %vm942_vm5, %v853_v39 }
  0xbb   : > { %1138 = vst.msk [vmem:[#allocation3 + $0x10] sm:$0xff] %vm1135_vm6, %v1044_v40  ;;  %1441 = vrot.lane.b32.xlu0 %v1947_v34, %s6659_s12  ;;  %2019 = vrot.lane.b32.xlu1 %v1948_v30, %s6662_s23  ;;  %v7256_v39 = vld [vmem:[#allocation2 + $0x187] sm:$0xff]  ;;  %v408_v40 = vld [vmem:[%s6897_s24 + $0xb8] sm:$0xff] }
  0xbc   : > { %442 = vst.msk [vmem:[#allocation2 + $0x190] sm:$0xff] %vm418_vm0, %v408_v40  ;;  %581 = vst.msk [vmem:[#allocation3 + $0xc0] sm:$0xff] %vm418_vm0, %v7256_v39 }
  0xbd   : > { %v1622_v42 = vpop.permute.xlu0 %1621  ;;  %v1813_v43 = vpop.permute.xlu1 %1812 }
  0xbe   : > { %1717 = vst.msk [vmem:[#allocation3 + $0x8] sm:$0xff] %vm1715_vm9, %v1622_v42 }
  0xbf   : > { %1909 = vst.msk [vmem:[#allocation3] sm:$0xff] %vm1908_vm10, %v1813_v43  ;;  %675 = vrot.lane.b32.xlu0 %v1755_v33, %s6656_s26  ;;  %866 = vrot.lane.b32.xlu1 %v1947_v34, %s6655_s25  ;;  %v1760_v43 = vld [vmem:[#allocation2 + $0x108] sm:$0xff] }
  0xc1   : > { %v1046_v44 = vpop.permute.xlu0 %1045  ;;  %v1237_v45 = vpop.permute.xlu1 %1236 }
  0xc2   : > { %1139 = vst.msk [vmem:[#allocation3 + $0x18] sm:$0xff] %vm1135_vm6, %v1046_v44 }
  0xc3   : > { %1331 = vst.msk [vmem:[#allocation3 + $0x10] sm:$0xff] %vm1328_vm7, %v1237_v45  ;;  %1443 = vrot.lane.b32.xlu0 %v1948_v30, %s6659_s12  ;;  %1635 = vrot.lane.b32.xlu1 %v6994_v46, %s6660_s15 }
  0xc5   : > { %v1815_v49 = vpop.permute.xlu0 %1814  ;;  %v2006_v50 = vpop.permute.xlu1 %2005 }
  0xc6   : > { %1910 = vst.msk [vmem:[#allocation3 + $0x8] sm:$0xff] %vm1908_vm10, %v1815_v49 }
  0xc7   : > { %2102 = vst.msk [vmem:[#allocation3] sm:$0xff] %vm2101_vm11, %v2006_v50  ;;  %868 = vrot.lane.b32.xlu0 %v1948_v30, %s6655_s25  ;;  %1059 = vrot.lane.b32.xlu1 %v6994_v46, %s6657_s27 }
  0xc9   : > { %v662_v52 = vpop.permute.xlu0 %661  ;;  %v1239_v54 = vpop.permute.xlu1 %1238 }
  0xca   : > { %754 = vst.msk [vmem:[#allocation3 + $0x20] sm:$0xff] %vm749_vm4, %v662_v52 }
  0xcb   : > { %1332 = vst.msk [vmem:[#allocation3 + $0x18] sm:$0xff] %vm1328_vm7, %v1239_v54  ;;  %1637 = vrot.lane.b32.xlu0 %v7012_v53, %s6660_s15  ;;  %1828 = vrot.lane.b32.xlu1 %v1756_v51, %s6661_s30 }
  0xcd   : > { %v1430_v56 = vpop.permute.xlu0 %1429  ;;  %v2008_v57 = vpop.permute.xlu1 %2007 }
  0xce   : > { %v2134_v46 = vld [vmem:[#allocation3] sm:$0xff]  ;;  %1524 = vst.msk [vmem:[#allocation3 + $0x10] sm:$0xff] %vm1521_vm8, %v1430_v56 }
  0xcf   : > { %2103 = vst.msk [vmem:[#allocation3 + $0x8] sm:$0xff] %vm2101_vm11, %v2008_v57  ;;  %6217 = vmatprep.mubr.f32.mxu0 %v2134_v46  ;;  %1061 = vrot.lane.b32.xlu0 %v7012_v53, %s6657_s27  ;;  %v1950_v53 = vld [vmem:[#allocation2 + $0xd1] sm:$0xff] }
  0xd0   : > { %1252 = vrot.lane.b32.xlu1 %v1756_v51, %s6658_s28 }
  0xd1   : > { %v664_v60 = vpop.permute.xlu0 %663  ;;  %v855_v61 = vpop.permute.xlu1 %854 }
  0xd2   : > { %755 = vst.msk [vmem:[#allocation3 + $0x28] sm:$0xff] %vm749_vm4, %v664_v60  ;;  %v409_v60 = vld [vmem:[%s6897_s24 + $0xc0] sm:$0xff] }
  0xd3   : > { %947 = vst.msk [vmem:[#allocation3 + $0x20] sm:$0xff] %vm942_vm5, %v855_v61  ;;  %1830 = vrot.lane.b32.xlu0 %v1757_v58, %s6661_s30 }
  0xd4   : > { %2021 = vrot.lane.b32.xlu1 %v1949_v59, %s6662_s23  ;;  %443 = vst.msk [vmem:[#allocation2 + $0x1a8] sm:$0xff] %vm418_vm0, %v409_v60 }
  0xd5   : > { %v1432_v62 = vpop.permute.xlu0 %1431  ;;  %v1624_v63 = vpop.permute.xlu1 %1623 }
  0xd6   : > { %v2135_v0 = vld [vmem:[#allocation3 + $0x8] sm:$0xff]  ;;  %1525 = vst.msk [vmem:[#allocation3 + $0x18] sm:$0xff] %vm1521_vm8, %v1432_v62 }
  0xd7   : > { %1718 = vst.msk [vmem:[#allocation3 + $0x10] sm:$0xff] %vm1715_vm9, %v1624_v63  ;;  %6218 = vmatmul.mubr.f32.vlgmr.msra.gmra.mrb[0].mxu0 %v2135_v0  ;;  %677 = vrot.lane.b32.xlu0 %v1756_v51, %s6656_s26  ;;  %v1953_v51 = vld [vmem:[#allocation2 + $0x109] sm:$0xff] }
  0xd8   : > { %1254 = vrot.lane.b32.xlu1 %v1757_v58, %s6658_s28 }
  0xd9   : > { %v857_v3 = vpop.permute.xlu0 %856  ;;  %v1048_v4 = vpop.permute.xlu1 %1047 }
  0xda   : > { %948 = vst.msk [vmem:[#allocation3 + $0x28] sm:$0xff] %vm942_vm5, %v857_v3 }
  0xdb   : > { %1140 = vst.msk [vmem:[#allocation3 + $0x20] sm:$0xff] %vm1135_vm6, %v1048_v4  ;;  %1445 = vrot.lane.b32.xlu0 %v1949_v59, %s6659_s12 }
  0xdc   : > { %2023 = vrot.lane.b32.xlu1 %v1950_v53, %s6662_s23 }
  0xdd   : > { %v1626_v7 = vpop.permute.xlu0 %1625  ;;  %v1817_v8 = vpop.permute.xlu1 %1816 }
  0xde   : > { %1719 = vst.msk [vmem:[#allocation3 + $0x18] sm:$0xff] %vm1715_vm9, %v1626_v7 }
  0xdf   : > { %1911 = vst.msk [vmem:[#allocation3 + $0x10] sm:$0xff] %vm1908_vm10, %v1817_v8  ;;  %679 = vrot.lane.b32.xlu0 %v1757_v58, %s6656_s26 }
  0xe0   : > { %870 = vrot.lane.b32.xlu1 %v1949_v59, %s6655_s25 }
  0xe1   : > { %v1050_v9 = vpop.permute.xlu0 %1049  ;;  %v1241_v11 = vpop.permute.xlu1 %1240 }
  0xe2   : > { %1141 = vst.msk [vmem:[#allocation3 + $0x28] sm:$0xff] %vm1135_vm6, %v1050_v9 }
  0xe3   : > { %1333 = vst.msk [vmem:[#allocation3 + $0x20] sm:$0xff] %vm1328_vm7, %v1241_v11  ;;  %1447 = vrot.lane.b32.xlu0 %v1950_v53, %s6659_s12 }
  0xe4   : > { %1639 = vrot.lane.b32.xlu1 %v7044_v2, %s6660_s15 }
  0xe5   : > { %v1819_v15 = vpop.permute.xlu0 %1818  ;;  %v2010_v16 = vpop.permute.xlu1 %2009 }
  0xe6   : > { %1912 = vst.msk [vmem:[#allocation3 + $0x18] sm:$0xff] %vm1908_vm10, %v1819_v15  ;;  %v1955_v15 = vld [vmem:[#allocation2 + $0x129] sm:$0xff] }
  0xe7   : > { %2104 = vst.msk [vmem:[#allocation3 + $0x10] sm:$0xff] %vm2101_vm11, %v2010_v16  ;;  %872 = vrot.lane.b32.xlu0 %v1950_v53, %s6655_s25  ;;  %v410_v53 = vld [vmem:[%s6897_s24 + $0xc8] sm:$0xff] }
  0xe8   : > { %1063 = vrot.lane.b32.xlu1 %v7044_v2, %s6657_s27  ;;  %444 = vst.msk [vmem:[#allocation2 + $0x1b0] sm:$0xff] %vm418_vm0, %v410_v53 }
  0xe9   : > { %v666_v18 = vpop.permute.xlu0 %665  ;;  %v1243_v19 = vpop.permute.xlu1 %1242 }
  0xea   : > { %756 = vst.msk [vmem:[#allocation3 + $0x30] sm:$0xff] %vm749_vm4, %v666_v18 }
  0xeb   : > { %1334 = vst.msk [vmem:[#allocation3 + $0x28] sm:$0xff] %vm1328_vm7, %v1243_v19  ;;  %1641 = vrot.lane.b32.xlu0 %v7056_v5, %s6660_s15 }
  0xec   : > { %1832 = vrot.lane.b32.xlu1 %v1758_v17, %s6661_s30 }
  0xed   : > { %v1434_v21 = vpop.permute.xlu0 %1433  ;;  %v2012_v23 = vpop.permute.xlu1 %2011 }
  0xee   : > { %v2136_v2 = vld [vmem:[#allocation3 + $0x10] sm:$0xff]  ;;  %1526 = vst.msk [vmem:[#allocation3 + $0x20] sm:$0xff] %vm1521_vm8, %v1434_v21 }
  0xef   : > { %2105 = vst.msk [vmem:[#allocation3 + $0x18] sm:$0xff] %vm2101_vm11, %v2012_v23  ;;  %6220 = vmatprep.mubr.f32.mxu0 %v2136_v2  ;;  %1065 = vrot.lane.b32.xlu0 %v7056_v5, %s6657_s27  ;;  %v1952_v5 = vld [vmem:[#allocation2 + $0xf1] sm:$0xff] }
  0xf0   : > { %1256 = vrot.lane.b32.xlu1 %v1758_v17, %s6658_s28 }
  0xf1   : > { %v668_v26 = vpop.permute.xlu0 %667  ;;  %v859_v27 = vpop.permute.xlu1 %858 }
  0xf2   : > { %757 = vst.msk [vmem:[#allocation3 + $0x38] sm:$0xff] %vm749_vm4, %v668_v26 }
  0xf3   : > { %949 = vst.msk [vmem:[#allocation3 + $0x30] sm:$0xff] %vm942_vm5, %v859_v27  ;;  %1834 = vrot.lane.b32.xlu0 %v1759_v24, %s6661_s30 }
  0xf4   : > { %2025 = vrot.lane.b32.xlu1 %v1951_v25, %s6662_s23 }
  0xf5   : > { %v1436_v28 = vpop.permute.xlu0 %1435  ;;  %v1628_v29 = vpop.permute.xlu1 %1627 }
  0xf6   : > { %v2137_v32 = vld [vmem:[#allocation3 + $0x18] sm:$0xff]  ;;  %1527 = vst.msk [vmem:[#allocation3 + $0x28] sm:$0xff] %vm1521_vm8, %v1436_v28 }
  0xf7   : > { %1720 = vst.msk [vmem:[#allocation3 + $0x20] sm:$0xff] %vm1715_vm9, %v1628_v29  ;;  %6221 = vmatmul.mubr.f32.gmra.mrb[2].mxu0 %v2137_v32  ;;  %681 = vrot.lane.b32.xlu0 %v1758_v17, %s6656_s26  ;;  %v412_v29 = vld [vmem:[%s6897_s24 + $0xd8] sm:$0xff] }
  0xf8   : > { %1258 = vrot.lane.b32.xlu1 %v1759_v24, %s6658_s28  ;;  %446 = vst.msk [vmem:[#allocation2 + $0x1d0] sm:$0xff] %vm418_vm0, %v412_v29 }
  0xf9   : > { %v861_v33 = vpop.permute.xlu0 %860  ;;  %v1052_v34 = vpop.permute.xlu1 %1051 }
  0xfa   : > { %950 = vst.msk [vmem:[#allocation3 + $0x38] sm:$0xff] %vm942_vm5, %v861_v33  ;;  %v1764_v33 = vld [vmem:[#allocation2 + $0x148] sm:$0xff] }
  0xfb   : > { %1142 = vst.msk [vmem:[#allocation3 + $0x30] sm:$0xff] %vm1135_vm6, %v1052_v34  ;;  %1449 = vrot.lane.b32.xlu0 %v1951_v25, %s6659_s12 }
  0xfc   : > { %2027 = vrot.lane.b32.xlu1 %v1952_v5, %s6662_s23 }
  0xfd   : > { %v1630_v36 = vpop.permute.xlu0 %1629  ;;  %v1821_v37 = vpop.permute.xlu1 %1820 }
  0xfe   : > { %1721 = vst.msk [vmem:[#allocation3 + $0x28] sm:$0xff] %vm1715_vm9, %v1630_v36 }
  0xff   : > { %1913 = vst.msk [vmem:[#allocation3 + $0x20] sm:$0xff] %vm1908_vm10, %v1821_v37  ;;  %683 = vrot.lane.b32.xlu0 %v1759_v24, %s6656_s26  ;;  %v411_v24 = vld [vmem:[%s6897_s24 + $0xd0] sm:$0xff] }
 0x100   : > { %874 = vrot.lane.b32.xlu1 %v1951_v25, %s6655_s25  ;;  %445 = vst.msk [vmem:[#allocation2 + $0x1c8] sm:$0xff] %vm418_vm0, %v411_v24 }
 0x101   : > { %v1054_v38 = vpop.permute.xlu0 %1053  ;;  %v1245_v30 = vpop.permute.xlu1 %1244 }
 0x102   : > { %1143 = vst.msk [vmem:[#allocation3 + $0x38] sm:$0xff] %vm1135_vm6, %v1054_v38 }
 0x103   : > { %1335 = vst.msk [vmem:[#allocation3 + $0x30] sm:$0xff] %vm1328_vm7, %v1245_v30  ;;  %1451 = vrot.lane.b32.xlu0 %v1952_v5, %s6659_s12  ;;  %v1957_v30 = vld [vmem:[#allocation2 + $0x149] sm:$0xff] }
 0x104   : > { %1643 = vrot.lane.b32.xlu1 %v7076_v10, %s6660_s15 }
 0x105   : > { %v1823_v41 = vpop.permute.xlu0 %1822  ;;  %v2014_v42 = vpop.permute.xlu1 %2013 }
 0x106   : > { %1914 = vst.msk [vmem:[#allocation3 + $0x28] sm:$0xff] %vm1908_vm10, %v1823_v41 }
 0x107   : > { %2106 = vst.msk [vmem:[#allocation3 + $0x20] sm:$0xff] %vm2101_vm11, %v2014_v42  ;;  %876 = vrot.lane.b32.xlu0 %v1952_v5, %s6655_s25 }
 0x108   : > { %1067 = vrot.lane.b32.xlu1 %v7076_v10, %s6657_s27  ;;  %v1761_v10 = vld [vmem:[#allocation2 + $0x110] sm:$0xff] }
 0x109   : > { %v670_v44 = vpop.permute.xlu0 %669  ;;  %v1247_v45 = vpop.permute.xlu1 %1246 }
 0x10a   : > { %758 = vst.msk [vmem:[#allocation3 + $0x40] sm:$0xff] %vm749_vm4, %v670_v44 }
 0x10b   : > { %1336 = vst.msk [vmem:[#allocation3 + $0x38] sm:$0xff] %vm1328_vm7, %v1247_v45  ;;  %1645 = vrot.lane.b32.xlu0 %v7088_v13, %s6660_s15  ;;  %v413_v45 = vld [vmem:[%s6897_s24 + $0xe0] sm:$0xff] }
 0x10c   : > { %1836 = vrot.lane.b32.xlu1 %v1760_v43, %s6661_s30  ;;  %447 = vst.msk [vmem:[#allocation2 + $0x1e8] sm:$0xff] %vm418_vm0, %v413_v45 }
 0x10d   : > { %v1438_v48 = vpop.permute.xlu0 %1437  ;;  %v2016_v49 = vpop.permute.xlu1 %2015 }
 0x10e   : > { %v2138_v50 = vld [vmem:[#allocation3 + $0x20] sm:$0xff]  ;;  %1528 = vst.msk [vmem:[#allocation3 + $0x30] sm:$0xff] %vm1521_vm8, %v1438_v48  ;;  %v414_v48 = vld [vmem:[%s6897_s24 + $0xe8] sm:$0xff] }
 0x10f   : > { %2107 = vst.msk [vmem:[#allocation3 + $0x28] sm:$0xff] %vm2101_vm11, %v2016_v49  ;;  %6223 = vmatprep.mubr.f32.mxu0 %v2138_v50  ;;  %1069 = vrot.lane.b32.xlu0 %v7088_v13, %s6657_s27  ;;  %v1954_v13 = vld [vmem:[#allocation2 + $0x111] sm:$0xff] }
 0x110   : > { %1260 = vrot.lane.b32.xlu1 %v1760_v43, %s6658_s28  ;;  %448 = vst.msk [vmem:[#allocation2 + $0x1f0] sm:$0xff] %vm418_vm0, %v414_v48 }
 0x111   : > { %v672_v52 = vpop.permute.xlu0 %671  ;;  %v863_v54 = vpop.permute.xlu1 %862 }
 0x112   : > { %759 = vst.msk [vmem:[#allocation3 + $0x48] sm:$0xff] %vm749_vm4, %v672_v52 }
 0x113   : > { %951 = vst.msk [vmem:[#allocation3 + $0x40] sm:$0xff] %vm942_vm5, %v863_v54  ;;  %1838 = vrot.lane.b32.xlu0 %v1761_v10, %s6661_s30 }
 0x114   : > { %2029 = vrot.lane.b32.xlu1 %v1953_v51, %s6662_s23 }
 0x115   : > { %v1440_v56 = vpop.permute.xlu0 %1439  ;;  %v1632_v57 = vpop.permute.xlu1 %1631 }
 0x116   : > { %v2139_v46 = vld [vmem:[#allocation3 + $0x28] sm:$0xff]  ;;  %1529 = vst.msk [vmem:[#allocation3 + $0x38] sm:$0xff] %vm1521_vm8, %v1440_v56 }
 0x117   : > { %1722 = vst.msk [vmem:[#allocation3 + $0x30] sm:$0xff] %vm1715_vm9, %v1632_v57  ;;  %6224 = vmatmul.mubr.f32.gmra.mrb[4].mxu0 %v2139_v46  ;;  %685 = vrot.lane.b32.xlu0 %v1760_v43, %s6656_s26  ;;  %v1766_v46 = vld [vmem:[#allocation2 + $0x168] sm:$0xff] }
 0x118   : > { %1262 = vrot.lane.b32.xlu1 %v1761_v10, %s6658_s28 }
 0x119   : > { %v865_v58 = vpop.permute.xlu0 %864  ;;  %v1056_v59 = vpop.permute.xlu1 %1055 }
 0x11a   : > { %952 = vst.msk [vmem:[#allocation3 + $0x48] sm:$0xff] %vm942_vm5, %v865_v58 }
 0x11b   : > { %1144 = vst.msk [vmem:[#allocation3 + $0x40] sm:$0xff] %vm1135_vm6, %v1056_v59  ;;  %1453 = vrot.lane.b32.xlu0 %v1953_v51, %s6659_s12 }
 0x11c   : > { %2031 = vrot.lane.b32.xlu1 %v1954_v13, %s6662_s23 }
 0x11d   : > { %v1634_v61 = vpop.permute.xlu0 %1633  ;;  %v1825_v62 = vpop.permute.xlu1 %1824 }
 0x11e   : > { %1723 = vst.msk [vmem:[#allocation3 + $0x38] sm:$0xff] %vm1715_vm9, %v1634_v61 }
 0x11f   : > { %1915 = vst.msk [vmem:[#allocation3 + $0x30] sm:$0xff] %vm1908_vm10, %v1825_v62  ;;  %687 = vrot.lane.b32.xlu0 %v1761_v10, %s6656_s26  ;;  %v1959_v62 = vld [vmem:[#allocation2 + $0x169] sm:$0xff] }
 0x120   : > { %878 = vrot.lane.b32.xlu1 %v1953_v51, %s6655_s25 }
 0x121   : > { %v1058_v63 = vpop.permute.xlu0 %1057  ;;  %v1249_v0 = vpop.permute.xlu1 %1248 }
 0x122   : > { %1145 = vst.msk [vmem:[#allocation3 + $0x48] sm:$0xff] %vm1135_vm6, %v1058_v63 }
 0x123   : > { %1337 = vst.msk [vmem:[#allocation3 + $0x40] sm:$0xff] %vm1328_vm7, %v1249_v0  ;;  %1455 = vrot.lane.b32.xlu0 %v1954_v13, %s6659_s12 }
 0x124   : > { %1647 = vrot.lane.b32.xlu1 %v7111_v22, %s6660_s15 }
 0x125   : > { %v1827_v3 = vpop.permute.xlu0 %1826  ;;  %v2018_v4 = vpop.permute.xlu1 %2017 }
 0x126   : > { %1916 = vst.msk [vmem:[#allocation3 + $0x38] sm:$0xff] %vm1908_vm10, %v1827_v3 }
 0x127   : > { %2108 = vst.msk [vmem:[#allocation3 + $0x30] sm:$0xff] %vm2101_vm11, %v2018_v4  ;;  %880 = vrot.lane.b32.xlu0 %v1954_v13, %s6655_s25 }
 0x128   : > { %1071 = vrot.lane.b32.xlu1 %v7111_v22, %s6657_s27 }
 0x129   : > { %v674_v7 = vpop.permute.xlu0 %673  ;;  %v1251_v8 = vpop.permute.xlu1 %1250 }
 0x12a   : > { %760 = vst.msk [vmem:[#allocation3 + $0x50] sm:$0xff] %vm749_vm4, %v674_v7 }
 0x12b   : > { %1338 = vst.msk [vmem:[#allocation3 + $0x48] sm:$0xff] %vm1328_vm7, %v1251_v8  ;;  %1649 = vrot.lane.b32.xlu0 %v7128_v31, %s6660_s15  ;;  %v415_v8 = vld [vmem:[%s6897_s24 + $0xf0] sm:$0xff] }
 0x12c   : > { %1840 = vrot.lane.b32.xlu1 %v1762_v6, %s6661_s30  ;;  %449 = vst.msk [vmem:[#allocation2 + $0x208] sm:$0xff] %vm418_vm0, %v415_v8 }
 0x12d   : > { %v1442_v22 = vpop.permute.xlu0 %1441  ;;  %v2020_v9 = vpop.permute.xlu1 %2019 }
 0x12e   : > { %v2140_v11 = vld [vmem:[#allocation3 + $0x30] sm:$0xff]  ;;  %1530 = vst.msk [vmem:[#allocation3 + $0x40] sm:$0xff] %vm1521_vm8, %v1442_v22 }
 0x12f   : > { %2109 = vst.msk [vmem:[#allocation3 + $0x38] sm:$0xff] %vm2101_vm11, %v2020_v9  ;;  %6226 = vmatprep.mubr.f32.mxu0 %v2140_v11  ;;  %1073 = vrot.lane.b32.xlu0 %v7128_v31, %s6657_s27  ;;  %v1956_v31 = vld [vmem:[#allocation2 + $0x131] sm:$0xff] }
 0x130   : > { %1264 = vrot.lane.b32.xlu1 %v1762_v6, %s6658_s28 }
 0x131   : > { %v676_v16 = vpop.permute.xlu0 %675  ;;  %v867_v17 = vpop.permute.xlu1 %866 }
 0x132   : > { %761 = vst.msk [vmem:[#allocation3 + $0x58] sm:$0xff] %vm749_vm4, %v676_v16 }
 0x133   : > { %953 = vst.msk [vmem:[#allocation3 + $0x50] sm:$0xff] %vm942_vm5, %v867_v17  ;;  %1842 = vrot.lane.b32.xlu0 %v1763_v14, %s6661_s30 }
 0x134   : > { %2033 = vrot.lane.b32.xlu1 %v1955_v15, %s6662_s23 }
 0x135   : > { %v1444_v18 = vpop.permute.xlu0 %1443  ;;  %v1636_v19 = vpop.permute.xlu1 %1635 }
 0x136   : > { %v2141_v21 = vld [vmem:[#allocation3 + $0x38] sm:$0xff]  ;;  %1531 = vst.msk [vmem:[#allocation3 + $0x48] sm:$0xff] %vm1521_vm8, %v1444_v18  ;;  %v1576_v18 = vld [vmem:[#allocation2 + $0x18f] sm:$0xff] }
 0x137   : > { %1724 = vst.msk [vmem:[#allocation3 + $0x40] sm:$0xff] %vm1715_vm9, %v1636_v19  ;;  %6227 = vmatmul.mubr.f32.gmra.mrb[6].mxu0 %v2141_v21  ;;  %689 = vrot.lane.b32.xlu0 %v1762_v6, %s6656_s26  ;;  %v1768_v19 = vld [vmem:[#allocation2 + $0x188] sm:$0xff] }
 0x138   : > { %1266 = vrot.lane.b32.xlu1 %v1763_v14, %s6658_s28 }
 0x139   : > { %v869_v23 = vpop.permute.xlu0 %868  ;;  %v1060_v2 = vpop.permute.xlu1 %1059 }
 0x13a   : > { %954 = vst.msk [vmem:[#allocation3 + $0x58] sm:$0xff] %vm942_vm5, %v869_v23 }
 0x13b   : > { %1146 = vst.msk [vmem:[#allocation3 + $0x50] sm:$0xff] %vm1135_vm6, %v1060_v2  ;;  %1457 = vrot.lane.b32.xlu0 %v1955_v15, %s6659_s12 }
 0x13c   : > { %2035 = vrot.lane.b32.xlu1 %v1956_v31, %s6662_s23 }
 0x13d   : > { %v1638_v25 = vpop.permute.xlu0 %1637  ;;  %v1829_v26 = vpop.permute.xlu1 %1828 }
 0x13e   : > { %1725 = vst.msk [vmem:[#allocation3 + $0x48] sm:$0xff] %vm1715_vm9, %v1638_v25  ;;  %v1961_v25 = vld [vmem:[#allocation2 + $0x189] sm:$0xff] }
 0x13f   : > { %1917 = vst.msk [vmem:[#allocation3 + $0x40] sm:$0xff] %vm1908_vm10, %v1829_v26  ;;  %691 = vrot.lane.b32.xlu0 %v1763_v14, %s6656_s26 }
 0x140   : > { %882 = vrot.lane.b32.xlu1 %v1955_v15, %s6655_s25  ;;  %v416_v15 = vld [vmem:[%s6897_s24 + $0xf8] sm:$0xff] }
 0x141   : > { %v1062_v27 = vpop.permute.xlu0 %1061  ;;  %450 = vst.msk [vmem:[#allocation2 + $0x210] sm:$0xff] %vm418_vm0, %v416_v15 }
 0x142   : > { %v1253_v28 = vpop.permute.xlu1 %1252  ;;  %1147 = vst.msk [vmem:[#allocation3 + $0x58] sm:$0xff] %vm1135_vm6, %v1062_v27 }
 0x143   : > { %1339 = vst.msk [vmem:[#allocation3 + $0x50] sm:$0xff] %vm1328_vm7, %v1253_v28  ;;  %1459 = vrot.lane.b32.xlu0 %v1956_v31, %s6659_s12  ;;  %v550_v28 = vld [vmem:[#allocation2 + $0x18f] sm:$0xff] }
 0x144   : > { %1651 = vrot.lane.b32.xlu1 %v7160_v47, %s6660_s15  ;;  %582 = vst.msk [vmem:[#allocation3 + $0xc8] sm:$0xff] %vm418_vm0, %v550_v28 }
 0x145   : > { %v1831_v32 = vpop.permute.xlu0 %1830 }
 0x146   : > { %v2022_v5 = vpop.permute.xlu1 %2021  ;;  %1918 = vst.msk [vmem:[#allocation3 + $0x48] sm:$0xff] %vm1908_vm10, %v1831_v32 }
 0x147   : > { %2110 = vst.msk [vmem:[#allocation3 + $0x40] sm:$0xff] %vm2101_vm11, %v2022_v5  ;;  %884 = vrot.lane.b32.xlu0 %v1956_v31, %s6655_s25 }
 0x148   : > { %1075 = vrot.lane.b32.xlu1 %v7160_v47, %s6657_s27  ;;  %v1765_v47 = vld [vmem:[#allocation2 + $0x150] sm:$0xff] }
 0x149   : > { %v678_v34 = vpop.permute.xlu0 %677 }
 0x14a   : > { %v1255_v35 = vpop.permute.xlu1 %1254  ;;  %762 = vst.msk [vmem:[#allocation3 + $0x60] sm:$0xff] %vm749_vm4, %v678_v34 }
 0x14b   : > { %1340 = vst.msk [vmem:[#allocation3 + $0x58] sm:$0xff] %vm1328_vm7, %v1255_v35  ;;  %1653 = vrot.lane.b32.xlu0 %v7176_v55, %s6660_s15 }
 0x14c   : > { %1844 = vrot.lane.b32.xlu1 %v1764_v33, %s6661_s30 }
 0x14d   : > { %v1446_v36 = vpop.permute.xlu0 %1445 }
 0x14e   : > { %v2024_v37 = vpop.permute.xlu1 %2023  ;;  %v2142_v38 = vld [vmem:[#allocation3 + $0x40] sm:$0xff]  ;;  %1532 = vst.msk [vmem:[#allocation3 + $0x50] sm:$0xff] %vm1521_vm8, %v1446_v36 }
 0x14f   : > { %2111 = vst.msk [vmem:[#allocation3 + $0x48] sm:$0xff] %vm2101_vm11, %v2024_v37  ;;  %6229 = vmatprep.mubr.f32.mxu0 %v2142_v38  ;;  %1077 = vrot.lane.b32.xlu0 %v7176_v55, %s6657_s27  ;;  %v1958_v55 = vld [vmem:[#allocation2 + $0x151] sm:$0xff]  ;;  %v1577_v38 = vld [vmem:[#allocation2 + $0x1a7] sm:$0xff] }
 0x150   : > { %1268 = vrot.lane.b32.xlu1 %v1764_v33, %s6658_s28 }
 0x151   : > { %v680_v40 = vpop.permute.xlu0 %679 }
 0x152   : > { %v871_v41 = vpop.permute.xlu1 %870  ;;  %763 = vst.msk [vmem:[#allocation3 + $0x68] sm:$0xff] %vm749_vm4, %v680_v40 }
 0x153   : > { %955 = vst.msk [vmem:[#allocation3 + $0x60] sm:$0xff] %vm942_vm5, %v871_v41  ;;  %1846 = vrot.lane.b32.xlu0 %v1765_v47, %s6661_s30 }
 0x154   : > { %2037 = vrot.lane.b32.xlu1 %v1957_v30, %s6662_s23 }
 0x155   : > { %v1448_v42 = vpop.permute.xlu0 %1447 }
 0x156   : > { %v1640_v43 = vpop.permute.xlu1 %1639  ;;  %v2143_v44 = vld [vmem:[#allocation3 + $0x48] sm:$0xff]  ;;  %1533 = vst.msk [vmem:[#allocation3 + $0x58] sm:$0xff] %vm1521_vm8, %v1448_v42 }
 0x157   : > { %1726 = vst.msk [vmem:[#allocation3 + $0x50] sm:$0xff] %vm1715_vm9, %v1640_v43  ;;  %6230 = vmatmul.mubr.f32.gmra.mrb[8].mxu0 %v2143_v44  ;;  %693 = vrot.lane.b32.xlu0 %v1764_v33, %s6656_s26  ;;  %v1962_v33 = vld [vmem:[#allocation2 + $0x191] sm:$0xff]  ;;  %v1770_v43 = vld [vmem:[#allocation2 + $0x1a8] sm:$0xff] }
 0x158   : > { %1270 = vrot.lane.b32.xlu1 %v1765_v47, %s6658_s28  ;;  %v1578_v42 = vld [vmem:[#allocation2 + $0x1af] sm:$0xff] }
 0x159   : > { %v873_v49 = vpop.permute.xlu0 %872 }
 0x15a   : > { %v1064_v50 = vpop.permute.xlu1 %1063  ;;  %956 = vst.msk [vmem:[#allocation3 + $0x68] sm:$0xff] %vm942_vm5, %v873_v49  ;;  %v551_v49 = vld [vmem:[#allocation2 + $0x1a7] sm:$0xff] }
 0x15b   : > { %1148 = vst.msk [vmem:[#allocation3 + $0x60] sm:$0xff] %vm1135_vm6, %v1064_v50  ;;  %1461 = vrot.lane.b32.xlu0 %v1957_v30, %s6659_s12 }
 0x15c   : > { %2039 = vrot.lane.b32.xlu1 %v1958_v55, %s6662_s23  ;;  %583 = vst.msk [vmem:[#allocation3 + $0xd0] sm:$0xff] %vm418_vm0, %v551_v49 }
 0x15d   : > { %v1642_v10 = vpop.permute.xlu0 %1641 }
 0x15e   : > { %v1833_v51 = vpop.permute.xlu1 %1832  ;;  %1727 = vst.msk [vmem:[#allocation3 + $0x58] sm:$0xff] %vm1715_vm9, %v1642_v10 }
 0x15f   : > { %1919 = vst.msk [vmem:[#allocation3 + $0x50] sm:$0xff] %vm1908_vm10, %v1833_v51  ;;  %695 = vrot.lane.b32.xlu0 %v1765_v47, %s6656_s26 }
 0x160   : > { %886 = vrot.lane.b32.xlu1 %v1957_v30, %s6655_s25 }
 0x161   : > { %v1066_v52 = vpop.permute.xlu0 %1065 }
 0x162   : > { %v1257_v54 = vpop.permute.xlu1 %1256  ;;  %1149 = vst.msk [vmem:[#allocation3 + $0x68] sm:$0xff] %vm1135_vm6, %v1066_v52  ;;  %v1771_v52 = vld [vmem:[#allocation2 + $0x1b0] sm:$0xff] }
 0x163   : > { %1341 = vst.msk [vmem:[#allocation3 + $0x60] sm:$0xff] %vm1328_vm7, %v1257_v54  ;;  %1463 = vrot.lane.b32.xlu0 %v1958_v55, %s6659_s12  ;;  %v1963_v54 = vld [vmem:[#allocation2 + $0x1a9] sm:$0xff] }
 0x164   : > { %1655 = vrot.lane.b32.xlu1 %v7208_v12, %s6660_s15 }
 0x165   : > { %v1835_v56 = vpop.permute.xlu0 %1834 }
 0x166   : > { %v2026_v57 = vpop.permute.xlu1 %2025  ;;  %1920 = vst.msk [vmem:[#allocation3 + $0x58] sm:$0xff] %vm1908_vm10, %v1835_v56 }
 0x167   : > { %2112 = vst.msk [vmem:[#allocation3 + $0x50] sm:$0xff] %vm2101_vm11, %v2026_v57  ;;  %888 = vrot.lane.b32.xlu0 %v1958_v55, %s6655_s25 }
 0x168   : > { %1079 = vrot.lane.b32.xlu1 %v7208_v12, %s6657_s27  ;;  %v1767_v12 = vld [vmem:[#allocation2 + $0x170] sm:$0xff] }
 0x169   : > { %v682_v13 = vpop.permute.xlu0 %681 }
 0x16a   : > { %v1259_v58 = vpop.permute.xlu1 %1258  ;;  %764 = vst.msk [vmem:[#allocation3 + $0x70] sm:$0xff] %vm749_vm4, %v682_v13 }
 0x16b   : > { %1342 = vst.msk [vmem:[#allocation3 + $0x68] sm:$0xff] %vm1328_vm7, %v1259_v58  ;;  %1657 = vrot.lane.b32.xlu0 %v7224_v20, %s6660_s15 }
 0x16c   : > { %1848 = vrot.lane.b32.xlu1 %v1766_v46, %s6661_s30 }
 0x16d   : > { %v1450_v59 = vpop.permute.xlu0 %1449 }
 0x16e   : > { %v2028_v60 = vpop.permute.xlu1 %2027  ;;  %v2144_v61 = vld [vmem:[#allocation3 + $0x50] sm:$0xff]  ;;  %1534 = vst.msk [vmem:[#allocation3 + $0x60] sm:$0xff] %vm1521_vm8, %v1450_v59 }
 0x16f   : > { %2113 = vst.msk [vmem:[#allocation3 + $0x58] sm:$0xff] %vm2101_vm11, %v2028_v60  ;;  %6232 = vmatprep.mubr.f32.mxu0 %v2144_v61  ;;  %1081 = vrot.lane.b32.xlu0 %v7224_v20, %s6657_s27  ;;  %v1960_v20 = vld [vmem:[#allocation2 + $0x171] sm:$0xff] }
 0x170   : > { %1272 = vrot.lane.b32.xlu1 %v1766_v46, %s6658_s28  ;;  %v1964_v61 = vld [vmem:[#allocation2 + $0x1b1] sm:$0xff] }
 0x171   : > { %v684_v63 = vpop.permute.xlu0 %683 }
 0x172   : > { %v875_v0 = vpop.permute.xlu1 %874  ;;  %765 = vst.msk [vmem:[#allocation3 + $0x78] sm:$0xff] %vm749_vm4, %v684_v63 }
 0x173   : > { %957 = vst.msk [vmem:[#allocation3 + $0x70] sm:$0xff] %vm942_vm5, %v875_v0  ;;  %1850 = vrot.lane.b32.xlu0 %v1767_v12, %s6661_s30  ;;  %v2453_v0 = vlaneseq }
 0x174   : > { %2041 = vrot.lane.b32.xlu1 %v1959_v62, %s6662_s23 }
 0x175   : > { %v1452_v53 = vpop.permute.xlu0 %1451 }
 0x176   : > { %v1644_v3 = vpop.permute.xlu1 %1643  ;;  %v2145_v4 = vld [vmem:[#allocation3 + $0x58] sm:$0xff]  ;;  %1535 = vst.msk [vmem:[#allocation3 + $0x68] sm:$0xff] %vm1521_vm8, %v1452_v53 }
 0x177   : > { %1728 = vst.msk [vmem:[#allocation3 + $0x60] sm:$0xff] %vm1715_vm9, %v1644_v3  ;;  %6233 = vmatmul.mubr.f32.gmra.mrb[10].mxu0 %v2145_v4  ;;  %697 = vrot.lane.b32.xlu0 %v1766_v46, %s6656_s26  ;;  %v552_v46 = vld [vmem:[#allocation2 + $0x1af] sm:$0xff] }
 0x178   : > { %1274 = vrot.lane.b32.xlu1 %v1767_v12, %s6658_s28  ;;  %584 = vst.msk [vmem:[#allocation3 + $0xd8] sm:$0xff] %vm418_vm0, %v552_v46 }
 0x179   : > { %v877_v6 = vpop.permute.xlu0 %876 }
 0x17a   : > { %v1068_v7 = vpop.permute.xlu1 %1067  ;;  %958 = vst.msk [vmem:[#allocation3 + $0x78] sm:$0xff] %vm942_vm5, %v877_v6 }
 0x17b   : > { %1150 = vst.msk [vmem:[#allocation3 + $0x70] sm:$0xff] %vm1135_vm6, %v1068_v7  ;;  %1465 = vrot.lane.b32.xlu0 %v1959_v62, %s6659_s12  ;;  %v1579_v7 = vld [vmem:[#allocation2 + $0x1c7] sm:$0xff] }
 0x17c   : > { %2043 = vrot.lane.b32.xlu1 %v1960_v20, %s6662_s23 }
 0x17d   : > { %v1646_v22 = vpop.permute.xlu0 %1645 }
 0x17e   : > { %v1837_v9 = vpop.permute.xlu1 %1836  ;;  %1729 = vst.msk [vmem:[#allocation3 + $0x68] sm:$0xff] %vm1715_vm9, %v1646_v22 }
 0x17f   : > { %1921 = vst.msk [vmem:[#allocation3 + $0x60] sm:$0xff] %vm1908_vm10, %v1837_v9  ;;  %699 = vrot.lane.b32.xlu0 %v1767_v12, %s6656_s26 }
 0x180   : > { %890 = vrot.lane.b32.xlu1 %v1959_v62, %s6655_s25  ;;  %v6663_v62 = vmov 1983009808  }
 0x181   : > { %v1070_v11 = vpop.permute.xlu0 %1069  ;;  %v2451_v63 = vunpack.c.l.s4 %v6663_v62 }
 0x182   : > { %v1261_v14 = vpop.permute.xlu1 %1260  ;;  %1151 = vst.msk [vmem:[#allocation3 + $0x78] sm:$0xff] %vm1135_vm6, %v1070_v11 }
 0x183   : > { %1343 = vst.msk [vmem:[#allocation3 + $0x70] sm:$0xff] %vm1328_vm7, %v1261_v14  ;;  %1467 = vrot.lane.b32.xlu0 %v1960_v20, %s6659_s12  ;;  %v2452_v4 = vunpack.c.0.s8 %v2451_v63 }
 0x184   : > { %1659 = vrot.lane.b32.xlu1 %v7256_v39, %s6660_s15 }
 0x185   : > { %v1839_v16 = vpop.permute.xlu0 %1838 }
 0x186   : > { %v2030_v17 = vpop.permute.xlu1 %2029  ;;  %1922 = vst.msk [vmem:[#allocation3 + $0x68] sm:$0xff] %vm1908_vm10, %v1839_v16 }
 0x187   : > { %2114 = vst.msk [vmem:[#allocation3 + $0x60] sm:$0xff] %vm2101_vm11, %v2030_v17  ;;  %892 = vrot.lane.b32.xlu0 %v1960_v20, %s6655_s25  ;;  %v2454_v20 = vshrl.u32 %v2453_v0, 7 }
 0x188   : > { %1083 = vrot.lane.b32.xlu1 %v7256_v39, %s6657_s27  ;;  %v1769_v39 = vld [vmem:[#allocation2 + $0x190] sm:$0xff] }
 0x189   : > { %v686_v21 = vpop.permute.xlu0 %685  ;;  %v7543_v9 = vsub.s32 %v2452_v4, %v2454_v20 }
 0x18a   : > { %v1263_v31 = vpop.permute.xlu1 %1262  ;;  %766 = vst.msk [vmem:[#allocation3 + $0x80] sm:$0xff] %vm749_vm4, %v686_v21 }
 0x18b   : > { %1344 = vst.msk [vmem:[#allocation3 + $0x78] sm:$0xff] %vm1328_vm7, %v1263_v31  ;;  %1661 = vrot.lane.b32.xlu0 %v1576_v18, %s6660_s15 }
 0x18c   : > { %1852 = vrot.lane.b32.xlu1 %v1768_v19, %s6661_s30 }
 0x18d   : > { %v1454_v23 = vpop.permute.xlu0 %1453 }
 0x18e   : > { %v2032_v2 = vpop.permute.xlu1 %2031  ;;  %v2146_v24 = vld [vmem:[#allocation3 + $0x60] sm:$0xff]  ;;  %1536 = vst.msk [vmem:[#allocation3 + $0x70] sm:$0xff] %vm1521_vm8, %v1454_v23  ;;  %v7550_v23 = vld [vmem:[#allocation2 + $0x1c8] sm:$0xff] }
 0x18f   : > { %2115 = vst.msk [vmem:[#allocation3 + $0x68] sm:$0xff] %vm2101_vm11, %v2032_v2  ;;  %6235 = vmatprep.mubr.f32.mxu0 %v2146_v24  ;;  %1085 = vrot.lane.b32.xlu0 %v1576_v18, %s6657_s27  ;;  %v1580_v18 = vld [vmem:[#allocation2 + $0x1cf] sm:$0xff] }
 0x190   : > { %1276 = vrot.lane.b32.xlu1 %v1768_v19, %s6658_s28 }
 0x191   : > { %v688_v26 = vpop.permute.xlu0 %687 }
 0x192   : > { %v879_v27 = vpop.permute.xlu1 %878  ;;  %767 = vst.msk [vmem:[#allocation3 + $0x88] sm:$0xff] %vm749_vm4, %v688_v26 }
 0x193   : > { %959 = vst.msk [vmem:[#allocation3 + $0x80] sm:$0xff] %vm942_vm5, %v879_v27  ;;  %1854 = vrot.lane.b32.xlu0 %v1769_v39, %s6661_s30 }
 0x194   : > { %2045 = vrot.lane.b32.xlu1 %v1961_v25, %s6662_s23 }
 0x195   : > { %v1456_v29 = vpop.permute.xlu0 %1455 }
 0x196   : > { %v1648_v32 = vpop.permute.xlu1 %1647  ;;  %v2147_v5 = vld [vmem:[#allocation3 + $0x68] sm:$0xff]  ;;  %1537 = vst.msk [vmem:[#allocation3 + $0x78] sm:$0xff] %vm1521_vm8, %v1456_v29 }
 0x197   : > { %1730 = vst.msk [vmem:[#allocation3 + $0x70] sm:$0xff] %vm1715_vm9, %v1648_v32  ;;  %6236 = vmatmul.mubr.f32.gmra.mrb[12].mxu0 %v2147_v5  ;;  %701 = vrot.lane.b32.xlu0 %v1768_v19, %s6656_s26 }
 0x198   : > { %1278 = vrot.lane.b32.xlu1 %v1769_v39, %s6658_s28 }
 0x199   : > { %v881_v34 = vpop.permute.xlu0 %880 }
 0x19a   : > { %v1072_v35 = vpop.permute.xlu1 %1071  ;;  %960 = vst.msk [vmem:[#allocation3 + $0x88] sm:$0xff] %vm942_vm5, %v881_v34 }
 0x19b   : > { %1152 = vst.msk [vmem:[#allocation3 + $0x80] sm:$0xff] %vm1135_vm6, %v1072_v35  ;;  %1469 = vrot.lane.b32.xlu0 %v1961_v25, %s6659_s12  ;;  %v7567_v35 = vld [vmem:[#allocation2 + $0x1d0] sm:$0xff] }
 0x19c   : > { %2047 = vrot.lane.b32.xlu1 %v1962_v33, %s6662_s23 }
 0x19d   : > { %v1650_v36 = vpop.permute.xlu0 %1649 }
 0x19e   : > { %v1841_v37 = vpop.permute.xlu1 %1840  ;;  %1731 = vst.msk [vmem:[#allocation3 + $0x78] sm:$0xff] %vm1715_vm9, %v1650_v36 }
 0x19f   : > { %1923 = vst.msk [vmem:[#allocation3 + $0x70] sm:$0xff] %vm1908_vm10, %v1841_v37  ;;  %703 = vrot.lane.b32.xlu0 %v1769_v39, %s6656_s26 }
 0x1a0   : > { %894 = vrot.lane.b32.xlu1 %v1961_v25, %s6655_s25 }
 0x1a1   : > { %v1074_v47 = vpop.permute.xlu0 %1073 }
 0x1a2   : > { %v1265_v30 = vpop.permute.xlu1 %1264  ;;  %1153 = vst.msk [vmem:[#allocation3 + $0x88] sm:$0xff] %vm1135_vm6, %v1074_v47 }
 0x1a3   : > { %1345 = vst.msk [vmem:[#allocation3 + $0x80] sm:$0xff] %vm1328_vm7, %v1265_v30  ;;  %1471 = vrot.lane.b32.xlu0 %v1962_v33, %s6659_s12 }
 0x1a4   : > { %1663 = vrot.lane.b32.xlu1 %v1577_v38, %s6660_s15 }
 0x1a5   : > { %v1843_v40 = vpop.permute.xlu0 %1842 }
 0x1a6   : > { %v2034_v41 = vpop.permute.xlu1 %2033  ;;  %1924 = vst.msk [vmem:[#allocation3 + $0x78] sm:$0xff] %vm1908_vm10, %v1843_v40  ;;  %v7572_v40 = vld [vmem:[#allocation2 + $0x1c9] sm:$0xff] }
 0x1a7   : > { %2116 = vst.msk [vmem:[#allocation3 + $0x70] sm:$0xff] %vm2101_vm11, %v2034_v41  ;;  %896 = vrot.lane.b32.xlu0 %v1962_v33, %s6655_s25 }
 0x1a8   : > { %1087 = vrot.lane.b32.xlu1 %v1577_v38, %s6657_s27 }
 0x1a9   : > { %v690_v44 = vpop.permute.xlu0 %689 }
 0x1aa   : > { %v6219_v55 = vpop.f32.mrb[0].mxu0  ;;  %768 = vst.msk [vmem:[#allocation3 + $0x90] sm:$0xff] %vm749_vm4, %v690_v44  ;;  %v1267_v45 = vpop.permute.xlu1 %1266 }
 0x1ab   : > { %2409 = vst.msk [vmem:[#allocation4 + $0x8] sm:$0xff] %vm2407_vm12, %v6219_v55  ;;  %v2248_v48 = vpop.f32.mrb[1].mxu0  ;;  %1665 = vrot.lane.b32.xlu0 %v1578_v42, %s6660_s15 }
 0x1ac   : > { %1346 = vst.msk [vmem:[#allocation3 + $0x88] sm:$0xff] %vm1328_vm7, %v1267_v45  ;;  %1856 = vrot.lane.b32.xlu1 %v1770_v43, %s6661_s30 }
 0x1ad   : > { %2408 = vst.msk [vmem:[#allocation4] sm:$0xff] %vm2407_vm12, %v2248_v48  ;;  %v1458_v50 = vpop.permute.xlu0 %1457 }
 0x1ae   : > { %v2148_v10 = vld [vmem:[#allocation3 + $0x70] sm:$0xff]  ;;  %1538 = vst.msk [vmem:[#allocation3 + $0x80] sm:$0xff] %vm1521_vm8, %v1458_v50  ;;  %v2036_v51 = vpop.permute.xlu1 %2035 }
 0x1af   : > { %6238 = vmatprep.mubr.f32.mxu0 %v2148_v10  ;;  %2117 = vst.msk [vmem:[#allocation3 + $0x78] sm:$0xff] %vm2101_vm11, %v2036_v51  ;;  %1089 = vrot.lane.b32.xlu0 %v1578_v42, %s6657_s27 }
 0x1b0   : > { %1280 = vrot.lane.b32.xlu1 %v1770_v43, %s6658_s28 }
 0x1b1   : > { %v692_v56 = vpop.permute.xlu0 %691 }
 0x1b2   : > { %769 = vst.msk [vmem:[#allocation3 + $0x98] sm:$0xff] %vm749_vm4, %v692_v56  ;;  %v883_v57 = vpop.permute.xlu1 %882  ;;  %v2442_v22 = vld [vmem:[#allocation4 + $0x8] sm:$0xff] }
 0x1b3   : > { %961 = vst.msk [vmem:[#allocation3 + $0x90] sm:$0xff] %vm942_vm5, %v883_v57  ;;  %1858 = vrot.lane.b32.xlu0 %v1771_v52, %s6661_s30  ;;  %v2466_v16 = vcombine.high %v2442_v22, %v2442_v22  ;;  %v2473_v19 = vrot.slane %v2442_v22, %v7543_v9 }
 0x1b4   : > { %2049 = vrot.lane.b32.xlu1 %v1963_v54, %s6662_s23  ;;  %v2441_v11 = vld [vmem:[#allocation4] sm:$0xff] }
 0x1b5   : > { %v1460_v13 = vpop.permute.xlu0 %1459  ;;  %v2449_v17 = vcombine.high %v2441_v11, %v2441_v11  ;;  %v2456_v2 = vrot.slane %v2441_v11, %v7543_v9  ;;  %v2480_v25 = vrot.slane %v2466_v16, %v7543_v9  ;;  %v2481_v27 = vcombine.high %v2473_v19, %v2473_v19  ;;  %v7602_v11 = vld [vmem:[#allocation2 + $0x1d1] sm:$0xff] }
 0x1b6   : > { %1539 = vst.msk [vmem:[#allocation3 + $0x88] sm:$0xff] %vm1521_vm8, %v1460_v13  ;;  %v1652_v58 = vpop.permute.xlu1 %1651  ;;  %v2149_v59 = vld [vmem:[#allocation3 + $0x78] sm:$0xff]  ;;  %v2570_v36 = vsel %vm8816_vm13, %v2473_v19, -inf }
 0x1b7   : > { %1732 = vst.msk [vmem:[#allocation3 + $0x80] sm:$0xff] %vm1715_vm9, %v1652_v58  ;;  %6239 = vmatmul.mubr.f32.gmra.mrb[14].mxu0 %v2149_v59  ;;  %705 = vrot.lane.b32.xlu0 %v1770_v43, %s6656_s26  ;;  %v2463_v26 = vrot.slane %v2449_v17, %v7543_v9  ;;  %v2464_v29 = vcombine.high %v2456_v2, %v2456_v2  ;;  %v2579_v37 = vsel %vm8816_vm13, %v2481_v27, -inf  ;;  %v2534_v38 = vsel %vm8816_vm13, %v2456_v2, -inf }
 0x1b8   : > { %1282 = vrot.lane.b32.xlu1 %v1771_v52, %s6658_s28  ;;  %v2482_v33 = vcombine.high %v2480_v25, %v2480_v25  ;;  %v2588_v41 = vsel %vm8816_vm13, %v2480_v25, -inf }
 0x1b9   : > { %v885_v60 = vpop.permute.xlu0 %884  ;;  %v2465_v34 = vcombine.high %v2463_v26, %v2463_v26  ;;  %v2543_v42 = vsel %vm8816_vm13, %v2464_v29, -inf  ;;  %v2552_v49 = vsel %vm8816_vm13, %v2463_v26, -inf }
 0x1ba   : > { %962 = vst.msk [vmem:[#allocation3 + $0x98] sm:$0xff] %vm942_vm5, %v885_v60  ;;  %v1076_v12 = vpop.permute.xlu1 %1075  ;;  %v2597_v48 = vsel %vm8816_vm13, %v2482_v33, -inf  ;;  %v7611_v33 = vld [vmem:[#allocation2 + $0x1e7] sm:$0xff] }
 0x1bb   : > { %1154 = vst.msk [vmem:[#allocation3 + $0x90] sm:$0xff] %vm1135_vm6, %v1076_v12  ;;  %1473 = vrot.lane.b32.xlu0 %v1963_v54, %s6659_s12  ;;  %v2561_v51 = vsel %vm8816_vm13, %v2465_v34, -inf }
 0x1bc   : > { %2051 = vrot.lane.b32.xlu1 %v1964_v61, %s6662_s23 }
 0x1bd   : > { %v1654_v53 = vpop.permute.xlu0 %1653 }
 0x1be   : > { %1733 = vst.msk [vmem:[#allocation3 + $0x88] sm:$0xff] %vm1715_vm9, %v1654_v53  ;;  %v1845_v3 = vpop.permute.xlu1 %1844 }
 0x1bf   : > { %1925 = vst.msk [vmem:[#allocation3 + $0x80] sm:$0xff] %vm1908_vm10, %v1845_v3  ;;  %707 = vrot.lane.b32.xlu0 %v1771_v52, %s6656_s26 }
 0x1c0   : > { %898 = vrot.lane.b32.xlu1 %v1963_v54, %s6655_s25 }
 0x1c1   : > { %v1078_v6 = vpop.permute.xlu0 %1077 }
 0x1c2   : > { %1155 = vst.msk [vmem:[#allocation3 + $0x98] sm:$0xff] %vm1135_vm6, %v1078_v6  ;;  %v1269_v8 = vpop.permute.xlu1 %1268 }
 0x1c3   : > { %1347 = vst.msk [vmem:[#allocation3 + $0x90] sm:$0xff] %vm1328_vm7, %v1269_v8  ;;  %1475 = vrot.lane.b32.xlu0 %v1964_v61, %s6659_s12 }
 0x1c4   : > { %1667 = vrot.lane.b32.xlu1 %v1579_v7, %s6660_s15 }
 0x1c5   : > { %v1847_v14 = vpop.permute.xlu0 %1846 }
 0x1c6   : > { %1926 = vst.msk [vmem:[#allocation3 + $0x88] sm:$0xff] %vm1908_vm10, %v1847_v14  ;;  %v2038_v15 = vpop.permute.xlu1 %2037 }
 0x1c7   : > { %2118 = vst.msk [vmem:[#allocation3 + $0x80] sm:$0xff] %vm2101_vm11, %v2038_v15  ;;  %900 = vrot.lane.b32.xlu0 %v1964_v61, %s6655_s25 }
 0x1c8   : > { %1091 = vrot.lane.b32.xlu1 %v1579_v7, %s6657_s27 }
 0x1c9   : > { %v694_v21 = vpop.permute.xlu0 %693 }
 0x1ca   : > { %v6222_v31 = vpop.f32.mrb[2].mxu0  ;;  %770 = vst.msk [vmem:[#allocation3 + $0xa0] sm:$0xff] %vm749_vm4, %v694_v21  ;;  %v1271_v24 = vpop.permute.xlu1 %1270 }
 0x1cb   : > { %2411 = vst.msk [vmem:[#allocation4 + $0x18] sm:$0xff] %vm2407_vm12, %v6222_v31  ;;  %v2258_v39 = vpop.f32.mrb[3].mxu0  ;;  %1669 = vrot.lane.b32.xlu0 %v1580_v18, %s6660_s15 }
 0x1cc   : > { %1348 = vst.msk [vmem:[#allocation3 + $0x98] sm:$0xff] %vm1328_vm7, %v1271_v24  ;;  %1860 = vrot.lane.b32.xlu1 %v7550_v23, %s6661_s30 }
 0x1cd   : > { %2410 = vst.msk [vmem:[#allocation4 + $0x10] sm:$0xff] %vm2407_vm12, %v2258_v39  ;;  %v1462_v28 = vpop.permute.xlu0 %1461 }
 0x1ce   : > { %1540 = vst.msk [vmem:[#allocation3 + $0x90] sm:$0xff] %vm1521_vm8, %v1462_v28  ;;  %v2040_v32 = vpop.permute.xlu1 %2039  ;;  %v2150_v5 = vld [vmem:[#allocation3 + $0x80] sm:$0xff] }
 0x1cf   : > { %2119 = vst.msk [vmem:[#allocation3 + $0x88] sm:$0xff] %vm2101_vm11, %v2040_v32  ;;  %1093 = vrot.lane.b32.xlu0 %v1580_v18, %s6657_s27  ;;  %6241 = vmatprep.mubr.f32.mxu0 %v2150_v5 }
 0x1d0   : > { %1284 = vrot.lane.b32.xlu1 %v7550_v23, %s6658_s28 }
 0x1d1   : > { %v696_v30 = vpop.permute.xlu0 %695 }
 0x1d2   : > { %v2444_v47 = vld [vmem:[#allocation4 + $0x18] sm:$0xff]  ;;  %771 = vst.msk [vmem:[#allocation3 + $0xa8] sm:$0xff] %vm749_vm4, %v696_v30  ;;  %v887_v45 = vpop.permute.xlu1 %886  ;;  %v7613_v30 = vld [vmem:[#allocation2 + $0x1ef] sm:$0xff] }
 0x1d3   : > { %v2500_v43 = vcombine.high %v2444_v47, %v2444_v47  ;;  %v2507_v44 = vrot.slane %v2444_v47, %v7543_v9  ;;  %963 = vst.msk [vmem:[#allocation3 + $0xa0] sm:$0xff] %vm942_vm5, %v887_v45  ;;  %1862 = vrot.lane.b32.xlu0 %v7567_v35, %s6661_s30 }
 0x1d4   : > { %v2443_v55 = vld [vmem:[#allocation4 + $0x10] sm:$0xff]  ;;  %2053 = vrot.lane.b32.xlu1 %v7572_v40, %s6662_s23 }
 0x1d5   : > { %v2483_v50 = vcombine.high %v2443_v55, %v2443_v55  ;;  %v2490_v10 = vrot.slane %v2443_v55, %v7543_v9  ;;  %v2514_v52 = vrot.slane %v2500_v43, %v7543_v9  ;;  %v2515_v54 = vcombine.high %v2507_v44, %v2507_v44  ;;  %v1464_v59 = vpop.permute.xlu0 %1463 }
 0x1d6   : > { %v2571_v56 = vsel %vm8816_vm13, %v2507_v44, -inf  ;;  %1541 = vst.msk [vmem:[#allocation3 + $0x98] sm:$0xff] %vm1521_vm8, %v1464_v59  ;;  %v1656_v63 = vpop.permute.xlu1 %1655  ;;  %v2151_v0 = vld [vmem:[#allocation3 + $0x88] sm:$0xff] }
 0x1d7   : > { %v2572_v57 = vmax.f32 %v2570_v36, %v2571_v56  ;;  %v2497_v46 = vrot.slane %v2483_v50, %v7543_v9  ;;  %v2498_v13 = vcombine.high %v2490_v10, %v2490_v10  ;;  %v2535_v58 = vsel %vm8816_vm13, %v2490_v10, -inf  ;;  %1734 = vst.msk [vmem:[#allocation3 + $0x90] sm:$0xff] %vm1715_vm9, %v1656_v63  ;;  %6242 = vmatmul.mubr.f32.gmra.mrb[16].mxu0 %v2151_v0  ;;  %v553_v10 = vld [vmem:[#allocation2 + $0x1c7] sm:$0xff] }
 0x1d8   : > { %v2516_v60 = vcombine.high %v2514_v52, %v2514_v52  ;;  %v2580_v61 = vsel %vm8816_vm13, %v2515_v54, -inf  ;;  %v2589_v12 = vsel %vm8816_vm13, %v2514_v52, -inf  ;;  %v2536_v62 = vmax.f32 %v2534_v38, %v2535_v58  ;;  %1286 = vrot.lane.b32.xlu0 %v7567_v35, %s6658_s28  ;;  %1477 = vrot.lane.b32.xlu1 %v7572_v40, %s6659_s12  ;;  %585 = vst.msk [vmem:[#allocation3 + $0xe0] sm:$0xff] %vm418_vm0, %v553_v10 }
 0x1d9   : > { %v2573_v53 = vrot.slane %v2572_v57, 4  ;;  %v2581_v3 = vmax.f32 %v2579_v37, %v2580_v61  ;;  %v2590_v4 = vmax.f32 %v2588_v41, %v2589_v12  ;;  %v2499_v20 = vcombine.high %v2497_v46, %v2497_v46  ;;  %v889_v18 = vpop.permute.xlu0 %888  ;;  %v7624_v61 = vld [vmem:[#allocation2 + $0x1f0] sm:$0xff] }
 0x1da   : > { %v2598_v6 = vsel %vm8816_vm13, %v2516_v60, -inf  ;;  %v2537_v7 = vrot.slane %v2536_v62, 4  ;;  %v2544_v8 = vsel %vm8816_vm13, %v2498_v13, -inf  ;;  %v2553_v22 = vsel %vm8816_vm13, %v2497_v46, -inf  ;;  %964 = vst.msk [vmem:[#allocation3 + $0xa8] sm:$0xff] %vm942_vm5, %v889_v18  ;;  %v1080_v24 = vpop.permute.xlu1 %1079  ;;  %v554_v46 = vld [vmem:[#allocation2 + $0x1cf] sm:$0xff] }
 0x1db   : > { %v2574_v14 = vmax.f32 %v2572_v57, %v2573_v53  ;;  %v2582_v15 = vrot.slane %v2581_v3, 4  ;;  %v2591_v16 = vrot.slane %v2590_v4, 4  ;;  %v2599_v17 = vmax.f32 %v2597_v48, %v2598_v6  ;;  %1156 = vst.msk [vmem:[#allocation3 + $0xa0] sm:$0xff] %vm1135_vm6, %v1080_v24  ;;  %v7621_v57 = vld [vmem:[#allocation2 + $0x1e8] sm:$0xff] }
 0x1dc   : > { %v2538_v19 = vmax.f32 %v2536_v62, %v2537_v7  ;;  %v2545_v21 = vmax.f32 %v2543_v42, %v2544_v8  ;;  %v2554_v31 = vmax.f32 %v2552_v49, %v2553_v22  ;;  %v2562_v2 = vsel %vm8816_vm13, %v2499_v20, -inf  ;;  %2055 = vrot.lane.b32.xlu0 %v7602_v11, %s6662_s23  ;;  %1479 = vrot.lane.b32.xlu1 %v7602_v11, %s6659_s12  ;;  %v7634_v20 = vld [vmem:[%s8805_s2] ss:$0 sm:$0xff] }
 0x1dd   : > { %v2575_v39 = vrot.slane %v2574_v14, 2  ;;  %v2583_v25 = vmax.f32 %v2581_v3, %v2582_v15  ;;  %v2592_v26 = vmax.f32 %v2590_v4, %v2591_v16  ;;  %v2600_v27 = vrot.slane %v2599_v17, 4  ;;  %v1658_v47 = vpop.permute.xlu0 %1657  ;;  %586 = vst.msk [vmem:[#allocation3 + $0xe8] sm:$0xff] %vm418_vm0, %v554_v46 }
 0x1de   : > { %v2539_v28 = vrot.slane %v2538_v19, 2  ;;  %v2546_v29 = vrot.slane %v2545_v21, 4  ;;  %v2555_v32 = vrot.slane %v2554_v31, 4  ;;  %v2563_v5 = vmax.f32 %v2561_v51, %v2562_v2  ;;  %1735 = vst.msk [vmem:[#allocation3 + $0x98] sm:$0xff] %vm1715_vm9, %v1658_v47  ;;  %v1849_v55 = vpop.permute.xlu1 %1848 }
 0x1df   : > { %v2576_v34 = vmax.f32 %v2574_v14, %v2575_v39  ;;  %v2584_v36 = vrot.slane %v2583_v25, 2  ;;  %v2593_v37 = vrot.slane %v2592_v26, 2  ;;  %v2601_v38 = vmax.f32 %v2599_v17, %v2600_v27  ;;  %1927 = vst.msk [vmem:[#allocation3 + $0x90] sm:$0xff] %vm1908_vm10, %v1849_v55  ;;  %v7638_v14 = vld [vmem:[#allocation2 + $0x1e9] sm:$0xff]  ;;  %v7640_v17 = vld [vmem:[#allocation2 + $0x1f1] sm:$0xff] }
 0x1e0   : > { %v2540_v41 = vmax.f32 %v2538_v19, %v2539_v28  ;;  %v2547_v42 = vmax.f32 %v2545_v21, %v2546_v29  ;;  %v2556_v43 = vmax.f32 %v2554_v31, %v2555_v32  ;;  %v2564_v44 = vrot.slane %v2563_v5, 4  ;;  %1671 = vrot.lane.b32.xlu0 %v7611_v33, %s6660_s15  ;;  %1673 = vrot.lane.b32.xlu1 %v7613_v30, %s6660_s15 }
 0x1e1   : > { %v2577_v45 = vrot.slane %v2576_v34, 1  ;;  %v2585_v48 = vmax.f32 %v2583_v25, %v2584_v36  ;;  %v2594_v49 = vmax.f32 %v2592_v26, %v2593_v37  ;;  %v2602_v50 = vrot.slane %v2601_v38, 2  ;;  %v1082_v60 = vpop.permute.xlu0 %1081 }
 0x1e2   : > { %v2541_v51 = vrot.slane %v2540_v41, 1  ;;  %v2548_v52 = vrot.slane %v2547_v42, 2  ;;  %v2557_v54 = vrot.slane %v2556_v43, 2  ;;  %v2565_v56 = vmax.f32 %v2563_v5, %v2564_v44  ;;  %1157 = vst.msk [vmem:[#allocation3 + $0xa8] sm:$0xff] %vm1135_vm6, %v1082_v60  ;;  %v1273_v0 = vpop.permute.xlu1 %1272 }
 0x1e3   : > { %v2586_v13 = vrot.slane %v2585_v48, 1  ;;  %v2595_v58 = vrot.slane %v2594_v49, 1  ;;  %v2603_v59 = vmax.f32 %v2601_v38, %v2602_v50  ;;  %v2578_v53 = vmax.f32 %v2576_v34, %v2577_v45  ;;  %1349 = vst.msk [vmem:[#allocation3 + $0xa0] sm:$0xff] %vm1328_vm7, %v1273_v0  ;;  %v556_v0 = vld [vmem:[#allocation2 + $0x1ef] sm:$0xff] }
 0x1e4   : > { %v2549_v12 = vmax.f32 %v2547_v42, %v2548_v52  ;;  %v2558_v62 = vmax.f32 %v2556_v43, %v2557_v54  ;;  %v2566_v63 = vrot.slane %v2565_v56, 2  ;;  %v2542_v3 = vmax.f32 %v2540_v41, %v2541_v51  ;;  %1864 = vrot.lane.b32.xlu0 %v7621_v57, %s6661_s30  ;;  %1866 = vrot.lane.b32.xlu1 %v7624_v61, %s6661_s30 }
 0x1e5   : > { %v2604_v4 = vrot.slane %v2603_v59, 1  ;;  %v2587_v6 = vmax.f32 %v2585_v48, %v2586_v13  ;;  %v2596_v15 = vmax.f32 %v2594_v49, %v2595_v58  ;;  %v1851_v16 = vpop.permute.xlu0 %1850  ;;  %v2616_v24 = vadd.f32 %v7634_v20, %v2578_v53  ;;  %v555_v49 = vld [vmem:[#allocation2 + $0x1e7] sm:$0xff]  ;;  %588 = vst.msk [vmem:[#allocation3 + $0xf8] sm:$0xff] %vm418_vm0, %v556_v0 }
 0x1e6   : > { %v2550_v7 = vrot.slane %v2549_v12, 1  ;;  %v2559_v8 = vrot.slane %v2558_v62, 1  ;;  %v2567_v22 = vmax.f32 %v2565_v56, %v2566_v63  ;;  %1928 = vst.msk [vmem:[#allocation3 + $0x98] sm:$0xff] %vm1908_vm10, %v1851_v16  ;;  %v2042_v31 = vpop.permute.xlu1 %2041  ;;  %v2612_v39 = vadd.f32 %v7634_v20, %v2542_v3 }
 0x1e7   : > { %v2605_v2 = vmax.f32 %v2603_v59, %v2604_v4  ;;  %2120 = vst.msk [vmem:[#allocation3 + $0x90] sm:$0xff] %vm2101_vm11, %v2042_v31  ;;  %v2617_v28 = vadd.f32 %v7634_v20, %v2587_v6  ;;  %v2618_v5 = vadd.f32 %v7634_v20, %v2596_v15  ;;  %v2624_v42 = vmax.f32 %v2616_v24, 0.0  ;;  %v1583_v15 = vld [vmem:[#allocation2 + $0x207] sm:$0xff] }
 0x1e8   : > { %v2551_v18 = vmax.f32 %v2549_v12, %v2550_v7  ;;  %v2560_v19 = vmax.f32 %v2558_v62, %v2559_v8  ;;  %v2568_v21 = vrot.slane %v2567_v22, 1  ;;  %2057 = vrot.lane.b32.xlu0 %v7638_v14, %s6662_s23  ;;  %2059 = vrot.lane.b32.xlu1 %v7640_v17, %s6662_s23  ;;  %v2620_v43 = vmax.f32 %v2612_v39, 0.0  ;;  %587 = vst.msk [vmem:[#allocation3 + $0xf0] sm:$0xff] %vm418_vm0, %v555_v49  ;;  %v1969_v49 = vld [vmem:[#allocation2 + $0x209] sm:$0xff] }
 0x1e9   : > { %v698_v29 = vpop.permute.xlu0 %697  ;;  %v2619_v41 = vadd.f32 %v7634_v20, %v2605_v2  ;;  %v2625_v48 = vmax.f32 %v2617_v28, 0.0  ;;  %v2626_v10 = vmax.f32 %v2618_v5, 0.0  ;;  %v2645_v46 = vrot.slane %v2624_v42, 4  ;;  %v1584_v2 = vld [vmem:[#allocation2 + $0x20f] sm:$0xff] }
 0x1ea   : > { %v2569_v25 = vmax.f32 %v2567_v22, %v2568_v21  ;;  %v2613_v26 = vadd.f32 %v7634_v20, %v2551_v18  ;;  %v2614_v27 = vadd.f32 %v7634_v20, %v2560_v19  ;;  %v6225_v32 = vpop.f32.mrb[4].mxu0  ;;  %772 = vst.msk [vmem:[#allocation3 + $0xb0] sm:$0xff] %vm749_vm4, %v698_v29  ;;  %v1275_v38 = vpop.permute.xlu1 %1274  ;;  %vm8817_vm13 = vcmask 1047559   ;;  %v1777_v42 = vld [vmem:[#allocation2 + $0x210] sm:$0xff] }
 0x1eb   : > { %2413 = vst.msk [vmem:[#allocation4 + $0x28] sm:$0xff] %vm2407_vm12, %v6225_v32  ;;  %v2268_v47 = vpop.f32.mrb[5].mxu0  ;;  %v2627_v56 = vmax.f32 %v2619_v41, 0.0  ;;  %v2648_v58 = vrot.slane %v2625_v48, 3  ;;  %v2651_v12 = vrot.slane %v2626_v10, 2  ;;  %vm8823_vm0 = vcmask 123904  }
 0x1ec   : > { %v2615_v34 = vadd.f32 %v7634_v20, %v2569_v25  ;;  %v2621_v36 = vmax.f32 %v2613_v26, 0.0  ;;  %v2622_v37 = vmax.f32 %v2614_v27, 0.0  ;;  %1350 = vst.msk [vmem:[#allocation3 + $0xa8] sm:$0xff] %vm1328_vm7, %v1275_v38  ;;  %709 = vrot.lane.b32.xlu0 %v7550_v23, %s6656_s26  ;;  %711 = vrot.lane.b32.xlu1 %v7567_v35, %s6656_s26  ;;  %v1776_v26 = vld [vmem:[#allocation2 + $0x208] sm:$0xff] }
 0x1ed   : > { %2412 = vst.msk [vmem:[#allocation4 + $0x20] sm:$0xff] %vm2407_vm12, %v2268_v47  ;;  %v1466_v50 = vpop.permute.xlu0 %1465  ;;  %v2654_v63 = vrot.slane %v2627_v56, 1 }
 0x1ee   : > { %v2623_v44 = vmax.f32 %v2615_v34, 0.0  ;;  %v2636_v55 = vrot.slane %v2621_v36, 7  ;;  %v2639_v45 = vrot.slane %v2622_v37, 6  ;;  %1542 = vst.msk [vmem:[#allocation3 + $0xa0] sm:$0xff] %vm1521_vm8, %v1466_v50  ;;  %v2044_v23 = vpop.permute.xlu1 %2043  ;;  %v2152_v54 = vld [vmem:[#allocation3 + $0x90] sm:$0xff] }
 0x1ef   : > { %2121 = vst.msk [vmem:[#allocation3 + $0x98] sm:$0xff] %vm2101_vm11, %v2044_v23  ;;  %6244 = vmatprep.mubr.f32.mxu0 %v2152_v54 }
 0x1f0   : > { %v2638_v51 = vsel %vm8815_vm1, %v2636_v55, %v2620_v43  ;;  %v2642_v52 = vrot.slane %v2623_v44, 5  ;;  %902 = vrot.lane.b32.xlu0 %v7572_v40, %s6655_s25  ;;  %904 = vrot.lane.b32.xlu1 %v7602_v11, %s6655_s25  ;;  %vm8818_vm1 = vcmask 1046534  }
 0x1f1   : > { %v2641_v35 = vsel %vm2640_vm2, %v2639_v45, %v2638_v51  ;;  %v700_v59 = vpop.permute.xlu0 %699 }
 0x1f2   : > { %v2644_v13 = vsel %vm8821_vm3, %v2642_v52, %v2641_v35  ;;  %773 = vst.msk [vmem:[#allocation3 + $0xb8] sm:$0xff] %vm749_vm4, %v700_v59  ;;  %v891_v62 = vpop.permute.xlu1 %890  ;;  %v2661_v18 = vld [vmem:[#allocation4 + $0x28] sm:$0xff]  ;;  %vm8828_vm3 = vmmov %vm8823_vm0 }
 0x1f3   : > { %v2647_v60 = vsel %vm8820_vm14, %v2645_v46, %v2644_v13  ;;  %965 = vst.msk [vmem:[#allocation3 + $0xb0] sm:$0xff] %vm942_vm5, %v891_v62  ;;  %v2685_v31 = vcombine.high %v2661_v18, %v2661_v18  ;;  %v2692_v24 = vrot.slane %v2661_v18, %v7543_v9  ;;  %vm8827_vm14 = vmmov %vm8823_vm0 }
 0x1f4   : > { %v2650_v40 = vsel %vm8819_vm15, %v2648_v58, %v2647_v60  ;;  %1095 = vrot.lane.b32.xlu0 %v7611_v33, %s6657_s27  ;;  %1097 = vrot.lane.b32.xlu1 %v7613_v30, %s6657_s27  ;;  %v2660_v19 = vld [vmem:[#allocation4 + $0x20] sm:$0xff]  ;;  %vm8826_vm15 = vmmov %vm8823_vm0 }
 0x1f5   : > { %v2653_v11 = vsel %vm8818_vm1, %v2651_v12, %v2650_v40  ;;  %v1468_v3 = vpop.permute.xlu0 %1467  ;;  %v2675_v27 = vrot.slane %v2660_v19, %v7543_v9  ;;  %v2699_v32 = vrot.slane %v2685_v31, %v7543_v9  ;;  %v2700_v5 = vcombine.high %v2692_v24, %v2692_v24  ;;  %vm8825_vm1 = vmmov %vm8823_vm0 }
 0x1f6   : > { %v2656_v53 = vsel %vm8817_vm13, %v2654_v63, %v2653_v11  ;;  %1543 = vst.msk [vmem:[#allocation3 + $0xa8] sm:$0xff] %vm1521_vm8, %v1468_v3  ;;  %v1660_v4 = vpop.permute.xlu1 %1659  ;;  %v2153_v6 = vld [vmem:[#allocation3 + $0x98] sm:$0xff]  ;;  %v2788_v43 = vsel %vm8823_vm0, %v2692_v24, -inf  ;;  %vm8824_vm13 = vmmov %vm8823_vm0 }
 0x1f7   : > { %2659 = vst.msk [vmem:[#allocation5 + $0x20] sm:$0xff] %vm2407_vm12, %v2656_v53  ;;  %6245 = vmatmul.mubr.f32.gmra.mrb[18].mxu0 %v2153_v6  ;;  %v2683_v36 = vcombine.high %v2675_v27, %v2675_v27  ;;  %v2701_v47 = vcombine.high %v2699_v32, %v2699_v32  ;;  %v2797_v44 = vsel %vm8824_vm13, %v2700_v5, -inf  ;;  %v2752_v55 = vsel %vm8825_vm1, %v2675_v27, -inf  ;;  %vm8829_vm13 = vmmov %vm8823_vm0 }
 0x1f8   : > { %1736 = vst.msk [vmem:[#allocation3 + $0xa0] sm:$0xff] %vm1715_vm9, %v1660_v4  ;;  %1288 = vrot.lane.b32.xlu0 %v7621_v57, %s6658_s28  ;;  %713 = vrot.lane.b32.xlu1 %v7621_v57, %s6656_s26  ;;  %v2806_v50 = vsel %vm8826_vm15, %v2699_v32, -inf  ;;  %vm8830_vm1 = vmmov %vm8823_vm0 }
 0x1f9   : > { %v893_v33 = vpop.permute.xlu0 %892  ;;  %v2761_v10 = vsel %vm8827_vm14, %v2683_v36, -inf  ;;  %v2815_v56 = vsel %vm8828_vm3, %v2701_v47, -inf  ;;  %vm8831_vm3 = vmmov %vm8823_vm0 }
 0x1fa   : > { %966 = vst.msk [vmem:[#allocation3 + $0xb8] sm:$0xff] %vm942_vm5, %v893_v33  ;;  %v1084_v30 = vpop.permute.xlu1 %1083  ;;  %vm8832_vm14 = vmmov %vm8823_vm0 }
 0x1fb   : > { %1158 = vst.msk [vmem:[#allocation3 + $0xb0] sm:$0xff] %vm1135_vm6, %v1084_v30  ;;  %vm8833_vm15 = vmmov %vm8823_vm0 }
 0x1fc   : > { %1290 = vrot.lane.b32.xlu0 %v7624_v61, %s6658_s28  ;;  %1481 = vrot.lane.b32.xlu1 %v7638_v14, %s6659_s12 }
 0x1fd   : > { %v1662_v8 = vpop.permute.xlu0 %1661 }
 0x1fe   : > { %v7698_v7 = vld [vmem:[#allocation5 + $0x1f] sm:$0xff]  ;;  %1737 = vst.msk [vmem:[#allocation3 + $0xa8] sm:$0xff] %vm1715_vm9, %v1662_v8  ;;  %v1853_v57 = vpop.permute.xlu1 %1852 }
 0x1ff   : > { %4135 = vst.msk [vmem:[#allocation6 + $0x10] sm:$0xff] %vm2407_vm12, %v7698_v7 }
 0x200   : > { %1929 = vst.msk [vmem:[#allocation3 + $0xa0] sm:$0xff] %vm1908_vm10, %v1853_v57  ;;  %715 = vrot.lane.b32.xlu0 %v7624_v61, %s6656_s26  ;;  %906 = vrot.lane.b32.xlu1 %v7638_v14, %s6655_s25  ;;  %v2668_v14 = vcombine.high %v2660_v19, %v2660_v19 }
 0x201   : > { %v1086_v22 = vpop.permute.xlu0 %1085 }
 0x202   : > { %1159 = vst.msk [vmem:[#allocation3 + $0xb8] sm:$0xff] %vm1135_vm6, %v1086_v22  ;;  %v1277_v16 = vpop.permute.xlu1 %1276 }
 0x203   : > { %1351 = vst.msk [vmem:[#allocation3 + $0xb0] sm:$0xff] %vm1328_vm7, %v1277_v16 }
 0x204   : > { %1483 = vrot.lane.b32.xlu0 %v7640_v17, %s6659_s12  ;;  %1675 = vrot.lane.b32.xlu1 %v1583_v15, %s6660_s15 }
 0x205   : > { %v1855_v21 = vpop.permute.xlu0 %1854 }
 0x206   : > { %1930 = vst.msk [vmem:[#allocation3 + $0xa8] sm:$0xff] %vm1908_vm10, %v1855_v21  ;;  %v2046_v61 = vpop.permute.xlu1 %2045 }
 0x207   : > { %2122 = vst.msk [vmem:[#allocation3 + $0xa0] sm:$0xff] %vm2101_vm11, %v2046_v61  ;;  %v1970_v61 = vld [vmem:[#allocation2 + $0x211] sm:$0xff] }
 0x208   : > { %908 = vrot.lane.b32.xlu0 %v7640_v17, %s6655_s25  ;;  %1099 = vrot.lane.b32.xlu1 %v1583_v15, %s6657_s27  ;;  %v2682_v17 = vrot.slane %v2668_v14, %v7543_v9 }
 0x209   : > { %v702_v39 = vpop.permute.xlu0 %701 }
 0x20a   : > { %v6228_v25 = vpop.f32.mrb[6].mxu0  ;;  %774 = vst.msk [vmem:[#allocation3 + $0xc0] sm:$0xff] %vm749_vm4, %v702_v39  ;;  %v1279_v28 = vpop.permute.xlu1 %1278  ;;  %v2684_v41 = vcombine.high %v2682_v17, %v2682_v17  ;;  %v2770_v46 = vsel %vm8823_vm0, %v2682_v17, -inf }
 0x20b   : > { %2415 = vst.msk [vmem:[#allocation4 + $0x38] sm:$0xff] %vm2407_vm12, %v6228_v25  ;;  %v2278_v29 = vpop.f32.mrb[7].mxu0 }
 0x20c   : > { %1352 = vst.msk [vmem:[#allocation3 + $0xb8] sm:$0xff] %vm1328_vm7, %v1279_v28  ;;  %1677 = vrot.lane.b32.xlu0 %v1584_v2, %s6660_s15  ;;  %1868 = vrot.lane.b32.xlu1 %v1776_v26, %s6661_s30  ;;  %v2779_v58 = vsel %vm8829_vm13, %v2684_v41, -inf  ;;  %vm8834_vm13 = vmmov %vm8823_vm0  ;;  %v1585_v41 = vld [vmem:[#allocation2 + $0x227] sm:$0xff] }
 0x20d   : > { %2414 = vst.msk [vmem:[#allocation4 + $0x30] sm:$0xff] %vm2407_vm12, %v2278_v29  ;;  %v1470_v34 = vpop.permute.xlu0 %1469 }
 0x20e   : > { %1544 = vst.msk [vmem:[#allocation3 + $0xb0] sm:$0xff] %vm1521_vm8, %v1470_v34  ;;  %v2048_v37 = vpop.permute.xlu1 %2047  ;;  %v2154_v38 = vld [vmem:[#allocation3 + $0xa0] sm:$0xff] }
 0x20f   : > { %2123 = vst.msk [vmem:[#allocation3 + $0xa8] sm:$0xff] %vm2101_vm11, %v2048_v37  ;;  %6247 = vmatprep.mubr.f32.mxu0 %v2154_v38 }
 0x210   : > { %1101 = vrot.lane.b32.xlu0 %v1584_v2, %s6657_s27  ;;  %1292 = vrot.lane.b32.xlu1 %v1776_v26, %s6658_s28 }
 0x211   : > { %v704_v48 = vpop.permute.xlu0 %703 }
 0x212   : > { %v2663_v45 = vld [vmem:[#allocation4 + $0x38] sm:$0xff]  ;;  %775 = vst.msk [vmem:[#allocation3 + $0xc8] sm:$0xff] %vm749_vm4, %v704_v48  ;;  %v895_v54 = vpop.permute.xlu1 %894  ;;  %v1586_v48 = vld [vmem:[#allocation2 + $0x22f] sm:$0xff] }
 0x213   : > { %v2719_v51 = vcombine.high %v2663_v45, %v2663_v45  ;;  %v2726_v52 = vrot.slane %v2663_v45, %v7543_v9  ;;  %967 = vst.msk [vmem:[#allocation3 + $0xc0] sm:$0xff] %vm942_vm5, %v895_v54 }
 0x214   : > { %v2662_v23 = vld [vmem:[#allocation4 + $0x30] sm:$0xff]  ;;  %1870 = vrot.lane.b32.xlu0 %v1777_v42, %s6661_s30  ;;  %2061 = vrot.lane.b32.xlu1 %v1969_v49, %s6662_s23 }
 0x215   : > { %v2702_v35 = vcombine.high %v2662_v23, %v2662_v23  ;;  %v2709_v13 = vrot.slane %v2662_v23, %v7543_v9  ;;  %v2733_v59 = vrot.slane %v2719_v51, %v7543_v9  ;;  %v2734_v60 = vcombine.high %v2726_v52, %v2726_v52  ;;  %v1472_v0 = vpop.permute.xlu0 %1471 }
 0x216   : > { %v2789_v12 = vsel %vm8830_vm1, %v2726_v52, -inf  ;;  %1545 = vst.msk [vmem:[#allocation3 + $0xb8] sm:$0xff] %vm1521_vm8, %v1472_v0  ;;  %v1664_v33 = vpop.permute.xlu1 %1663  ;;  %v2155_v30 = vld [vmem:[#allocation3 + $0xa8] sm:$0xff]  ;;  %vm8835_vm1 = vmmov %vm8823_vm0 }
 0x217   : > { %v2790_v62 = vmax.f32 %v2788_v43, %v2789_v12  ;;  %v2716_v40 = vrot.slane %v2702_v35, %v7543_v9  ;;  %v2717_v63 = vcombine.high %v2709_v13, %v2709_v13  ;;  %v2753_v11 = vsel %vm8831_vm3, %v2709_v13, -inf  ;;  %1738 = vst.msk [vmem:[#allocation3 + $0xb0] sm:$0xff] %vm1715_vm9, %v1664_v33  ;;  %6248 = vmatmul.mubr.f32.gmra.mrb[20].mxu0 %v2155_v30  ;;  %vm8836_vm3 = vmmov %vm8823_vm0  ;;  %v4126_v0 = vld [vmem:[#allocation5 + $0x7] sm:$0xff] }
 0x218   : > { %v2735_v53 = vcombine.high %v2733_v59, %v2733_v59  ;;  %v2798_v3 = vsel %vm8832_vm14, %v2734_v60, -inf  ;;  %v2807_v4 = vsel %vm8833_vm15, %v2733_v59, -inf  ;;  %v2754_v6 = vmax.f32 %v2752_v55, %v2753_v11  ;;  %1294 = vrot.lane.b32.xlu0 %v1777_v42, %s6658_s28  ;;  %1485 = vrot.lane.b32.xlu1 %v1969_v49, %s6659_s12  ;;  %v1778_v60 = vld [vmem:[#allocation2 + $0x228] sm:$0xff]  ;;  %v1779_v11 = vld [vmem:[#allocation2 + $0x230] sm:$0xff]  ;;  %4134 = vst.msk [vmem:[#allocation6] sm:$0xff] %vm2407_vm12, %v4126_v0  ;;  %s6664_s28 = smov 16  }
 0x219   : > { %v2791_v8 = vrot.slane %v2790_v62, 4  ;;  %v2799_v57 = vmax.f32 %v2797_v44, %v2798_v3  ;;  %v2808_v22 = vmax.f32 %v2806_v50, %v2807_v4  ;;  %v2718_v15 = vcombine.high %v2716_v40, %v2716_v40  ;;  %v897_v39 = vpop.permute.xlu0 %896  ;;  %v4521_v0 = vld [vmem:[%s8806_s3 + $0x20] sm:$0xff] }
 0x21a   : > { %v2816_v16 = vsel %vm8823_vm0, %v2735_v53, -inf  ;;  %v2755_v18 = vrot.slane %v2754_v6, 4  ;;  %v2762_v19 = vsel %vm8834_vm13, %v2717_v63, -inf  ;;  %v2771_v21 = vsel %vm8835_vm1, %v2716_v40, -inf  ;;  %968 = vst.msk [vmem:[#allocation3 + $0xc8] sm:$0xff] %vm942_vm5, %v897_v39  ;;  %v1088_v29 = vpop.permute.xlu1 %1087 }
 0x21b   : > { %v2792_v31 = vmax.f32 %v2790_v62, %v2791_v8  ;;  %v2800_v14 = vrot.slane %v2799_v57, 4  ;;  %v2809_v2 = vrot.slane %v2808_v22, 4  ;;  %v2817_v24 = vmax.f32 %v2815_v56, %v2816_v16  ;;  %1160 = vst.msk [vmem:[#allocation3 + $0xc0] sm:$0xff] %vm1135_vm6, %v1088_v29 }
 0x21c   : > { %v2756_v25 = vmax.f32 %v2754_v6, %v2755_v18  ;;  %v2763_v26 = vmax.f32 %v2761_v10, %v2762_v19  ;;  %v2772_v27 = vmax.f32 %v2770_v46, %v2771_v21  ;;  %v2780_v28 = vsel %vm8836_vm3, %v2718_v15, -inf  ;;  %2063 = vrot.lane.b32.xlu0 %v1970_v61, %s6662_s23  ;;  %1487 = vrot.lane.b32.xlu1 %v1970_v61, %s6659_s12  ;;  %v1971_v18 = vld [vmem:[#allocation2 + $0x229] sm:$0xff]  ;;  %v1972_v61 = vld [vmem:[#allocation2 + $0x231] sm:$0xff]  ;;  %s6665_s12 = smov 32  }
 0x21d   : > { %v2793_v32 = vrot.slane %v2792_v31, 2  ;;  %v2801_v17 = vmax.f32 %v2799_v57, %v2800_v14  ;;  %v2810_v5 = vmax.f32 %v2808_v22, %v2809_v2  ;;  %v2818_v34 = vrot.slane %v2817_v24, 4  ;;  %v1666_v45 = vpop.permute.xlu0 %1665  ;;  %v4534_v14 = vld [vmem:[%s8806_s3 + $0x88] sm:$0xff] }
 0x21e   : > { %v2757_v36 = vrot.slane %v2756_v25, 2  ;;  %v2764_v37 = vrot.slane %v2763_v26, 4  ;;  %v2773_v38 = vrot.slane %v2772_v27, 4  ;;  %v2781_v47 = vmax.f32 %v2779_v58, %v2780_v28  ;;  %1739 = vst.msk [vmem:[#allocation3 + $0xb8] sm:$0xff] %vm1715_vm9, %v1666_v45  ;;  %v1857_v52 = vpop.permute.xlu1 %1856  ;;  %v4518_v28 = vld [vmem:[%s8806_s3 + $0x8] sm:$0xff] }
 0x21f   : > { %v2794_v42 = vmax.f32 %v2792_v31, %v2793_v32  ;;  %v2802_v43 = vrot.slane %v2801_v17, 2  ;;  %v2811_v44 = vrot.slane %v2810_v5, 2  ;;  %v2819_v55 = vmax.f32 %v2817_v24, %v2818_v34  ;;  %1931 = vst.msk [vmem:[#allocation3 + $0xb0] sm:$0xff] %vm1908_vm10, %v1857_v52  ;;  %v4533_v31 = vld [vmem:[%s8806_s3 + $0x80] sm:$0xff] }
 0x220   : > { %v2758_v49 = vmax.f32 %v2756_v25, %v2757_v36  ;;  %v2765_v50 = vmax.f32 %v2763_v26, %v2764_v37  ;;  %v2774_v10 = vmax.f32 %v2772_v27, %v2773_v38  ;;  %v2782_v51 = vrot.slane %v2781_v47, 4  ;;  %1679 = vrot.lane.b32.xlu0 %v1585_v41, %s6660_s15  ;;  %1681 = vrot.lane.b32.xlu1 %v1586_v48, %s6660_s15  ;;  %v4517_v27 = vld [vmem:[%s8806_s3] sm:$0xff]  ;;  %v4142_v37 = vld [vmem:[#allocation5 + $0x8] sm:$0xff]  ;;  %v4536_v41 = vld [vmem:[%s8806_s3 + $0x98] sm:$0xff] }
 0x221   : > { %v2795_v23 = vrot.slane %v2794_v42, 1  ;;  %v2803_v54 = vmax.f32 %v2801_v17, %v2802_v43  ;;  %v2812_v56 = vmax.f32 %v2810_v5, %v2811_v44  ;;  %v2820_v46 = vrot.slane %v2819_v55, 2  ;;  %v1090_v63 = vpop.permute.xlu0 %1089  ;;  %v4191_v44 = vld [vmem:[#allocation5 + $0x9] sm:$0xff] }
 0x222   : > { %v2759_v35 = vrot.slane %v2758_v49, 1  ;;  %v2766_v13 = vrot.slane %v2765_v50, 2  ;;  %v2775_v58 = vrot.slane %v2774_v10, 2  ;;  %v2783_v59 = vmax.f32 %v2781_v47, %v2782_v51  ;;  %1161 = vst.msk [vmem:[#allocation3 + $0xc8] sm:$0xff] %vm1135_vm6, %v1090_v63  ;;  %v1281_v6 = vpop.permute.xlu1 %1280  ;;  %v4535_v47 = vld [vmem:[%s8806_s3 + $0x90] sm:$0xff] }
 0x223   : > { %v2804_v12 = vrot.slane %v2803_v54, 1  ;;  %v2813_v62 = vrot.slane %v2812_v56, 1  ;;  %v2821_v40 = vmax.f32 %v2819_v55, %v2820_v46  ;;  %v2796_v33 = vmax.f32 %v2794_v42, %v2795_v23  ;;  %1353 = vst.msk [vmem:[#allocation3 + $0xc0] sm:$0xff] %vm1328_vm7, %v1281_v6  ;;  %v4519_v48 = vld [vmem:[%s8806_s3 + $0x10] sm:$0xff]  ;;  %v4538_v46 = vld [vmem:[%s8806_s3 + $0xa8] sm:$0xff] }
 0x224   : > { %v2767_v53 = vmax.f32 %v2765_v50, %v2766_v13  ;;  %v2776_v3 = vmax.f32 %v2774_v10, %v2775_v58  ;;  %v2784_v4 = vrot.slane %v2783_v59, 2  ;;  %v2760_v8 = vmax.f32 %v2758_v49, %v2759_v35  ;;  %1872 = vrot.lane.b32.xlu0 %v1778_v60, %s6661_s30  ;;  %1874 = vrot.lane.b32.xlu1 %v1779_v11, %s6661_s30  ;;  %v4520_v49 = vld [vmem:[%s8806_s3 + $0x18] sm:$0xff]  ;;  %s6669_s30 = smov 112  }
 0x225   : > { %v2805_v30 = vmax.f32 %v2803_v54, %v2804_v12  ;;  %v2822_v57 = vrot.slane %v2821_v40, 1  ;;  %v2814_v19 = vmax.f32 %v2812_v56, %v2813_v62  ;;  %v1859_v21 = vpop.permute.xlu0 %1858  ;;  %v2828_v29 = vadd.f32 %v7634_v20, %v2796_v33  ;;  %v4537_v56 = vld [vmem:[%s8806_s3 + $0xa0] sm:$0xff] }
 0x226   : > { %v2768_v22 = vrot.slane %v2767_v53, 1  ;;  %v2777_v15 = vrot.slane %v2776_v3, 1  ;;  %v2785_v16 = vmax.f32 %v2783_v59, %v2784_v4  ;;  %1932 = vst.msk [vmem:[#allocation3 + $0xb8] sm:$0xff] %vm1908_vm10, %v1859_v21  ;;  %v2050_v25 = vpop.permute.xlu1 %2049  ;;  %v2824_v32 = vadd.f32 %v7634_v20, %v2760_v8  ;;  %v4539_v8 = vld [vmem:[%s8806_s3 + $0xb0] sm:$0xff] }
 0x227   : > { %v2823_v26 = vmax.f32 %v2821_v40, %v2822_v57  ;;  %2124 = vst.msk [vmem:[#allocation3 + $0xb0] sm:$0xff] %vm2101_vm11, %v2050_v25  ;;  %v7791_v17 = vadd.f32 %v7634_v20, %v2805_v30  ;;  %v6408_v38 = vpack.c.bf16 %v4534_v14, %v4533_v31  ;;  %v2830_v55 = vadd.f32 %v7634_v20, %v2814_v19  ;;  %v4540_v57 = vld [vmem:[%s8806_s3 + $0xb8] sm:$0xff] }
 0x228   : > { %v2769_v2 = vmax.f32 %v2767_v53, %v2768_v22  ;;  %v2778_v24 = vmax.f32 %v2776_v3, %v2777_v15  ;;  %v2786_v39 = vrot.slane %v2785_v16, 1  ;;  %2065 = vrot.lane.b32.xlu0 %v1971_v18, %s6662_s23  ;;  %2067 = vrot.lane.b32.xlu1 %v1972_v61, %s6662_s23  ;;  %v6410_v45 = vpack.c.bf16 %v4518_v28, %v4517_v27  ;;  %v4522_v53 = vld [vmem:[%s8806_s3 + $0x28] sm:$0xff]  ;;  %v4289_v15 = vld [vmem:[#allocation5 + $0x20] sm:$0xff] }
 0x229   : > { %v706_v42 = vpop.permute.xlu0 %705  ;;  %v2831_v54 = vadd.f32 %v7634_v20, %v2823_v26  ;;  %6409 = vmatprep.subr.bf16.mxu1 %v6408_v38  ;;  %v2836_v35 = vmax.f32 %v2828_v29, 0.0  ;;  %v2832_v13 = vmax.f32 %v2824_v32, 0.0  ;;  %v6412_v58 = vpack.c.bf16 %v4536_v41, %v4535_v47  ;;  %v4541_v27 = vld [vmem:[%s8806_s3 + $0xc0] sm:$0xff]  ;;  %v4542_v28 = vld [vmem:[%s8806_s3 + $0xc8] sm:$0xff] }
 0x22a   : > { %v2787_v5 = vmax.f32 %v2785_v16, %v2786_v39  ;;  %v2825_v34 = vadd.f32 %v7634_v20, %v2769_v2  ;;  %v2826_v36 = vadd.f32 %v7634_v20, %v2778_v24  ;;  %v6231_v43 = vpop.f32.mrb[8].mxu0  ;;  %776 = vst.msk [vmem:[#allocation3 + $0xd0] sm:$0xff] %vm749_vm4, %v706_v42  ;;  %v1283_v52 = vpop.permute.xlu1 %1282  ;;  %6411 = vmatpush3.bf16.msra.mxu1 %v6410_v45  ;;  %v2838_v63 = vmax.f32 %v2830_v55, 0.0  ;;  %v4524_v24 = vld [vmem:[%s8806_s3 + $0x38] sm:$0xff]  ;;  %v4338_v29 = vld [vmem:[#allocation5 + $0x21] sm:$0xff]  ;;  %v4543_v42 = vld [vmem:[%s8806_s3 + $0xd0] sm:$0xff] }
 0x22b   : > { %2417 = vst.msk [vmem:[#allocation4 + $0x48] sm:$0xff] %vm2407_vm12, %v6231_v43  ;;  %v2288_v23 = vpop.f32.mrb[9].mxu0  ;;  %v6414_v62 = vpack.c.bf16 %v4520_v49, %v4519_v48  ;;  %6413 = vmatprep.subr.bf16.mxu1 %v6412_v58  ;;  %v6416_v11 = vpack.c.bf16 %v4538_v46, %v4537_v56  ;;  %vm8837_vm14 = vcmask 1041409   ;;  %v2839_v30 = vmax.f32 %v2831_v54, 0.0  ;;  %v4526_v38 = vld [vmem:[%s8806_s3 + $0x48] sm:$0xff]  ;;  %v4544_v43 = vld [vmem:[%s8806_s3 + $0xd8] sm:$0xff] }
 0x22c   : > { %v2827_v50 = vadd.f32 %v7634_v20, %v2787_v5  ;;  %v2833_v10 = vmax.f32 %v2825_v34, 0.0  ;;  %v2834_v51 = vmax.f32 %v2826_v36, 0.0  ;;  %1354 = vst.msk [vmem:[#allocation3 + $0xc8] sm:$0xff] %vm1328_vm7, %v1283_v52  ;;  %4158 = vrot.lane.b32.xlu0 %v4142_v37, %s6664_s28  ;;  %v2837_v20 = vmax.f32 %v7791_v17, 0.0  ;;  %4207 = vrot.lane.b32.xlu1 %v4191_v44, %s6665_s12  ;;  %v4525_v37 = vld [vmem:[%s8806_s3 + $0x40] sm:$0xff]  ;;  %v4527_v45 = vld [vmem:[%s8806_s3 + $0x50] sm:$0xff] }
 0x22d   : > { %2416 = vst.msk [vmem:[#allocation4 + $0x40] sm:$0xff] %vm2407_vm12, %v2288_v23  ;;  %v1474_v40 = vpop.permute.xlu0 %1473  ;;  %v2854_v22 = vrot.slane %v2836_v35, 4  ;;  %vm8838_vm15 = vcmask 1043459   ;;  %v6418_v21 = vpack.c.bf16 %v4522_v53, %v4521_v0  ;;  %vm8839_vm0 = vcmask 1044484   ;;  %v4528_v48 = vld [vmem:[%s8806_s3 + $0x58] sm:$0xff]  ;;  %v4529_v46 = vld [vmem:[%s8806_s3 + $0x60] sm:$0xff] }
 0x22e   : > { %v2835_v59 = vmax.f32 %v2827_v50, 0.0  ;;  %v2848_v60 = vrot.slane %v2833_v10, 7  ;;  %v2850_v12 = vrot.slane %v2834_v51, 6  ;;  %1546 = vst.msk [vmem:[#allocation3 + $0xc0] sm:$0xff] %vm1521_vm8, %v1474_v40  ;;  %v2052_v6 = vpop.permute.xlu1 %2051  ;;  %v2156_v33 = vld [vmem:[#allocation3 + $0xb0] sm:$0xff]  ;;  %v2856_v19 = vrot.slane %v2837_v20, 3  ;;  %6415 = vmatpush3.bf16.msra.mxu1 %v6414_v62 }
 0x22f   : > { %2125 = vst.msk [vmem:[#allocation3 + $0xb8] sm:$0xff] %vm2101_vm11, %v2052_v6  ;;  %6250 = vmatprep.mubr.f32.mxu0 %v2156_v33  ;;  %v2858_v14 = vrot.slane %v2838_v63, 2  ;;  %6417 = vmatprep.subr.bf16.mxu1 %v6416_v11  ;;  %v6420_v2 = vpack.c.bf16 %v4540_v57, %v4539_v8  ;;  %vm8840_vm13 = vcmask 1045509   ;;  %v2860_v26 = vrot.slane %v2839_v30, 1  ;;  %v4545_v10 = vld [vmem:[%s8806_s3 + $0xe0] sm:$0xff]  ;;  %v4546_v51 = vld [vmem:[%s8806_s3 + $0xe8] sm:$0xff] }
 0x230   : > { %v2849_v3 = vsel %vm8837_vm14, %v2848_v60, %v2832_v13  ;;  %v2852_v4 = vrot.slane %v2835_v59, 5  ;;  %4256 = vrot.lane.b32.xlu0 %v7698_v7, %s6662_s23  ;;  %4305 = vrot.lane.b32.xlu1 %v4289_v15, %s6666_s21  ;;  %v4523_v7 = vld [vmem:[%s8806_s3 + $0x30] sm:$0xff]  ;;  %vm8841_vm1 = vcmask 1046534   ;;  %vm8842_vm3 = vcmask 1047559   ;;  %v4530_v35 = vld [vmem:[%s8806_s3 + $0x68] sm:$0xff] }
 0x231   : > { %v2851_v16 = vsel %vm2640_vm2, %v2850_v12, %v2849_v3  ;;  %v708_v61 = vpop.permute.xlu0 %707  ;;  %v6422_v5 = vpack.c.bf16 %v4524_v24, %v4523_v7  ;;  %v6424_v36 = vpack.c.bf16 %v4542_v28, %v4541_v27  ;;  %v6426_v44 = vpack.c.bf16 %v4526_v38, %v4525_v37  ;;  %v4547_v58 = vld [vmem:[%s8806_s3 + $0xf0] sm:$0xff]  ;;  %v4548_v59 = vld [vmem:[%s8806_s3 + $0xf8] sm:$0xff] }
 0x232   : > { %v2853_v18 = vsel %vm8838_vm15, %v2852_v4, %v2851_v16  ;;  %777 = vst.msk [vmem:[#allocation3 + $0xd8] sm:$0xff] %vm749_vm4, %v708_v61  ;;  %v899_v39 = vpop.permute.xlu1 %898  ;;  %6419 = vmatpush3.bf16.msra.mxu1 %v6418_v21  ;;  %v6428_v50 = vpack.c.bf16 %v4544_v43, %v4543_v42  ;;  %v6430_v54 = vpack.c.bf16 %v4528_v48, %v4527_v45  ;;  %v4531_v40 = vld [vmem:[%s8806_s3 + $0x70] sm:$0xff]  ;;  %v4532_v63 = vld [vmem:[%s8806_s3 + $0x78] sm:$0xff]  ;;  %v2866_v53 = vld [vmem:[#allocation4 + $0x48] sm:$0xff]  ;;  %vm8843_vm14 = vcmask 123904  }
 0x233   : > { %v2855_v31 = vsel %vm8839_vm0, %v2854_v22, %v2853_v18  ;;  %969 = vst.msk [vmem:[#allocation3 + $0xd0] sm:$0xff] %vm942_vm5, %v899_v39  ;;  %6421 = vmatprep.subr.bf16.mxu1 %v6420_v2  ;;  %v6432_v20 = vpack.c.bf16 %v4546_v51, %v4545_v10  ;;  %v6434_v12 = vpack.c.bf16 %v4530_v35, %v4529_v46  ;;  %vm8844_vm15 = vmmov %vm8843_vm14 }
 0x234   : > { %v2857_v25 = vsel %vm8840_vm13, %v2856_v19, %v2855_v31  ;;  %4160 = vrot.lane.b32.xlu0 %v4289_v15, %s6664_s28  ;;  %4354 = vrot.lane.b32.xlu1 %v4338_v29, %s6667_s13  ;;  %v6436_v0 = vpack.c.bf16 %v4548_v59, %v4547_v58  ;;  %v6438_v4 = vpack.c.bf16 %v4532_v63, %v4531_v40  ;;  %v2865_v6 = vld [vmem:[#allocation4 + $0x40] sm:$0xff]  ;;  %vm8845_vm0 = vmmov %vm8843_vm14 }
 0x235   : > { %v2859_v32 = vsel %vm8841_vm1, %v2858_v14, %v2857_v25  ;;  %v1476_v34 = vpop.permute.xlu0 %1475  ;;  %v2890_v8 = vcombine.high %v2866_v53, %v2866_v53  ;;  %v2873_v57 = vcombine.high %v2865_v6, %v2865_v6  ;;  %v2897_v22 = vrot.slane %v2866_v53, %v7543_v9  ;;  %vm8846_vm13 = vmmov %vm8845_vm0 }
 0x236   : > { %v2861_v17 = vsel %vm8842_vm3, %v2860_v26, %v2859_v32  ;;  %1547 = vst.msk [vmem:[#allocation3 + $0xc8] sm:$0xff] %vm1521_vm8, %v1476_v34  ;;  %v1668_v47 = vpop.permute.xlu1 %1667  ;;  %v2157_v41 = vld [vmem:[#allocation3 + $0xb8] sm:$0xff]  ;;  %6423 = vmatpush3.bf16.msra.mxu1 %v6422_v5  ;;  %v2880_v18 = vrot.slane %v2865_v6, %v7543_v9  ;;  %vm8847_vm1 = vmmov %vm8845_vm0 }
 0x237   : > { %2864 = vst.msk [vmem:[#allocation5 + $0x38] sm:$0xff] %vm2407_vm12, %v2861_v17  ;;  %6251 = vmatmul.mubr.f32.gmra.mrb[22].mxu0 %v2157_v41  ;;  %6425 = vmatprep.subr.bf16.mxu1 %v6424_v36  ;;  %v2904_v61 = vrot.slane %v2890_v8, %v7543_v9  ;;  %v2887_v31 = vrot.slane %v2873_v57, %v7543_v9  ;;  %v2993_v27 = vsel %vm8843_vm14, %v2897_v22, -inf  ;;  %vm8848_vm3 = vmmov %vm8845_vm0 }
 0x238   : > { %1740 = vst.msk [vmem:[#allocation3 + $0xc0] sm:$0xff] %vm1715_vm9, %v1668_v47  ;;  %4209 = vrot.lane.b32.xlu0 %v4338_v29, %s6665_s12  ;;  %v2905_v14 = vcombine.high %v2897_v22, %v2897_v22  ;;  %v2888_v7 = vcombine.high %v2880_v18, %v2880_v18  ;;  %v2957_v29 = vsel %vm8845_vm0, %v2880_v18, -inf  ;;  %vm8849_vm14 = vmmov %vm8845_vm0 }
 0x239   : > { %v901_v55 = vpop.permute.xlu0 %900  ;;  %v2906_v25 = vcombine.high %v2904_v61, %v2904_v61  ;;  %v2889_v26 = vcombine.high %v2887_v31, %v2887_v31  ;;  %v3011_v5 = vsel %vm8846_vm13, %v2904_v61, -inf  ;;  %v2975_v42 = vsel %vm8849_vm14, %v2887_v31, -inf  ;;  %vm8851_vm13 = vmmov %vm8845_vm0 }
 0x23a   : > { %970 = vst.msk [vmem:[#allocation3 + $0xd8] sm:$0xff] %vm942_vm5, %v901_v55  ;;  %v1092_v49 = vpop.permute.xlu1 %1091  ;;  %6427 = vmatpush3.bf16.msra.mxu1 %v6426_v44  ;;  %v3002_v28 = vsel %vm8844_vm15, %v2905_v14, -inf  ;;  %v2966_v34 = vsel %vm8847_vm1, %v2888_v7, -inf  ;;  %vm8850_vm15 = vmmov %vm8845_vm0 }
 0x23b   : > { %1162 = vst.msk [vmem:[#allocation3 + $0xd0] sm:$0xff] %vm1135_vm6, %v1092_v49  ;;  %6429 = vmatprep.subr.bf16.mxu1 %v6428_v50  ;;  %v3020_v41 = vsel %vm8848_vm3, %v2906_v25, -inf  ;;  %v2984_v55 = vsel %vm8850_vm15, %v2889_v26, -inf  ;;  %vm8852_vm1 = vmmov %vm8845_vm0 }
 0x23c   : > { %vm8853_vm3 = vmmov %vm8845_vm0 }
 0x23d   : > { %v1670_v56 = vpop.permute.xlu0 %1669  ;;  %vm8854_vm14 = vmmov %vm8845_vm0 }
 0x23e   : > { %v4387_v52 = vld [vmem:[#allocation5 + $0x37] sm:$0xff]  ;;  %1741 = vst.msk [vmem:[#allocation3 + $0xc8] sm:$0xff] %vm1715_vm9, %v1670_v56  ;;  %v1861_v13 = vpop.permute.xlu1 %1860  ;;  %6431 = vmatpush3.bf16.msra.mxu1 %v6430_v54  ;;  %vm8855_vm15 = vmmov %vm8845_vm0 }
 0x23f   : > { %v4485_v23 = vld [vmem:[#allocation5 + $0x39] sm:$0xff]  ;;  %4403 = vrot.lane.b32.xlu1 %v4387_v52, %s6668_s18  ;;  %4258 = vrot.lane.b32.xlu0 %v4387_v52, %s6662_s23  ;;  %4136 = vst.msk [vmem:[#allocation6 + $0x20] sm:$0xff] %vm2407_vm12, %v4387_v52 }
 0x240   : > { %4493 = vst.msk [vmem:[#allocation6 + $0x8] sm:$0xff] %vm2407_vm12, %v4485_v23  ;;  %v4436_v60 = vld [vmem:[#allocation5 + $0x38] sm:$0xff]  ;;  %6433 = vmatprep.subr.bf16.mxu1 %v6432_v20 }
 0x241   : > { %1933 = vst.msk [vmem:[#allocation3 + $0xc0] sm:$0xff] %vm1908_vm10, %v1861_v13  ;;  %v1094_v62 = vpop.permute.xlu0 %1093 }
 0x242   : > { %1163 = vst.msk [vmem:[#allocation3 + $0xd8] sm:$0xff] %vm1135_vm6, %v1094_v62  ;;  %v1285_v11 = vpop.permute.xlu1 %1284  ;;  %6435 = vmatpush3.bf16.msra.mxu1 %v6434_v12 }
 0x243   : > { %4452 = vrot.lane.b32.xlu1 %v4436_v60, %s6669_s30  ;;  %4307 = vrot.lane.b32.xlu0 %v4436_v60, %s6666_s21  ;;  %1355 = vst.msk [vmem:[#allocation3 + $0xd0] sm:$0xff] %vm1328_vm7, %v1285_v11 }
 0x244   : > { %6437 = vmatprep.subr.bf16.mxu1 %v6436_v0 }
 0x245   : > { %v1863_v33 = vpop.permute.xlu0 %1862 }
 0x246   : > { %1934 = vst.msk [vmem:[#allocation3 + $0xc8] sm:$0xff] %vm1908_vm10, %v1863_v33  ;;  %v2054_v30 = vpop.permute.xlu1 %2053  ;;  %6439 = vmatpush3.bf16.msra.mxu1 %v6438_v4 }
 0x247   : > { %v4502_v3 = vld [vmem:[#allocation6 + $0x8] sm:$0xff]  ;;  %4356 = vrot.lane.b32.xlu0 %v4485_v23, %s6667_s13  ;;  %4162 = vrot.lane.b32.xlu1 %v4436_v60, %s6664_s28  ;;  %2126 = vst.msk [vmem:[#allocation3 + $0xc0] sm:$0xff] %vm2101_vm11, %v2054_v30 }
 0x248   : > { %4613 = vmatprep.mubr.f32.mxu1 %v4502_v3 }
 0x24a   : > { %v1287_v15 = vpop.permute.xlu0 %1286  ;;  %v6234_v16 = vpop.f32.mrb[10].mxu0 }
 0x24b   : > { %4211 = vrot.lane.b32.xlu1 %v4485_v23, %s6665_s12  ;;  %1356 = vst.msk [vmem:[#allocation3 + $0xd8] sm:$0xff] %vm1328_vm7, %v1287_v15  ;;  %v1478_v19 = vpop.permute.xlu1 %1477  ;;  %v2298_v21 = vpop.f32.mrb[11].mxu0 }
 0x24c   : > { %2419 = vst.msk [vmem:[#allocation4 + $0x58] sm:$0xff] %vm2407_vm12, %v6234_v16  ;;  %2418 = vst.msk [vmem:[#allocation4 + $0x50] sm:$0xff] %vm2407_vm12, %v2298_v21 }
 0x24d   : > { %1548 = vst.msk [vmem:[#allocation3 + $0xd0] sm:$0xff] %vm1521_vm8, %v1478_v19 }
 0x24e   : > { %v2056_v2 = vpop.permute.xlu0 %2055  ;;  %v2158_v39 = vld [vmem:[#allocation3 + $0xc0] sm:$0xff] }
 0x24f   : > { %2127 = vst.msk [vmem:[#allocation3 + $0xc8] sm:$0xff] %vm2101_vm11, %v2056_v2  ;;  %v1480_v24 = vpop.permute.xlu1 %1479  ;;  %6253 = vmatprep.mubr.f32.mxu0 %v2158_v39 }
 0x250   : > { %1549 = vst.msk [vmem:[#allocation3 + $0xd8] sm:$0xff] %vm1521_vm8, %v1480_v24 }
 0x252   : > { %v1672_v17 = vpop.permute.xlu0 %1671 }
 0x253   : > { %v2868_v32 = vld [vmem:[#allocation4 + $0x58] sm:$0xff]  ;;  %v2867_v38 = vld [vmem:[#allocation4 + $0x50] sm:$0xff]  ;;  %1742 = vst.msk [vmem:[#allocation3 + $0xd0] sm:$0xff] %vm1715_vm9, %v1672_v17  ;;  %v1674_v47 = vpop.permute.xlu1 %1673 }
 0x254   : > { %v2924_v36 = vcombine.high %v2868_v32, %v2868_v32  ;;  %v2931_v37 = vrot.slane %v2868_v32, %v7543_v9  ;;  %v2907_v43 = vcombine.high %v2867_v38, %v2867_v38  ;;  %v2914_v44 = vrot.slane %v2867_v38, %v7543_v9  ;;  %1743 = vst.msk [vmem:[#allocation3 + $0xd8] sm:$0xff] %vm1715_vm9, %v1674_v47 }
 0x256   : > { %v2938_v45 = vrot.slane %v2924_v36, %v7543_v9  ;;  %v2939_v48 = vcombine.high %v2931_v37, %v2931_v37  ;;  %v2994_v49 = vsel %vm8845_vm0, %v2931_v37, -inf  ;;  %v2921_v10 = vrot.slane %v2907_v43, %v7543_v9  ;;  %v1865_v23 = vpop.permute.xlu0 %1864  ;;  %v2159_v54 = vld [vmem:[#allocation3 + $0xc8] sm:$0xff] }
 0x257   : > { %v2995_v50 = vmax.f32 %v2993_v27, %v2994_v49  ;;  %v2922_v51 = vcombine.high %v2914_v44, %v2914_v44  ;;  %v2958_v52 = vsel %vm8851_vm13, %v2914_v44, -inf  ;;  %1935 = vst.msk [vmem:[#allocation3 + $0xd0] sm:$0xff] %vm1908_vm10, %v1865_v23  ;;  %v1867_v20 = vpop.permute.xlu1 %1866  ;;  %6254 = vmatmul.mubr.f32.gmra.mrb[24].mxu0 %v2159_v54  ;;  %vm8856_vm13 = vmmov %vm8845_vm0 }
 0x258   : > { %v2940_v56 = vcombine.high %v2938_v45, %v2938_v45  ;;  %v3003_v46 = vsel %vm8852_vm1, %v2939_v48, -inf  ;;  %v3012_v35 = vsel %vm8853_vm3, %v2938_v45, -inf  ;;  %v2959_v13 = vmax.f32 %v2957_v29, %v2958_v52  ;;  %1936 = vst.msk [vmem:[#allocation3 + $0xd8] sm:$0xff] %vm1908_vm10, %v1867_v20 }
 0x259   : > { %v2996_v58 = vrot.slane %v2995_v50, 4  ;;  %v3004_v59 = vmax.f32 %v3002_v28, %v3003_v46  ;;  %v3013_v60 = vmax.f32 %v3011_v5, %v3012_v35  ;;  %v2923_v12 = vcombine.high %v2921_v10, %v2921_v10 }
 0x25a   : > { %v3021_v62 = vsel %vm8854_vm14, %v2940_v56, -inf  ;;  %v2960_v40 = vrot.slane %v2959_v13, 4  ;;  %v2967_v63 = vsel %vm8855_vm15, %v2922_v51, -inf  ;;  %v2976_v11 = vsel %vm8845_vm0, %v2921_v10, -inf  ;;  %v2058_v6 = vpop.permute.xlu0 %2057 }
 0x25b   : > { %v2997_v0 = vmax.f32 %v2995_v50, %v2996_v58  ;;  %v3005_v53 = vrot.slane %v3004_v59, 4  ;;  %v3014_v3 = vrot.slane %v3013_v60, 4  ;;  %v3022_v4 = vmax.f32 %v3020_v41, %v3021_v62  ;;  %2128 = vst.msk [vmem:[#allocation3 + $0xd0] sm:$0xff] %vm2101_vm11, %v2058_v6  ;;  %v2060_v22 = vpop.permute.xlu1 %2059 }
 0x25c   : > { %v2961_v33 = vmax.f32 %v2959_v13, %v2960_v40  ;;  %v2968_v30 = vmax.f32 %v2966_v34, %v2967_v63  ;;  %v2977_v8 = vmax.f32 %v2975_v42, %v2976_v11  ;;  %v2985_v57 = vsel %vm8856_vm13, %v2923_v12, -inf  ;;  %2129 = vst.msk [vmem:[#allocation3 + $0xd8] sm:$0xff] %vm2101_vm11, %v2060_v22  ;;  %v7971_v63 = vld [vmem:[%s8805_s2] ss:$0 sm:$0xff] }
 0x25d   : > { %v2998_v15 = vrot.slane %v2997_v0, 2  ;;  %v3006_v16 = vmax.f32 %v3004_v59, %v3005_v53  ;;  %v3015_v18 = vmax.f32 %v3013_v60, %v3014_v3  ;;  %v3023_v19 = vrot.slane %v3022_v4, 4 }
 0x25e   : > { %v2962_v21 = vrot.slane %v2961_v33, 2  ;;  %v2969_v61 = vrot.slane %v2968_v30, 4  ;;  %v2978_v31 = vrot.slane %v2977_v8, 4  ;;  %v2986_v14 = vmax.f32 %v2984_v55, %v2985_v57  ;;  %v710_v25 = vpop.permute.xlu0 %709 }
 0x25f   : > { %v2999_v2 = vmax.f32 %v2997_v0, %v2998_v15  ;;  %v3007_v7 = vrot.slane %v3006_v16, 2  ;;  %v3016_v24 = vrot.slane %v3015_v18, 2  ;;  %v3024_v39 = vmax.f32 %v3022_v4, %v3023_v19  ;;  %778 = vst.msk [vmem:[#allocation3 + $0xe0] sm:$0xff] %vm749_vm4, %v710_v25  ;;  %v712_v32 = vpop.permute.xlu1 %711 }
 0x260   : > { %v2963_v26 = vmax.f32 %v2961_v33, %v2962_v21  ;;  %v2970_v27 = vmax.f32 %v2968_v30, %v2969_v61  ;;  %v2979_v28 = vmax.f32 %v2977_v8, %v2978_v31  ;;  %v2987_v29 = vrot.slane %v2986_v14, 4  ;;  %779 = vst.msk [vmem:[#allocation3 + $0xe8] sm:$0xff] %vm749_vm4, %v712_v32 }
 0x261   : > { %v3000_v17 = vrot.slane %v2999_v2, 1  ;;  %v3008_v5 = vmax.f32 %v3006_v16, %v3007_v7  ;;  %v3017_v34 = vmax.f32 %v3015_v18, %v3016_v24  ;;  %v3025_v36 = vrot.slane %v3024_v39, 2 }
 0x262   : > { %v2964_v37 = vrot.slane %v2963_v26, 1  ;;  %v2971_v38 = vrot.slane %v2970_v27, 2  ;;  %v2980_v47 = vrot.slane %v2979_v28, 2  ;;  %v2988_v41 = vmax.f32 %v2986_v14, %v2987_v29  ;;  %v903_v55 = vpop.permute.xlu0 %902  ;;  %v2160_v45 = vld [vmem:[#allocation3 + $0xd0] sm:$0xff] }
 0x263   : > { %v3009_v42 = vrot.slane %v3008_v5, 1  ;;  %v3018_v43 = vrot.slane %v3017_v34, 1  ;;  %v3026_v44 = vmax.f32 %v3024_v39, %v3025_v36  ;;  %971 = vst.msk [vmem:[#allocation3 + $0xe0] sm:$0xff] %vm942_vm5, %v903_v55  ;;  %v905_v10 = vpop.permute.xlu1 %904  ;;  %6256 = vmatprep.mubr.f32.mxu0 %v2160_v45  ;;  %v2161_v51 = vld [vmem:[#allocation3 + $0xd8] sm:$0xff]  ;;  %v3001_v52 = vmax.f32 %v2999_v2, %v3000_v17 }
 0x264   : > { %v2972_v48 = vmax.f32 %v2970_v27, %v2971_v38  ;;  %v2981_v49 = vmax.f32 %v2979_v28, %v2980_v47  ;;  %v2989_v50 = vrot.slane %v2988_v41, 2  ;;  %v2965_v23 = vmax.f32 %v2963_v26, %v2964_v37  ;;  %972 = vst.msk [vmem:[#allocation3 + $0xe8] sm:$0xff] %vm942_vm5, %v905_v10  ;;  %6257 = vmatmul.mubr.f32.gmra.mrb[26].mxu0 %v2161_v51 }
 0x265   : > { %v3027_v54 = vrot.slane %v3026_v44, 1  ;;  %v3010_v56 = vmax.f32 %v3008_v5, %v3009_v42  ;;  %v3019_v20 = vmax.f32 %v3017_v34, %v3018_v43  ;;  %v3033_v11 = vadd.f32 %v7971_v63, %v3001_v52 }
 0x266   : > { %v2973_v46 = vrot.slane %v2972_v48, 1  ;;  %v2982_v35 = vrot.slane %v2981_v49, 1  ;;  %v2990_v13 = vmax.f32 %v2988_v41, %v2989_v50  ;;  %v1096_v58 = vpop.permute.xlu0 %1095  ;;  %v3029_v0 = vadd.f32 %v7971_v63, %v2965_v23 }
 0x267   : > { %1164 = vst.msk [vmem:[#allocation3 + $0xe0] sm:$0xff] %vm1135_vm6, %v1096_v58  ;;  %v1098_v62 = vpop.permute.xlu1 %1097  ;;  %v3028_v40 = vmax.f32 %v3026_v44, %v3027_v54  ;;  %v3034_v6 = vadd.f32 %v7971_v63, %v3010_v56  ;;  %v3035_v8 = vadd.f32 %v7971_v63, %v3019_v20  ;;  %v3041_v21 = vmax.f32 %v3033_v11, 0.0 }
 0x268   : > { %v2974_v59 = vmax.f32 %v2972_v48, %v2973_v46  ;;  %v2983_v60 = vmax.f32 %v2981_v49, %v2982_v35  ;;  %v2991_v12 = vrot.slane %v2990_v13, 1  ;;  %1165 = vst.msk [vmem:[#allocation3 + $0xe8] sm:$0xff] %vm1135_vm6, %v1098_v62  ;;  %v3037_v61 = vmax.f32 %v3029_v0, 0.0 }
 0x269   : > { %v3036_v19 = vadd.f32 %v7971_v63, %v3028_v40  ;;  %v3042_v7 = vmax.f32 %v3034_v6, 0.0  ;;  %v3043_v39 = vmax.f32 %v3035_v8, 0.0  ;;  %vm8857_vm1 = vcmask 1041409  }
 0x26a   : > { %v2992_v53 = vmax.f32 %v2990_v13, %v2991_v12  ;;  %v3030_v3 = vadd.f32 %v7971_v63, %v2974_v59  ;;  %v3031_v4 = vadd.f32 %v7971_v63, %v2983_v60  ;;  %v1289_v33 = vpop.permute.xlu0 %1288  ;;  %v6237_v30 = vpop.f32.mrb[12].mxu0  ;;  %v3059_v29 = vrot.slane %v3041_v21, 4 }
 0x26b   : > { %1357 = vst.msk [vmem:[#allocation3 + $0xe0] sm:$0xff] %vm1328_vm7, %v1289_v33  ;;  %v714_v16 = vpop.permute.xlu1 %713  ;;  %v2308_v18 = vpop.f32.mrb[13].mxu0  ;;  %v3044_v28 = vmax.f32 %v3036_v19, 0.0  ;;  %vm8858_vm3 = vcmask 1043459   ;;  %v3061_v5 = vrot.slane %v3042_v7, 3  ;;  %vm8859_vm14 = vcmask 1044484  }
 0x26c   : > { %v3032_v57 = vadd.f32 %v7971_v63, %v2992_v53  ;;  %v3038_v22 = vmax.f32 %v3030_v3, 0.0  ;;  %v3039_v15 = vmax.f32 %v3031_v4, 0.0  ;;  %2421 = vst.msk [vmem:[#allocation4 + $0x68] sm:$0xff] %vm2407_vm12, %v6237_v30  ;;  %2420 = vst.msk [vmem:[#allocation4 + $0x60] sm:$0xff] %vm2407_vm12, %v2308_v18  ;;  %v3063_v37 = vrot.slane %v3043_v39, 2 }
 0x26d   : > { %780 = vst.msk [vmem:[#allocation3 + $0xf0] sm:$0xff] %vm749_vm4, %v714_v16  ;;  %vm8860_vm15 = vcmask 1045509   ;;  %v3065_v41 = vrot.slane %v3044_v28, 1  ;;  %vm8861_vm0 = vcmask 1046534   ;;  %vm8862_vm13 = vcmask 1047559  }
 0x26e   : > { %v3040_v31 = vmax.f32 %v3032_v57, 0.0  ;;  %v3053_v14 = vrot.slane %v3038_v22, 7  ;;  %v3055_v2 = vrot.slane %v3039_v15, 6  ;;  %v1291_v24 = vpop.permute.xlu0 %1290 }
 0x26f   : > { %1358 = vst.msk [vmem:[#allocation3 + $0xe8] sm:$0xff] %vm1328_vm7, %v1291_v24  ;;  %v1482_v27 = vpop.permute.xlu1 %1481 }
 0x270   : > { %v3054_v25 = vsel %vm8857_vm1, %v3053_v14, %v3037_v61  ;;  %v3057_v26 = vrot.slane %v3040_v31, 5  ;;  %1550 = vst.msk [vmem:[#allocation3 + $0xe0] sm:$0xff] %vm1521_vm8, %v1482_v27 }
 0x271   : > { %v3056_v32 = vsel %vm2640_vm2, %v3055_v2, %v3054_v25 }
 0x272   : > { %v3058_v17 = vsel %vm8858_vm3, %v3057_v26, %v3056_v32  ;;  %v716_v34 = vpop.permute.xlu0 %715 }
 0x273   : > { %v3060_v36 = vsel %vm8859_vm14, %v3059_v29, %v3058_v17  ;;  %781 = vst.msk [vmem:[#allocation3 + $0xf8] sm:$0xff] %vm749_vm4, %v716_v34  ;;  %v907_v38 = vpop.permute.xlu1 %906  ;;  %v3071_v56 = vld [vmem:[#allocation4 + $0x68] sm:$0xff]  ;;  %v3070_v35 = vld [vmem:[#allocation4 + $0x60] sm:$0xff]  ;;  %vm8863_vm4 = vcmask 123904  }
 0x274   : > { %v3062_v47 = vsel %vm8860_vm15, %v3061_v5, %v3060_v36  ;;  %973 = vst.msk [vmem:[#allocation3 + $0xf0] sm:$0xff] %vm942_vm5, %v907_v38  ;;  %v3095_v20 = vcombine.high %v3071_v56, %v3071_v56  ;;  %v3078_v58 = vcombine.high %v3070_v35, %v3070_v35  ;;  %v3102_v60 = vrot.slane %v3071_v56, %v7543_v9  ;;  %vm8867_vm1 = vmmov %vm8863_vm4 }
 0x275   : > { %v3064_v42 = vsel %vm8861_vm0, %v3063_v37, %v3062_v47  ;;  %v3085_v40 = vrot.slane %v3070_v35, %v7543_v9  ;;  %vm8868_vm3 = vmmov %vm8867_vm1  ;;  %vm4231_vm15 = vcmask 392448  }
 0x276   : > { %v3066_v43 = vsel %vm8862_vm13, %v3065_v41, %v3064_v42  ;;  %v1484_v44 = vpop.permute.xlu0 %1483  ;;  %v3109_v0 = vrot.slane %v3095_v20, %v7543_v9  ;;  %v3092_v53 = vrot.slane %v3078_v58, %v7543_v9  ;;  %v3110_v4 = vcombine.high %v3102_v60, %v3102_v60  ;;  %vm8869_vm14 = vmmov %vm8867_vm1 }
 0x277   : > { %3069 = vst.msk [vmem:[#allocation5 + $0x50] sm:$0xff] %vm2407_vm12, %v3066_v43  ;;  %v1676_v55 = vpop.permute.xlu1 %1675  ;;  %v3093_v30 = vcombine.high %v3085_v40, %v3085_v40  ;;  %v3198_v15 = vsel %vm8863_vm4, %v3102_v60, -inf  ;;  %vm8870_vm0 = vmmov %vm8867_vm1 }
 0x278   : > { %1551 = vst.msk [vmem:[#allocation3 + $0xe8] sm:$0xff] %vm1521_vm8, %v1484_v44  ;;  %v3111_v8 = vcombine.high %v3109_v0, %v3109_v0  ;;  %v3094_v57 = vcombine.high %v3092_v53, %v3092_v53  ;;  %v3180_v39 = vsel %vm8869_vm14, %v3092_v53, -inf  ;;  %vm8871_vm13 = vmmov %vm8870_vm0 }
 0x279   : > { %1744 = vst.msk [vmem:[#allocation3 + $0xe0] sm:$0xff] %vm1715_vm9, %v1676_v55  ;;  %v3171_v31 = vsel %vm8867_vm1, %v3093_v30, -inf  ;;  %vm8875_vm1 = vmmov %vm8870_vm0 }
 0x27a   : > { %v909_v45 = vpop.permute.xlu0 %908  ;;  %v3225_v24 = vsel %vm8868_vm3, %v3111_v8, -inf  ;;  %v3189_v27 = vsel %vm8870_vm0, %v3094_v57, -inf  ;;  %vm8876_vm3 = vmmov %vm8870_vm0 }
 0x27b   : > { %974 = vst.msk [vmem:[#allocation3 + $0xf8] sm:$0xff] %vm942_vm5, %v909_v45  ;;  %v1100_v48 = vpop.permute.xlu1 %1099  ;;  %vm8864_vm5 = vmmov %vm8863_vm4 }
 0x27c   : > { %1166 = vst.msk [vmem:[#allocation3 + $0xf0] sm:$0xff] %vm1135_vm6, %v1100_v48  ;;  %v3207_v16 = vsel %vm8864_vm5, %v3110_v4, -inf  ;;  %vm8874_vm5 = vmmov %vm8870_vm0 }
 0x27d   : > { %vm8877_vm14 = vmmov %vm8870_vm0 }
 0x27e   : > { %v4388_v49 = vld [vmem:[#allocation5 + $0x4f] sm:$0xff]  ;;  %v1678_v10 = vpop.permute.xlu0 %1677 }
 0x27f   : > { %v4340_v50 = vld [vmem:[#allocation5 + $0x51] sm:$0xff]  ;;  %4405 = vrot.lane.b32.xlu0 %v4388_v49, %s6668_s18  ;;  %4260 = vrot.lane.b32.xlu1 %v4388_v49, %s6662_s23  ;;  %4137 = vst.msk [vmem:[#allocation6 + $0x30] sm:$0xff] %vm2407_vm12, %v4388_v49  ;;  %v1869_v51 = vpop.permute.xlu1 %1868 }
 0x280   : > { %4494 = vst.msk [vmem:[#allocation6 + $0x18] sm:$0xff] %vm2407_vm12, %v4340_v50  ;;  %v4437_v52 = vld [vmem:[#allocation5 + $0x50] sm:$0xff] }
 0x281   : > { %1745 = vst.msk [vmem:[#allocation3 + $0xe8] sm:$0xff] %vm1715_vm9, %v1678_v10 }
 0x282   : > { %1937 = vst.msk [vmem:[#allocation3 + $0xe0] sm:$0xff] %vm1908_vm10, %v1869_v51  ;;  %v1102_v23 = vpop.permute.xlu0 %1101 }
 0x283   : > { %4454 = vrot.lane.b32.xlu0 %v4437_v52, %s6669_s30  ;;  %4309 = vrot.lane.b32.xlu1 %v4437_v52, %s6666_s21  ;;  %1167 = vst.msk [vmem:[#allocation3 + $0xf8] sm:$0xff] %vm1135_vm6, %v1102_v23  ;;  %v1293_v54 = vpop.permute.xlu1 %1292  ;;  %vm8865_vm6 = vmmov %vm8863_vm4 }
 0x284   : > { %1359 = vst.msk [vmem:[#allocation3 + $0xf0] sm:$0xff] %vm1328_vm7, %v1293_v54  ;;  %v3162_v18 = vsel %vm8865_vm6, %v3085_v40, -inf  ;;  %vm4280_vm6 = vcmask 523648  }
 0x286   : > { %v1871_v46 = vpop.permute.xlu0 %1870 }
 0x287   : > { %4358 = vrot.lane.b32.xlu1 %v4340_v50, %s6667_s13  ;;  %4164 = vrot.lane.b32.xlu0 %v4437_v52, %s6664_s28  ;;  %1938 = vst.msk [vmem:[#allocation3 + $0xe8] sm:$0xff] %vm1908_vm10, %v1871_v46  ;;  %v2062_v13 = vpop.permute.xlu1 %2061 }
 0x288   : > { %2130 = vst.msk [vmem:[#allocation3 + $0xe0] sm:$0xff] %vm2101_vm11, %v2062_v13 }
 0x28a   : > { %v1295_v59 = vpop.permute.xlu0 %1294  ;;  %v6240_v62 = vpop.f32.mrb[14].mxu0 }
 0x28b   : > { %4213 = vrot.lane.b32.xlu0 %v4340_v50, %s6665_s12  ;;  %1360 = vst.msk [vmem:[#allocation3 + $0xf8] sm:$0xff] %vm1328_vm7, %v1295_v59  ;;  %v1486_v12 = vpop.permute.xlu1 %1485  ;;  %v2318_v11 = vpop.f32.mrb[15].mxu0  ;;  %vm8866_vm7 = vmmov %vm8863_vm4 }
 0x28c   : > { %1552 = vst.msk [vmem:[#allocation3 + $0xf0] sm:$0xff] %vm1521_vm8, %v1486_v12  ;;  %v3216_v61 = vsel %vm8866_vm7, %v3109_v0, -inf  ;;  %vm8873_vm4 = vmmov %vm8870_vm0  ;;  %vm4329_vm7 = vcmask 654848  }
 0x28d   : > { %2423 = vst.msk [vmem:[#allocation4 + $0x78] sm:$0xff] %vm2407_vm12, %v6240_v62  ;;  %2422 = vst.msk [vmem:[#allocation4 + $0x70] sm:$0xff] %vm2407_vm12, %v2318_v11 }
 0x28e   : > { %v2064_v3 = vpop.permute.xlu0 %2063 }
 0x28f   : > { %2131 = vst.msk [vmem:[#allocation3 + $0xe8] sm:$0xff] %vm2101_vm11, %v2064_v3  ;;  %v1488_v6 = vpop.permute.xlu1 %1487  ;;  %v2162_v33 = vld [vmem:[#allocation3 + $0xe0] sm:$0xff] }
 0x290   : > { %1553 = vst.msk [vmem:[#allocation3 + $0xf8] sm:$0xff] %vm1521_vm8, %v1488_v6  ;;  %6259 = vmatprep.mubr.f32.mxu0 %v2162_v33  ;;  %vm4182_vm8 = vcmask 261248  }
 0x292   : > { %v1680_v22 = vpop.permute.xlu0 %1679 }
 0x293   : > { %1746 = vst.msk [vmem:[#allocation3 + $0xf0] sm:$0xff] %vm1715_vm9, %v1680_v22  ;;  %v1682_v21 = vpop.permute.xlu1 %1681 }
 0x294   : > { %v3073_v19 = vld [vmem:[#allocation4 + $0x78] sm:$0xff]  ;;  %v3072_v7 = vld [vmem:[#allocation4 + $0x70] sm:$0xff]  ;;  %1747 = vst.msk [vmem:[#allocation3 + $0xf8] sm:$0xff] %vm1715_vm9, %v1682_v21  ;;  %vm8872_vm9 = vmmov %vm8870_vm0 }
 0x295   : > { %v3129_v14 = vcombine.high %v3073_v19, %v3073_v19  ;;  %v3136_v2 = vrot.slane %v3073_v19, %v7543_v9  ;;  %v3112_v25 = vcombine.high %v3072_v7, %v3072_v7  ;;  %v3119_v26 = vrot.slane %v3072_v7, %v7543_v9 }
 0x296   : > { %v1873_v17 = vpop.permute.xlu0 %1872  ;;  %v2163_v5 = vld [vmem:[#allocation3 + $0xe8] sm:$0xff] }
 0x297   : > { %v3143_v28 = vrot.slane %v3129_v14, %v7543_v9  ;;  %v3144_v29 = vcombine.high %v3136_v2, %v3136_v2  ;;  %v3199_v32 = vsel %vm8871_vm13, %v3136_v2, -inf  ;;  %v3126_v36 = vrot.slane %v3112_v25, %v7543_v9  ;;  %1939 = vst.msk [vmem:[#allocation3 + $0xf0] sm:$0xff] %vm1908_vm10, %v1873_v17  ;;  %v1875_v47 = vpop.permute.xlu1 %1874  ;;  %6260 = vmatmul.mubr.f32.gmra.mrb[28].mxu0 %v2163_v5 }
 0x298   : > { %v3200_v34 = vmax.f32 %v3198_v15, %v3199_v32  ;;  %v3127_v37 = vcombine.high %v3119_v26, %v3119_v26  ;;  %v3163_v38 = vsel %vm8872_vm9, %v3119_v26, -inf  ;;  %1940 = vst.msk [vmem:[#allocation3 + $0xf8] sm:$0xff] %vm1908_vm10, %v1875_v47  ;;  %vm8878_vm10 = vmmov %vm8870_vm0  ;;  %vm4427_vm0 = vcmask 917248  }
 0x299   : > { %v3145_v41 = vcombine.high %v3143_v28, %v3143_v28  ;;  %v3208_v42 = vsel %vm8873_vm4, %v3144_v29, -inf  ;;  %v3217_v43 = vsel %vm8874_vm5, %v3143_v28, -inf  ;;  %v3164_v44 = vmax.f32 %v3162_v18, %v3163_v38 }
 0x29a   : > { %v3201_v55 = vrot.slane %v3200_v34, 4  ;;  %v3209_v45 = vmax.f32 %v3207_v16, %v3208_v42  ;;  %v3218_v48 = vmax.f32 %v3216_v61, %v3217_v43  ;;  %v3128_v49 = vcombine.high %v3126_v36, %v3126_v36  ;;  %v2066_v23 = vpop.permute.xlu0 %2065 }
 0x29b   : > { %v3226_v50 = vsel %vm8875_vm1, %v3145_v41, -inf  ;;  %v3165_v10 = vrot.slane %v3164_v44, 4  ;;  %v3172_v51 = vsel %vm8876_vm3, %v3127_v37, -inf  ;;  %v3181_v52 = vsel %vm8877_vm14, %v3126_v36, -inf  ;;  %2132 = vst.msk [vmem:[#allocation3 + $0xf0] sm:$0xff] %vm2101_vm11, %v2066_v23  ;;  %v2068_v13 = vpop.permute.xlu1 %2067 }
 0x29c   : > { %v3202_v54 = vmax.f32 %v3200_v34, %v3201_v55  ;;  %v3210_v56 = vrot.slane %v3209_v45, 4  ;;  %v3219_v46 = vrot.slane %v3218_v48, 4  ;;  %v3227_v35 = vmax.f32 %v3225_v24, %v3226_v50  ;;  %2133 = vst.msk [vmem:[#allocation3 + $0xf8] sm:$0xff] %vm2101_vm11, %v2068_v13 }
 0x29d   : > { %v3166_v20 = vmax.f32 %v3164_v44, %v3165_v10  ;;  %v3173_v58 = vmax.f32 %v3171_v31, %v3172_v51  ;;  %v3182_v59 = vmax.f32 %v3180_v39, %v3181_v52  ;;  %v3190_v60 = vsel %vm8878_vm10, %v3128_v49, -inf }
 0x29e   : > { %v3203_v12 = vrot.slane %v3202_v54, 2  ;;  %v3211_v62 = vmax.f32 %v3209_v45, %v3210_v56  ;;  %v3220_v40 = vmax.f32 %v3218_v48, %v3219_v46  ;;  %v3228_v11 = vrot.slane %v3227_v35, 4  ;;  %v4159_v6 = vpop.permute.xlu0 %4158 }
 0x29f   : > { %v3167_v0 = vrot.slane %v3166_v20, 2  ;;  %v3174_v53 = vrot.slane %v3173_v58, 4  ;;  %v3183_v3 = vrot.slane %v3182_v59, 4  ;;  %v3191_v4 = vmax.f32 %v3189_v27, %v3190_v60  ;;  %4183 = vst.msk [vmem:[#allocation6] sm:$0xff] %vm4182_vm8, %v4159_v6  ;;  %v4208_v22 = vpop.permute.xlu1 %4207 }
 0x2a0   : > { %v3204_v33 = vmax.f32 %v3202_v54, %v3203_v12  ;;  %v3212_v30 = vrot.slane %v3211_v62, 2  ;;  %v3221_v8 = vrot.slane %v3220_v40, 2  ;;  %v3229_v57 = vmax.f32 %v3227_v35, %v3228_v11  ;;  %4232 = vst.msk [vmem:[#allocation6] sm:$0xff] %vm4231_vm15, %v4208_v22 }
 0x2a1   : > { %v3168_v15 = vmax.f32 %v3166_v20, %v3167_v0  ;;  %v3175_v16 = vmax.f32 %v3173_v58, %v3174_v53  ;;  %v3184_v18 = vmax.f32 %v3182_v59, %v3183_v3  ;;  %v3192_v19 = vrot.slane %v3191_v4, 4 }
 0x2a2   : > { %v3205_v21 = vrot.slane %v3204_v33, 1  ;;  %v3213_v61 = vmax.f32 %v3211_v62, %v3212_v30  ;;  %v3222_v31 = vmax.f32 %v3220_v40, %v3221_v8  ;;  %v3230_v14 = vrot.slane %v3229_v57, 2  ;;  %v4257_v25 = vpop.permute.xlu0 %4256  ;;  %v2164_v26 = vld [vmem:[#allocation3 + $0xf0] sm:$0xff] }
 0x2a3   : > { %v3169_v2 = vrot.slane %v3168_v15, 1  ;;  %v3176_v7 = vrot.slane %v3175_v16, 2  ;;  %v3185_v24 = vrot.slane %v3184_v18, 2  ;;  %v3193_v39 = vmax.f32 %v3191_v4, %v3192_v19  ;;  %v4306_v32 = vpop.permute.xlu1 %4305  ;;  %4281 = vst.msk [vmem:[#allocation6] sm:$0xff] %vm4280_vm6, %v4257_v25  ;;  %6262 = vmatprep.mubr.f32.mxu0 %v2164_v26  ;;  %v2165_v17 = vld [vmem:[#allocation3 + $0xf8] sm:$0xff] }
 0x2a4   : > { %v3214_v27 = vrot.slane %v3213_v61, 1  ;;  %v3223_v28 = vrot.slane %v3222_v31, 1  ;;  %v3231_v29 = vmax.f32 %v3229_v57, %v3230_v14  ;;  %6263 = vmatmul.mubr.f32.gmra.mrb[30].mxu0 %v2165_v17  ;;  %4330 = vst.msk [vmem:[#allocation6] sm:$0xff] %vm4329_vm7, %v4306_v32  ;;  %v3206_v37 = vmax.f32 %v3204_v33, %v3205_v21  ;;  %v4504_v32 = vld [vmem:[#allocation6 + $0x18] sm:$0xff] }
 0x2a5   : > { %v3177_v5 = vmax.f32 %v3175_v16, %v3176_v7  ;;  %v3186_v34 = vmax.f32 %v3184_v18, %v3185_v24  ;;  %v3194_v36 = vrot.slane %v3193_v39, 2  ;;  %v3170_v38 = vmax.f32 %v3168_v15, %v3169_v2 }
 0x2a6   : > { %vm4378_vm11 = vcmask 786048   ;;  %v3232_v47 = vrot.slane %v3231_v29, 1  ;;  %v3215_v41 = vmax.f32 %v3213_v61, %v3214_v27  ;;  %v4161_v55 = vpop.permute.xlu0 %4160  ;;  %v3224_v45 = vmax.f32 %v3222_v31, %v3223_v28 }
 0x2a7   : > { %v3178_v42 = vrot.slane %v3177_v5, 1  ;;  %v3187_v43 = vrot.slane %v3186_v34, 1  ;;  %v3195_v44 = vmax.f32 %v3193_v39, %v3194_v36  ;;  %v4355_v48 = vpop.permute.xlu1 %4354  ;;  %4184 = vst.msk [vmem:[#allocation6 + $0x10] sm:$0xff] %vm4182_vm8, %v4161_v55  ;;  %v3238_v52 = vadd.f32 %v7971_v63, %v3206_v37 }
 0x2a8   : > { %4379 = vst.msk [vmem:[#allocation6] sm:$0xff] %vm4378_vm11, %v4355_v48  ;;  %v3233_v51 = vmax.f32 %v3231_v29, %v3232_v47  ;;  %v3234_v23 = vadd.f32 %v7971_v63, %v3170_v38  ;;  %v3239_v13 = vadd.f32 %v7971_v63, %v3215_v41  ;;  %v3240_v58 = vadd.f32 %v7971_v63, %v3224_v45 }
 0x2a9   : > { %v3179_v49 = vmax.f32 %v3177_v5, %v3178_v42  ;;  %v3188_v50 = vmax.f32 %v3186_v34, %v3187_v43  ;;  %v3196_v10 = vrot.slane %v3195_v44, 1  ;;  %v3246_v11 = vmax.f32 %v3238_v52, 0.0 }
 0x2aa   : > { %v4210_v35 = vpop.permute.xlu0 %4209  ;;  %v6243_v20 = vpop.f32.mrb[16].mxu0  ;;  %v3241_v40 = vadd.f32 %v7971_v63, %v3233_v51  ;;  %v3242_v0 = vmax.f32 %v3234_v23, 0.0  ;;  %v3247_v6 = vmax.f32 %v3239_v13, 0.0  ;;  %v3248_v33 = vmax.f32 %v3240_v58, 0.0 }
 0x2ab   : > { %v3197_v54 = vmax.f32 %v3195_v44, %v3196_v10  ;;  %v3235_v56 = vadd.f32 %v7971_v63, %v3179_v49  ;;  %v3236_v46 = vadd.f32 %v7971_v63, %v3188_v50  ;;  %4233 = vst.msk [vmem:[#allocation6 + $0x10] sm:$0xff] %vm4231_vm15, %v4210_v35  ;;  %v2328_v62 = vpop.f32.mrb[17].mxu0  ;;  %vm8879_vm13 = vcmask 1041409  }
 0x2ac   : > { %2425 = vst.msk [vmem:[#allocation4 + $0x88] sm:$0xff] %vm2407_vm12, %v6243_v20  ;;  %2424 = vst.msk [vmem:[#allocation4 + $0x80] sm:$0xff] %vm2407_vm12, %v2328_v62  ;;  %v3249_v15 = vmax.f32 %v3241_v40, 0.0  ;;  %v3264_v16 = vrot.slane %v3246_v11, 4  ;;  %vm4476_vm9 = vcmask 1048448   ;;  %vm8880_vm4 = vcmask 1043459  }
 0x2ad   : > { %v3237_v59 = vadd.f32 %v7971_v63, %v3197_v54  ;;  %v3243_v60 = vmax.f32 %v3235_v56, 0.0  ;;  %v3244_v12 = vmax.f32 %v3236_v46, 0.0  ;;  %v3266_v21 = vrot.slane %v3247_v6, 3 }
 0x2ae   : > { %vm8881_vm5 = vcmask 1044484   ;;  %v3268_v31 = vrot.slane %v3248_v33, 2  ;;  %vm8882_vm1 = vcmask 1045509   ;;  %v3270_v24 = vrot.slane %v3249_v15, 1 }
 0x2af   : > { %v3245_v53 = vmax.f32 %v3237_v59, 0.0  ;;  %v3258_v3 = vrot.slane %v3243_v60, 7  ;;  %v3260_v4 = vrot.slane %v3244_v12, 6  ;;  %vm8883_vm3 = vcmask 1046534  }
 0x2b0   : > { %vm8884_vm14 = vcmask 1047559  }
 0x2b1   : > { %v3259_v30 = vsel %vm8879_vm13, %v3258_v3, %v3242_v0  ;;  %v3262_v8 = vrot.slane %v3245_v53, 5  ;;  %v4404_v57 = vpop.permute.xlu1 %4403  ;;  %v4259_v22 = vpop.permute.xlu0 %4258  ;;  %vm8885_vm13 = vmmov %vm8878_vm10 }
 0x2b2   : > { %4428 = vst.msk [vmem:[#allocation6] sm:$0xff] %vm4427_vm0, %v4404_v57  ;;  %v3261_v18 = vsel %vm2640_vm2, %v3260_v4, %v3259_v30 }
 0x2b3   : > { %4282 = vst.msk [vmem:[#allocation6 + $0x10] sm:$0xff] %vm4280_vm6, %v4259_v22  ;;  %v3263_v19 = vsel %vm8880_vm4, %v3262_v8, %v3261_v18  ;;  %v3276_v36 = vld [vmem:[#allocation4 + $0x88] sm:$0xff]  ;;  %v3275_v37 = vld [vmem:[#allocation4 + $0x80] sm:$0xff]  ;;  %vm8886_vm4 = vmmov %vm8878_vm10 }
 0x2b4   : > { %v3265_v61 = vsel %vm8881_vm5, %v3264_v16, %v3263_v19  ;;  %v3300_v38 = vcombine.high %v3276_v36, %v3276_v36  ;;  %v3283_v47 = vcombine.high %v3275_v37, %v3275_v37  ;;  %v3307_v41 = vrot.slane %v3276_v36, %v7543_v9  ;;  %vm8887_vm5 = vmmov %vm8886_vm4 }
 0x2b5   : > { %v4453_v14 = vpop.permute.xlu1 %4452  ;;  %v4308_v2 = vpop.permute.xlu0 %4307  ;;  %v3267_v7 = vsel %vm8882_vm1, %v3266_v21, %v3265_v61  ;;  %v3290_v43 = vrot.slane %v3275_v37, %v7543_v9  ;;  %vm8888_vm1 = vmmov %vm8886_vm4 }
 0x2b6   : > { %4477 = vst.msk [vmem:[#allocation6] sm:$0xff] %vm4476_vm9, %v4453_v14  ;;  %v3269_v39 = vsel %vm8883_vm3, %v3268_v31, %v3267_v7  ;;  %v3314_v55 = vrot.slane %v3300_v38, %v7543_v9  ;;  %v3297_v45 = vrot.slane %v3283_v47, %v7543_v9  ;;  %v3315_v48 = vcombine.high %v3307_v41, %v3307_v41  ;;  %vm8889_vm3 = vmmov %vm8888_vm1 }
 0x2b7   : > { %4331 = vst.msk [vmem:[#allocation6 + $0x10] sm:$0xff] %vm4329_vm7, %v4308_v2  ;;  %v3271_v25 = vsel %vm8884_vm14, %v3270_v24, %v3269_v39  ;;  %v3298_v49 = vcombine.high %v3290_v43, %v3290_v43  ;;  %v3403_v51 = vsel %vm8878_vm10, %v3307_v41, -inf  ;;  %v3367_v23 = vsel %vm8886_vm4, %v3290_v43, -inf  ;;  %vm8890_vm14 = vmmov %vm8888_vm1 }
 0x2b8   : > { %3274 = vst.msk [vmem:[#allocation5 + $0x68] sm:$0xff] %vm2407_vm12, %v3271_v25  ;;  %v3316_v50 = vcombine.high %v3314_v55, %v3314_v55  ;;  %v3299_v10 = vcombine.high %v3297_v45, %v3297_v45  ;;  %v3412_v52 = vsel %vm8885_vm13, %v3315_v48, -inf  ;;  %v3421_v56 = vsel %vm8887_vm5, %v3314_v55, -inf  ;;  %vm8891_vm10 = vmmov %vm8888_vm1 }
 0x2b9   : > { %v4357_v26 = vpop.permute.xlu0 %4356  ;;  %v4163_v27 = vpop.permute.xlu1 %4162  ;;  %v3376_v46 = vsel %vm8888_vm1, %v3298_v49, -inf  ;;  %v3385_v59 = vsel %vm8890_vm14, %v3297_v45, -inf  ;;  %vm8892_vm13 = vmmov %vm8888_vm1 }
 0x2ba   : > { %4380 = vst.msk [vmem:[#allocation6 + $0x10] sm:$0xff] %vm4378_vm11, %v4357_v26  ;;  %v3430_v58 = vsel %vm8889_vm3, %v3316_v50, -inf  ;;  %v3394_v62 = vsel %vm8891_vm10, %v3299_v10, -inf  ;;  %vm8893_vm4 = vmmov %vm8888_vm1 }
 0x2bb   : > { %4185 = vst.msk [vmem:[#allocation6 + $0x20] sm:$0xff] %vm4182_vm8, %v4163_v27  ;;  %vm8894_vm5 = vmmov %vm8888_vm1 }
 0x2bc   : > { %vm8895_vm3 = vmmov %vm8888_vm1 }
 0x2bd   : > { %v4501_v28 = vld [vmem:[#allocation6] sm:$0xff]  ;;  %v4212_v29 = vpop.permute.xlu1 %4211  ;;  %vm8896_vm14 = vmmov %vm8888_vm1 }
 0x2be   : > { %4614 = vmatmul.mubr.f32.vlgmr.msra.gmra.mrb[0].mxu1 %v4501_v28  ;;  %4234 = vst.msk [vmem:[#allocation6 + $0x20] sm:$0xff] %vm4231_vm15, %v4212_v29  ;;  %vm8897_vm10 = vmmov %vm8888_vm1 }
 0x2bf   : > { %4618 = vmatprep.mubr.f32.mxu1 %v4504_v32  ;;  %v4389_v17 = vld [vmem:[#allocation5 + $0x67] sm:$0xff] }
 0x2c0   : > { %v4341_v5 = vld [vmem:[#allocation5 + $0x69] sm:$0xff]  ;;  %4407 = vrot.lane.b32.xlu1 %v4389_v17, %s6668_s18  ;;  %4262 = vrot.lane.b32.xlu0 %v4389_v17, %s6662_s23  ;;  %4138 = vst.msk [vmem:[#allocation6 + $0x40] sm:$0xff] %vm2407_vm12, %v4389_v17 }
 0x2c1   : > { %4495 = vst.msk [vmem:[#allocation6 + $0x28] sm:$0xff] %vm2407_vm12, %v4341_v5  ;;  %v4438_v34 = vld [vmem:[#allocation5 + $0x68] sm:$0xff] }
 0x2c4   : > { %4456 = vrot.lane.b32.xlu1 %v4438_v34, %s6669_s30  ;;  %4311 = vrot.lane.b32.xlu0 %v4438_v34, %s6666_s21 }
 0x2c8   : > { %4360 = vrot.lane.b32.xlu0 %v4341_v5, %s6667_s13  ;;  %4166 = vrot.lane.b32.xlu1 %v4438_v34, %s6664_s28 }
 0x2ca   : > { %v6246_v42 = vpop.f32.mrb[18].mxu0 }
 0x2cb   : > { %2427 = vst.msk [vmem:[#allocation4 + $0x98] sm:$0xff] %vm2407_vm12, %v6246_v42  ;;  %v2338_v44 = vpop.f32.mrb[19].mxu0 }
 0x2cc   : > { %4215 = vrot.lane.b32.xlu1 %v4341_v5, %s6665_s12  ;;  %2426 = vst.msk [vmem:[#allocation4 + $0x90] sm:$0xff] %vm2407_vm12, %v2338_v44 }
 0x2d2   : > { %v3278_v54 = vld [vmem:[#allocation4 + $0x98] sm:$0xff] }
 0x2d3   : > { %v3334_v35 = vcombine.high %v3278_v54, %v3278_v54  ;;  %v3341_v13 = vrot.slane %v3278_v54, %v7543_v9  ;;  %v3277_v20 = vld [vmem:[#allocation4 + $0x90] sm:$0xff] }
 0x2d4   : > { %v3317_v60 = vcombine.high %v3277_v20, %v3277_v20  ;;  %v3324_v12 = vrot.slane %v3277_v20, %v7543_v9 }
 0x2d5   : > { %v3348_v40 = vrot.slane %v3334_v35, %v7543_v9  ;;  %v3349_v11 = vcombine.high %v3341_v13, %v3341_v13  ;;  %v3404_v0 = vsel %vm8892_vm13, %v3341_v13, -inf  ;;  %vm8898_vm13 = vmmov %vm8888_vm1 }
 0x2d6   : > { %v3405_v53 = vmax.f32 %v3403_v51, %v3404_v0  ;;  %v3331_v3 = vrot.slane %v3317_v60, %v7543_v9  ;;  %v3332_v4 = vcombine.high %v3324_v12, %v3324_v12  ;;  %v3368_v6 = vsel %vm8893_vm4, %v3324_v12, -inf }
 0x2d7   : > { %v3350_v33 = vcombine.high %v3348_v40, %v3348_v40  ;;  %v3413_v30 = vsel %vm8894_vm5, %v3349_v11, -inf  ;;  %v3422_v8 = vsel %vm8888_vm1, %v3348_v40, -inf  ;;  %v3369_v57 = vmax.f32 %v3367_v23, %v3368_v6 }
 0x2d8   : > { %v3406_v22 = vrot.slane %v3405_v53, 4  ;;  %v3414_v15 = vmax.f32 %v3412_v52, %v3413_v30  ;;  %v3423_v16 = vmax.f32 %v3421_v56, %v3422_v8  ;;  %v3333_v18 = vcombine.high %v3331_v3, %v3331_v3 }
 0x2d9   : > { %v3431_v19 = vsel %vm8895_vm3, %v3350_v33, -inf  ;;  %v3370_v21 = vrot.slane %v3369_v57, 4  ;;  %v3377_v61 = vsel %vm8896_vm14, %v3332_v4, -inf  ;;  %v3386_v31 = vsel %vm8897_vm10, %v3331_v3, -inf }
 0x2da   : > { %v3407_v14 = vmax.f32 %v3405_v53, %v3406_v22  ;;  %v3415_v2 = vrot.slane %v3414_v15, 4  ;;  %v3424_v7 = vrot.slane %v3423_v16, 4  ;;  %v3432_v24 = vmax.f32 %v3430_v58, %v3431_v19 }
 0x2db   : > { %v3371_v39 = vmax.f32 %v3369_v57, %v3370_v21  ;;  %v3378_v25 = vmax.f32 %v3376_v46, %v3377_v61  ;;  %v3387_v26 = vmax.f32 %v3385_v59, %v3386_v31  ;;  %v3395_v27 = vsel %vm8898_vm13, %v3333_v18, -inf }
 0x2dc   : > { %v3408_v28 = vrot.slane %v3407_v14, 2  ;;  %v3416_v29 = vmax.f32 %v3414_v15, %v3415_v2  ;;  %v3425_v32 = vmax.f32 %v3423_v16, %v3424_v7  ;;  %v3433_v17 = vrot.slane %v3432_v24, 4 }
 0x2dd   : > { %v3372_v5 = vrot.slane %v3371_v39, 2  ;;  %v3379_v34 = vrot.slane %v3378_v25, 4  ;;  %v3388_v36 = vrot.slane %v3387_v26, 4  ;;  %v3396_v37 = vmax.f32 %v3394_v62, %v3395_v27 }
 0x2de   : > { %v3409_v38 = vmax.f32 %v3407_v14, %v3408_v28  ;;  %v3417_v47 = vrot.slane %v3416_v29, 2  ;;  %v3426_v41 = vrot.slane %v3425_v32, 2  ;;  %v3434_v42 = vmax.f32 %v3432_v24, %v3433_v17 }
 0x2df   : > { %v3373_v43 = vmax.f32 %v3371_v39, %v3372_v5  ;;  %v3380_v44 = vmax.f32 %v3378_v25, %v3379_v34  ;;  %v3389_v55 = vmax.f32 %v3387_v26, %v3388_v36  ;;  %v3397_v45 = vrot.slane %v3396_v37, 4 }
 0x2e0   : > { %v3410_v48 = vrot.slane %v3409_v38, 1  ;;  %v3418_v49 = vmax.f32 %v3416_v29, %v3417_v47  ;;  %v3427_v50 = vmax.f32 %v3425_v32, %v3426_v41  ;;  %v3435_v10 = vrot.slane %v3434_v42, 2 }
 0x2e1   : > { %v3374_v51 = vrot.slane %v3373_v43, 1  ;;  %v3381_v52 = vrot.slane %v3380_v44, 2  ;;  %v3390_v23 = vrot.slane %v3389_v55, 2  ;;  %v3398_v54 = vmax.f32 %v3396_v37, %v3397_v45 }
 0x2e2   : > { %v3419_v56 = vrot.slane %v3418_v49, 1  ;;  %v3428_v46 = vrot.slane %v3427_v50, 1  ;;  %v3436_v35 = vmax.f32 %v3434_v42, %v3435_v10  ;;  %v3411_v59 = vmax.f32 %v3409_v38, %v3410_v48 }
 0x2e3   : > { %v3382_v13 = vmax.f32 %v3380_v44, %v3381_v52  ;;  %v3391_v20 = vmax.f32 %v3389_v55, %v3390_v23  ;;  %v3399_v58 = vrot.slane %v3398_v54, 2  ;;  %v3375_v60 = vmax.f32 %v3373_v43, %v3374_v51  ;;  %v4506_v52 = vld [vmem:[#allocation6 + $0x28] sm:$0xff] }
 0x2e4   : > { %v3437_v12 = vrot.slane %v3436_v35, 1  ;;  %v3420_v62 = vmax.f32 %v3418_v49, %v3419_v56  ;;  %v3429_v53 = vmax.f32 %v3427_v50, %v3428_v46  ;;  %v3443_v30 = vadd.f32 %v7971_v63, %v3411_v59 }
 0x2e5   : > { %v3383_v40 = vrot.slane %v3382_v13, 1  ;;  %v3392_v11 = vrot.slane %v3391_v20, 1  ;;  %v3400_v0 = vmax.f32 %v3398_v54, %v3399_v58  ;;  %v3439_v8 = vadd.f32 %v7971_v63, %v3375_v60 }
 0x2e6   : > { %v3438_v33 = vmax.f32 %v3436_v35, %v3437_v12  ;;  %v3444_v16 = vadd.f32 %v7971_v63, %v3420_v62  ;;  %v3445_v19 = vadd.f32 %v7971_v63, %v3429_v53  ;;  %v3451_v7 = vmax.f32 %v3443_v30, 0.0 }
 0x2e7   : > { %v3384_v3 = vmax.f32 %v3382_v13, %v3383_v40  ;;  %v3393_v4 = vmax.f32 %v3391_v20, %v3392_v11  ;;  %v3401_v6 = vrot.slane %v3400_v0, 1  ;;  %v3447_v24 = vmax.f32 %v3439_v8, 0.0 }
 0x2e8   : > { %v3446_v2 = vadd.f32 %v7971_v63, %v3438_v33  ;;  %v3452_v27 = vmax.f32 %v3444_v16, 0.0  ;;  %v3453_v28 = vmax.f32 %v3445_v19, 0.0  ;;  %vm8899_vm4 = vcmask 1041409  }
 0x2e9   : > { %v3402_v57 = vmax.f32 %v3400_v0, %v3401_v6  ;;  %v3440_v22 = vadd.f32 %v7971_v63, %v3384_v3  ;;  %v3441_v15 = vadd.f32 %v7971_v63, %v3393_v4  ;;  %v3469_v36 = vrot.slane %v3451_v7, 4 }
 0x2ea   : > { %v6249_v18 = vpop.f32.mrb[20].mxu0  ;;  %v3454_v34 = vmax.f32 %v3446_v2, 0.0  ;;  %vm8900_vm5 = vcmask 1043459   ;;  %v3471_v38 = vrot.slane %v3452_v27, 3  ;;  %vm8901_vm1 = vcmask 1044484  }
 0x2eb   : > { %v3442_v21 = vadd.f32 %v7971_v63, %v3402_v57  ;;  %v3448_v61 = vmax.f32 %v3440_v22, 0.0  ;;  %v3449_v31 = vmax.f32 %v3441_v15, 0.0  ;;  %2429 = vst.msk [vmem:[#allocation4 + $0xa8] sm:$0xff] %vm2407_vm12, %v6249_v18  ;;  %v2348_v14 = vpop.f32.mrb[21].mxu0  ;;  %v3473_v41 = vrot.slane %v3453_v28, 2 }
 0x2ec   : > { %2428 = vst.msk [vmem:[#allocation4 + $0xa0] sm:$0xff] %vm2407_vm12, %v2348_v14  ;;  %vm8902_vm3 = vcmask 1045509   ;;  %v3475_v55 = vrot.slane %v3454_v34, 1  ;;  %vm8903_vm14 = vcmask 1046534   ;;  %vm8904_vm10 = vcmask 1047559  }
 0x2ed   : > { %v3450_v39 = vmax.f32 %v3442_v21, 0.0  ;;  %v3463_v25 = vrot.slane %v3448_v61, 7  ;;  %v3465_v26 = vrot.slane %v3449_v31, 6 }
 0x2ef   : > { %v3464_v29 = vsel %vm8899_vm4, %v3463_v25, %v3447_v24  ;;  %v3467_v32 = vrot.slane %v3450_v39, 5  ;;  %vm8905_vm4 = vmmov %vm8898_vm13 }
 0x2f0   : > { %v3466_v63 = vsel %vm2640_vm2, %v3465_v26, %v3464_v29 }
 0x2f1   : > { %v4406_v17 = vpop.permute.xlu0 %4405  ;;  %v4261_v5 = vpop.permute.xlu1 %4260  ;;  %v3468_v37 = vsel %vm8900_vm5, %v3467_v32, %v3466_v63  ;;  %vm8906_vm5 = vmmov %vm8905_vm4 }
 0x2f2   : > { %4429 = vst.msk [vmem:[#allocation6 + $0x10] sm:$0xff] %vm4427_vm0, %v4406_v17  ;;  %v3470_v47 = vsel %vm8901_vm1, %v3469_v36, %v3468_v37  ;;  %v3481_v46 = vld [vmem:[#allocation4 + $0xa8] sm:$0xff]  ;;  %vm8907_vm1 = vmmov %vm8905_vm4 }
 0x2f3   : > { %4283 = vst.msk [vmem:[#allocation6 + $0x20] sm:$0xff] %vm4280_vm6, %v4261_v5  ;;  %v3472_v44 = vsel %vm8902_vm3, %v3471_v38, %v3470_v47  ;;  %v3480_v35 = vld [vmem:[#allocation4 + $0xa0] sm:$0xff]  ;;  %v3505_v13 = vcombine.high %v3481_v46, %v3481_v46  ;;  %v3512_v58 = vrot.slane %v3481_v46, %v7543_v9  ;;  %vm8908_vm3 = vmmov %vm8907_vm1 }
 0x2f4   : > { %v3474_v45 = vsel %vm8903_vm14, %v3473_v41, %v3472_v44  ;;  %v3488_v20 = vcombine.high %v3480_v35, %v3480_v35  ;;  %v3495_v60 = vrot.slane %v3480_v35, %v7543_v9  ;;  %vm8909_vm14 = vmmov %vm8907_vm1 }
 0x2f5   : > { %v4455_v42 = vpop.permute.xlu0 %4454  ;;  %v4310_v43 = vpop.permute.xlu1 %4309  ;;  %v3476_v48 = vsel %vm8904_vm10, %v3475_v55, %v3474_v45  ;;  %v3519_v62 = vrot.slane %v3505_v13, %v7543_v9  ;;  %v3520_v11 = vcombine.high %v3512_v58, %v3512_v58  ;;  %v3608_v4 = vsel %vm8898_vm13, %v3512_v58, -inf  ;;  %vm8910_vm10 = vmmov %vm8907_vm1 }
 0x2f6   : > { %4478 = vst.msk [vmem:[#allocation6 + $0x10] sm:$0xff] %vm4476_vm9, %v4455_v42  ;;  %v3502_v40 = vrot.slane %v3488_v20, %v7543_v9  ;;  %v3503_v0 = vcombine.high %v3495_v60, %v3495_v60  ;;  %v3572_v33 = vsel %vm8906_vm5, %v3495_v60, -inf  ;;  %vm8911_vm13 = vmmov %vm8907_vm1 }
 0x2f7   : > { %4332 = vst.msk [vmem:[#allocation6 + $0x20] sm:$0xff] %vm4329_vm7, %v4310_v43  ;;  %v3521_v53 = vcombine.high %v3519_v62, %v3519_v62  ;;  %v3617_v6 = vsel %vm8905_vm4, %v3520_v11, -inf  ;;  %v3626_v8 = vsel %vm8907_vm1, %v3519_v62, -inf  ;;  %vm8912_vm4 = vmmov %vm8907_vm1 }
 0x2f8   : > { %3479 = vst.msk [vmem:[#allocation5 + $0x80] sm:$0xff] %vm2407_vm12, %v3476_v48  ;;  %v3504_v3 = vcombine.high %v3502_v40, %v3502_v40  ;;  %v3581_v57 = vsel %vm8908_vm3, %v3503_v0, -inf  ;;  %v3590_v19 = vsel %vm8910_vm10, %v3502_v40, -inf  ;;  %vm8913_vm5 = vmmov %vm8907_vm1 }
 0x2f9   : > { %v4359_v49 = vpop.permute.xlu1 %4358  ;;  %v4165_v50 = vpop.permute.xlu0 %4164  ;;  %v3635_v18 = vsel %vm8909_vm14, %v3521_v53, -inf  ;;  %vm8914_vm3 = vmmov %vm8907_vm1 }
 0x2fa   : > { %4381 = vst.msk [vmem:[#allocation6 + $0x20] sm:$0xff] %vm4378_vm11, %v4359_v49  ;;  %v3599_v31 = vsel %vm8911_vm13, %v3504_v3, -inf  ;;  %vm8915_vm14 = vmmov %vm8907_vm1 }
 0x2fb   : > { %4186 = vst.msk [vmem:[#allocation6 + $0x30] sm:$0xff] %vm4182_vm8, %v4165_v50  ;;  %vm8916_vm10 = vmmov %vm8907_vm1 }
 0x2fc   : > { %vm8917_vm13 = vmmov %vm8907_vm1 }
 0x2fd   : > { %v4214_v10 = vpop.permute.xlu0 %4213  ;;  %v4503_v51 = vld [vmem:[#allocation6 + $0x10] sm:$0xff] }
 0x2fe   : > { %4235 = vst.msk [vmem:[#allocation6 + $0x30] sm:$0xff] %vm4231_vm15, %v4214_v10  ;;  %4619 = vmatmul.mubr.f32.gmra.mrb[2].mxu1 %v4503_v51 }
 0x2ff   : > { %4623 = vmatprep.mubr.f32.mxu1 %v4506_v52  ;;  %v4390_v23 = vld [vmem:[#allocation5 + $0x7f] sm:$0xff] }
 0x300   : > { %v4342_v54 = vld [vmem:[#allocation5 + $0x81] sm:$0xff]  ;;  %4409 = vrot.lane.b32.xlu0 %v4390_v23, %s6668_s18  ;;  %4264 = vrot.lane.b32.xlu1 %v4390_v23, %s6662_s23  ;;  %4139 = vst.msk [vmem:[#allocation6 + $0x50] sm:$0xff] %vm2407_vm12, %v4390_v23 }
 0x301   : > { %4496 = vst.msk [vmem:[#allocation6 + $0x38] sm:$0xff] %vm2407_vm12, %v4342_v54  ;;  %v4439_v56 = vld [vmem:[#allocation5 + $0x80] sm:$0xff] }
 0x304   : > { %4458 = vrot.lane.b32.xlu0 %v4439_v56, %s6669_s30  ;;  %4313 = vrot.lane.b32.xlu1 %v4439_v56, %s6666_s21 }
 0x308   : > { %4362 = vrot.lane.b32.xlu1 %v4342_v54, %s6667_s13  ;;  %4168 = vrot.lane.b32.xlu0 %v4439_v56, %s6664_s28 }
 0x30a   : > { %v6252_v59 = vpop.f32.mrb[22].mxu0 }
 0x30b   : > { %2431 = vst.msk [vmem:[#allocation4 + $0xb8] sm:$0xff] %vm2407_vm12, %v6252_v59  ;;  %v2358_v12 = vpop.f32.mrb[23].mxu0 }
 0x30c   : > { %4217 = vrot.lane.b32.xlu0 %v4342_v54, %s6665_s12  ;;  %2430 = vst.msk [vmem:[#allocation4 + $0xb0] sm:$0xff] %vm2407_vm12, %v2358_v12 }
 0x312   : > { %v3483_v30 = vld [vmem:[#allocation4 + $0xb8] sm:$0xff] }
 0x313   : > { %v3539_v22 = vcombine.high %v3483_v30, %v3483_v30  ;;  %v3546_v15 = vrot.slane %v3483_v30, %v7543_v9  ;;  %v3482_v16 = vld [vmem:[#allocation4 + $0xb0] sm:$0xff] }
 0x314   : > { %v3522_v21 = vcombine.high %v3482_v16, %v3482_v16  ;;  %v3529_v61 = vrot.slane %v3482_v16, %v7543_v9 }
 0x315   : > { %v3553_v14 = vrot.slane %v3539_v22, %v7543_v9  ;;  %v3554_v2 = vcombine.high %v3546_v15, %v3546_v15  ;;  %v3609_v7 = vsel %vm8912_vm4, %v3546_v15, -inf  ;;  %vm8918_vm4 = vmmov %vm8907_vm1 }
 0x316   : > { %v3610_v24 = vmax.f32 %v3608_v4, %v3609_v7  ;;  %v3536_v39 = vrot.slane %v3522_v21, %v7543_v9  ;;  %v3537_v25 = vcombine.high %v3529_v61, %v3529_v61  ;;  %v3573_v26 = vsel %vm8913_vm5, %v3529_v61, -inf }
 0x317   : > { %v3555_v27 = vcombine.high %v3553_v14, %v3553_v14  ;;  %v3618_v28 = vsel %vm8907_vm1, %v3554_v2, -inf  ;;  %v3627_v29 = vsel %vm8914_vm3, %v3553_v14, -inf  ;;  %v3574_v32 = vmax.f32 %v3572_v33, %v3573_v26 }
 0x318   : > { %v3611_v17 = vrot.slane %v3610_v24, 4  ;;  %v3619_v5 = vmax.f32 %v3617_v6, %v3618_v28  ;;  %v3628_v34 = vmax.f32 %v3626_v8, %v3627_v29  ;;  %v3538_v36 = vcombine.high %v3536_v39, %v3536_v39 }
 0x319   : > { %v3636_v63 = vsel %vm8915_vm14, %v3555_v27, -inf  ;;  %v3575_v37 = vrot.slane %v3574_v32, 4  ;;  %v3582_v38 = vsel %vm8916_vm10, %v3537_v25, -inf  ;;  %v3591_v47 = vsel %vm8917_vm13, %v3536_v39, -inf  ;;  %v8183_v27 = vld [vmem:[%s8805_s2] ss:$0 sm:$0xff] }
 0x31a   : > { %v3612_v41 = vmax.f32 %v3610_v24, %v3611_v17  ;;  %v3620_v42 = vrot.slane %v3619_v5, 4  ;;  %v3629_v43 = vrot.slane %v3628_v34, 4  ;;  %v3637_v44 = vmax.f32 %v3635_v18, %v3636_v63 }
 0x31b   : > { %v3576_v55 = vmax.f32 %v3574_v32, %v3575_v37  ;;  %v3583_v45 = vmax.f32 %v3581_v57, %v3582_v38  ;;  %v3592_v48 = vmax.f32 %v3590_v19, %v3591_v47  ;;  %v3600_v49 = vsel %vm8918_vm4, %v3538_v36, -inf }
 0x31c   : > { %v3613_v50 = vrot.slane %v3612_v41, 2  ;;  %v3621_v10 = vmax.f32 %v3619_v5, %v3620_v42  ;;  %v3630_v51 = vmax.f32 %v3628_v34, %v3629_v43  ;;  %v3638_v52 = vrot.slane %v3637_v44, 4 }
 0x31d   : > { %v3577_v23 = vrot.slane %v3576_v55, 2  ;;  %v3584_v54 = vrot.slane %v3583_v45, 4  ;;  %v3593_v56 = vrot.slane %v3592_v48, 4  ;;  %v3601_v46 = vmax.f32 %v3599_v31, %v3600_v49 }
 0x31e   : > { %v3614_v35 = vmax.f32 %v3612_v41, %v3613_v50  ;;  %v3622_v13 = vrot.slane %v3621_v10, 2  ;;  %v3631_v20 = vrot.slane %v3630_v51, 2  ;;  %v3639_v58 = vmax.f32 %v3637_v44, %v3638_v52 }
 0x31f   : > { %v3578_v59 = vmax.f32 %v3576_v55, %v3577_v23  ;;  %v3585_v60 = vmax.f32 %v3583_v45, %v3584_v54  ;;  %v3594_v12 = vmax.f32 %v3592_v48, %v3593_v56  ;;  %v3602_v62 = vrot.slane %v3601_v46, 4 }
 0x320   : > { %v3615_v40 = vrot.slane %v3614_v35, 1  ;;  %v3623_v11 = vmax.f32 %v3621_v10, %v3622_v13  ;;  %v3632_v0 = vmax.f32 %v3630_v51, %v3631_v20  ;;  %v3640_v53 = vrot.slane %v3639_v58, 2 }
 0x321   : > { %v3579_v3 = vrot.slane %v3578_v59, 1  ;;  %v3586_v4 = vrot.slane %v3585_v60, 2  ;;  %v3595_v6 = vrot.slane %v3594_v12, 2  ;;  %v3603_v33 = vmax.f32 %v3601_v46, %v3602_v62 }
 0x322   : > { %v3624_v30 = vrot.slane %v3623_v11, 1  ;;  %v3633_v8 = vrot.slane %v3632_v0, 1  ;;  %v3641_v57 = vmax.f32 %v3639_v58, %v3640_v53  ;;  %v3616_v18 = vmax.f32 %v3614_v35, %v3615_v40 }
 0x323   : > { %v3587_v22 = vmax.f32 %v3585_v60, %v3586_v4  ;;  %v3596_v15 = vmax.f32 %v3594_v12, %v3595_v6  ;;  %v3604_v16 = vrot.slane %v3603_v33, 2  ;;  %v3580_v19 = vmax.f32 %v3578_v59, %v3579_v3 }
 0x324   : > { %v3642_v21 = vrot.slane %v3641_v57, 1  ;;  %v3625_v61 = vmax.f32 %v3623_v11, %v3624_v30  ;;  %v3634_v7 = vmax.f32 %v3632_v0, %v3633_v8  ;;  %v3648_v28 = vadd.f32 %v8183_v27, %v3616_v18 }
 0x325   : > { %v3588_v31 = vrot.slane %v3587_v22, 1  ;;  %v3597_v14 = vrot.slane %v3596_v15, 1  ;;  %v3605_v2 = vmax.f32 %v3603_v33, %v3604_v16  ;;  %v3644_v29 = vadd.f32 %v8183_v27, %v3580_v19 }
 0x326   : > { %v3643_v26 = vmax.f32 %v3641_v57, %v3642_v21  ;;  %v3649_v36 = vadd.f32 %v8183_v27, %v3625_v61  ;;  %v3650_v37 = vadd.f32 %v8183_v27, %v3634_v7  ;;  %v3656_v43 = vmax.f32 %v3648_v28, 0.0 }
 0x327   : > { %v3589_v24 = vmax.f32 %v3587_v22, %v3588_v31  ;;  %v3598_v39 = vmax.f32 %v3596_v15, %v3597_v14  ;;  %v3606_v25 = vrot.slane %v3605_v2, 1  ;;  %v3652_v44 = vmax.f32 %v3644_v29, 0.0 }
 0x328   : > { %v3651_v42 = vadd.f32 %v8183_v27, %v3643_v26  ;;  %v3657_v49 = vmax.f32 %v3649_v36, 0.0  ;;  %v3658_v50 = vmax.f32 %v3650_v37, 0.0  ;;  %vm8919_vm5 = vcmask 1041409  }
 0x329   : > { %v3607_v32 = vmax.f32 %v3605_v2, %v3606_v25  ;;  %v3645_v17 = vadd.f32 %v8183_v27, %v3589_v24  ;;  %v3646_v5 = vadd.f32 %v8183_v27, %v3598_v39  ;;  %v3674_v23 = vrot.slane %v3656_v43, 4  ;;  %v4508_v2 = vld [vmem:[#allocation6 + $0x38] sm:$0xff] }
 0x32a   : > { %v6255_v34 = vpop.f32.mrb[24].mxu0  ;;  %v3659_v52 = vmax.f32 %v3651_v42, 0.0  ;;  %vm8920_vm1 = vcmask 1043459   ;;  %v3676_v20 = vrot.slane %v3657_v49, 3  ;;  %vm8921_vm3 = vcmask 1044484  }
 0x32b   : > { %2433 = vst.msk [vmem:[#allocation4 + $0xc8] sm:$0xff] %vm2407_vm12, %v6255_v34  ;;  %v2368_v63 = vpop.f32.mrb[25].mxu0  ;;  %v3647_v38 = vadd.f32 %v8183_v27, %v3607_v32  ;;  %v3653_v47 = vmax.f32 %v3645_v17, 0.0  ;;  %v3654_v41 = vmax.f32 %v3646_v5, 0.0  ;;  %v3678_v60 = vrot.slane %v3658_v50, 2 }
 0x32c   : > { %2432 = vst.msk [vmem:[#allocation4 + $0xc0] sm:$0xff] %vm2407_vm12, %v2368_v63  ;;  %vm8922_vm14 = vcmask 1045509   ;;  %v3680_v62 = vrot.slane %v3659_v52, 1  ;;  %vm8923_vm10 = vcmask 1046534   ;;  %vm8924_vm13 = vcmask 1047559  }
 0x32d   : > { %v3655_v55 = vmax.f32 %v3647_v38, 0.0  ;;  %v3668_v45 = vrot.slane %v3653_v47, 7  ;;  %v3670_v48 = vrot.slane %v3654_v41, 6 }
 0x32f   : > { %v3669_v10 = vsel %vm8919_vm5, %v3668_v45, %v3652_v44  ;;  %v3672_v51 = vrot.slane %v3655_v55, 5  ;;  %vm8925_vm5 = vmmov %vm8918_vm4 }
 0x330   : > { %v3671_v46 = vsel %vm2640_vm2, %v3670_v48, %v3669_v10 }
 0x331   : > { %v3673_v13 = vsel %vm8920_vm1, %v3672_v51, %v3671_v46  ;;  %vm8926_vm1 = vmmov %vm8918_vm4 }
 0x332   : > { %v4408_v54 = vpop.permute.xlu1 %4407  ;;  %v4263_v56 = vpop.permute.xlu0 %4262  ;;  %v3686_v35 = vld [vmem:[#allocation4 + $0xc8] sm:$0xff]  ;;  %v3675_v59 = vsel %vm8921_vm3, %v3674_v23, %v3673_v13  ;;  %vm8927_vm3 = vmmov %vm8926_vm1 }
 0x333   : > { %4430 = vst.msk [vmem:[#allocation6 + $0x20] sm:$0xff] %vm4427_vm0, %v4408_v54  ;;  %v3685_v58 = vld [vmem:[#allocation4 + $0xc0] sm:$0xff]  ;;  %v3677_v12 = vsel %vm8922_vm14, %v3676_v20, %v3675_v59  ;;  %v3710_v40 = vcombine.high %v3686_v35, %v3686_v35  ;;  %v3717_v6 = vrot.slane %v3686_v35, %v7543_v9  ;;  %vm8928_vm14 = vmmov %vm8926_vm1 }
 0x334   : > { %4284 = vst.msk [vmem:[#allocation6 + $0x30] sm:$0xff] %vm4280_vm6, %v4263_v56  ;;  %v3679_v53 = vsel %vm8923_vm10, %v3678_v60, %v3677_v12  ;;  %v3693_v3 = vcombine.high %v3685_v58, %v3685_v58  ;;  %v3700_v30 = vrot.slane %v3685_v58, %v7543_v9  ;;  %vm8929_vm10 = vmmov %vm8926_vm1 }
 0x335   : > { %v3681_v4 = vsel %vm8924_vm13, %v3680_v62, %v3679_v53  ;;  %v3724_v57 = vrot.slane %v3710_v40, %v7543_v9  ;;  %v3725_v18 = vcombine.high %v3717_v6, %v3717_v6  ;;  %v3813_v39 = vsel %vm8918_vm4, %v3717_v6, -inf  ;;  %vm8930_vm13 = vmmov %vm8926_vm1 }
 0x336   : > { %v4457_v11 = vpop.permute.xlu1 %4456  ;;  %v4312_v0 = vpop.permute.xlu0 %4311  ;;  %3684 = vst.msk [vmem:[#allocation5 + $0x98] sm:$0xff] %vm2407_vm12, %v3681_v4  ;;  %v3707_v16 = vrot.slane %v3693_v3, %v7543_v9  ;;  %v3708_v19 = vcombine.high %v3700_v30, %v3700_v30  ;;  %v3777_v26 = vsel %vm8926_vm1, %v3700_v30, -inf  ;;  %vm8931_vm4 = vmmov %vm8926_vm1 }
 0x337   : > { %4479 = vst.msk [vmem:[#allocation6 + $0x20] sm:$0xff] %vm4476_vm9, %v4457_v11  ;;  %v6258_v33 = vpop.f32.mrb[26].mxu0  ;;  %v3726_v21 = vcombine.high %v3724_v57, %v3724_v57  ;;  %v3822_v25 = vsel %vm8925_vm5, %v3725_v18, -inf  ;;  %v3831_v29 = vsel %vm8927_vm3, %v3724_v57, -inf  ;;  %vm8932_vm5 = vmmov %vm8926_vm1 }
 0x338   : > { %4333 = vst.msk [vmem:[#allocation6 + $0x30] sm:$0xff] %vm4329_vm7, %v4312_v0  ;;  %v2378_v8 = vpop.f32.mrb[27].mxu0  ;;  %v3709_v14 = vcombine.high %v3707_v16, %v3707_v16  ;;  %v3786_v32 = vsel %vm8928_vm14, %v3708_v19, -inf  ;;  %v3795_v63 = vsel %vm8930_vm13, %v3707_v16, -inf  ;;  %vm8933_vm3 = vmmov %vm8926_vm1 }
 0x339   : > { %2435 = vst.msk [vmem:[#allocation4 + $0xd8] sm:$0xff] %vm2407_vm12, %v6258_v33  ;;  %2434 = vst.msk [vmem:[#allocation4 + $0xd0] sm:$0xff] %vm2407_vm12, %v2378_v8  ;;  %v3840_v36 = vsel %vm8929_vm10, %v3726_v21, -inf }
 0x33a   : > { %v4361_v22 = vpop.permute.xlu0 %4360  ;;  %v4167_v15 = vpop.permute.xlu1 %4166  ;;  %v3804_v47 = vsel %vm8931_vm4, %v3709_v14, -inf  ;;  %vm8934_vm14 = vmmov %vm8926_vm1 }
 0x33b   : > { %4382 = vst.msk [vmem:[#allocation6 + $0x30] sm:$0xff] %vm4378_vm11, %v4361_v22  ;;  %vm8935_vm10 = vmmov %vm8926_vm1 }
 0x33c   : > { %4187 = vst.msk [vmem:[#allocation6 + $0x40] sm:$0xff] %vm4182_vm8, %v4167_v15  ;;  %vm8936_vm13 = vmmov %vm8926_vm1 }
 0x33d   : > { %v4391_v7 = vld [vmem:[#allocation5 + $0x97] sm:$0xff]  ;;  %vm8937_vm4 = vmmov %vm8926_vm1 }
 0x33e   : > { %v4216_v61 = vpop.permute.xlu1 %4215  ;;  %v4505_v31 = vld [vmem:[#allocation6 + $0x20] sm:$0xff]  ;;  %v8216_v24 = vld [vmem:[#allocation5 + $0x99] sm:$0xff]  ;;  %4411 = vrot.lane.b32.xlu1 %v4391_v7, %s6668_s18  ;;  %4140 = vst.msk [vmem:[#allocation6 + $0x60] sm:$0xff] %vm2407_vm12, %v4391_v7  ;;  %4266 = vrot.lane.b32.xlu0 %v4391_v7, %s6662_s23 }
 0x33f   : > { %4236 = vst.msk [vmem:[#allocation6 + $0x40] sm:$0xff] %vm4231_vm15, %v4216_v61  ;;  %4624 = vmatmul.mubr.f32.gmra.mrb[4].mxu1 %v4505_v31  ;;  %v8235_v44 = vld [vmem:[#allocation5 + $0x98] sm:$0xff] }
 0x340   : > { %v3688_v28 = vld [vmem:[#allocation4 + $0xd8] sm:$0xff]  ;;  %4628 = vmatprep.mubr.f32.mxu1 %v4508_v2  ;;  %4497 = vst.msk [vmem:[#allocation6 + $0x48] sm:$0xff] %vm2407_vm12, %v8216_v24  ;;  %v3687_v34 = vld [vmem:[#allocation4 + $0xd0] sm:$0xff] }
 0x341   : > { %v3744_v17 = vcombine.high %v3688_v28, %v3688_v28  ;;  %v3751_v5 = vrot.slane %v3688_v28, %v7543_v9  ;;  %v3727_v37 = vcombine.high %v3687_v34, %v3687_v34  ;;  %v3734_v38 = vrot.slane %v3687_v34, %v7543_v9 }
 0x342   : > { %4460 = vrot.lane.b32.xlu1 %v8235_v44, %s6669_s30  ;;  %4315 = vrot.lane.b32.xlu0 %v8235_v44, %s6666_s21 }
 0x343   : > { %v3758_v41 = vrot.slane %v3744_v17, %v7543_v9  ;;  %v3759_v42 = vcombine.high %v3751_v5, %v3751_v5  ;;  %v3814_v43 = vsel %vm8932_vm5, %v3751_v5, -inf  ;;  %v3741_v45 = vrot.slane %v3727_v37, %v7543_v9  ;;  %vm8938_vm5 = vmmov %vm8926_vm1 }
 0x344   : > { %v3815_v55 = vmax.f32 %v3813_v39, %v3814_v43  ;;  %v3742_v48 = vcombine.high %v3734_v38, %v3734_v38  ;;  %v3778_v49 = vsel %vm8926_vm1, %v3734_v38, -inf  ;;  %vm8939_vm1 = vcmask 1041409  }
 0x345   : > { %v3760_v50 = vcombine.high %v3758_v41, %v3758_v41  ;;  %v3823_v10 = vsel %vm8933_vm3, %v3759_v42, -inf  ;;  %v3832_v51 = vsel %vm8934_vm14, %v3758_v41, -inf  ;;  %v3779_v52 = vmax.f32 %v3777_v26, %v3778_v49 }
 0x346   : > { %v3816_v23 = vrot.slane %v3815_v55, 4  ;;  %v3824_v54 = vmax.f32 %v3822_v25, %v3823_v10  ;;  %v3833_v56 = vmax.f32 %v3831_v29, %v3832_v51  ;;  %v3743_v46 = vcombine.high %v3741_v45, %v3741_v45  ;;  %4364 = vrot.lane.b32.xlu1 %v8216_v24, %s6667_s13 }
 0x347   : > { %v3841_v35 = vsel %vm8935_vm10, %v3760_v50, -inf  ;;  %v3780_v13 = vrot.slane %v3779_v52, 4  ;;  %v3787_v20 = vsel %vm8936_vm13, %v3742_v48, -inf  ;;  %v3796_v58 = vsel %vm8937_vm4, %v3741_v45, -inf }
 0x348   : > { %v3817_v59 = vmax.f32 %v3815_v55, %v3816_v23  ;;  %v3825_v60 = vrot.slane %v3824_v54, 4  ;;  %v3834_v12 = vrot.slane %v3833_v56, 4  ;;  %v3842_v62 = vmax.f32 %v3840_v36, %v3841_v35 }
 0x349   : > { %v3781_v40 = vmax.f32 %v3779_v52, %v3780_v13  ;;  %v3788_v11 = vmax.f32 %v3786_v32, %v3787_v20  ;;  %v3797_v0 = vmax.f32 %v3795_v63, %v3796_v58  ;;  %v3805_v53 = vsel %vm8938_vm5, %v3743_v46, -inf }
 0x34a   : > { %v3818_v3 = vrot.slane %v3817_v59, 2  ;;  %v3826_v4 = vmax.f32 %v3824_v54, %v3825_v60  ;;  %v3835_v6 = vmax.f32 %v3833_v56, %v3834_v12  ;;  %v3843_v33 = vrot.slane %v3842_v62, 4 }
 0x34b   : > { %v3782_v30 = vrot.slane %v3781_v40, 2  ;;  %v3789_v8 = vrot.slane %v3788_v11, 4  ;;  %v3798_v57 = vrot.slane %v3797_v0, 4  ;;  %v3806_v22 = vmax.f32 %v3804_v47, %v3805_v53 }
 0x34c   : > { %v3819_v15 = vmax.f32 %v3817_v59, %v3818_v3  ;;  %v3827_v16 = vrot.slane %v3826_v4, 2  ;;  %v3836_v18 = vrot.slane %v3835_v6, 2  ;;  %v3844_v19 = vmax.f32 %v3842_v62, %v3843_v33 }
 0x34d   : > { %v3783_v21 = vmax.f32 %v3781_v40, %v3782_v30  ;;  %v3790_v61 = vmax.f32 %v3788_v11, %v3789_v8  ;;  %v3799_v31 = vmax.f32 %v3797_v0, %v3798_v57  ;;  %v3807_v14 = vrot.slane %v3806_v22, 4 }
 0x34e   : > { %v3820_v2 = vrot.slane %v3819_v15, 1  ;;  %v3828_v7 = vmax.f32 %v3826_v4, %v3827_v16  ;;  %v3837_v39 = vmax.f32 %v3835_v6, %v3836_v18  ;;  %v3845_v25 = vrot.slane %v3844_v19, 2 }
 0x34f   : > { %v3784_v26 = vrot.slane %v3783_v21, 1  ;;  %v3791_v28 = vrot.slane %v3790_v61, 2  ;;  %v3800_v29 = vrot.slane %v3799_v31, 2  ;;  %v3808_v32 = vmax.f32 %v3806_v22, %v3807_v14 }
 0x350   : > { %v3829_v17 = vrot.slane %v3828_v7, 1  ;;  %v3838_v5 = vrot.slane %v3837_v39, 1  ;;  %v3846_v34 = vmax.f32 %v3844_v19, %v3845_v25  ;;  %v3821_v38 = vmax.f32 %v3819_v15, %v3820_v2 }
 0x351   : > { %v3792_v36 = vmax.f32 %v3790_v61, %v3791_v28  ;;  %v3801_v63 = vmax.f32 %v3799_v31, %v3800_v29  ;;  %v3809_v37 = vrot.slane %v3808_v32, 2  ;;  %v3785_v47 = vmax.f32 %v3783_v21, %v3784_v26 }
 0x352   : > { %v3847_v41 = vrot.slane %v3846_v34, 1  ;;  %v3830_v42 = vmax.f32 %v3828_v7, %v3829_v17  ;;  %v3839_v48 = vmax.f32 %v3837_v39, %v3838_v5  ;;  %v3853_v52 = vadd.f32 %v8183_v27, %v3821_v38 }
 0x353   : > { %v3793_v43 = vrot.slane %v3792_v36, 1  ;;  %v3802_v55 = vrot.slane %v3801_v63, 1  ;;  %v3810_v45 = vmax.f32 %v3808_v32, %v3809_v37  ;;  %v3849_v23 = vadd.f32 %v8183_v27, %v3785_v47 }
 0x354   : > { %v3848_v51 = vmax.f32 %v3846_v34, %v3847_v41  ;;  %v3854_v35 = vadd.f32 %v8183_v27, %v3830_v42  ;;  %v3855_v13 = vadd.f32 %v8183_v27, %v3839_v48  ;;  %v3861_v12 = vmax.f32 %v3853_v52, 0.0 }
 0x355   : > { %v3794_v49 = vmax.f32 %v3792_v36, %v3793_v43  ;;  %v3803_v50 = vmax.f32 %v3801_v63, %v3802_v55  ;;  %v3811_v10 = vrot.slane %v3810_v45, 1  ;;  %v3857_v62 = vmax.f32 %v3849_v23, 0.0 }
 0x356   : > { %v3856_v60 = vadd.f32 %v8183_v27, %v3848_v51  ;;  %v3862_v53 = vmax.f32 %v3854_v35, 0.0  ;;  %v3863_v3 = vmax.f32 %v3855_v13, 0.0  ;;  %v3879_v30 = vrot.slane %v3861_v12, 4  ;;  %v4510_v51 = vld [vmem:[#allocation6 + $0x48] sm:$0xff] }
 0x357   : > { %v3812_v54 = vmax.f32 %v3810_v45, %v3811_v10  ;;  %v3850_v56 = vadd.f32 %v8183_v27, %v3794_v49  ;;  %v3851_v46 = vadd.f32 %v8183_v27, %v3803_v50  ;;  %vm8940_vm3 = vcmask 1043459  }
 0x358   : > { %v3864_v33 = vmax.f32 %v3856_v60, 0.0  ;;  %v3881_v22 = vrot.slane %v3862_v53, 3  ;;  %vm8941_vm14 = vcmask 1044484   ;;  %v3883_v16 = vrot.slane %v3863_v3, 2 }
 0x359   : > { %v3852_v20 = vadd.f32 %v8183_v27, %v3812_v54  ;;  %v3858_v58 = vmax.f32 %v3850_v56, 0.0  ;;  %v3859_v59 = vmax.f32 %v3851_v46, 0.0  ;;  %vm8942_vm10 = vcmask 1045509  }
 0x35a   : > { %v3885_v19 = vrot.slane %v3864_v33, 1  ;;  %vm8943_vm13 = vcmask 1046534   ;;  %vm8944_vm4 = vcmask 1047559   ;;  %vm5084_vm5 = vcmask 259072  }
 0x35b   : > { %v3860_v40 = vmax.f32 %v3852_v20, 0.0  ;;  %v3873_v11 = vrot.slane %v3858_v58, 7  ;;  %v3875_v0 = vrot.slane %v3859_v59, 6  ;;  %5085 = vst.msk [vmem:[#allocation8 + $0x7] sm:$0x3f] %vm5084_vm5, %v6654_v1 }
 0x35c   : > { %5087 = vst.msk [vmem:[#allocation8 + $0x57] sm:$0x3f] %vm5084_vm5, %v6654_v1 }
 0x35d   : > { %v3874_v4 = vsel %vm8939_vm1, %v3873_v11, %v3857_v62  ;;  %v3877_v6 = vrot.slane %v3860_v40, 5  ;;  %vm5088_vm1 = vcmask 253952  }
 0x35e   : > { %v3876_v8 = vsel %vm2640_vm2, %v3875_v0, %v3874_v4  ;;  %5093 = vst.msk [vmem:[#allocation8 + $0x1c] sm:$0x1] %vm5088_vm1, %v6654_v1  ;;  %5089 = vst.msk [vmem:[#allocation8 + $0x17] sm:$0x1] %vm5088_vm1, %v6654_v1 }
 0x35f   : > { %v3878_v57 = vsel %vm8940_vm3, %v3877_v6, %v3876_v8  ;;  %5090 = vst.msk [vmem:[#allocation8 + $0x27] sm:$0x1] %vm5088_vm1, %v6654_v1  ;;  %5091 = vst.msk [vmem:[#allocation8 + $0x37] sm:$0x1] %vm5088_vm1, %v6654_v1  ;;  %vm8945_vm3 = vcmask 123904  }
 0x360   : > { %v3880_v15 = vsel %vm8941_vm14, %v3879_v30, %v3878_v57  ;;  %5092 = vst.msk [vmem:[#allocation8 + $0x47] sm:$0x1] %vm5088_vm1, %v6654_v1  ;;  %5094 = vst.msk [vmem:[#allocation8 + $0x2c] sm:$0x1] %vm5088_vm1, %v6654_v1 }
 0x361   : > { %v3882_v18 = vsel %vm8942_vm10, %v3881_v22, %v3880_v15  ;;  %5095 = vst.msk [vmem:[#allocation8 + $0x3c] sm:$0x1] %vm5088_vm1, %v6654_v1  ;;  %5096 = vst.msk [vmem:[#allocation8 + $0x4c] sm:$0x1] %vm5088_vm1, %v6654_v1 }
 0x362   : > { %v3884_v21 = vsel %vm8943_vm13, %v3883_v16, %v3882_v18  ;;  %vm8946_vm14 = vmmov %vm8945_vm3 }
 0x363   : > { %v3886_v61 = vsel %vm8944_vm4, %v3885_v19, %v3884_v21  ;;  %vm8947_vm10 = vmmov %vm8945_vm3 }
 0x364   : > { %3889 = vst.msk [vmem:[#allocation5 + $0xb0] sm:$0xff] %vm2407_vm12, %v3886_v61  ;;  %vm8948_vm13 = vmmov %vm8945_vm3 }
 0x365   : > { %vm8949_vm4 = vmmov %vm8945_vm3 }
 0x366   : > { %vm8950_vm5 = vmmov %vm8945_vm3 }
 0x367   : > { %vm8951_vm1 = vmmov %vm8945_vm3 }
 0x36a   : > { %v6261_v2 = vpop.f32.mrb[28].mxu0 }
 0x36b   : > { %v4441_v31 = vld [vmem:[#allocation5 + $0xb0] sm:$0xff]  ;;  %2437 = vst.msk [vmem:[#allocation4 + $0xe8] sm:$0xff] %vm2407_vm12, %v6261_v2  ;;  %v2388_v39 = vpop.f32.mrb[29].mxu0 }
 0x36c   : > { %v4392_v14 = vld [vmem:[#allocation5 + $0xaf] sm:$0xff]  ;;  %4462 = vrot.lane.b32.xlu1 %v4441_v31, %s6669_s30  ;;  %2436 = vst.msk [vmem:[#allocation4 + $0xe0] sm:$0xff] %vm2407_vm12, %v2388_v39 }
 0x36d   : > { %v4344_v7 = vld [vmem:[#allocation5 + $0xb1] sm:$0xff]  ;;  %4413 = vrot.lane.b32.xlu0 %v4392_v14, %s6668_s18  ;;  %4141 = vst.msk [vmem:[#allocation6 + $0x70] sm:$0xff] %vm2407_vm12, %v4392_v14 }
 0x36e   : > { %4498 = vst.msk [vmem:[#allocation6 + $0x58] sm:$0xff] %vm2407_vm12, %v4344_v7 }
 0x370   : > { %4219 = vrot.lane.b32.xlu1 %v8216_v24, %s6665_s12 }
 0x371   : > { %4170 = vrot.lane.b32.xlu0 %v8235_v44, %s6664_s28 }
 0x372   : > { %v4410_v25 = vpop.permute.xlu0 %4409  ;;  %v4265_v26 = vpop.permute.xlu1 %4264  ;;  %v3891_v28 = vld [vmem:[#allocation4 + $0xe8] sm:$0xff] }
 0x373   : > { %4431 = vst.msk [vmem:[#allocation6 + $0x30] sm:$0xff] %vm4427_vm0, %v4410_v25  ;;  %v3890_v29 = vld [vmem:[#allocation4 + $0xe0] sm:$0xff]  ;;  %v3915_v32 = vcombine.high %v3891_v28, %v3891_v28  ;;  %v3922_v24 = vrot.slane %v3891_v28, %v7543_v9 }
 0x374   : > { %4285 = vst.msk [vmem:[#allocation6 + $0x40] sm:$0xff] %vm4280_vm6, %v4265_v26  ;;  %4317 = vrot.lane.b32.xlu1 %v4441_v31, %s6666_s21  ;;  %v3898_v34 = vcombine.high %v3890_v29, %v3890_v29  ;;  %v3905_v44 = vrot.slane %v3890_v29, %v7543_v9 }
 0x375   : > { %4268 = vrot.lane.b32.xlu0 %v4392_v14, %s6662_s23  ;;  %v3929_v63 = vrot.slane %v3915_v32, %v7543_v9  ;;  %v3930_v42 = vcombine.high %v3922_v24, %v3922_v24  ;;  %v4018_v49 = vsel %vm8945_vm3, %v3922_v24, -inf  ;;  %vm8952_vm3 = vmmov %vm8951_vm1 }
 0x376   : > { %v4459_v17 = vpop.permute.xlu0 %4458  ;;  %v4314_v5 = vpop.permute.xlu1 %4313  ;;  %v3912_v41 = vrot.slane %v3898_v34, %v7543_v9  ;;  %v3913_v43 = vcombine.high %v3905_v44, %v3905_v44  ;;  %v3982_v10 = vsel %vm8946_vm14, %v3905_v44, -inf  ;;  %vm8953_vm14 = vmmov %vm8951_vm1 }
 0x377   : > { %4480 = vst.msk [vmem:[#allocation6 + $0x30] sm:$0xff] %vm4476_vm9, %v4459_v17  ;;  %v6264_v36 = vpop.f32.mrb[30].mxu0  ;;  %v3931_v55 = vcombine.high %v3929_v63, %v3929_v63  ;;  %v4027_v52 = vsel %vm8947_vm10, %v3930_v42, -inf  ;;  %v4036_v23 = vsel %vm8948_vm13, %v3929_v63, -inf  ;;  %vm8954_vm10 = vmmov %vm8951_vm1 }
 0x378   : > { %4334 = vst.msk [vmem:[#allocation6 + $0x40] sm:$0xff] %vm4329_vm7, %v4314_v5  ;;  %4366 = vrot.lane.b32.xlu1 %v4344_v7, %s6667_s13  ;;  %v2398_v37 = vpop.f32.mrb[31].mxu0  ;;  %v3914_v50 = vcombine.high %v3912_v41, %v3912_v41  ;;  %v3991_v54 = vsel %vm8949_vm4, %v3913_v43, -inf  ;;  %v4000_v56 = vsel %vm8950_vm5, %v3912_v41, -inf  ;;  %vm8955_vm13 = vmmov %vm8951_vm1 }
 0x379   : > { %4172 = vrot.lane.b32.xlu0 %v4441_v31, %s6664_s28  ;;  %2439 = vst.msk [vmem:[#allocation4 + $0xf8] sm:$0xff] %vm2407_vm12, %v6264_v36  ;;  %2438 = vst.msk [vmem:[#allocation4 + $0xf0] sm:$0xff] %vm2407_vm12, %v2398_v37  ;;  %v4045_v35 = vsel %vm8951_vm1, %v3931_v55, -inf }
 0x37a   : > { %v4363_v38 = vpop.permute.xlu1 %4362  ;;  %v4169_v47 = vpop.permute.xlu0 %4168  ;;  %v4009_v12 = vsel %vm8952_vm3, %v3914_v50, -inf  ;;  %vm8956_vm4 = vmmov %vm8951_vm1 }
 0x37b   : > { %4383 = vst.msk [vmem:[#allocation6 + $0x40] sm:$0xff] %vm4378_vm11, %v4363_v38  ;;  %vm8957_vm5 = vmmov %vm8951_vm1 }
 0x37c   : > { %4188 = vst.msk [vmem:[#allocation6 + $0x50] sm:$0xff] %vm4182_vm8, %v4169_v47  ;;  %vm8958_vm3 = vmmov %vm8951_vm1 }
 0x37d   : > { %4221 = vrot.lane.b32.xlu0 %v4344_v7, %s6665_s12 }
 0x37e   : > { %v4218_v45 = vpop.permute.xlu0 %4217  ;;  %v4507_v48 = vld [vmem:[#allocation6 + $0x30] sm:$0xff] }
 0x37f   : > { %4237 = vst.msk [vmem:[#allocation6 + $0x50] sm:$0xff] %vm4231_vm15, %v4218_v45  ;;  %4629 = vmatmul.mubr.f32.gmra.mrb[6].mxu1 %v4507_v48 }
 0x380   : > { %v3893_v46 = vld [vmem:[#allocation4 + $0xf8] sm:$0xff]  ;;  %4633 = vmatprep.mubr.f32.mxu1 %v4510_v51  ;;  %v3892_v58 = vld [vmem:[#allocation4 + $0xf0] sm:$0xff] }
 0x381   : > { %v3949_v13 = vcombine.high %v3893_v46, %v3893_v46  ;;  %v3956_v20 = vrot.slane %v3893_v46, %v7543_v9  ;;  %v3932_v59 = vcombine.high %v3892_v58, %v3892_v58  ;;  %v3939_v60 = vrot.slane %v3892_v58, %v7543_v9 }
 0x383   : > { %v3963_v62 = vrot.slane %v3949_v13, %v7543_v9  ;;  %v3964_v40 = vcombine.high %v3956_v20, %v3956_v20  ;;  %v4019_v11 = vsel %vm8953_vm14, %v3956_v20, -inf  ;;  %v3946_v53 = vrot.slane %v3932_v59, %v7543_v9  ;;  %vm8959_vm14 = vmmov %vm8951_vm1 }
 0x384   : > { %v4020_v0 = vmax.f32 %v4018_v49, %v4019_v11  ;;  %v3947_v3 = vcombine.high %v3939_v60, %v3939_v60  ;;  %v3983_v4 = vsel %vm8954_vm10, %v3939_v60, -inf  ;;  %vm4654_vm10 = vcmask 261120  }
 0x385   : > { %v3965_v6 = vcombine.high %v3963_v62, %v3963_v62  ;;  %v4028_v33 = vsel %vm8955_vm13, %v3964_v40, -inf  ;;  %v4037_v30 = vsel %vm8956_vm4, %v3963_v62, -inf  ;;  %v3984_v8 = vmax.f32 %v3982_v10, %v3983_v4 }
 0x386   : > { %v4021_v57 = vrot.slane %v4020_v0, 4  ;;  %v4029_v22 = vmax.f32 %v4027_v52, %v4028_v33  ;;  %v4038_v15 = vmax.f32 %v4036_v23, %v4037_v30  ;;  %v3948_v16 = vcombine.high %v3946_v53, %v3946_v53 }
 0x387   : > { %v4046_v18 = vsel %vm8957_vm5, %v3965_v6, -inf  ;;  %v3985_v19 = vrot.slane %v3984_v8, 4  ;;  %v3992_v21 = vsel %vm8951_vm1, %v3947_v3, -inf  ;;  %v4001_v61 = vsel %vm8958_vm3, %v3946_v53, -inf }
 0x388   : > { %v4022_v31 = vmax.f32 %v4020_v0, %v4021_v57  ;;  %v4030_v14 = vrot.slane %v4029_v22, 4  ;;  %v4039_v2 = vrot.slane %v4038_v15, 4  ;;  %v4047_v7 = vmax.f32 %v4045_v35, %v4046_v18 }
 0x389   : > { %v3986_v39 = vmax.f32 %v3984_v8, %v3985_v19  ;;  %v3993_v25 = vmax.f32 %v3991_v54, %v3992_v21  ;;  %v4002_v26 = vmax.f32 %v4000_v56, %v4001_v61  ;;  %v4010_v28 = vsel %vm8959_vm14, %v3948_v16, -inf }
 0x38a   : > { %v4023_v29 = vrot.slane %v4022_v31, 2  ;;  %v4031_v32 = vmax.f32 %v4029_v22, %v4030_v14  ;;  %v4040_v17 = vmax.f32 %v4038_v15, %v4039_v2  ;;  %v4048_v5 = vrot.slane %v4047_v7, 4 }
 0x38b   : > { %v3987_v34 = vrot.slane %v3986_v39, 2  ;;  %v3994_v24 = vrot.slane %v3993_v25, 4  ;;  %v4003_v44 = vrot.slane %v4002_v26, 4  ;;  %v4011_v36 = vmax.f32 %v4009_v12, %v4010_v28 }
 0x38c   : > { %v4024_v63 = vmax.f32 %v4022_v31, %v4023_v29  ;;  %v4032_v37 = vrot.slane %v4031_v32, 2  ;;  %v4041_v38 = vrot.slane %v4040_v17, 2  ;;  %v4049_v47 = vmax.f32 %v4047_v7, %v4048_v5 }
 0x38d   : > { %v3988_v41 = vmax.f32 %v3986_v39, %v3987_v34  ;;  %v3995_v42 = vmax.f32 %v3993_v25, %v3994_v24  ;;  %v4004_v43 = vmax.f32 %v4002_v26, %v4003_v44  ;;  %v4012_v55 = vrot.slane %v4011_v36, 4 }
 0x38e   : > { %v4025_v45 = vrot.slane %v4024_v63, 1  ;;  %v4033_v48 = vmax.f32 %v4031_v32, %v4032_v37  ;;  %v4042_v49 = vmax.f32 %v4040_v17, %v4041_v38  ;;  %v4050_v50 = vrot.slane %v4049_v47, 2 }
 0x38f   : > { %v3989_v10 = vrot.slane %v3988_v41, 1  ;;  %v3996_v51 = vrot.slane %v3995_v42, 2  ;;  %v4005_v52 = vrot.slane %v4004_v43, 2  ;;  %v4013_v23 = vmax.f32 %v4011_v36, %v4012_v55 }
 0x390   : > { %v4034_v54 = vrot.slane %v4033_v48, 1  ;;  %v4043_v56 = vrot.slane %v4042_v49, 1  ;;  %v4051_v46 = vmax.f32 %v4049_v47, %v4050_v50  ;;  %v4026_v59 = vmax.f32 %v4024_v63, %v4025_v45  ;;  %v4492_v45 = vld [vmem:[#allocation5 + $0xe1] sm:$0xff] }
 0x391   : > { %v3997_v35 = vmax.f32 %v3995_v42, %v3996_v51  ;;  %v4006_v13 = vmax.f32 %v4004_v43, %v4005_v52  ;;  %v4014_v20 = vrot.slane %v4013_v23, 2  ;;  %v6069_v58 = vpop.f32.mrb[0].mxu1  ;;  %v3990_v60 = vmax.f32 %v3988_v41, %v3989_v10  ;;  %4500 = vst.msk [vmem:[#allocation6 + $0x78] sm:$0xff] %vm2407_vm12, %v4492_v45  ;;  %v4443_v51 = vld [vmem:[#allocation5 + $0xe0] sm:$0xff] }
 0x392   : > { %v6070_v12 = vpop.f32.mrb[1].mxu1  ;;  %v4052_v62 = vrot.slane %v4051_v46, 1  ;;  %v4035_v40 = vmax.f32 %v4033_v48, %v4034_v54  ;;  %v4044_v3 = vmax.f32 %v4042_v49, %v4043_v56  ;;  %v4058_v57 = vadd.f32 %v8183_v27, %v4026_v59  ;;  %v4394_v49 = vld [vmem:[#allocation5 + $0xdf] sm:$0xff] }
 0x393   : > { %v3998_v11 = vrot.slane %v3997_v35, 1  ;;  %v4007_v0 = vrot.slane %v4006_v13, 1  ;;  %v4015_v53 = vmax.f32 %v4013_v23, %v4014_v20  ;;  %v6071_v4 = vadd.f32 %v6070_v12, %v6069_v58 }
 0x394   : > { %v4053_v8 = vmax.f32 %v4051_v46, %v4052_v62  ;;  %v4054_v22 = vadd.f32 %v8183_v27, %v3990_v60  ;;  %v4059_v19 = vadd.f32 %v8183_v27, %v4035_v40  ;;  %v4060_v21 = vadd.f32 %v8183_v27, %v4044_v3  ;;  %v4512_v46 = vld [vmem:[#allocation6 + $0x58] sm:$0xff] }
 0x395   : > { %v3999_v6 = vmax.f32 %v3997_v35, %v3998_v11  ;;  %v4008_v33 = vmax.f32 %v4006_v13, %v4007_v0  ;;  %v4016_v30 = vrot.slane %v4015_v53, 1  ;;  %4655 = vst.msk [vmem:[#allocation7] sm:$0xff] %vm4654_vm10, %v6071_v4  ;;  %v4066_v7 = vmax.f32 %v4058_v57, 0.0 }
 0x396   : > { %v4061_v2 = vadd.f32 %v8183_v27, %v4053_v8  ;;  %v4062_v39 = vmax.f32 %v4054_v22, 0.0  ;;  %v4067_v29 = vmax.f32 %v4059_v19, 0.0  ;;  %v4068_v32 = vmax.f32 %v4060_v21, 0.0 }
 0x397   : > { %v4017_v15 = vmax.f32 %v4015_v53, %v4016_v30  ;;  %v4055_v16 = vadd.f32 %v8183_v27, %v3999_v6  ;;  %v4056_v18 = vadd.f32 %v8183_v27, %v4008_v33  ;;  %vm8960_vm13 = vcmask 1041409  }
 0x398   : > { %v4069_v34 = vmax.f32 %v4061_v2, 0.0  ;;  %v4084_v24 = vrot.slane %v4066_v7, 4  ;;  %vm8961_vm4 = vcmask 1043459   ;;  %v4086_v63 = vrot.slane %v4067_v29, 3 }
 0x399   : > { %v4057_v61 = vadd.f32 %v8183_v27, %v4017_v15  ;;  %v4063_v31 = vmax.f32 %v4055_v16, 0.0  ;;  %v4064_v14 = vmax.f32 %v4056_v18, 0.0  ;;  %vm8962_vm5 = vcmask 1044484  }
 0x39a   : > { %v4088_v27 = vrot.slane %v4068_v32, 2  ;;  %vm8963_vm1 = vcmask 1045509   ;;  %v4090_v47 = vrot.slane %v4069_v34, 1  ;;  %vm8964_vm3 = vcmask 1046534  }
 0x39b   : > { %v4065_v25 = vmax.f32 %v4057_v61, 0.0  ;;  %v4078_v26 = vrot.slane %v4063_v31, 7  ;;  %v4080_v28 = vrot.slane %v4064_v14, 6  ;;  %vm8965_vm14 = vcmask 1047559  }
 0x39c   : > { %v4664_v58 = vld [vmem:[#allocation7] sm:$0xff] }
 0x39d   : > { %v4079_v17 = vsel %vm8960_vm13, %v4078_v26, %v4062_v39  ;;  %v4082_v5 = vrot.slane %v4065_v25, 5  ;;  %v4668_v59 = vcombine.high %v4664_v58, %v4664_v58  ;;  %v4675_v60 = vrot.slane %v4664_v58, %v7543_v9 }
 0x39e   : > { %v4081_v44 = vsel %vm2640_vm2, %v4080_v28, %v4079_v17 }
 0x39f   : > { %v4083_v36 = vsel %vm8961_vm4, %v4082_v5, %v4081_v44  ;;  %v4682_v12 = vrot.slane %v4668_v59, %v7543_v9  ;;  %v4683_v62 = vcombine.high %v4675_v60, %v4675_v60 }
 0x3a0   : > { %v4085_v37 = vsel %vm8962_vm5, %v4084_v24, %v4083_v36 }
 0x3a1   : > { %v4087_v38 = vsel %vm8963_vm1, %v4086_v63, %v4085_v37  ;;  %v4684_v6 = vcombine.high %v4682_v12, %v4682_v12  ;;  %vm5168_vm1 = vcmask 1048320  }
 0x3a2   : > { %v4089_v41 = vsel %vm8964_vm3, %v4088_v27, %v4087_v38 }
 0x3a3   : > { %v4091_v42 = vsel %vm8965_vm14, %v4090_v47, %v4089_v41 }
 0x3a4   : > { %4094 = vst.msk [vmem:[#allocation5 + $0xc8] sm:$0xff] %vm2407_vm12, %v4091_v42 }
 0x3ab   : > { %v4393_v43 = vld [vmem:[#allocation5 + $0xc7] sm:$0xff] }
 0x3ac   : > { %v4345_v55 = vld [vmem:[#allocation5 + $0xc9] sm:$0xff]  ;;  %4415 = vrot.lane.b32.xlu1 %v4393_v43, %s6668_s18  ;;  %4270 = vrot.lane.b32.xlu0 %v4393_v43, %s6662_s23 }
 0x3ad   : > { %4499 = vst.msk [vmem:[#allocation6 + $0x68] sm:$0xff] %vm2407_vm12, %v4345_v55  ;;  %v4442_v48 = vld [vmem:[#allocation5 + $0xc8] sm:$0xff]  ;;  %vm4710_vm12 = vcmask 254976  }
 0x3ae   : > { %v4711_v53 = vsel %vm4710_vm12, %v4675_v60, -inf  ;;  %v4720_v57 = vsel %vm4710_vm12, %v4683_v62, -inf  ;;  %v4729_v15 = vsel %vm4710_vm12, %v4682_v12, -inf  ;;  %v4738_v7 = vsel %vm4710_vm12, %v4684_v6, -inf }
 0x3b0   : > { %4464 = vrot.lane.b32.xlu1 %v4442_v48, %s6669_s30  ;;  %4319 = vrot.lane.b32.xlu0 %v4442_v48, %s6666_s21  ;;  %v4412_v50 = vpop.permute.xlu1 %4411  ;;  %v4267_v10 = vpop.permute.xlu0 %4266 }
 0x3b1   : > { %4432 = vst.msk [vmem:[#allocation6 + $0x40] sm:$0xff] %vm4427_vm0, %v4412_v50 }
 0x3b2   : > { %4286 = vst.msk [vmem:[#allocation6 + $0x50] sm:$0xff] %vm4280_vm6, %v4267_v10 }
 0x3b4   : > { %4368 = vrot.lane.b32.xlu1 %v4345_v55, %s6667_s13  ;;  %4417 = vrot.lane.b32.xlu0 %v4394_v49, %s6668_s18  ;;  %v4461_v52 = vpop.permute.xlu1 %4460  ;;  %v4316_v23 = vpop.permute.xlu0 %4315  ;;  %v4514_v47 = vld [vmem:[#allocation6 + $0x68] sm:$0xff] }
 0x3b5   : > { %4481 = vst.msk [vmem:[#allocation6 + $0x40] sm:$0xff] %vm4476_vm9, %v4461_v52  ;;  %v8380_v52 = vld [vmem:[%s8807_s4] ss:$0 sm:$0xff] }
 0x3b6   : > { %4335 = vst.msk [vmem:[#allocation6 + $0x50] sm:$0xff] %vm4329_vm7, %v4316_v23 }
 0x3b8   : > { %4466 = vrot.lane.b32.xlu1 %v4443_v51, %s6669_s30  ;;  %v4365_v54 = vpop.permute.xlu1 %4364 }
 0x3b9   : > { %4384 = vst.msk [vmem:[#allocation6 + $0x50] sm:$0xff] %vm4378_vm11, %v4365_v54 }
 0x3bc   : > { %v4509_v56 = vld [vmem:[#allocation6 + $0x40] sm:$0xff] }
 0x3bd   : > { %4634 = vmatmul.mubr.f32.gmra.mrb[8].mxu1 %v4509_v56 }
 0x3be   : > { %4638 = vmatprep.mubr.f32.mxu1 %v4512_v46 }
 0x3d1   : > { %v6072_v35 = vpop.f32.mrb[2].mxu1 }
 0x3d2   : > { %v6073_v13 = vpop.f32.mrb[3].mxu1 }
 0x3d3   : > { %v6074_v20 = vadd.f32 %v6073_v13, %v6072_v35 }
 0x3d5   : > { %4656 = vst.msk [vmem:[#allocation7 + $0x8] sm:$0xff] %vm4654_vm10, %v6074_v20 }
 0x3dc   : > { %v4665_v40 = vld [vmem:[#allocation7 + $0x8] sm:$0xff] }
 0x3dd   : > { %v4685_v11 = vcombine.high %v4665_v40, %v4665_v40  ;;  %v4692_v0 = vrot.slane %v4665_v40, %v7543_v9 }
 0x3de   : > { %v4463_v3 = vpop.permute.xlu1 %4462 }
 0x3df   : > { %v4414_v4 = vpop.permute.xlu0 %4413  ;;  %v4699_v33 = vrot.slane %v4685_v11, %v7543_v9  ;;  %v4700_v30 = vcombine.high %v4692_v0, %v4692_v0  ;;  %v4712_v8 = vsel %vm4710_vm12, %v4692_v0, -inf }
 0x3e0   : > { %4433 = vst.msk [vmem:[#allocation6 + $0x50] sm:$0xff] %vm4427_vm0, %v4414_v4  ;;  %v4713_v22 = vmax.f32 %v4711_v53, %v4712_v8 }
 0x3e1   : > { %4482 = vst.msk [vmem:[#allocation6 + $0x50] sm:$0xff] %vm4476_vm9, %v4463_v3  ;;  %v4701_v16 = vcombine.high %v4699_v33, %v4699_v33  ;;  %v4721_v18 = vsel %vm4710_vm12, %v4700_v30, -inf  ;;  %v4730_v19 = vsel %vm4710_vm12, %v4699_v33, -inf }
 0x3e2   : > { %v4714_v21 = vrot.slane %v4713_v22, 4  ;;  %v4722_v61 = vmax.f32 %v4720_v57, %v4721_v18  ;;  %v4731_v31 = vmax.f32 %v4729_v15, %v4730_v19  ;;  %v4220_v14 = vpop.permute.xlu1 %4219 }
 0x3e3   : > { %v4171_v2 = vpop.permute.xlu0 %4170  ;;  %v4739_v39 = vsel %vm4710_vm12, %v4701_v16, -inf }
 0x3e4   : > { %4189 = vst.msk [vmem:[#allocation6 + $0x60] sm:$0xff] %vm4182_vm8, %v4171_v2  ;;  %v4715_v25 = vmax.f32 %v4713_v22, %v4714_v21  ;;  %v4723_v26 = vrot.slane %v4722_v61, 4  ;;  %v4732_v28 = vrot.slane %v4731_v31, 4  ;;  %v4740_v29 = vmax.f32 %v4738_v7, %v4739_v39 }
 0x3e5   : > { %4238 = vst.msk [vmem:[#allocation6 + $0x60] sm:$0xff] %vm4231_vm15, %v4220_v14  ;;  %v4516_v14 = vld [vmem:[#allocation6 + $0x78] sm:$0xff] }
 0x3e6   : > { %v4716_v32 = vrot.slane %v4715_v25, 2  ;;  %v4724_v17 = vmax.f32 %v4722_v61, %v4723_v26  ;;  %v4733_v5 = vmax.f32 %v4731_v31, %v4732_v28  ;;  %v4741_v34 = vrot.slane %v4740_v29, 4  ;;  %v4318_v24 = vpop.permute.xlu1 %4317 }
 0x3e7   : > { %v4269_v44 = vpop.permute.xlu0 %4268 }
 0x3e8   : > { %4287 = vst.msk [vmem:[#allocation6 + $0x60] sm:$0xff] %vm4280_vm6, %v4269_v44  ;;  %v4511_v36 = vld [vmem:[#allocation6 + $0x50] sm:$0xff]  ;;  %v4717_v63 = vmax.f32 %v4715_v25, %v4716_v32  ;;  %v4725_v37 = vrot.slane %v4724_v17, 2  ;;  %v4734_v27 = vrot.slane %v4733_v5, 2  ;;  %v4742_v38 = vmax.f32 %v4740_v29, %v4741_v34 }
 0x3e9   : > { %4336 = vst.msk [vmem:[#allocation6 + $0x60] sm:$0xff] %vm4329_vm7, %v4318_v24  ;;  %4639 = vmatmul.mubr.f32.gmra.mrb[10].mxu1 %v4511_v36 }
 0x3ea   : > { %4643 = vmatprep.mubr.f32.mxu1 %v4514_v47  ;;  %v4718_v41 = vrot.slane %v4717_v63, 1  ;;  %v4726_v42 = vmax.f32 %v4724_v17, %v4725_v37  ;;  %v4735_v43 = vmax.f32 %v4733_v5, %v4734_v27  ;;  %v4743_v55 = vrot.slane %v4742_v38, 2  ;;  %v4367_v45 = vpop.permute.xlu1 %4366 }
 0x3eb   : > { %v4173_v48 = vpop.permute.xlu0 %4172  ;;  %4385 = vst.msk [vmem:[#allocation6 + $0x60] sm:$0xff] %vm4378_vm11, %v4367_v45 }
 0x3ec   : > { %4190 = vst.msk [vmem:[#allocation6 + $0x70] sm:$0xff] %vm4182_vm8, %v4173_v48  ;;  %v4719_v49 = vmax.f32 %v4717_v63, %v4718_v41  ;;  %v4727_v50 = vrot.slane %v4726_v42, 1  ;;  %v4736_v10 = vrot.slane %v4735_v43, 1  ;;  %v4744_v51 = vmax.f32 %v4742_v38, %v4743_v55  ;;  %vm8966_vm8 = vmmov %vm8960_vm13 }
 0x3ed   : > { %vm4773_vm13 = vcmask 257024  }
 0x3ee   : > { %v4728_v23 = vmax.f32 %v4726_v42, %v4727_v50  ;;  %v4737_v54 = vmax.f32 %v4735_v43, %v4736_v10  ;;  %v4745_v56 = vrot.slane %v4744_v51, 1  ;;  %v4753_v13 = vadd.f32 %v8380_v52, %v4719_v49 }
 0x3ef   : > { %v4222_v46 = vpop.permute.xlu0 %4221 }
 0x3f0   : > { %4239 = vst.msk [vmem:[#allocation6 + $0x70] sm:$0xff] %vm4231_vm15, %v4222_v46  ;;  %v4746_v35 = vmax.f32 %v4744_v51, %v4745_v56  ;;  %v4754_v20 = vadd.f32 %v8380_v52, %v4728_v23  ;;  %v4755_v58 = vadd.f32 %v8380_v52, %v4737_v54  ;;  %v4757_v62 = vmax.f32 %v4753_v13, 0.0  ;;  %vm8967_vm15 = vmmov %vm8961_vm4 }
 0x3f2   : > { %v4758_v59 = vmax.f32 %v4754_v20, 0.0  ;;  %v4756_v60 = vadd.f32 %v8380_v52, %v4746_v35  ;;  %v4759_v12 = vmax.f32 %v4755_v58, 0.0 }
 0x3f4   : > { %v4765_v40 = vrot.slane %v4758_v59, 7  ;;  %v4760_v11 = vmax.f32 %v4756_v60, 0.0  ;;  %v4767_v0 = vrot.slane %v4759_v12, 6 }
 0x3f6   : > { %v4766_v53 = vsel %vm8966_vm8, %v4765_v40, %v4757_v62  ;;  %v4769_v3 = vrot.slane %v4760_v11, 5 }
 0x3f7   : > { %v4768_v4 = vsel %vm2640_vm2, %v4767_v0, %v4766_v53 }
 0x3f8   : > { %v4770_v6 = vsel %vm8967_vm15, %v4769_v3, %v4768_v4 }
 0x3f9   : > { %4774 = vst.msk [vmem:[#allocation8 + $0x18] sm:$0xf] %vm4773_vm13, %v4770_v6 }
 0x400   : > { %v6618_v33 = vld [vmem:[#allocation8 + $0x8] ss:$16 sps:$4 sm:$0xff]  }
 0x401   : > { %v6622_v30 = vld [vmem:[#allocation8 + $0x7] ss:$16 sps:$4 sm:$0xff]   ;;  %5124 = vrot.lane.b32.xlu1 %v6618_v33, %s6665_s12 }
 0x402   : > { %5112 = vst.msk [vmem:[#allocation9] sm:$0xff] %vm4654_vm10, %v6622_v30  ;;  %v6619_v8 = vld [vmem:[#allocation8 + $0x9] ss:$16 sps:$4 sm:$0xff]  }
 0x405   : > { %5143 = vrot.lane.b32.xlu1 %v6619_v8, %s6666_s21 }
 0x412   : > { %v6075_v57 = vpop.f32.mrb[4].mxu1 }
 0x413   : > { %v6076_v22 = vpop.f32.mrb[5].mxu1 }
 0x414   : > { %v6077_v15 = vadd.f32 %v6076_v22, %v6075_v57 }
 0x416   : > { %4657 = vst.msk [vmem:[#allocation7 + $0x10] sm:$0xff] %vm4654_vm10, %v6077_v15 }
 0x41d   : > { %v4775_v29 = vld [vmem:[#allocation7 + $0x10] sm:$0xff] }
 0x41e   : > { %v4416_v16 = vpop.permute.xlu1 %4415  ;;  %v4271_v18 = vpop.permute.xlu0 %4270  ;;  %v4779_v32 = vcombine.high %v4775_v29, %v4775_v29  ;;  %v4786_v17 = vrot.slane %v4775_v29, %v7543_v9 }
 0x41f   : > { %4434 = vst.msk [vmem:[#allocation6 + $0x60] sm:$0xff] %vm4427_vm0, %v4416_v16 }
 0x420   : > { %4288 = vst.msk [vmem:[#allocation6 + $0x70] sm:$0xff] %vm4280_vm6, %v4271_v18  ;;  %v4793_v5 = vrot.slane %v4779_v32, %v7543_v9  ;;  %v4794_v34 = vcombine.high %v4786_v17, %v4786_v17  ;;  %v4821_v63 = vsel %vm4710_vm12, %v4786_v17, -inf  ;;  %vm5097_vm6 = vcmask 1047808  }
 0x421   : > { %5098 = vst.msk [vmem:[#allocation9 + $0x10] sm:$0xff] %vm5097_vm6, %v6654_v1  ;;  %5099 = vst.msk [vmem:[#allocation9 + $0x28] sm:$0xff] %vm5097_vm6, %v6654_v1 }
 0x422   : > { %v4465_v19 = vpop.permute.xlu1 %4464  ;;  %v4320_v21 = vpop.permute.xlu0 %4319  ;;  %v4795_v37 = vcombine.high %v4793_v5, %v4793_v5  ;;  %v4830_v41 = vsel %vm4710_vm12, %v4794_v34, -inf  ;;  %v4839_v43 = vsel %vm4710_vm12, %v4793_v5, -inf }
 0x423   : > { %4483 = vst.msk [vmem:[#allocation6 + $0x60] sm:$0xff] %vm4476_vm9, %v4465_v19 }
 0x424   : > { %4337 = vst.msk [vmem:[#allocation6 + $0x70] sm:$0xff] %vm4329_vm7, %v4320_v21  ;;  %v4848_v51 = vsel %vm4710_vm12, %v4795_v37, -inf  ;;  %vm5130_vm7 = vcmask 523520   ;;  %v5291_v37 = vld [vmem:[%s8808_s5 + $0x100] sm:$0xff] }
 0x426   : > { %v4369_v61 = vpop.permute.xlu1 %4368  ;;  %v4418_v31 = vpop.permute.xlu0 %4417 }
 0x427   : > { %4386 = vst.msk [vmem:[#allocation6 + $0x70] sm:$0xff] %vm4378_vm11, %v4369_v61  ;;  %vm5149_vm11 = vcmask 785920  }
 0x428   : > { %4435 = vst.msk [vmem:[#allocation6 + $0x70] sm:$0xff] %vm4427_vm0, %v4418_v31  ;;  %vm8968_vm0 = vmmov %vm8966_vm8  ;;  %vm5893_vm8 = vcmask 516096  }
 0x429   : > { %vm8972_vm3 = vmmov %vm8968_vm0 }
 0x42a   : > { %v4467_v2 = vpop.permute.xlu1 %4466  ;;  %v4513_v7 = vld [vmem:[#allocation6 + $0x60] sm:$0xff] }
 0x42b   : > { %4484 = vst.msk [vmem:[#allocation6 + $0x70] sm:$0xff] %vm4476_vm9, %v4467_v2  ;;  %4644 = vmatmul.mubr.f32.gmra.mrb[12].mxu1 %v4513_v7  ;;  %vm8969_vm9 = vmmov %vm8961_vm4 }
 0x42c   : > { %4648 = vmatprep.mubr.f32.mxu1 %v4516_v14  ;;  %vm8970_vm4 = vmmov %vm8968_vm0 }
 0x42d   : > { %vm8971_vm5 = vmmov %vm8969_vm9 }
 0x42e   : > { %vm8973_vm14 = vmmov %vm8971_vm5 }
 0x432   : > { %v4515_v39 = vld [vmem:[#allocation6 + $0x70] sm:$0xff] }
 0x433   : > { %4649 = vmatmul.mubr.f32.gmra.mrb[14].mxu1 %v4515_v39 }
 0x452   : > { %v6078_v25 = vpop.f32.mrb[6].mxu1 }
 0x453   : > { %v6079_v26 = vpop.f32.mrb[7].mxu1 }
 0x454   : > { %v6080_v28 = vadd.f32 %v6079_v26, %v6078_v25 }
 0x456   : > { %4658 = vst.msk [vmem:[#allocation7 + $0x18] sm:$0xff] %vm4654_vm10, %v6080_v28 }
 0x45d   : > { %v4776_v24 = vld [vmem:[#allocation7 + $0x18] sm:$0xff] }
 0x45e   : > { %v4796_v44 = vcombine.high %v4776_v24, %v4776_v24  ;;  %v4803_v36 = vrot.slane %v4776_v24, %v7543_v9 }
 0x460   : > { %v4810_v27 = vrot.slane %v4796_v44, %v7543_v9  ;;  %v4811_v38 = vcombine.high %v4803_v36, %v4803_v36  ;;  %v4822_v47 = vsel %vm4710_vm12, %v4803_v36, -inf }
 0x461   : > { %v4823_v42 = vmax.f32 %v4821_v63, %v4822_v47  ;;  %v5293_v47 = vld [vmem:[%s8808_s5 + $0x110] sm:$0xff] }
 0x462   : > { %v4812_v55 = vcombine.high %v4810_v27, %v4810_v27  ;;  %v4831_v45 = vsel %vm4710_vm12, %v4811_v38, -inf  ;;  %v4840_v48 = vsel %vm4710_vm12, %v4810_v27, -inf  ;;  %v5292_v27 = vld [vmem:[%s8808_s5 + $0x108] sm:$0xff] }
 0x463   : > { %v4824_v49 = vrot.slane %v4823_v42, 4  ;;  %v4832_v50 = vmax.f32 %v4830_v41, %v4831_v45  ;;  %v4841_v10 = vmax.f32 %v4839_v43, %v4840_v48  ;;  %v6472_v38 = vpack.c.bf16 %v5292_v27, %v5291_v37  ;;  %v5294_v41 = vld [vmem:[%s8808_s5 + $0x118] sm:$0xff]  ;;  %v5295_v43 = vld [vmem:[%s8808_s5 + $0x120] sm:$0xff]  ;;  %v5297_v48 = vld [vmem:[%s8808_s5 + $0x130] sm:$0xff] }
 0x464   : > { %v4849_v23 = vsel %vm4710_vm12, %v4812_v55, -inf  ;;  %v5296_v55 = vld [vmem:[%s8808_s5 + $0x128] sm:$0xff] }
 0x465   : > { %v4825_v54 = vmax.f32 %v4823_v42, %v4824_v49  ;;  %v4833_v56 = vrot.slane %v4832_v50, 4  ;;  %v4842_v46 = vrot.slane %v4841_v10, 4  ;;  %v4850_v35 = vmax.f32 %v4848_v51, %v4849_v23  ;;  %6473 = vmatprep.subr.bf16.mxu0 %v6472_v38  ;;  %v5298_v49 = vld [vmem:[%s8808_s5 + $0x138] sm:$0xff]  ;;  %v5300_v51 = vld [vmem:[%s8808_s5 + $0x148] sm:$0xff] }
 0x466   : > { %6475 = vmatpush3.bf16.msra.mxu0 %v6472_v38  ;;  %v6476_v42 = vpack.c.bf16 %v5294_v41, %v5293_v47  ;;  %v6480_v45 = vpack.c.bf16 %v5296_v55, %v5295_v43  ;;  %v5266_v47 = vld [vmem:[%s8808_s5 + $0x38] sm:$0xff]  ;;  %v5283_v41 = vld [vmem:[%s8808_s5 + $0xc0] sm:$0xff] }
 0x467   : > { %v4826_v13 = vrot.slane %v4825_v54, 2  ;;  %v4834_v20 = vmax.f32 %v4832_v50, %v4833_v56  ;;  %v4843_v58 = vmax.f32 %v4841_v10, %v4842_v46  ;;  %v4851_v59 = vrot.slane %v4850_v35, 4  ;;  %v5299_v10 = vld [vmem:[%s8808_s5 + $0x140] sm:$0xff]  ;;  %v5302_v56 = vld [vmem:[%s8808_s5 + $0x158] sm:$0xff] }
 0x468   : > { %6477 = vmatprep.subr.bf16.mxu0 %v6476_v42  ;;  %v6484_v50 = vpack.c.bf16 %v5298_v49, %v5297_v48  ;;  %v6488_v23 = vpack.c.bf16 %v5300_v51, %v5299_v10 }
 0x469   : > { %v4827_v60 = vmax.f32 %v4825_v54, %v4826_v13  ;;  %v4835_v12 = vrot.slane %v4834_v20, 2  ;;  %v4844_v62 = vrot.slane %v4843_v58, 2  ;;  %v4852_v40 = vmax.f32 %v4850_v35, %v4851_v59  ;;  %v5301_v54 = vld [vmem:[%s8808_s5 + $0x150] sm:$0xff]  ;;  %v5303_v35 = vld [vmem:[%s8808_s5 + $0x160] sm:$0xff]  ;;  %v5304_v13 = vld [vmem:[%s8808_s5 + $0x168] sm:$0xff] }
 0x46a   : > { %6479 = vmatpush3.bf16.msra.mxu0 %v6476_v42  ;;  %v6492_v46 = vpack.c.bf16 %v5302_v56, %v5301_v54  ;;  %v5306_v59 = vld [vmem:[%s8808_s5 + $0x178] sm:$0xff]  ;;  %v5284_v42 = vld [vmem:[%s8808_s5 + $0xc8] sm:$0xff] }
 0x46b   : > { %v4828_v11 = vrot.slane %v4827_v60, 1  ;;  %v4836_v0 = vmax.f32 %v4834_v20, %v4835_v12  ;;  %v4845_v53 = vmax.f32 %v4843_v58, %v4844_v62  ;;  %v4853_v3 = vrot.slane %v4852_v40, 2  ;;  %6481 = vmatprep.subr.bf16.mxu0 %v6480_v45  ;;  %v5305_v58 = vld [vmem:[%s8808_s5 + $0x170] sm:$0xff] }
 0x46c   : > { %v6496_v20 = vpack.c.bf16 %v5304_v13, %v5303_v35  ;;  %v6456_v56 = vpack.c.bf16 %v5284_v42, %v5283_v41  ;;  %v5288_v41 = vld [vmem:[%s8808_s5 + $0xe8] sm:$0xff]  ;;  %v5271_v42 = vld [vmem:[%s8808_s5 + $0x60] sm:$0xff] }
 0x46d   : > { %v4829_v4 = vmax.f32 %v4827_v60, %v4828_v11  ;;  %v4837_v6 = vrot.slane %v4836_v0, 1  ;;  %v4846_v33 = vrot.slane %v4845_v53, 1  ;;  %v4854_v30 = vmax.f32 %v4852_v40, %v4853_v3  ;;  %v5276_v3 = vld [vmem:[%s8808_s5 + $0x88] sm:$0xff] }
 0x46e   : > { %6483 = vmatpush3.bf16.msra.mxu0 %v6480_v45  ;;  %v6500_v60 = vpack.c.bf16 %v5306_v59, %v5305_v58  ;;  %v5267_v58 = vld [vmem:[%s8808_s5 + $0x40] sm:$0xff]  ;;  %v5268_v59 = vld [vmem:[%s8808_s5 + $0x48] sm:$0xff] }
 0x46f   : > { %v4838_v8 = vmax.f32 %v4836_v0, %v4837_v6  ;;  %v4847_v57 = vmax.f32 %v4845_v53, %v4846_v33  ;;  %v4855_v22 = vrot.slane %v4854_v30, 1  ;;  %v4857_v16 = vadd.f32 %v8380_v52, %v4829_v4  ;;  %6485 = vmatprep.subr.bf16.mxu0 %v6484_v50  ;;  %v5275_v53 = vld [vmem:[%s8808_s5 + $0x80] sm:$0xff] }
 0x470   : > { %v5259_v4 = vld [vmem:[%s8808_s5] sm:$0xff]  ;;  %v6440_v33 = vpack.c.bf16 %v5276_v3, %v5275_v53 }
 0x471   : > { %v4856_v15 = vmax.f32 %v4854_v30, %v4855_v22  ;;  %v4858_v18 = vadd.f32 %v8380_v52, %v4838_v8  ;;  %v4859_v19 = vadd.f32 %v8380_v52, %v4847_v57  ;;  %v4861_v2 = vmax.f32 %v4857_v16, 0.0  ;;  %v5260_v30 = vld [vmem:[%s8808_s5 + $0x8] sm:$0xff]  ;;  %v5277_v8 = vld [vmem:[%s8808_s5 + $0x90] sm:$0xff]  ;;  %v5278_v57 = vld [vmem:[%s8808_s5 + $0x98] sm:$0xff] }
 0x472   : > { %6487 = vmatpush3.bf16.msra.mxu0 %v6484_v50  ;;  %v6442_v22 = vpack.c.bf16 %v5260_v30, %v5259_v4  ;;  %v5261_v16 = vld [vmem:[%s8808_s5 + $0x10] sm:$0xff]  ;;  %6441 = vmatprep.subr.bf16.mxu1 %v6440_v33 }
 0x473   : > { %v4862_v21 = vmax.f32 %v4858_v18, 0.0  ;;  %v4860_v61 = vadd.f32 %v8380_v52, %v4856_v15  ;;  %v4863_v31 = vmax.f32 %v4859_v19, 0.0  ;;  %v5125_v14 = vpop.permute.xlu1 %5124  ;;  %6489 = vmatprep.subr.bf16.mxu0 %v6488_v23  ;;  %v6444_v15 = vpack.c.bf16 %v5278_v57, %v5277_v8  ;;  %v5262_v18 = vld [vmem:[%s8808_s5 + $0x18] sm:$0xff]  ;;  %v5279_v19 = vld [vmem:[%s8808_s5 + $0xa0] sm:$0xff] }
 0x474   : > { %5131 = vst.msk [vmem:[#allocation9] sm:$0xff] %vm5130_vm7, %v5125_v14  ;;  %6443 = vmatpush3.bf16.msra.mxu1 %v6442_v22 }
 0x475   : > { %v4869_v7 = vrot.slane %v4862_v21, 7  ;;  %v4864_v39 = vmax.f32 %v4860_v61, 0.0  ;;  %v4871_v25 = vrot.slane %v4863_v31, 6  ;;  %v5280_v61 = vld [vmem:[%s8808_s5 + $0xa8] sm:$0xff]  ;;  %v6446_v31 = vpack.c.bf16 %v5262_v18, %v5261_v16  ;;  %6445 = vmatprep.subr.bf16.mxu1 %v6444_v15 }
 0x476   : > { %6491 = vmatpush3.bf16.msra.mxu0 %v6488_v23 }
 0x477   : > { %v4870_v26 = vsel %vm8968_vm0, %v4869_v7, %v4861_v2  ;;  %v4873_v28 = vrot.slane %v4864_v39, 5  ;;  %v5144_v29 = vpop.permute.xlu1 %5143  ;;  %6493 = vmatprep.subr.bf16.mxu0 %v6492_v46  ;;  %v6448_v7 = vpack.c.bf16 %v5280_v61, %v5279_v19  ;;  %v5263_v39 = vld [vmem:[%s8808_s5 + $0x20] sm:$0xff] }
 0x478   : > { %v4872_v32 = vsel %vm2640_vm2, %v4871_v25, %v4870_v26  ;;  %5150 = vst.msk [vmem:[#allocation9] sm:$0xff] %vm5149_vm11, %v5144_v29  ;;  %v5264_v25 = vld [vmem:[%s8808_s5 + $0x28] sm:$0xff]  ;;  %v5281_v29 = vld [vmem:[%s8808_s5 + $0xb0] sm:$0xff]  ;;  %6447 = vmatpush3.bf16.msra.mxu1 %v6446_v31 }
 0x479   : > { %v4874_v17 = vsel %vm8969_vm9, %v4873_v28, %v4872_v32  ;;  %v5282_v32 = vld [vmem:[%s8808_s5 + $0xb8] sm:$0xff]  ;;  %6449 = vmatprep.subr.bf16.mxu1 %v6448_v7 }
 0x47a   : > { %4877 = vst.msk [vmem:[#allocation8 + $0x28] sm:$0xf] %vm4773_vm13, %v4874_v17  ;;  %6495 = vmatpush3.bf16.msra.mxu0 %v6492_v46  ;;  %v6452_v38 = vpack.c.bf16 %v5282_v32, %v5281_v29 }
 0x47b   : > { %6497 = vmatprep.subr.bf16.mxu0 %v6496_v20 }
 0x47e   : > { %6499 = vmatpush3.bf16.msra.mxu0 %v6496_v20 }
 0x47f   : > { %6501 = vmatprep.subr.bf16.mxu0 %v6500_v60 }
 0x481   : > { %v6623_v5 = vld [vmem:[#allocation8 + $0x17] ss:$16 sps:$4 sm:$0xff]  }
 0x482   : > { %v6624_v34 = vld [vmem:[#allocation8 + $0x19] ss:$16 sps:$4 sm:$0xff]   ;;  %5162 = vrot.lane.b32.xlu1 %v6623_v5, %s6668_s18  ;;  %6503 = vmatpush3.bf16.msra.mxu0 %v6500_v60 }
 0x483   : > { %5195 = vrot.lane.b32.xlu0 %v6624_v34, %s6665_s12  ;;  %v6632_v24 = vld [vmem:[#allocation8 + $0x18] ss:$16 sps:$4 sm:$0xff]  }
 0x484   : > { %5183 = vst.msk [vmem:[#allocation9 + $0x8] sm:$0xff] %vm4654_vm10, %v6632_v24 }
 0x490   : > { %v6081_v44 = vpop.f32.mrb[8].mxu1 }
 0x491   : > { %v6082_v36 = vpop.f32.mrb[9].mxu1 }
 0x492   : > { %v6083_v63 = vadd.f32 %v6082_v36, %v6081_v44  ;;  %v6450_v36 = vpack.c.bf16 %v5264_v25, %v5263_v39 }
 0x494   : > { %4659 = vst.msk [vmem:[#allocation7 + $0x20] sm:$0xff] %vm4654_vm10, %v6083_v63  ;;  %v5265_v63 = vld [vmem:[%s8808_s5 + $0x30] sm:$0xff]  ;;  %6451 = vmatpush3.bf16.msra.mxu1 %v6450_v36 }
 0x495   : > { %v6454_v54 = vpack.c.bf16 %v5266_v47, %v5265_v63  ;;  %6453 = vmatprep.subr.bf16.mxu1 %v6452_v38  ;;  %v5287_v47 = vld [vmem:[%s8808_s5 + $0xe0] sm:$0xff] }
 0x498   : > { %6455 = vmatpush3.bf16.msra.mxu1 %v6454_v54 }
 0x499   : > { %6457 = vmatprep.subr.bf16.mxu1 %v6456_v56 }
 0x49b   : > { %v4878_v40 = vld [vmem:[#allocation7 + $0x20] sm:$0xff] }
 0x49c   : > { %v4882_v0 = vcombine.high %v4878_v40, %v4878_v40  ;;  %v4889_v6 = vrot.slane %v4878_v40, %v7543_v9 }
 0x49e   : > { %v4896_v21 = vrot.slane %v4882_v0, %v7543_v9  ;;  %v4897_v14 = vcombine.high %v4889_v6, %v4889_v6  ;;  %v4924_v5 = vsel %vm4710_vm12, %v4889_v6, -inf }
 0x4a0   : > { %v4898_v17 = vcombine.high %v4896_v21, %v4896_v21  ;;  %v4933_v37 = vsel %vm4710_vm12, %v4897_v14, -inf  ;;  %v4942_v43 = vsel %vm4710_vm12, %v4896_v21, -inf }
 0x4a2   : > { %v4951_v51 = vsel %vm4710_vm12, %v4898_v17, -inf }
 0x4bc   : > { %v6084_v12 = vpop.f32.mrb[10].mxu1 }
 0x4bd   : > { %v6085_v62 = vpop.f32.mrb[11].mxu1 }
 0x4be   : > { %v6086_v11 = vadd.f32 %v6085_v62, %v6084_v12 }
 0x4c0   : > { %4660 = vst.msk [vmem:[#allocation7 + $0x28] sm:$0xff] %vm4654_vm10, %v6086_v11  ;;  %v6458_v11 = vpack.c.bf16 %v5268_v59, %v5267_v58 }
 0x4c2   : > { %6459 = vmatpush3.bf16.msra.mxu1 %v6458_v11 }
 0x4c7   : > { %v4879_v2 = vld [vmem:[#allocation7 + $0x28] sm:$0xff] }
 0x4c8   : > { %v4899_v26 = vcombine.high %v4879_v2, %v4879_v2  ;;  %v4906_v28 = vrot.slane %v4879_v2, %v7543_v9 }
 0x4ca   : > { %v4913_v34 = vrot.slane %v4899_v26, %v7543_v9  ;;  %v4914_v24 = vcombine.high %v4906_v28, %v4906_v28  ;;  %v4925_v44 = vsel %vm4710_vm12, %v4906_v28, -inf }
 0x4cb   : > { %v4926_v27 = vmax.f32 %v4924_v5, %v4925_v44  ;;  %v5269_v44 = vld [vmem:[%s8808_s5 + $0x50] sm:$0xff] }
 0x4cc   : > { %v4915_v55 = vcombine.high %v4913_v34, %v4913_v34  ;;  %v4934_v45 = vsel %vm4710_vm12, %v4914_v24, -inf  ;;  %v4943_v48 = vsel %vm4710_vm12, %v4913_v34, -inf  ;;  %v5285_v34 = vld [vmem:[%s8808_s5 + $0xd0] sm:$0xff]  ;;  %v5286_v24 = vld [vmem:[%s8808_s5 + $0xd8] sm:$0xff] }
 0x4cd   : > { %v4927_v49 = vrot.slane %v4926_v27, 4  ;;  %v4935_v50 = vmax.f32 %v4933_v37, %v4934_v45  ;;  %v4944_v10 = vmax.f32 %v4942_v43, %v4943_v48  ;;  %v6460_v63 = vpack.c.bf16 %v5286_v24, %v5285_v34  ;;  %v5270_v37 = vld [vmem:[%s8808_s5 + $0x58] sm:$0xff]  ;;  %v5289_v45 = vld [vmem:[%s8808_s5 + $0xf0] sm:$0xff] }
 0x4ce   : > { %v4952_v23 = vsel %vm4710_vm12, %v4915_v55, -inf  ;;  %v6462_v38 = vpack.c.bf16 %v5270_v37, %v5269_v44  ;;  %v6464_v43 = vpack.c.bf16 %v5288_v41, %v5287_v47  ;;  %v5272_v55 = vld [vmem:[%s8808_s5 + $0x68] sm:$0xff]  ;;  %v5290_v48 = vld [vmem:[%s8808_s5 + $0xf8] sm:$0xff] }
 0x4cf   : > { %v4928_v46 = vmax.f32 %v4926_v27, %v4927_v49  ;;  %v4936_v35 = vrot.slane %v4935_v50, 4  ;;  %v4945_v13 = vrot.slane %v4944_v10, 4  ;;  %v4953_v20 = vmax.f32 %v4951_v51, %v4952_v23  ;;  %6461 = vmatprep.subr.bf16.mxu1 %v6460_v63  ;;  %v5274_v51 = vld [vmem:[%s8808_s5 + $0x78] sm:$0xff] }
 0x4d0   : > { %6463 = vmatpush3.bf16.msra.mxu1 %v6462_v38  ;;  %v6466_v49 = vpack.c.bf16 %v5272_v55, %v5271_v42 }
 0x4d1   : > { %v4929_v60 = vrot.slane %v4928_v46, 2  ;;  %v4937_v12 = vmax.f32 %v4935_v50, %v4936_v35  ;;  %v4946_v62 = vmax.f32 %v4944_v10, %v4945_v13  ;;  %v4954_v40 = vrot.slane %v4953_v20, 4  ;;  %v5273_v10 = vld [vmem:[%s8808_s5 + $0x70] sm:$0xff]  ;;  %6465 = vmatprep.subr.bf16.mxu1 %v6464_v43 }
 0x4d2   : > { %v6468_v50 = vpack.c.bf16 %v5290_v48, %v5289_v45  ;;  %v6470_v23 = vpack.c.bf16 %v5274_v51, %v5273_v10 }
 0x4d3   : > { %v4930_v0 = vmax.f32 %v4928_v46, %v4929_v60  ;;  %v4938_v53 = vrot.slane %v4937_v12, 2  ;;  %v4947_v3 = vrot.slane %v4946_v62, 2  ;;  %v4955_v4 = vmax.f32 %v4953_v20, %v4954_v40 }
 0x4d4   : > { %6467 = vmatpush3.bf16.msra.mxu1 %v6466_v49 }
 0x4d5   : > { %v4931_v6 = vrot.slane %v4930_v0, 1  ;;  %v4939_v33 = vmax.f32 %v4937_v12, %v4938_v53  ;;  %v4948_v30 = vmax.f32 %v4946_v62, %v4947_v3  ;;  %v4956_v8 = vrot.slane %v4955_v4, 2  ;;  %6469 = vmatprep.subr.bf16.mxu1 %v6468_v50 }
 0x4d7   : > { %v4932_v57 = vmax.f32 %v4930_v0, %v4931_v6  ;;  %v4940_v22 = vrot.slane %v4939_v33, 1  ;;  %v4949_v15 = vrot.slane %v4948_v30, 1  ;;  %v4957_v16 = vmax.f32 %v4955_v4, %v4956_v8 }
 0x4d8   : > { %6471 = vmatpush3.bf16.msra.mxu1 %v6470_v23 }
 0x4d9   : > { %v4941_v18 = vmax.f32 %v4939_v33, %v4940_v22  ;;  %v4950_v19 = vmax.f32 %v4948_v30, %v4949_v15  ;;  %v4958_v21 = vrot.slane %v4957_v16, 1  ;;  %v4960_v31 = vadd.f32 %v8380_v52, %v4932_v57 }
 0x4db   : > { %v4959_v61 = vmax.f32 %v4957_v16, %v4958_v21  ;;  %v4961_v14 = vadd.f32 %v8380_v52, %v4941_v18  ;;  %v4962_v2 = vadd.f32 %v8380_v52, %v4950_v19  ;;  %v4964_v26 = vmax.f32 %v4960_v31, 0.0 }
 0x4dd   : > { %v4965_v7 = vmax.f32 %v4961_v14, 0.0  ;;  %v4963_v39 = vadd.f32 %v8380_v52, %v4959_v61  ;;  %v4966_v25 = vmax.f32 %v4962_v2, 0.0 }
 0x4df   : > { %v4972_v28 = vrot.slane %v4965_v7, 7  ;;  %v4967_v29 = vmax.f32 %v4963_v39, 0.0  ;;  %v4974_v32 = vrot.slane %v4966_v25, 6 }
 0x4e1   : > { %v4973_v17 = vsel %vm8970_vm4, %v4972_v28, %v4964_v26  ;;  %v4976_v5 = vrot.slane %v4967_v29, 5 }
 0x4e2   : > { %v4975_v36 = vsel %vm2640_vm2, %v4974_v32, %v4973_v17 }
 0x4e3   : > { %v4977_v27 = vsel %vm8971_vm5, %v4976_v5, %v4975_v36 }
 0x4e4   : > { %4980 = vst.msk [vmem:[#allocation8 + $0x38] sm:$0xf] %vm4773_vm13, %v4977_v27 }
 0x4eb   : > { %v6627_v54 = vld [vmem:[#allocation8 + $0x28] ss:$16 sps:$4 sm:$0xff]  }
 0x4ec   : > { %v6628_v56 = vld [vmem:[#allocation8 + $0x27] ss:$16 sps:$4 sm:$0xff]   ;;  %5126 = vrot.lane.b32.xlu1 %v6627_v54, %s6665_s12 }
 0x4ed   : > { %v6629_v46 = vld [vmem:[#allocation8 + $0x29] ss:$16 sps:$4 sm:$0xff]   ;;  %5213 = vrot.lane.b32.xlu0 %v6628_v56, %s6666_s21 }
 0x4ee   : > { %v6631_v35 = vld [vmem:[#allocation8 + $0x29] ss:$16 sps:$4 sm:$0xff]  }
 0x4ef   : > { %v6640_v13 = vld [vmem:[#allocation8 + $0x27] ss:$16 sps:$4 sm:$0xff]   ;;  %5251 = vst.msk [vmem:[#allocation9 + $0x10] sm:$0xff] %vm4654_vm10, %v6631_v35 }
 0x4f0   : > { %v6630_v20 = vld [vmem:[#allocation8 + $0x28] ss:$16 sps:$4 sm:$0xff]   ;;  %5145 = vrot.lane.b32.xlu1 %v6629_v46, %s6666_s21  ;;  %5113 = vst.msk [vmem:[#allocation9 + $0x18] sm:$0xff] %vm4654_vm10, %v6640_v13 }
 0x4f1   : > { %5231 = vrot.lane.b32.xlu0 %v6630_v20, %s6668_s18 }
 0x4f4   : > { %v5163_v58 = vpop.permute.xlu1 %5162 }
 0x4f5   : > { %5169 = vst.msk [vmem:[#allocation9] sm:$0xff] %vm5168_vm1, %v5163_v58  ;;  %v5196_v60 = vpop.permute.xlu0 %5195 }
 0x4f6   : > { %v5255_v59 = vld [vmem:[#allocation9 + $0x10] sm:$0xff]  ;;  %5201 = vst.msk [vmem:[#allocation9 + $0x8] sm:$0xff] %vm5130_vm7, %v5196_v60 }
 0x4f7   : > { %6297 = vmatprep.mubr.f32.mxu0 %v5255_v59 }
 0x4fe   : > { %v6087_v12 = vpop.f32.mrb[12].mxu1 }
 0x4ff   : > { %v6088_v62 = vpop.f32.mrb[13].mxu1 }
 0x500   : > { %v6089_v40 = vadd.f32 %v6088_v62, %v6087_v12 }
 0x502   : > { %4661 = vst.msk [vmem:[#allocation7 + $0x30] sm:$0xff] %vm4654_vm10, %v6089_v40 }
 0x506   : > { %v6090_v11 = vpop.f32.mrb[14].mxu1 }
 0x507   : > { %v6091_v0 = vpop.f32.mrb[15].mxu1 }
 0x508   : > { %v6092_v53 = vadd.f32 %v6091_v0, %v6090_v11 }
 0x509   : > { %v4981_v3 = vld [vmem:[#allocation7 + $0x30] sm:$0xff] }
 0x50a   : > { %4662 = vst.msk [vmem:[#allocation7 + $0x38] sm:$0xff] %vm4654_vm10, %v6092_v53  ;;  %v4985_v4 = vcombine.high %v4981_v3, %v4981_v3  ;;  %v4992_v6 = vrot.slane %v4981_v3, %v7543_v9 }
 0x50c   : > { %v4999_v33 = vrot.slane %v4985_v4, %v7543_v9  ;;  %v5000_v30 = vcombine.high %v4992_v6, %v4992_v6  ;;  %v5027_v15 = vsel %vm4710_vm12, %v4992_v6, -inf }
 0x50e   : > { %v5001_v16 = vcombine.high %v4999_v33, %v4999_v33  ;;  %v5036_v61 = vsel %vm4710_vm12, %v5000_v30, -inf  ;;  %v5045_v14 = vsel %vm4710_vm12, %v4999_v33, -inf }
 0x510   : > { %v5054_v29 = vsel %vm4710_vm12, %v5001_v16, -inf }
 0x511   : > { %v4982_v8 = vld [vmem:[#allocation7 + $0x38] sm:$0xff] }
 0x512   : > { %v5002_v57 = vcombine.high %v4982_v8, %v4982_v8  ;;  %v5009_v22 = vrot.slane %v4982_v8, %v7543_v9 }
 0x514   : > { %v5016_v18 = vrot.slane %v5002_v57, %v7543_v9  ;;  %v5017_v19 = vcombine.high %v5009_v22, %v5009_v22  ;;  %v5028_v21 = vsel %vm4710_vm12, %v5009_v22, -inf }
 0x515   : > { %v5029_v31 = vmax.f32 %v5027_v15, %v5028_v21  ;;  %v5253_v21 = vld [vmem:[#allocation9] sm:$0xff] }
 0x516   : > { %v5018_v2 = vcombine.high %v5016_v18, %v5016_v18  ;;  %v5037_v7 = vsel %vm4710_vm12, %v5017_v19, -inf  ;;  %v5046_v39 = vsel %vm4710_vm12, %v5016_v18, -inf }
 0x517   : > { %v5030_v25 = vrot.slane %v5029_v31, 4  ;;  %v5038_v26 = vmax.f32 %v5036_v61, %v5037_v7  ;;  %v5047_v28 = vmax.f32 %v5045_v14, %v5046_v39 }
 0x518   : > { %v5055_v32 = vsel %vm4710_vm12, %v5018_v2, -inf  ;;  %vm5484_vm12 = vcmask 517120  }
 0x519   : > { %v5031_v17 = vmax.f32 %v5029_v31, %v5030_v25  ;;  %v5039_v5 = vrot.slane %v5038_v26, 4  ;;  %v5048_v34 = vrot.slane %v5047_v28, 4  ;;  %v5056_v24 = vmax.f32 %v5054_v29, %v5055_v32  ;;  %v5559_v25 = vld [vmem:[%s8810_s7] sm:$0xff] }
 0x51a   : > { %v6670_v29 = vmov 0.0|0.0  }
 0x51b   : > { %v5032_v44 = vrot.slane %v5031_v17, 2  ;;  %v5040_v36 = vmax.f32 %v5038_v26, %v5039_v5  ;;  %v5049_v63 = vmax.f32 %v5047_v28, %v5048_v34  ;;  %v5057_v37 = vrot.slane %v5056_v24, 4  ;;  %v5560_v26 = vld [vmem:[%s8810_s7 + $0x8] sm:$0xff]  ;;  %v5959_v28 = vld [vmem:[%s8810_s7 + $0x40] sm:$0xff]  ;;  %6504 = vmatprep.subr.bf16.mxu0 %v6670_v29  ;;  %6516 = vmatprep.subr.bf16.mxu1 %v6670_v29  ;;  %v5561_v5 = vld [vmem:[%s8810_s7 + $0x10] sm:$0xff] }
 0x51c   : > { %v6505_v32 = vpack.c.bf16 %v5560_v26, %v5559_v25  ;;  %v5562_v34 = vld [vmem:[%s8810_s7 + $0x18] sm:$0xff]  ;;  %v5970_v26 = vld [vmem:[%s8810_s7 + $0x90] sm:$0xff] }
 0x51d   : > { %v5033_v27 = vmax.f32 %v5031_v17, %v5032_v44  ;;  %v5041_v38 = vrot.slane %v5040_v36, 2  ;;  %v5050_v47 = vrot.slane %v5049_v63, 2  ;;  %v5058_v41 = vmax.f32 %v5056_v24, %v5057_v37  ;;  %v5960_v17 = vld [vmem:[%s8810_s7 + $0x48] sm:$0xff]  ;;  %v5961_v44 = vld [vmem:[%s8810_s7 + $0x50] sm:$0xff] }
 0x51e   : > { %v6517_v24 = vpack.c.bf16 %v5960_v17, %v5959_v28  ;;  %v5971_v28 = vld [vmem:[%s8810_s7 + $0x98] sm:$0xff]  ;;  %v5972_v17 = vld [vmem:[%s8810_s7 + $0xa0] sm:$0xff] }
 0x51f   : > { %v5034_v42 = vrot.slane %v5033_v27, 1  ;;  %v5042_v43 = vmax.f32 %v5040_v36, %v5041_v38  ;;  %v5051_v55 = vmax.f32 %v5049_v63, %v5050_v47  ;;  %v5059_v45 = vrot.slane %v5058_v41, 2  ;;  %v5962_v36 = vld [vmem:[%s8810_s7 + $0x58] sm:$0xff]  ;;  %v5564_v38 = vld [vmem:[%s8810_s7 + $0x28] sm:$0xff]  ;;  %v5963_v47 = vld [vmem:[%s8810_s7 + $0x60] sm:$0xff] }
 0x520   : > { %v6508_v63 = vpack.c.bf16 %v5562_v34, %v5561_v5  ;;  %v6520_v37 = vpack.c.bf16 %v5962_v36, %v5961_v44  ;;  %v5973_v5 = vld [vmem:[%s8810_s7 + $0xa8] sm:$0xff]  ;;  %v5975_v44 = vld [vmem:[%s8810_s7 + $0xb8] sm:$0xff] }
 0x521   : > { %v5035_v48 = vmax.f32 %v5033_v27, %v5034_v42  ;;  %v5043_v49 = vrot.slane %v5042_v43, 1  ;;  %v5052_v50 = vrot.slane %v5051_v55, 1  ;;  %v5060_v10 = vmax.f32 %v5058_v41, %v5059_v45  ;;  %v5563_v27 = vld [vmem:[%s8810_s7 + $0x20] sm:$0xff]  ;;  %v5964_v41 = vld [vmem:[%s8810_s7 + $0x68] sm:$0xff]  ;;  %v5566_v45 = vld [vmem:[%s8810_s7 + $0x38] sm:$0xff] }
 0x522   : > { %v6511_v42 = vpack.c.bf16 %v5564_v38, %v5563_v27  ;;  %v6535_v34 = vpack.c.bf16 %v5973_v5, %v5972_v17 }
 0x523   : > { %v5044_v51 = vmax.f32 %v5042_v43, %v5043_v49  ;;  %v5053_v23 = vmax.f32 %v5051_v55, %v5052_v50  ;;  %v5061_v54 = vrot.slane %v5060_v10, 1  ;;  %v5063_v46 = vadd.f32 %v8380_v52, %v5035_v48  ;;  %v5565_v55 = vld [vmem:[%s8810_s7 + $0x30] sm:$0xff]  ;;  %v5966_v49 = vld [vmem:[%s8810_s7 + $0x78] sm:$0xff] }
 0x524   : > { %v6523_v43 = vpack.c.bf16 %v5964_v41, %v5963_v47  ;;  %v5965_v48 = vld [vmem:[%s8810_s7 + $0x70] sm:$0xff]  ;;  %v6514_v50 = vpack.c.bf16 %v5566_v45, %v5565_v55 }
 0x525   : > { %v5062_v56 = vmax.f32 %v5060_v10, %v5061_v54  ;;  %v5064_v35 = vadd.f32 %v8380_v52, %v5044_v51  ;;  %v5065_v13 = vadd.f32 %v8380_v52, %v5053_v23  ;;  %v5067_v60 = vmax.f32 %v5063_v46, 0.0 }
 0x526   : > { %v6526_v10 = vpack.c.bf16 %v5966_v49, %v5965_v48 }
 0x527   : > { %v5068_v20 = vmax.f32 %v5064_v35, 0.0  ;;  %v5066_v58 = vadd.f32 %v8380_v52, %v5062_v56  ;;  %v5069_v59 = vmax.f32 %v5065_v13, 0.0 }
 0x529   : > { %v5075_v12 = vrot.slane %v5068_v20, 7  ;;  %v5070_v62 = vmax.f32 %v5066_v58, 0.0  ;;  %v5077_v40 = vrot.slane %v5069_v59, 6 }
 0x52b   : > { %v5076_v11 = vsel %vm8972_vm3, %v5075_v12, %v5067_v60  ;;  %v5079_v0 = vrot.slane %v5070_v62, 5 }
 0x52c   : > { %v5078_v53 = vsel %vm2640_vm2, %v5077_v40, %v5076_v11  ;;  %vm6671_vm2 = vmmov 0  }
 0x52d   : > { %v5080_v3 = vsel %vm8973_vm14, %v5079_v0, %v5078_v53 }
 0x52e   : > { %5083 = vst.msk [vmem:[#allocation8 + $0x48] sm:$0xf] %vm4773_vm13, %v5080_v3  ;;  %vm5899_vm13 = vcmask 0  }
 0x535   : > { %v6635_v4 = vld [vmem:[#allocation8 + $0x39] ss:$16 sps:$4 sm:$0xff]  }
 0x536   : > { %v6636_v6 = vld [vmem:[#allocation8 + $0x37] ss:$16 sps:$4 sm:$0xff]   ;;  %5197 = vrot.lane.b32.xlu0 %v6635_v4, %s6665_s12  ;;  %s384_s12 = scalar_lea.vmem %s8814_s11, %s8975_s20 }
 0x537   : > { %v6638_v33 = vld [vmem:[#allocation8 + $0x49] ss:$16 sps:$4 sm:$0xff]   ;;  %5164 = vrot.lane.b32.xlu1 %v6636_v6, %s6668_s18 }
 0x538   : > { %v6641_v52 = vld [vmem:[#allocation8 + $0x38] ss:$16 sps:$4 sm:$0xff]   ;;  %5252 = vst.msk [vmem:[#allocation9 + $0x28] sm:$0xff] %vm4654_vm10, %v6638_v33 }
 0x539   : > { %v6637_v30 = vld [vmem:[#allocation8 + $0x47] ss:$16 sps:$4 sm:$0xff]   ;;  %5184 = vst.msk [vmem:[#allocation9 + $0x20] sm:$0xff] %vm4654_vm10, %v6641_v52  ;;  %vm5457_vm10 = vcmask 523264  }
 0x53a   : > { %5215 = vrot.lane.b32.xlu0 %v6637_v30, %s6666_s21  ;;  %v6639_v8 = vld [vmem:[#allocation8 + $0x48] ss:$16 sps:$4 sm:$0xff]  }
 0x53e   : > { %5233 = vrot.lane.b32.xlu0 %v6639_v8, %s6668_s18 }
 0x53f   : > { %v5258_v57 = vld [vmem:[#allocation9 + $0x28] sm:$0xff] }
 0x540   : > { %6298 = vmatmul.mubr.f32.vlgmr.msra.gmra.mrb[32].mxu0 %v5258_v57 }
 0x541   : > { %6316 = vmatprep.mubr.msk.f32.mxu0 %vm6671_vm2, %v6654_v1  ;;  %6506 = vmatpush3.bf16.msra.mxu0 %v6505_v32  ;;  %v6532_v32 = vpack.c.bf16 %v5971_v28, %v5970_v26  ;;  %v5897_v26 = vld [vmem:[#allocation11] sm:$0x1] }
 0x542   : > { %6507 = vmatprep.subr.bf16.mxu0 %v6670_v29 }
 0x545   : > { %6509 = vmatpush3.bf16.msra.mxu0 %v6508_v63 }
 0x546   : > { %6510 = vmatprep.subr.bf16.mxu0 %v6670_v29 }
 0x549   : > { %6512 = vmatpush3.bf16.msra.mxu0 %v6511_v42 }
 0x54a   : > { %6513 = vmatprep.subr.bf16.mxu0 %v6670_v29 }
 0x54d   : > { %6515 = vmatpush3.bf16.msra.mxu0 %v6514_v50 }
 0x55e   : > { %v5127_v22 = vpop.permute.xlu1 %5126 }
 0x55f   : > { %5132 = vst.msk [vmem:[#allocation9 + $0x18] sm:$0xff] %vm5130_vm7, %v5127_v22  ;;  %v5214_v15 = vpop.permute.xlu0 %5213 }
 0x560   : > { %5219 = vst.msk [vmem:[#allocation9 + $0x8] sm:$0xff] %vm5149_vm11, %v5214_v15 }
 0x562   : > { %v5146_v16 = vpop.permute.xlu1 %5145 }
 0x563   : > { %5151 = vst.msk [vmem:[#allocation9 + $0x18] sm:$0xff] %vm5149_vm11, %v5146_v16  ;;  %v5232_v18 = vpop.permute.xlu0 %5231  ;;  %v8713_v16 = vld [vmem:[%s8809_s6] ss:$0 sm:$0xff] }
 0x564   : > { %5237 = vst.msk [vmem:[#allocation9 + $0x8] sm:$0xff] %vm5168_vm1, %v5232_v18 }
 0x56b   : > { %v5254_v19 = vld [vmem:[#allocation9 + $0x8] sm:$0xff] }
 0x56c   : > { %5371 = vmatprep.mubr.f32.mxu1 %v5254_v19 }
 0x56d   : > { %5372 = vmatmul.mubr.f32.vlgmr.msra.gmra.mrb[16].mxu1 %v5253_v21 }
 0x56e   : > { %6518 = vmatpush3.bf16.msra.mxu1 %v6517_v24  ;;  %v5974_v24 = vld [vmem:[%s8810_s7 + $0xb0] sm:$0xff] }
 0x56f   : > { %6519 = vmatprep.subr.bf16.mxu1 %v6670_v29  ;;  %v6538_v36 = vpack.c.bf16 %v5975_v44, %v5974_v24 }
 0x572   : > { %6521 = vmatpush3.bf16.msra.mxu1 %v6520_v37 }
 0x573   : > { %6522 = vmatprep.subr.bf16.mxu1 %v6670_v29 }
 0x576   : > { %6524 = vmatpush3.bf16.msra.mxu1 %v6523_v43 }
 0x577   : > { %6525 = vmatprep.subr.bf16.mxu1 %v6670_v29 }
 0x57a   : > { %6527 = vmatpush3.bf16.msra.mxu1 %v6526_v10 }
 0x57b   : > { %6528 = vmatprep.subr.bf16.mxu1 %v6670_v29 }
 0x5a8   : > { %v5198_v61 = vpop.permute.xlu0 %5197 }
 0x5a9   : > { %v5165_v31 = vpop.permute.xlu1 %5164  ;;  %5202 = vst.msk [vmem:[#allocation9 + $0x20] sm:$0xff] %vm5130_vm7, %v5198_v61 }
 0x5aa   : > { %5170 = vst.msk [vmem:[#allocation9 + $0x18] sm:$0xff] %vm5168_vm1, %v5165_v31  ;;  %v5968_v31 = vld [vmem:[%s8810_s7 + $0x80] sm:$0xff] }
 0x5ac   : > { %v5216_v14 = vpop.permute.xlu0 %5215 }
 0x5ad   : > { %5220 = vst.msk [vmem:[#allocation9 + $0x20] sm:$0xff] %vm5149_vm11, %v5216_v14  ;;  %v5969_v14 = vld [vmem:[%s8810_s7 + $0x88] sm:$0xff] }
 0x5b0   : > { %v5234_v2 = vpop.permute.xlu0 %5233 }
 0x5b1   : > { %5238 = vst.msk [vmem:[#allocation9 + $0x20] sm:$0xff] %vm5168_vm1, %v5234_v2  ;;  %v5256_v39 = vld [vmem:[#allocation9 + $0x18] sm:$0xff] }
 0x5b8   : > { %v5257_v7 = vld [vmem:[#allocation9 + $0x20] sm:$0xff] }
 0x5b9   : > { %5376 = vmatprep.mubr.f32.mxu1 %v5257_v7 }
 0x5ba   : > { %5377 = vmatmul.mubr.f32.gmra.mrb[18].mxu1 %v5256_v39  ;;  %v6529_v39 = vpack.c.bf16 %v5969_v14, %v5968_v31 }
 0x5bb   : > { %6335 = vmatprep.mubr.msk.f32.mxu1 %vm6671_vm2, %v6654_v1 }
 0x613   : > { %v8701_v51 = vpop.f32.mrb[32].mxu0 }
 0x614   : > { %v5448_v23 = vpop.f32.mrb[33].mxu0 }
 0x640   : > { %v6125_v54 = vpop.f32.mrb[16].mxu1 }
 0x641   : > { %v6126_v56 = vpop.f32.mrb[17].mxu1 }
 0x642   : > { %v6127_v46 = vadd.f32 %v6126_v56, %v6125_v54 }
 0x644   : > { %v5449_v35 = vadd.f32 %v6127_v46, %v5448_v23 }
 0x646   : > { %5458 = vst.msk [vmem:[#allocation10] sm:$0xff] %vm5457_vm10, %v5449_v35 }
 0x64d   : > { %v5461_v13 = vld [vmem:[#allocation10] sm:$0xff] }
 0x64e   : > { %v5463_v20 = vcombine.high %v5461_v13, %v5461_v13  ;;  %v5470_v58 = vrot.slane %v5461_v13, %v7543_v9 }
 0x650   : > { %v5477_v59 = vrot.slane %v5463_v20, %v7543_v9  ;;  %v5478_v60 = vcombine.high %v5470_v58, %v5470_v58  ;;  %v5485_v62 = vsel %vm5484_vm12, %v5470_v58, -inf }
 0x652   : > { %v5479_v12 = vcombine.high %v5477_v59, %v5477_v59  ;;  %v5486_v40 = vsel %vm5484_vm12, %v5477_v59, -inf  ;;  %v5494_v0 = vsel %vm5484_vm12, %v5478_v60, -inf  ;;  %v5977_v59 = vld [vmem:[%s8810_s7 + $0xc0] sm:$0xff]  ;;  %v5978_v60 = vld [vmem:[%s8810_s7 + $0xc8] sm:$0xff] }
 0x653   : > { %v5487_v11 = vmax.f32 %v5485_v62, %v5486_v40  ;;  %v6541_v40 = vpack.c.bf16 %v5978_v60, %v5977_v59 }
 0x654   : > { %v5495_v53 = vsel %vm5484_vm12, %v5479_v12, -inf }
 0x655   : > { %v5488_v3 = vrot.slane %v5487_v11, 4  ;;  %v5496_v4 = vmax.f32 %v5494_v0, %v5495_v53  ;;  %v5979_v0 = vld [vmem:[%s8810_s7 + $0xd0] sm:$0xff]  ;;  %v5980_v53 = vld [vmem:[%s8810_s7 + $0xd8] sm:$0xff] }
 0x657   : > { %v5489_v6 = vmax.f32 %v5487_v11, %v5488_v3  ;;  %v5497_v33 = vrot.slane %v5496_v4, 4 }
 0x659   : > { %v5490_v52 = vrot.slane %v5489_v6, 2  ;;  %v5498_v30 = vmax.f32 %v5496_v4, %v5497_v33  ;;  %v6544_v4 = vpack.c.bf16 %v5980_v53, %v5979_v0  ;;  %v5982_v33 = vld [vmem:[%s8810_s7 + $0xe8] sm:$0xff] }
 0x65b   : > { %v5491_v8 = vmax.f32 %v5489_v6, %v5490_v52  ;;  %v5499_v57 = vrot.slane %v5498_v30, 2  ;;  %v5981_v6 = vld [vmem:[%s8810_s7 + $0xe0] sm:$0xff] }
 0x65d   : > { %v5492_v22 = vrot.slane %v5491_v8, 1  ;;  %v5500_v15 = vmax.f32 %v5498_v30, %v5499_v57  ;;  %v6547_v30 = vpack.c.bf16 %v5982_v33, %v5981_v6 }
 0x65f   : > { %v5493_v18 = vmax.f32 %v5491_v8, %v5492_v22  ;;  %v5501_v19 = vrot.slane %v5500_v15, 1  ;;  %v5983_v8 = vld [vmem:[%s8810_s7 + $0xf0] sm:$0xff] }
 0x661   : > { %v5509_v21 = vadd.f32 %v8713_v16, %v5493_v18  ;;  %v5502_v61 = vmax.f32 %v5500_v15, %v5501_v19 }
 0x663   : > { %v5511_v2 = vmax.f32 %v5509_v21, 0.0  ;;  %v5510_v7 = vadd.f32 %v8713_v16, %v5502_v61  ;;  %v5558_v61 = vld [vmem:[%s8811_s8] sm:$0x1] }
 0x665   : > { %6317 = vmatmul.mubr.msk.f32.vlgmr.msra.gmra.mrb[34].mxu0 %vm5457_vm10, %v5511_v2  ;;  %v5512_v25 = vmax.f32 %v5510_v7, 0.0 }
 0x667   : > { %6336 = vmatmul.mubr.msk.f32.vlgmr.msra.gmra.mrb[20].mxu1 %vm5457_vm10, %v5512_v25 }
 0x668   : > { %6530 = vmatpush3.bf16.msra.mxu1 %v6529_v39  ;;  %6354 = vmatprep.mubr.msk.f32.mxu1 %vm6671_vm2, %v6654_v1 }
 0x669   : > { %6531 = vmatprep.subr.bf16.mxu1 %v6670_v29 }
 0x66c   : > { %6533 = vmatpush3.bf16.msra.mxu1 %v6532_v32 }
 0x66d   : > { %6534 = vmatprep.subr.bf16.mxu1 %v6670_v29 }
 0x670   : > { %6536 = vmatpush3.bf16.msra.mxu1 %v6535_v34 }
 0x671   : > { %6537 = vmatprep.subr.bf16.mxu1 %v6670_v29 }
 0x674   : > { %6539 = vmatpush3.bf16.msra.mxu1 %v6538_v36 }
 0x675   : > { %6540 = vmatprep.subr.bf16.mxu1 %v6670_v29 }
 0x68d   : > { %v6128_v63 = vpop.f32.mrb[18].mxu1 }
 0x68e   : > { %v6129_v37 = vpop.f32.mrb[19].mxu1 }
 0x68f   : > { %v6130_v27 = vadd.f32 %v6129_v37, %v6128_v63 }
 0x691   : > { %v5454_v38 = vadd.f32 %v8701_v51, %v6130_v27 }
 0x693   : > { %5459 = vst.msk [vmem:[#allocation10 + $0x8] sm:$0xff] %vm5457_vm10, %v5454_v38 }
 0x69a   : > { %v5513_v47 = vld [vmem:[#allocation10 + $0x8] sm:$0xff] }
 0x69b   : > { %v5515_v41 = vcombine.high %v5513_v47, %v5513_v47  ;;  %v5522_v42 = vrot.slane %v5513_v47, %v7543_v9 }
 0x69d   : > { %v5529_v43 = vrot.slane %v5515_v41, %v7543_v9  ;;  %v5530_v55 = vcombine.high %v5522_v42, %v5522_v42  ;;  %v5536_v45 = vsel %vm5484_vm12, %v5522_v42, -inf }
 0x69f   : > { %v5537_v48 = vsel %vm5484_vm12, %v5529_v43, -inf  ;;  %v5531_v49 = vcombine.high %v5529_v43, %v5529_v43  ;;  %v5545_v10 = vsel %vm5484_vm12, %v5530_v55, -inf }
 0x6a0   : > { %v5538_v50 = vmax.f32 %v5536_v45, %v5537_v48 }
 0x6a1   : > { %v5546_v23 = vsel %vm5484_vm12, %v5531_v49, -inf }
 0x6a2   : > { %v5539_v51 = vrot.slane %v5538_v50, 4  ;;  %v5547_v54 = vmax.f32 %v5545_v10, %v5546_v23 }
 0x6a4   : > { %v5540_v56 = vmax.f32 %v5538_v50, %v5539_v51  ;;  %v5548_v46 = vrot.slane %v5547_v54, 4 }
 0x6a6   : > { %v5541_v35 = vrot.slane %v5540_v56, 2  ;;  %v5549_v20 = vmax.f32 %v5547_v54, %v5548_v46 }
 0x6a8   : > { %v5542_v13 = vmax.f32 %v5540_v56, %v5541_v35  ;;  %v5550_v12 = vrot.slane %v5549_v20, 2 }
 0x6aa   : > { %v5543_v58 = vrot.slane %v5542_v13, 1  ;;  %v5551_v3 = vmax.f32 %v5549_v20, %v5550_v12 }
 0x6ac   : > { %v5544_v9 = vmax.f32 %v5542_v13, %v5543_v58  ;;  %v5552_v52 = vrot.slane %v5551_v3, 1 }
 0x6ae   : > { %v5554_v62 = vadd.f32 %v8713_v16, %v5544_v9  ;;  %v5553_v57 = vmax.f32 %v5551_v3, %v5552_v52 }
 0x6b0   : > { %v5556_v11 = vmax.f32 %v5554_v62, 0.0  ;;  %v5555_v15 = vadd.f32 %v8713_v16, %v5553_v57 }
 0x6b2   : > { %6355 = vmatmul.mubr.msk.f32.vlgmr.msra.gmra.mrb[20].mxu1 %vm5457_vm10, %v5556_v11  ;;  %v5557_v18 = vmax.f32 %v5555_v15, 0.0 }
 0x6b3   : > { %6542 = vmatpush3.bf16.msra.mxu1 %v6541_v40  ;;  %6373 = vmatprep.mubr.msk.f32.mxu1 %vm6671_vm2, %v6654_v1  ;;  %v5984_v1 = vld [vmem:[%s8810_s7 + $0xf8] sm:$0xff] }
 0x6b4   : > { %6543 = vmatprep.subr.bf16.mxu1 %v6670_v29  ;;  %v6550_v22 = vpack.c.bf16 %v5984_v1, %v5983_v8 }
 0x6b7   : > { %6545 = vmatpush3.bf16.msra.mxu1 %v6544_v4 }
 0x6b8   : > { %6546 = vmatprep.subr.bf16.mxu1 %v6670_v29 }
 0x6bb   : > { %6548 = vmatpush3.bf16.msra.mxu1 %v6547_v30 }
 0x6bc   : > { %6549 = vmatprep.subr.bf16.mxu1 %v6670_v29  ;;  %v5891_v29 = vld [vmem:[%s8812_s9] sm:$0x1] }
 0x6bf   : > { %6551 = vmatpush3.bf16.msra.mxu1 %v6550_v22 }
 0x6c2   : > { %6374 = vmatmul.mubr.msk.f32.vlgmr.msra.gmra.mrb[20].mxu1 %vm5457_vm10, %v5557_v18 }
 0x738   : > { %v5636_v19 = vpop.f32.mrb[34].mxu0 }
 0x739   : > { %v6318_v21 = vpop.f32.mrb[35].mxu0  ;;  %v5640_v31 = vadd.f32 %v5636_v19, %v5558_v61 }
 0x795   : > { %v5885_v14 = vpop.f32.mrb[20].mxu1 }
 0x796   : > { %v6553_v2 = vadd.f32 %v5885_v14, %v5640_v31  ;;  %v6375_v7 = vpop.f32.mrb[21].mxu1 }
 0x798   : > { %v5890_v16 = vmax.f32 %v6553_v2, 0.0 }
 0x79a   : > { %v5892_v39 = vmul.f32 %v5891_v29, %v5890_v16 }
 0x79c   : > { %v5894_v25 = vsel %vm5893_vm8, %v5892_v39, 0.0 }
 0x79d   : > { %5895 = vadd.xlane.f32.xlu0 %v5894_v25 }
 0x82a   : > { %v5896_v28 = vpop.xlane.xlu0 %5895 }
 0x82b   : > { %v5898_v32 = vadd.f32 %v5897_v26, %v5896_v28 }
 0x82d   : > { %5900 = vst.msk [vmem:[%s384_s12] sm:$0x1] %vm5899_vm13, %v5898_v32 }
 0x82e PF: > { %s23_s19 = sadd.s32 1, %s6652_s19  }
 0x82f   : > { %p20_p4 = scmp.ge.s32.totalorder %s23_s19, 4  }
 0x831   :  { %22 = sbr.rel (!%p20_p4) target bundleno = 3 (0x3), region = 114 }

</bundles_post_ra>
